<compile_context>
chip_gen: v7x
topology: tpu7x:2x2x1
jax: 0.10.0
libtpu: 0.0.40
codegen_flags: <defaults>
</compile_context>

<pallas_src>
import functools

import jax
import jax.numpy as jnp
from jax import lax
from jax.experimental import pallas as pl
from jax.experimental.pallas import tpu as pltpu

E = 4  # ensemble size (4 spellers)


def speller_kernel(lf_ref, lft_ref, w_ow_ref, w_f_ref, w_h_ref, b_sum_ref,
                   wcdh_ref, wcdc_ref, bcd_ref, pred_ref, att_ref,
                   *, max_step, H, C, T):
    f32 = jnp.float32
    bf16 = jnp.bfloat16

    # Small, hoisted once (a few vregs): listener features (both layouts) + biases.
    lf = lf_ref[...]                                    # (E, T, H) bf16 (context matmul)
    lft = lft_ref[...]                                  # (E, H, T) bf16 (energy matmul)
    b_sum = b_sum_ref[...]                              # (E, 4H)   f32 (b_ih + b_hh)
    bcd = bcd_ref[...]                                  # (E, C)    f32
    iota_c = lax.broadcasted_iota(jnp.int32, (1, C), 1)

    # CreateOnehotVariable(zeros((B,1)), C) -> one-hot of class 0.
    ow0 = (iota_c == 0).astype(f32)                     # (1, C)
    feat0 = lf[:, 0, :].astype(f32)                     # (E, H)  listener_feature[:, 0, :]
    h0 = jnp.zeros((E, H), f32)
    c0 = jnp.zeros((E, H), f32)

    def body(step, carry):
        ow, feat, h, c = carry                          # (1,C), (E,H), (E,H), (E,H)

        # ---- LSTM gate pre-activations: split M=1 MXU matmuls, no concat ----
        # gates_fh depends only on the previous step's context / h_new, so in
        # the unrolled loop it overlaps the previous step's classifier /
        # softmax / argmax tail.  Only the tiny K=C one-hot matmul is on the
        # argmax-feedback chain.
        gates_fh = (
            jnp.einsum('eik,ekg->eig', feat[:, None, :].astype(bf16),
                       w_f_ref[...], preferred_element_type=f32)
            + jnp.einsum('eik,ekg->eig', h[:, None, :].astype(bf16),
                         w_h_ref[...], preferred_element_type=f32))[:, 0, :]
        gates_ow = jnp.einsum(
            'eik,ekg->eig',
            jnp.broadcast_to(ow, (E, C))[:, None, :].astype(bf16),
            w_ow_ref[...], preferred_element_type=f32)[:, 0, :]
        gates = gates_fh + gates_ow + b_sum             # (E, 4H) f32

        # Whole-vreg transcendentals once, then slice (PyTorch gate order i,f,g,o).
        sig = jax.nn.sigmoid(gates)
        tnh = jnp.tanh(gates)
        i_g = sig[:, 0:H]
        f_g = sig[:, H:2 * H]
        g_g = tnh[:, 2 * H:3 * H]
        o_g = sig[:, 3 * H:4 * H]
        c_new = f_g * c + i_g * g_g
        h_new = o_g * jnp.tanh(c_new)                   # (E, H) f32

        # ---- dot attention (MXU): energy uses the pre-transposed features ----
        energy = jnp.einsum('eih,eht->eit', h_new[:, None, :].astype(bf16),
                            lft, preferred_element_type=f32)[:, 0, :]      # (E, T)
        m = jnp.max(energy, axis=-1, keepdims=True)
        ex = jnp.exp(energy - m)
        score = ex * pl.reciprocal(jnp.sum(ex, axis=-1, keepdims=True),
                                   approx=True)                            # (E, T)
        context = jnp.einsum('eit,eth->eih', score[:, None, :].astype(bf16),
                             lf, preferred_element_type=f32)[:, 0, :]      # (E, H)

        # ---- character_distribution: two M=1 matmuls (no lane-shifted concat) ----
        logits = (
            jnp.einsum('eik,ekc->eic', h_new[:, None, :].astype(bf16),
                       wcdh_ref[...], preferred_element_type=f32)
            + jnp.einsum('eik,ekc->eic', context[:, None, :].astype(bf16),
                         wcdc_ref[...], preferred_element_type=f32))[:, 0, :] + bcd
        lm = jnp.max(logits, axis=-1, keepdims=True)
        lex = jnp.exp(logits - lm)
        # prob_e = exp(logsoftmax(logits_e)) = softmax(logits_e); exact divide
        # here so exp(raw_pred_seq) stays normalized (attention keeps approx).
        prob = lex / jnp.sum(lex, axis=-1, keepdims=True)                  # (E, C)
        avg_log = jnp.log(jnp.mean(prob, axis=0, keepdims=True))           # (1, C)

        pred_ref[pl.ds(step, 1), :] = avg_log
        att_ref[pl.ds(step, 1), :, :] = score[None]

        # ---- decode_mode == 1: feed back one-hot of the (first) argmax ----
        mmax = jnp.max(avg_log, axis=-1, keepdims=True)
        first_idx = jnp.min(jnp.where(avg_log >= mmax, iota_c, C),
                            axis=-1, keepdims=True)
        ow_next = (iota_c == first_idx).astype(f32)                        # (1, C)

        return (ow_next, context, h_new, c_new)

    # Fully serial decode chain; unroll so the scheduler can interleave
    # independent work (next step's feat/h gate matmuls) across step boundaries.
    lax.fori_loop(0, max_step, body, (ow0, feat0, h0, c0), unroll=True)


def ensemble_speller_forward(listener_features, params, *, max_step):
    """listener_features: (E, T, H) float32 stacked listener features (batch = 1)."""
    wih, whh, bih, bhh, wcd, bcd = params
    _, T, H = listener_features.shape
    C = bcd.shape[-1]

    # Host-side layout plumbing (outside the kernel):
    #  * split W_ih into its one-hot (C) and feature (H) column blocks and
    #    transpose each so 4H (=128) is the lane-dense output dim
    #  * pre-sum the two LSTM biases
    #  * split + transpose the classifier weight into its h / context halves
    #  * bf16 MXU operands, f32 everywhere else; listener features are passed
    #    both as (E, T, H) and pre-transposed (E, H, T) for the energy matmul
    w_ow = jnp.transpose(wih[:, :, 0:C], (0, 2, 1)).astype(jnp.bfloat16)      # (E, C, 4H)
    w_f = jnp.transpose(wih[:, :, C:C + H], (0, 2, 1)).astype(jnp.bfloat16)   # (E, H, 4H)
    w_h = jnp.transpose(whh, (0, 2, 1)).astype(jnp.bfloat16)                  # (E, H, 4H)
    b_sum = (bih + bhh).astype(jnp.float32)                                   # (E, 4H)
    wcd_h = jnp.transpose(wcd[:, :, 0:H], (0, 2, 1)).astype(jnp.bfloat16)     # (E, H, C)
    wcd_c = jnp.transpose(wcd[:, :, H:2 * H], (0, 2, 1)).astype(jnp.bfloat16) # (E, H, C)
    bcd = bcd.astype(jnp.float32)
    lf = listener_features.astype(jnp.bfloat16)                               # (E, T, H)
    lf_t = jnp.transpose(lf, (0, 2, 1))                                       # (E, H, T)

    vmem = pl.BlockSpec(memory_space=pltpu.MemorySpace.VMEM)
    out_shapes = (
        jax.ShapeDtypeStruct((max_step, C), jnp.float32),          # averaged log-probs
        jax.ShapeDtypeStruct((max_step, E, T), jnp.float32),       # attention scores
    )
    return pl.pallas_call(
        functools.partial(speller_kernel, max_step=max_step, H=H, C=C, T=T),
        out_shape=out_shapes,
        in_specs=[vmem] * 9,
        out_specs=(vmem, vmem),
        # Tiny footprint at these shapes (< 1 MiB); keep a modest scoped limit.
        compiler_params=pltpu.CompilerParams(vmem_limit_bytes=32 * 1024 * 1024),
    )(lf, lf_t, w_ow, w_f, w_h, b_sum, wcd_h, wcd_c, bcd)


def init_params(key, C, H):
    """Deterministic synthetic parameters matching the nn.Module shapes
    (PyTorch LSTM gate order i, f, g, o; num_layers = 1)."""
    ks = jax.random.split(key, 6)
    scale = 0.2
    wih = scale * jax.random.normal(ks[0], (E, 4 * H, C + H), jnp.float32)
    whh = scale * jax.random.normal(ks[1], (E, 4 * H, H), jnp.float32)
    bih = scale * jax.random.normal(ks[2], (E, 4 * H), jnp.float32)
    bhh = scale * jax.random.normal(ks[3], (E, 4 * H), jnp.float32)
    wcd = scale * jax.random.normal(ks[4], (E, C, 2 * H), jnp.float32)
    bcd = scale * jax.random.normal(ks[5], (E, C), jnp.float32)
    return (wih, whh, bih, bhh, wcd, bcd)


if __name__ == "__main__":
    # Small shapes consistent with the module: batch=1 (required by the
    # ensemble-averaging code), seq T=8, speller_hidden_dim H=32,
    # output_class_dim C=10, max_label_len=6, rnn_unit='LSTM', rnn_layer=1.
    T, H, C, MAX_STEP = 8, 32, 10, 6
    key = jax.random.PRNGKey(0)
    k_lf, k_p = jax.random.split(key)
    listener_features = jax.random.normal(k_lf, (E, T, H), jnp.float32)
    params = init_params(k_p, C, H)

    raw_pred_seq, attention = jax.block_until_ready(
        ensemble_speller_forward(listener_features, params, max_step=MAX_STEP))

    assert raw_pred_seq.shape == (MAX_STEP, C)
    assert attention.shape == (MAX_STEP, E, T)
    assert bool(jnp.all(jnp.isfinite(raw_pred_seq)))
    assert bool(jnp.all(jnp.isfinite(attention)))
    # log of averaged probabilities must be a (near-)normalized distribution.
    assert bool(jnp.all(jnp.abs(jnp.sum(jnp.exp(raw_pred_seq), axis=-1) - 1.0) < 1e-2))
    # attention scores are softmaxes over T (approx EUP reciprocal -> loose tol).
    assert bool(jnp.all(jnp.abs(jnp.sum(attention, axis=-1) - 1.0) < 1e-2))
    # TODO(synk): teacher-forcing / decode_mode 0 and 2 (Categorical sampling)
    # branches of the reference forward are not implemented (eval path only).
    print("KERNEL_OK")
</pallas_src>

<mosaic_0001>
module attributes {stable_mosaic.version = 11 : i64} {
  func.func @speller_kernel(%arg0: memref<4x8x32xbf16, #tpu.memory_space<vmem>>, %arg1: memref<4x32x8xbf16, #tpu.memory_space<vmem>>, %arg2: memref<4x10x128xbf16, #tpu.memory_space<vmem>>, %arg3: memref<4x32x128xbf16, #tpu.memory_space<vmem>>, %arg4: memref<4x32x128xbf16, #tpu.memory_space<vmem>>, %arg5: memref<4x128xf32, #tpu.memory_space<vmem>>, %arg6: memref<4x32x10xbf16, #tpu.memory_space<vmem>>, %arg7: memref<4x32x10xbf16, #tpu.memory_space<vmem>>, %arg8: memref<4x10xf32, #tpu.memory_space<vmem>>, %arg9: memref<6x10xf32, #tpu.memory_space<vmem>>, %arg10: memref<6x4x8xf32, #tpu.memory_space<vmem>>) attributes {dimension_semantics = [], scalar_prefetch = 0 : i64, scratch_operands = 0 : i64, tpu.core_type = #tpu.core_type<tc>} {
    %c0 = arith.constant 0 : index
    %c0_0 = arith.constant 0 : index
    %c0_1 = arith.constant 0 : index
    %0 = vector.load %arg0[%c0, %c0_0, %c0_1] : memref<4x8x32xbf16, #tpu.memory_space<vmem>>, vector<4x8x32xbf16>
    %c0_2 = arith.constant 0 : index
    %c0_3 = arith.constant 0 : index
    %c0_4 = arith.constant 0 : index
    %1 = vector.load %arg1[%c0_2, %c0_3, %c0_4] : memref<4x32x8xbf16, #tpu.memory_space<vmem>>, vector<4x32x8xbf16>
    %c0_5 = arith.constant 0 : index
    %c0_6 = arith.constant 0 : index
    %2 = vector.load %arg5[%c0_5, %c0_6] : memref<4x128xf32, #tpu.memory_space<vmem>>, vector<4x128xf32>
    %c0_7 = arith.constant 0 : index
    %c0_8 = arith.constant 0 : index
    %3 = vector.load %arg8[%c0_7, %c0_8] : memref<4x10xf32, #tpu.memory_space<vmem>>, vector<4x10xf32>
    %4 = tpu.iota {dimensions = array<i32: 1>} : vector<1x10xi32>
    %c0_i32 = arith.constant 0 : i32
    %5 = vector.broadcast %c0_i32 : i32 to vector<1x10xi32>
    %6 = arith.cmpi eq, %4, %5 : vector<1x10xi32>
    %7 = arith.extui %6 : vector<1x10xi1> to vector<1x10xi32>
    %8 = arith.sitofp %7 : vector<1x10xi32> to vector<1x10xf32>
    %9 = vector.extract_strided_slice %0 {offsets = [0, 0, 0], sizes = [4, 1, 32], strides = [1, 1, 1]} : vector<4x8x32xbf16> to vector<4x1x32xbf16>
    %10 = vector.shape_cast %9 : vector<4x1x32xbf16> to vector<4x32xbf16>
    %11 = arith.extf %10 : vector<4x32xbf16> to vector<4x32xf32>
    %cst = arith.constant 0.000000e+00 : f32
    %12 = vector.broadcast %cst : f32 to vector<4x32xf32>
    %cst_9 = arith.constant 0.000000e+00 : f32
    %13 = vector.broadcast %cst_9 : f32 to vector<4x32xf32>
    %c0_i32_10 = arith.constant 0 : i32
    %14 = vector.shape_cast %11 : vector<4x32xf32> to vector<4x1x32xf32>
    %15 = arith.truncf %14 : vector<4x1x32xf32> to vector<4x1x32xbf16>
    %c0_11 = arith.constant 0 : index
    %c0_12 = arith.constant 0 : index
    %c0_13 = arith.constant 0 : index
    %16 = vector.load %arg3[%c0_11, %c0_12, %c0_13] : memref<4x32x128xbf16, #tpu.memory_space<vmem>>, vector<4x32x128xbf16>
    "tpu.trace_start"() <{level = 10 : i32, message = "eik,ekg->eig"}> : () -> ()
    %cst_14 = arith.constant dense<0.000000e+00> : vector<4x1x128xf32>
    %17 = tpu.matmul %15, %16, %cst_14 {dimension_numbers = #tpu.dot_dimension_numbers<[2], [1], [1], [2], [0, 0, 0, 1, 1, 2], [0], [0]>} : vector<4x1x32xbf16>, vector<4x32x128xbf16>, vector<4x1x128xf32> -> vector<4x1x128xf32>
    "tpu.trace_stop"() : () -> ()
    %18 = vector.shape_cast %12 : vector<4x32xf32> to vector<4x1x32xf32>
    %19 = arith.truncf %18 : vector<4x1x32xf32> to vector<4x1x32xbf16>
    %c0_15 = arith.constant 0 : index
    %c0_16 = arith.constant 0 : index
    %c0_17 = arith.constant 0 : index
    %20 = vector.load %arg4[%c0_15, %c0_16, %c0_17] : memref<4x32x128xbf16, #tpu.memory_space<vmem>>, vector<4x32x128xbf16>
    "tpu.trace_start"() <{level = 10 : i32, message = "eik,ekg->eig"}> : () -> ()
    %cst_18 = arith.constant dense<0.000000e+00> : vector<4x1x128xf32>
    %21 = tpu.matmul %19, %20, %cst_18 {dimension_numbers = #tpu.dot_dimension_numbers<[2], [1], [1], [2], [0, 0, 0, 1, 1, 2], [0], [0]>} : vector<4x1x32xbf16>, vector<4x32x128xbf16>, vector<4x1x128xf32> -> vector<4x1x128xf32>
    "tpu.trace_stop"() : () -> ()
    %22 = arith.addf %17, %21 : vector<4x1x128xf32>
    %23 = vector.shape_cast %22 : vector<4x1x128xf32> to vector<4x128xf32>
    %24 = vector.shape_cast %8 : vector<1x10xf32> to vector<1x10xf32>
    %25 = vector.broadcast %24 : vector<1x10xf32> to vector<4x10xf32>
    %26 = vector.shape_cast %25 : vector<4x10xf32> to vector<4x1x10xf32>
    %27 = arith.truncf %26 : vector<4x1x10xf32> to vector<4x1x10xbf16>
    %c0_19 = arith.constant 0 : index
    %c0_20 = arith.constant 0 : index
    %c0_21 = arith.constant 0 : index
    %28 = vector.load %arg2[%c0_19, %c0_20, %c0_21] : memref<4x10x128xbf16, #tpu.memory_space<vmem>>, vector<4x10x128xbf16>
    "tpu.trace_start"() <{level = 10 : i32, message = "eik,ekg->eig"}> : () -> ()
    %cst_22 = arith.constant dense<0.000000e+00> : vector<4x1x128xf32>
    %29 = tpu.matmul %27, %28, %cst_22 {dimension_numbers = #tpu.dot_dimension_numbers<[2], [1], [1], [2], [0, 0, 0, 1, 1, 2], [0], [0]>} : vector<4x1x10xbf16>, vector<4x10x128xbf16>, vector<4x1x128xf32> -> vector<4x1x128xf32>
    "tpu.trace_stop"() : () -> ()
    %30 = vector.shape_cast %29 : vector<4x1x128xf32> to vector<4x128xf32>
    %31 = arith.addf %23, %30 : vector<4x128xf32>
    %32 = arith.addf %31, %2 : vector<4x128xf32>
    %33 = arith.negf %32 : vector<4x128xf32>
    %34 = math.exp %33 : vector<4x128xf32>
    %cst_23 = arith.constant 1.000000e+00 : f32
    %35 = vector.broadcast %cst_23 : f32 to vector<4x128xf32>
    %36 = arith.addf %35, %34 : vector<4x128xf32>
    %37 = arith.divf %35, %36 : vector<4x128xf32>
    %38 = math.tanh %32 : vector<4x128xf32>
    %39 = vector.extract_strided_slice %37 {offsets = [0, 0], sizes = [4, 32], strides = [1, 1]} : vector<4x128xf32> to vector<4x32xf32>
    %40 = vector.extract_strided_slice %37 {offsets = [0, 32], sizes = [4, 32], strides = [1, 1]} : vector<4x128xf32> to vector<4x32xf32>
    %41 = vector.extract_strided_slice %38 {offsets = [0, 64], sizes = [4, 32], strides = [1, 1]} : vector<4x128xf32> to vector<4x32xf32>
    %42 = vector.extract_strided_slice %37 {offsets = [0, 96], sizes = [4, 32], strides = [1, 1]} : vector<4x128xf32> to vector<4x32xf32>
    %43 = arith.mulf %40, %13 : vector<4x32xf32>
    %44 = arith.mulf %39, %41 : vector<4x32xf32>
    %45 = arith.addf %43, %44 : vector<4x32xf32>
    %46 = math.tanh %45 : vector<4x32xf32>
    %47 = arith.mulf %42, %46 : vector<4x32xf32>
    %48 = vector.shape_cast %47 : vector<4x32xf32> to vector<4x1x32xf32>
    %49 = arith.truncf %48 : vector<4x1x32xf32> to vector<4x1x32xbf16>
    "tpu.trace_start"() <{level = 10 : i32, message = "eih,eht->eit"}> : () -> ()
    %cst_24 = arith.constant dense<0.000000e+00> : vector<4x1x8xf32>
    %50 = tpu.matmul %49, %1, %cst_24 {dimension_numbers = #tpu.dot_dimension_numbers<[2], [1], [1], [2], [0, 0, 0, 1, 1, 2], [0], [0]>} : vector<4x1x32xbf16>, vector<4x32x8xbf16>, vector<4x1x8xf32> -> vector<4x1x8xf32>
    "tpu.trace_stop"() : () -> ()
    %51 = vector.shape_cast %50 : vector<4x1x8xf32> to vector<4x8xf32>
    %cst_25 = arith.constant dense<0xFF800000> : vector<4xf32>
    %52 = vector.multi_reduction <maximumf>, %51, %cst_25 [1] : vector<4x8xf32> to vector<4xf32>
    %53 = vector.shape_cast %52 : vector<4xf32> to vector<4x1xf32>
    %54 = vector.broadcast %53 : vector<4x1xf32> to vector<4x8xf32>
    %55 = arith.subf %51, %54 : vector<4x8xf32>
    %56 = math.exp %55 : vector<4x8xf32>
    %cst_26 = arith.constant dense<0.000000e+00> : vector<4xf32>
    %57 = vector.multi_reduction <add>, %56, %cst_26 [1] : vector<4x8xf32> to vector<4xf32>
    %58 = vector.shape_cast %57 : vector<4xf32> to vector<4x1xf32>
    %59 = tpu.reciprocal %58 {approx = true} : vector<4x1xf32> -> vector<4x1xf32>
    %60 = vector.broadcast %59 : vector<4x1xf32> to vector<4x8xf32>
    %61 = arith.mulf %56, %60 : vector<4x8xf32>
    %62 = vector.shape_cast %61 : vector<4x8xf32> to vector<4x1x8xf32>
    %63 = arith.truncf %62 : vector<4x1x8xf32> to vector<4x1x8xbf16>
    "tpu.trace_start"() <{level = 10 : i32, message = "eit,eth->eih"}> : () -> ()
    %cst_27 = arith.constant dense<0.000000e+00> : vector<4x1x32xf32>
    %64 = tpu.matmul %63, %0, %cst_27 {dimension_numbers = #tpu.dot_dimension_numbers<[2], [1], [1], [2], [0, 0, 0, 1, 1, 2], [0], [0]>} : vector<4x1x8xbf16>, vector<4x8x32xbf16>, vector<4x1x32xf32> -> vector<4x1x32xf32>
    "tpu.trace_stop"() : () -> ()
    %65 = vector.shape_cast %64 : vector<4x1x32xf32> to vector<4x32xf32>
    %66 = vector.shape_cast %47 : vector<4x32xf32> to vector<4x1x32xf32>
    %67 = arith.truncf %66 : vector<4x1x32xf32> to vector<4x1x32xbf16>
    %c0_28 = arith.constant 0 : index
    %c0_29 = arith.constant 0 : index
    %c0_30 = arith.constant 0 : index
    %68 = vector.load %arg6[%c0_28, %c0_29, %c0_30] : memref<4x32x10xbf16, #tpu.memory_space<vmem>>, vector<4x32x10xbf16>
    "tpu.trace_start"() <{level = 10 : i32, message = "eik,ekc->eic"}> : () -> ()
    %cst_31 = arith.constant dense<0.000000e+00> : vector<4x1x10xf32>
    %69 = tpu.matmul %67, %68, %cst_31 {dimension_numbers = #tpu.dot_dimension_numbers<[2], [1], [1], [2], [0, 0, 0, 1, 1, 2], [0], [0]>} : vector<4x1x32xbf16>, vector<4x32x10xbf16>, vector<4x1x10xf32> -> vector<4x1x10xf32>
    "tpu.trace_stop"() : () -> ()
    %70 = vector.shape_cast %65 : vector<4x32xf32> to vector<4x1x32xf32>
    %71 = arith.truncf %70 : vector<4x1x32xf32> to vector<4x1x32xbf16>
    %c0_32 = arith.constant 0 : index
    %c0_33 = arith.constant 0 : index
    %c0_34 = arith.constant 0 : index
    %72 = vector.load %arg7[%c0_32, %c0_33, %c0_34] : memref<4x32x10xbf16, #tpu.memory_space<vmem>>, vector<4x32x10xbf16>
    "tpu.trace_start"() <{level = 10 : i32, message = "eik,ekc->eic"}> : () -> ()
    %cst_35 = arith.constant dense<0.000000e+00> : vector<4x1x10xf32>
    %73 = tpu.matmul %71, %72, %cst_35 {dimension_numbers = #tpu.dot_dimension_numbers<[2], [1], [1], [2], [0, 0, 0, 1, 1, 2], [0], [0]>} : vector<4x1x32xbf16>, vector<4x32x10xbf16>, vector<4x1x10xf32> -> vector<4x1x10xf32>
    "tpu.trace_stop"() : () -> ()
    %74 = arith.addf %69, %73 : vector<4x1x10xf32>
    %75 = vector.shape_cast %74 : vector<4x1x10xf32> to vector<4x10xf32>
    %76 = arith.addf %75, %3 : vector<4x10xf32>
    %cst_36 = arith.constant dense<0xFF800000> : vector<4xf32>
    %77 = vector.multi_reduction <maximumf>, %76, %cst_36 [1] : vector<4x10xf32> to vector<4xf32>
    %78 = vector.shape_cast %77 : vector<4xf32> to vector<4x1xf32>
    %79 = vector.broadcast %78 : vector<4x1xf32> to vector<4x10xf32>
    %80 = arith.subf %76, %79 : vector<4x10xf32>
    %81 = math.exp %80 : vector<4x10xf32>
    %cst_37 = arith.constant dense<0.000000e+00> : vector<4xf32>
    %82 = vector.multi_reduction <add>, %81, %cst_37 [1] : vector<4x10xf32> to vector<4xf32>
    %83 = vector.shape_cast %82 : vector<4xf32> to vector<4x1xf32>
    %84 = vector.broadcast %83 : vector<4x1xf32> to vector<4x10xf32>
    %85 = arith.divf %81, %84 : vector<4x10xf32>
    %cst_38 = arith.constant dense<0.000000e+00> : vector<10xf32>
    %86 = vector.multi_reduction <add>, %85, %cst_38 [0] : vector<4x10xf32> to vector<10xf32>
    %87 = vector.shape_cast %86 : vector<10xf32> to vector<1x10xf32>
    %cst_39 = arith.constant 4.000000e+00 : f32
    %88 = vector.broadcast %cst_39 : f32 to vector<1x10xf32>
    %89 = arith.divf %87, %88 : vector<1x10xf32>
    %90 = math.log %89 : vector<1x10xf32>
    %91 = arith.index_cast %c0_i32_10 : i32 to index
    %c0_40 = arith.constant 0 : index
    %92 = vector.load %arg9[%91, %c0_40] : memref<6x10xf32, #tpu.memory_space<vmem>>, vector<1x10xf32>
    tpu.vector_store %arg9[%91, %c0_40], %90 {strides = array<i32>} : memref<6x10xf32, #tpu.memory_space<vmem>>, vector<1x10xf32>,
    %93 = vector.shape_cast %61 : vector<4x8xf32> to vector<1x4x8xf32>
    %94 = arith.index_cast %c0_i32_10 : i32 to index
    %c0_41 = arith.constant 0 : index
    %c0_42 = arith.constant 0 : index
    %95 = vector.load %arg10[%94, %c0_41, %c0_42] : memref<6x4x8xf32, #tpu.memory_space<vmem>>, vector<1x4x8xf32>
    tpu.vector_store %arg10[%94, %c0_41, %c0_42], %93 {strides = array<i32>} : memref<6x4x8xf32, #tpu.memory_space<vmem>>, vector<1x4x8xf32>,
    %cst_43 = arith.constant dense<0xFF800000> : vector<1xf32>
    %96 = vector.multi_reduction <maximumf>, %90, %cst_43 [1] : vector<1x10xf32> to vector<1xf32>
    %97 = vector.shape_cast %96 : vector<1xf32> to vector<1x1xf32>
    %98 = vector.broadcast %97 : vector<1x1xf32> to vector<1x10xf32>
    %99 = arith.cmpf oge, %90, %98 : vector<1x10xf32>
    %c10_i32 = arith.constant 10 : i32
    %100 = vector.broadcast %c10_i32 : i32 to vector<1x10xi32>
    %101 = arith.select %99, %4, %100 : vector<1x10xi1>, vector<1x10xi32>
    %cst_44 = arith.constant dense<2147483647> : vector<1xi32>
    %102 = vector.multi_reduction <minsi>, %101, %cst_44 [1] : vector<1x10xi32> to vector<1xi32>
    %103 = vector.shape_cast %102 : vector<1xi32> to vector<1x1xi32>
    %104 = vector.broadcast %103 : vector<1x1xi32> to vector<1x10xi32>
    %105 = arith.cmpi eq, %4, %104 : vector<1x10xi32>
    %106 = arith.extui %105 : vector<1x10xi1> to vector<1x10xi32>
    %107 = arith.sitofp %106 : vector<1x10xi32> to vector<1x10xf32>
    %c1_i32 = arith.constant 1 : i32
    %108 = vector.shape_cast %65 : vector<4x32xf32> to vector<4x1x32xf32>
    %109 = arith.truncf %108 : vector<4x1x32xf32> to vector<4x1x32xbf16>
    %c0_45 = arith.constant 0 : index
    %c0_46 = arith.constant 0 : index
    %c0_47 = arith.constant 0 : index
    %110 = vector.load %arg3[%c0_45, %c0_46, %c0_47] : memref<4x32x128xbf16, #tpu.memory_space<vmem>>, vector<4x32x128xbf16>
    "tpu.trace_start"() <{level = 10 : i32, message = "eik,ekg->eig"}> : () -> ()
    %cst_48 = arith.constant dense<0.000000e+00> : vector<4x1x128xf32>
    %111 = tpu.matmul %109, %110, %cst_48 {dimension_numbers = #tpu.dot_dimension_numbers<[2], [1], [1], [2], [0, 0, 0, 1, 1, 2], [0], [0]>} : vector<4x1x32xbf16>, vector<4x32x128xbf16>, vector<4x1x128xf32> -> vector<4x1x128xf32>
    "tpu.trace_stop"() : () -> ()
    %112 = vector.shape_cast %47 : vector<4x32xf32> to vector<4x1x32xf32>
    %113 = arith.truncf %112 : vector<4x1x32xf32> to vector<4x1x32xbf16>
    %c0_49 = arith.constant 0 : index
    %c0_50 = arith.constant 0 : index
    %c0_51 = arith.constant 0 : index
    %114 = vector.load %arg4[%c0_49, %c0_50, %c0_51] : memref<4x32x128xbf16, #tpu.memory_space<vmem>>, vector<4x32x128xbf16>
    "tpu.trace_start"() <{level = 10 : i32, message = "eik,ekg->eig"}> : () -> ()
    %cst_52 = arith.constant dense<0.000000e+00> : vector<4x1x128xf32>
    %115 = tpu.matmul %113, %114, %cst_52 {dimension_numbers = #tpu.dot_dimension_numbers<[2], [1], [1], [2], [0, 0, 0, 1, 1, 2], [0], [0]>} : vector<4x1x32xbf16>, vector<4x32x128xbf16>, vector<4x1x128xf32> -> vector<4x1x128xf32>
    "tpu.trace_stop"() : () -> ()
    %116 = arith.addf %111, %115 : vector<4x1x128xf32>
    %117 = vector.shape_cast %116 : vector<4x1x128xf32> to vector<4x128xf32>
    %118 = vector.shape_cast %107 : vector<1x10xf32> to vector<1x10xf32>
    %119 = vector.broadcast %118 : vector<1x10xf32> to vector<4x10xf32>
    %120 = vector.shape_cast %119 : vector<4x10xf32> to vector<4x1x10xf32>
    %121 = arith.truncf %120 : vector<4x1x10xf32> to vector<4x1x10xbf16>
    %c0_53 = arith.constant 0 : index
    %c0_54 = arith.constant 0 : index
    %c0_55 = arith.constant 0 : index
    %122 = vector.load %arg2[%c0_53, %c0_54, %c0_55] : memref<4x10x128xbf16, #tpu.memory_space<vmem>>, vector<4x10x128xbf16>
    "tpu.trace_start"() <{level = 10 : i32, message = "eik,ekg->eig"}> : () -> ()
    %cst_56 = arith.constant dense<0.000000e+00> : vector<4x1x128xf32>
    %123 = tpu.matmul %121, %122, %cst_56 {dimension_numbers = #tpu.dot_dimension_numbers<[2], [1], [1], [2], [0, 0, 0, 1, 1, 2], [0], [0]>} : vector<4x1x10xbf16>, vector<4x10x128xbf16>, vector<4x1x128xf32> -> vector<4x1x128xf32>
    "tpu.trace_stop"() : () -> ()
    %124 = vector.shape_cast %123 : vector<4x1x128xf32> to vector<4x128xf32>
    %125 = arith.addf %117, %124 : vector<4x128xf32>
    %126 = arith.addf %125, %2 : vector<4x128xf32>
    %127 = arith.negf %126 : vector<4x128xf32>
    %128 = math.exp %127 : vector<4x128xf32>
    %cst_57 = arith.constant 1.000000e+00 : f32
    %129 = vector.broadcast %cst_57 : f32 to vector<4x128xf32>
    %130 = arith.addf %129, %128 : vector<4x128xf32>
    %131 = arith.divf %129, %130 : vector<4x128xf32>
    %132 = math.tanh %126 : vector<4x128xf32>
    %133 = vector.extract_strided_slice %131 {offsets = [0, 0], sizes = [4, 32], strides = [1, 1]} : vector<4x128xf32> to vector<4x32xf32>
    %134 = vector.extract_strided_slice %131 {offsets = [0, 32], sizes = [4, 32], strides = [1, 1]} : vector<4x128xf32> to vector<4x32xf32>
    %135 = vector.extract_strided_slice %132 {offsets = [0, 64], sizes = [4, 32], strides = [1, 1]} : vector<4x128xf32> to vector<4x32xf32>
    %136 = vector.extract_strided_slice %131 {offsets = [0, 96], sizes = [4, 32], strides = [1, 1]} : vector<4x128xf32> to vector<4x32xf32>
    %137 = arith.mulf %134, %45 : vector<4x32xf32>
    %138 = arith.mulf %133, %135 : vector<4x32xf32>
    %139 = arith.addf %137, %138 : vector<4x32xf32>
    %140 = math.tanh %139 : vector<4x32xf32>
    %141 = arith.mulf %136, %140 : vector<4x32xf32>
    %142 = vector.shape_cast %141 : vector<4x32xf32> to vector<4x1x32xf32>
    %143 = arith.truncf %142 : vector<4x1x32xf32> to vector<4x1x32xbf16>
    "tpu.trace_start"() <{level = 10 : i32, message = "eih,eht->eit"}> : () -> ()
    %cst_58 = arith.constant dense<0.000000e+00> : vector<4x1x8xf32>
    %144 = tpu.matmul %143, %1, %cst_58 {dimension_numbers = #tpu.dot_dimension_numbers<[2], [1], [1], [2], [0, 0, 0, 1, 1, 2], [0], [0]>} : vector<4x1x32xbf16>, vector<4x32x8xbf16>, vector<4x1x8xf32> -> vector<4x1x8xf32>
    "tpu.trace_stop"() : () -> ()
    %145 = vector.shape_cast %144 : vector<4x1x8xf32> to vector<4x8xf32>
    %cst_59 = arith.constant dense<0xFF800000> : vector<4xf32>
    %146 = vector.multi_reduction <maximumf>, %145, %cst_59 [1] : vector<4x8xf32> to vector<4xf32>
    %147 = vector.shape_cast %146 : vector<4xf32> to vector<4x1xf32>
    %148 = vector.broadcast %147 : vector<4x1xf32> to vector<4x8xf32>
    %149 = arith.subf %145, %148 : vector<4x8xf32>
    %150 = math.exp %149 : vector<4x8xf32>
    %cst_60 = arith.constant dense<0.000000e+00> : vector<4xf32>
    %151 = vector.multi_reduction <add>, %150, %cst_60 [1] : vector<4x8xf32> to vector<4xf32>
    %152 = vector.shape_cast %151 : vector<4xf32> to vector<4x1xf32>
    %153 = tpu.reciprocal %152 {approx = true} : vector<4x1xf32> -> vector<4x1xf32>
    %154 = vector.broadcast %153 : vector<4x1xf32> to vector<4x8xf32>
    %155 = arith.mulf %150, %154 : vector<4x8xf32>
    %156 = vector.shape_cast %155 : vector<4x8xf32> to vector<4x1x8xf32>
    %157 = arith.truncf %156 : vector<4x1x8xf32> to vector<4x1x8xbf16>
    "tpu.trace_start"() <{level = 10 : i32, message = "eit,eth->eih"}> : () -> ()
    %cst_61 = arith.constant dense<0.000000e+00> : vector<4x1x32xf32>
    %158 = tpu.matmul %157, %0, %cst_61 {dimension_numbers = #tpu.dot_dimension_numbers<[2], [1], [1], [2], [0, 0, 0, 1, 1, 2], [0], [0]>} : vector<4x1x8xbf16>, vector<4x8x32xbf16>, vector<4x1x32xf32> -> vector<4x1x32xf32>
    "tpu.trace_stop"() : () -> ()
    %159 = vector.shape_cast %158 : vector<4x1x32xf32> to vector<4x32xf32>
    %160 = vector.shape_cast %141 : vector<4x32xf32> to vector<4x1x32xf32>
    %161 = arith.truncf %160 : vector<4x1x32xf32> to vector<4x1x32xbf16>
    %c0_62 = arith.constant 0 : index
    %c0_63 = arith.constant 0 : index
    %c0_64 = arith.constant 0 : index
    %162 = vector.load %arg6[%c0_62, %c0_63, %c0_64] : memref<4x32x10xbf16, #tpu.memory_space<vmem>>, vector<4x32x10xbf16>
    "tpu.trace_start"() <{level = 10 : i32, message = "eik,ekc->eic"}> : () -> ()
    %cst_65 = arith.constant dense<0.000000e+00> : vector<4x1x10xf32>
    %163 = tpu.matmul %161, %162, %cst_65 {dimension_numbers = #tpu.dot_dimension_numbers<[2], [1], [1], [2], [0, 0, 0, 1, 1, 2], [0], [0]>} : vector<4x1x32xbf16>, vector<4x32x10xbf16>, vector<4x1x10xf32> -> vector<4x1x10xf32>
    "tpu.trace_stop"() : () -> ()
    %164 = vector.shape_cast %159 : vector<4x32xf32> to vector<4x1x32xf32>
    %165 = arith.truncf %164 : vector<4x1x32xf32> to vector<4x1x32xbf16>
    %c0_66 = arith.constant 0 : index
    %c0_67 = arith.constant 0 : index
    %c0_68 = arith.constant 0 : index
    %166 = vector.load %arg7[%c0_66, %c0_67, %c0_68] : memref<4x32x10xbf16, #tpu.memory_space<vmem>>, vector<4x32x10xbf16>
    "tpu.trace_start"() <{level = 10 : i32, message = "eik,ekc->eic"}> : () -> ()
    %cst_69 = arith.constant dense<0.000000e+00> : vector<4x1x10xf32>
    %167 = tpu.matmul %165, %166, %cst_69 {dimension_numbers = #tpu.dot_dimension_numbers<[2], [1], [1], [2], [0, 0, 0, 1, 1, 2], [0], [0]>} : vector<4x1x32xbf16>, vector<4x32x10xbf16>, vector<4x1x10xf32> -> vector<4x1x10xf32>
    "tpu.trace_stop"() : () -> ()
    %168 = arith.addf %163, %167 : vector<4x1x10xf32>
    %169 = vector.shape_cast %168 : vector<4x1x10xf32> to vector<4x10xf32>
    %170 = arith.addf %169, %3 : vector<4x10xf32>
    %cst_70 = arith.constant dense<0xFF800000> : vector<4xf32>
    %171 = vector.multi_reduction <maximumf>, %170, %cst_70 [1] : vector<4x10xf32> to vector<4xf32>
    %172 = vector.shape_cast %171 : vector<4xf32> to vector<4x1xf32>
    %173 = vector.broadcast %172 : vector<4x1xf32> to vector<4x10xf32>
    %174 = arith.subf %170, %173 : vector<4x10xf32>
    %175 = math.exp %174 : vector<4x10xf32>
    %cst_71 = arith.constant dense<0.000000e+00> : vector<4xf32>
    %176 = vector.multi_reduction <add>, %175, %cst_71 [1] : vector<4x10xf32> to vector<4xf32>
    %177 = vector.shape_cast %176 : vector<4xf32> to vector<4x1xf32>
    %178 = vector.broadcast %177 : vector<4x1xf32> to vector<4x10xf32>
    %179 = arith.divf %175, %178 : vector<4x10xf32>
    %cst_72 = arith.constant dense<0.000000e+00> : vector<10xf32>
    %180 = vector.multi_reduction <add>, %179, %cst_72 [0] : vector<4x10xf32> to vector<10xf32>
    %181 = vector.shape_cast %180 : vector<10xf32> to vector<1x10xf32>
    %cst_73 = arith.constant 4.000000e+00 : f32
    %182 = vector.broadcast %cst_73 : f32 to vector<1x10xf32>
    %183 = arith.divf %181, %182 : vector<1x10xf32>
    %184 = math.log %183 : vector<1x10xf32>
    %185 = arith.index_cast %c1_i32 : i32 to index
    %c0_74 = arith.constant 0 : index
    %186 = vector.load %arg9[%185, %c0_74] : memref<6x10xf32, #tpu.memory_space<vmem>>, vector<1x10xf32>
    tpu.vector_store %arg9[%185, %c0_74], %184 {strides = array<i32>} : memref<6x10xf32, #tpu.memory_space<vmem>>, vector<1x10xf32>,
    %187 = vector.shape_cast %155 : vector<4x8xf32> to vector<1x4x8xf32>
    %188 = arith.index_cast %c1_i32 : i32 to index
    %c0_75 = arith.constant 0 : index
    %c0_76 = arith.constant 0 : index
    %189 = vector.load %arg10[%188, %c0_75, %c0_76] : memref<6x4x8xf32, #tpu.memory_space<vmem>>, vector<1x4x8xf32>
    tpu.vector_store %arg10[%188, %c0_75, %c0_76], %187 {strides = array<i32>} : memref<6x4x8xf32, #tpu.memory_space<vmem>>, vector<1x4x8xf32>,
    %cst_77 = arith.constant dense<0xFF800000> : vector<1xf32>
    %190 = vector.multi_reduction <maximumf>, %184, %cst_77 [1] : vector<1x10xf32> to vector<1xf32>
    %191 = vector.shape_cast %190 : vector<1xf32> to vector<1x1xf32>
    %192 = vector.broadcast %191 : vector<1x1xf32> to vector<1x10xf32>
    %193 = arith.cmpf oge, %184, %192 : vector<1x10xf32>
    %c10_i32_78 = arith.constant 10 : i32
    %194 = vector.broadcast %c10_i32_78 : i32 to vector<1x10xi32>
    %195 = arith.select %193, %4, %194 : vector<1x10xi1>, vector<1x10xi32>
    %cst_79 = arith.constant dense<2147483647> : vector<1xi32>
    %196 = vector.multi_reduction <minsi>, %195, %cst_79 [1] : vector<1x10xi32> to vector<1xi32>
    %197 = vector.shape_cast %196 : vector<1xi32> to vector<1x1xi32>
    %198 = vector.broadcast %197 : vector<1x1xi32> to vector<1x10xi32>
    %199 = arith.cmpi eq, %4, %198 : vector<1x10xi32>
    %200 = arith.extui %199 : vector<1x10xi1> to vector<1x10xi32>
    %201 = arith.sitofp %200 : vector<1x10xi32> to vector<1x10xf32>
    %c2_i32 = arith.constant 2 : i32
    %202 = vector.shape_cast %159 : vector<4x32xf32> to vector<4x1x32xf32>
    %203 = arith.truncf %202 : vector<4x1x32xf32> to vector<4x1x32xbf16>
    %c0_80 = arith.constant 0 : index
    %c0_81 = arith.constant 0 : index
    %c0_82 = arith.constant 0 : index
    %204 = vector.load %arg3[%c0_80, %c0_81, %c0_82] : memref<4x32x128xbf16, #tpu.memory_space<vmem>>, vector<4x32x128xbf16>
    "tpu.trace_start"() <{level = 10 : i32, message = "eik,ekg->eig"}> : () -> ()
    %cst_83 = arith.constant dense<0.000000e+00> : vector<4x1x128xf32>
    %205 = tpu.matmul %203, %204, %cst_83 {dimension_numbers = #tpu.dot_dimension_numbers<[2], [1], [1], [2], [0, 0, 0, 1, 1, 2], [0], [0]>} : vector<4x1x32xbf16>, vector<4x32x128xbf16>, vector<4x1x128xf32> -> vector<4x1x128xf32>
    "tpu.trace_stop"() : () -> ()
    %206 = vector.shape_cast %141 : vector<4x32xf32> to vector<4x1x32xf32>
    %207 = arith.truncf %206 : vector<4x1x32xf32> to vector<4x1x32xbf16>
    %c0_84 = arith.constant 0 : index
    %c0_85 = arith.constant 0 : index
    %c0_86 = arith.constant 0 : index
    %208 = vector.load %arg4[%c0_84, %c0_85, %c0_86] : memref<4x32x128xbf16, #tpu.memory_space<vmem>>, vector<4x32x128xbf16>
    "tpu.trace_start"() <{level = 10 : i32, message = "eik,ekg->eig"}> : () -> ()
    %cst_87 = arith.constant dense<0.000000e+00> : vector<4x1x128xf32>
    %209 = tpu.matmul %207, %208, %cst_87 {dimension_numbers = #tpu.dot_dimension_numbers<[2], [1], [1], [2], [0, 0, 0, 1, 1, 2], [0], [0]>} : vector<4x1x32xbf16>, vector<4x32x128xbf16>, vector<4x1x128xf32> -> vector<4x1x128xf32>
    "tpu.trace_stop"() : () -> ()
    %210 = arith.addf %205, %209 : vector<4x1x128xf32>
    %211 = vector.shape_cast %210 : vector<4x1x128xf32> to vector<4x128xf32>
    %212 = vector.shape_cast %201 : vector<1x10xf32> to vector<1x10xf32>
    %213 = vector.broadcast %212 : vector<1x10xf32> to vector<4x10xf32>
    %214 = vector.shape_cast %213 : vector<4x10xf32> to vector<4x1x10xf32>
    %215 = arith.truncf %214 : vector<4x1x10xf32> to vector<4x1x10xbf16>
    %c0_88 = arith.constant 0 : index
    %c0_89 = arith.constant 0 : index
    %c0_90 = arith.constant 0 : index
    %216 = vector.load %arg2[%c0_88, %c0_89, %c0_90] : memref<4x10x128xbf16, #tpu.memory_space<vmem>>, vector<4x10x128xbf16>
    "tpu.trace_start"() <{level = 10 : i32, message = "eik,ekg->eig"}> : () -> ()
    %cst_91 = arith.constant dense<0.000000e+00> : vector<4x1x128xf32>
    %217 = tpu.matmul %215, %216, %cst_91 {dimension_numbers = #tpu.dot_dimension_numbers<[2], [1], [1], [2], [0, 0, 0, 1, 1, 2], [0], [0]>} : vector<4x1x10xbf16>, vector<4x10x128xbf16>, vector<4x1x128xf32> -> vector<4x1x128xf32>
    "tpu.trace_stop"() : () -> ()
    %218 = vector.shape_cast %217 : vector<4x1x128xf32> to vector<4x128xf32>
    %219 = arith.addf %211, %218 : vector<4x128xf32>
    %220 = arith.addf %219, %2 : vector<4x128xf32>
    %221 = arith.negf %220 : vector<4x128xf32>
    %222 = math.exp %221 : vector<4x128xf32>
    %cst_92 = arith.constant 1.000000e+00 : f32
    %223 = vector.broadcast %cst_92 : f32 to vector<4x128xf32>
    %224 = arith.addf %223, %222 : vector<4x128xf32>
    %225 = arith.divf %223, %224 : vector<4x128xf32>
    %226 = math.tanh %220 : vector<4x128xf32>
    %227 = vector.extract_strided_slice %225 {offsets = [0, 0], sizes = [4, 32], strides = [1, 1]} : vector<4x128xf32> to vector<4x32xf32>
    %228 = vector.extract_strided_slice %225 {offsets = [0, 32], sizes = [4, 32], strides = [1, 1]} : vector<4x128xf32> to vector<4x32xf32>
    %229 = vector.extract_strided_slice %226 {offsets = [0, 64], sizes = [4, 32], strides = [1, 1]} : vector<4x128xf32> to vector<4x32xf32>
    %230 = vector.extract_strided_slice %225 {offsets = [0, 96], sizes = [4, 32], strides = [1, 1]} : vector<4x128xf32> to vector<4x32xf32>
    %231 = arith.mulf %228, %139 : vector<4x32xf32>
    %232 = arith.mulf %227, %229 : vector<4x32xf32>
    %233 = arith.addf %231, %232 : vector<4x32xf32>
    %234 = math.tanh %233 : vector<4x32xf32>
    %235 = arith.mulf %230, %234 : vector<4x32xf32>
    %236 = vector.shape_cast %235 : vector<4x32xf32> to vector<4x1x32xf32>
    %237 = arith.truncf %236 : vector<4x1x32xf32> to vector<4x1x32xbf16>
    "tpu.trace_start"() <{level = 10 : i32, message = "eih,eht->eit"}> : () -> ()
    %cst_93 = arith.constant dense<0.000000e+00> : vector<4x1x8xf32>
    %238 = tpu.matmul %237, %1, %cst_93 {dimension_numbers = #tpu.dot_dimension_numbers<[2], [1], [1], [2], [0, 0, 0, 1, 1, 2], [0], [0]>} : vector<4x1x32xbf16>, vector<4x32x8xbf16>, vector<4x1x8xf32> -> vector<4x1x8xf32>
    "tpu.trace_stop"() : () -> ()
    %239 = vector.shape_cast %238 : vector<4x1x8xf32> to vector<4x8xf32>
    %cst_94 = arith.constant dense<0xFF800000> : vector<4xf32>
    %240 = vector.multi_reduction <maximumf>, %239, %cst_94 [1] : vector<4x8xf32> to vector<4xf32>
    %241 = vector.shape_cast %240 : vector<4xf32> to vector<4x1xf32>
    %242 = vector.broadcast %241 : vector<4x1xf32> to vector<4x8xf32>
    %243 = arith.subf %239, %242 : vector<4x8xf32>
    %244 = math.exp %243 : vector<4x8xf32>
    %cst_95 = arith.constant dense<0.000000e+00> : vector<4xf32>
    %245 = vector.multi_reduction <add>, %244, %cst_95 [1] : vector<4x8xf32> to vector<4xf32>
    %246 = vector.shape_cast %245 : vector<4xf32> to vector<4x1xf32>
    %247 = tpu.reciprocal %246 {approx = true} : vector<4x1xf32> -> vector<4x1xf32>
    %248 = vector.broadcast %247 : vector<4x1xf32> to vector<4x8xf32>
    %249 = arith.mulf %244, %248 : vector<4x8xf32>
    %250 = vector.shape_cast %249 : vector<4x8xf32> to vector<4x1x8xf32>
    %251 = arith.truncf %250 : vector<4x1x8xf32> to vector<4x1x8xbf16>
    "tpu.trace_start"() <{level = 10 : i32, message = "eit,eth->eih"}> : () -> ()
    %cst_96 = arith.constant dense<0.000000e+00> : vector<4x1x32xf32>
    %252 = tpu.matmul %251, %0, %cst_96 {dimension_numbers = #tpu.dot_dimension_numbers<[2], [1], [1], [2], [0, 0, 0, 1, 1, 2], [0], [0]>} : vector<4x1x8xbf16>, vector<4x8x32xbf16>, vector<4x1x32xf32> -> vector<4x1x32xf32>
    "tpu.trace_stop"() : () -> ()
    %253 = vector.shape_cast %252 : vector<4x1x32xf32> to vector<4x32xf32>
    %254 = vector.shape_cast %235 : vector<4x32xf32> to vector<4x1x32xf32>
    %255 = arith.truncf %254 : vector<4x1x32xf32> to vector<4x1x32xbf16>
    %c0_97 = arith.constant 0 : index
    %c0_98 = arith.constant 0 : index
    %c0_99 = arith.constant 0 : index
    %256 = vector.load %arg6[%c0_97, %c0_98, %c0_99] : memref<4x32x10xbf16, #tpu.memory_space<vmem>>, vector<4x32x10xbf16>
    "tpu.trace_start"() <{level = 10 : i32, message = "eik,ekc->eic"}> : () -> ()
    %cst_100 = arith.constant dense<0.000000e+00> : vector<4x1x10xf32>
    %257 = tpu.matmul %255, %256, %cst_100 {dimension_numbers = #tpu.dot_dimension_numbers<[2], [1], [1], [2], [0, 0, 0, 1, 1, 2], [0], [0]>} : vector<4x1x32xbf16>, vector<4x32x10xbf16>, vector<4x1x10xf32> -> vector<4x1x10xf32>
    "tpu.trace_stop"() : () -> ()
    %258 = vector.shape_cast %253 : vector<4x32xf32> to vector<4x1x32xf32>
    %259 = arith.truncf %258 : vector<4x1x32xf32> to vector<4x1x32xbf16>
    %c0_101 = arith.constant 0 : index
    %c0_102 = arith.constant 0 : index
    %c0_103 = arith.constant 0 : index
    %260 = vector.load %arg7[%c0_101, %c0_102, %c0_103] : memref<4x32x10xbf16, #tpu.memory_space<vmem>>, vector<4x32x10xbf16>
    "tpu.trace_start"() <{level = 10 : i32, message = "eik,ekc->eic"}> : () -> ()
    %cst_104 = arith.constant dense<0.000000e+00> : vector<4x1x10xf32>
    %261 = tpu.matmul %259, %260, %cst_104 {dimension_numbers = #tpu.dot_dimension_numbers<[2], [1], [1], [2], [0, 0, 0, 1, 1, 2], [0], [0]>} : vector<4x1x32xbf16>, vector<4x32x10xbf16>, vector<4x1x10xf32> -> vector<4x1x10xf32>
    "tpu.trace_stop"() : () -> ()
    %262 = arith.addf %257, %261 : vector<4x1x10xf32>
    %263 = vector.shape_cast %262 : vector<4x1x10xf32> to vector<4x10xf32>
    %264 = arith.addf %263, %3 : vector<4x10xf32>
    %cst_105 = arith.constant dense<0xFF800000> : vector<4xf32>
    %265 = vector.multi_reduction <maximumf>, %264, %cst_105 [1] : vector<4x10xf32> to vector<4xf32>
    %266 = vector.shape_cast %265 : vector<4xf32> to vector<4x1xf32>
    %267 = vector.broadcast %266 : vector<4x1xf32> to vector<4x10xf32>
    %268 = arith.subf %264, %267 : vector<4x10xf32>
    %269 = math.exp %268 : vector<4x10xf32>
    %cst_106 = arith.constant dense<0.000000e+00> : vector<4xf32>
    %270 = vector.multi_reduction <add>, %269, %cst_106 [1] : vector<4x10xf32> to vector<4xf32>
    %271 = vector.shape_cast %270 : vector<4xf32> to vector<4x1xf32>
    %272 = vector.broadcast %271 : vector<4x1xf32> to vector<4x10xf32>
    %273 = arith.divf %269, %272 : vector<4x10xf32>
    %cst_107 = arith.constant dense<0.000000e+00> : vector<10xf32>
    %274 = vector.multi_reduction <add>, %273, %cst_107 [0] : vector<4x10xf32> to vector<10xf32>
    %275 = vector.shape_cast %274 : vector<10xf32> to vector<1x10xf32>
    %cst_108 = arith.constant 4.000000e+00 : f32
    %276 = vector.broadcast %cst_108 : f32 to vector<1x10xf32>
    %277 = arith.divf %275, %276 : vector<1x10xf32>
    %278 = math.log %277 : vector<1x10xf32>
    %279 = arith.index_cast %c2_i32 : i32 to index
    %c0_109 = arith.constant 0 : index
    %280 = vector.load %arg9[%279, %c0_109] : memref<6x10xf32, #tpu.memory_space<vmem>>, vector<1x10xf32>
    tpu.vector_store %arg9[%279, %c0_109], %278 {strides = array<i32>} : memref<6x10xf32, #tpu.memory_space<vmem>>, vector<1x10xf32>,
    %281 = vector.shape_cast %249 : vector<4x8xf32> to vector<1x4x8xf32>
    %282 = arith.index_cast %c2_i32 : i32 to index
    %c0_110 = arith.constant 0 : index
    %c0_111 = arith.constant 0 : index
    %283 = vector.load %arg10[%282, %c0_110, %c0_111] : memref<6x4x8xf32, #tpu.memory_space<vmem>>, vector<1x4x8xf32>
    tpu.vector_store %arg10[%282, %c0_110, %c0_111], %281 {strides = array<i32>} : memref<6x4x8xf32, #tpu.memory_space<vmem>>, vector<1x4x8xf32>,
    %cst_112 = arith.constant dense<0xFF800000> : vector<1xf32>
    %284 = vector.multi_reduction <maximumf>, %278, %cst_112 [1] : vector<1x10xf32> to vector<1xf32>
    %285 = vector.shape_cast %284 : vector<1xf32> to vector<1x1xf32>
    %286 = vector.broadcast %285 : vector<1x1xf32> to vector<1x10xf32>
    %287 = arith.cmpf oge, %278, %286 : vector<1x10xf32>
    %c10_i32_113 = arith.constant 10 : i32
    %288 = vector.broadcast %c10_i32_113 : i32 to vector<1x10xi32>
    %289 = arith.select %287, %4, %288 : vector<1x10xi1>, vector<1x10xi32>
    %cst_114 = arith.constant dense<2147483647> : vector<1xi32>
    %290 = vector.multi_reduction <minsi>, %289, %cst_114 [1] : vector<1x10xi32> to vector<1xi32>
    %291 = vector.shape_cast %290 : vector<1xi32> to vector<1x1xi32>
    %292 = vector.broadcast %291 : vector<1x1xi32> to vector<1x10xi32>
    %293 = arith.cmpi eq, %4, %292 : vector<1x10xi32>
    %294 = arith.extui %293 : vector<1x10xi1> to vector<1x10xi32>
    %295 = arith.sitofp %294 : vector<1x10xi32> to vector<1x10xf32>
    %c3_i32 = arith.constant 3 : i32
    %296 = vector.shape_cast %253 : vector<4x32xf32> to vector<4x1x32xf32>
    %297 = arith.truncf %296 : vector<4x1x32xf32> to vector<4x1x32xbf16>
    %c0_115 = arith.constant 0 : index
    %c0_116 = arith.constant 0 : index
    %c0_117 = arith.constant 0 : index
    %298 = vector.load %arg3[%c0_115, %c0_116, %c0_117] : memref<4x32x128xbf16, #tpu.memory_space<vmem>>, vector<4x32x128xbf16>
    "tpu.trace_start"() <{level = 10 : i32, message = "eik,ekg->eig"}> : () -> ()
    %cst_118 = arith.constant dense<0.000000e+00> : vector<4x1x128xf32>
    %299 = tpu.matmul %297, %298, %cst_118 {dimension_numbers = #tpu.dot_dimension_numbers<[2], [1], [1], [2], [0, 0, 0, 1, 1, 2], [0], [0]>} : vector<4x1x32xbf16>, vector<4x32x128xbf16>, vector<4x1x128xf32> -> vector<4x1x128xf32>
    "tpu.trace_stop"() : () -> ()
    %300 = vector.shape_cast %235 : vector<4x32xf32> to vector<4x1x32xf32>
    %301 = arith.truncf %300 : vector<4x1x32xf32> to vector<4x1x32xbf16>
    %c0_119 = arith.constant 0 : index
    %c0_120 = arith.constant 0 : index
    %c0_121 = arith.constant 0 : index
    %302 = vector.load %arg4[%c0_119, %c0_120, %c0_121] : memref<4x32x128xbf16, #tpu.memory_space<vmem>>, vector<4x32x128xbf16>
    "tpu.trace_start"() <{level = 10 : i32, message = "eik,ekg->eig"}> : () -> ()
    %cst_122 = arith.constant dense<0.000000e+00> : vector<4x1x128xf32>
    %303 = tpu.matmul %301, %302, %cst_122 {dimension_numbers = #tpu.dot_dimension_numbers<[2], [1], [1], [2], [0, 0, 0, 1, 1, 2], [0], [0]>} : vector<4x1x32xbf16>, vector<4x32x128xbf16>, vector<4x1x128xf32> -> vector<4x1x128xf32>
    "tpu.trace_stop"() : () -> ()
    %304 = arith.addf %299, %303 : vector<4x1x128xf32>
    %305 = vector.shape_cast %304 : vector<4x1x128xf32> to vector<4x128xf32>
    %306 = vector.shape_cast %295 : vector<1x10xf32> to vector<1x10xf32>
    %307 = vector.broadcast %306 : vector<1x10xf32> to vector<4x10xf32>
    %308 = vector.shape_cast %307 : vector<4x10xf32> to vector<4x1x10xf32>
    %309 = arith.truncf %308 : vector<4x1x10xf32> to vector<4x1x10xbf16>
    %c0_123 = arith.constant 0 : index
    %c0_124 = arith.constant 0 : index
    %c0_125 = arith.constant 0 : index
    %310 = vector.load %arg2[%c0_123, %c0_124, %c0_125] : memref<4x10x128xbf16, #tpu.memory_space<vmem>>, vector<4x10x128xbf16>
    "tpu.trace_start"() <{level = 10 : i32, message = "eik,ekg->eig"}> : () -> ()
    %cst_126 = arith.constant dense<0.000000e+00> : vector<4x1x128xf32>
    %311 = tpu.matmul %309, %310, %cst_126 {dimension_numbers = #tpu.dot_dimension_numbers<[2], [1], [1], [2], [0, 0, 0, 1, 1, 2], [0], [0]>} : vector<4x1x10xbf16>, vector<4x10x128xbf16>, vector<4x1x128xf32> -> vector<4x1x128xf32>
    "tpu.trace_stop"() : () -> ()
    %312 = vector.shape_cast %311 : vector<4x1x128xf32> to vector<4x128xf32>
    %313 = arith.addf %305, %312 : vector<4x128xf32>
    %314 = arith.addf %313, %2 : vector<4x128xf32>
    %315 = arith.negf %314 : vector<4x128xf32>
    %316 = math.exp %315 : vector<4x128xf32>
    %cst_127 = arith.constant 1.000000e+00 : f32
    %317 = vector.broadcast %cst_127 : f32 to vector<4x128xf32>
    %318 = arith.addf %317, %316 : vector<4x128xf32>
    %319 = arith.divf %317, %318 : vector<4x128xf32>
    %320 = math.tanh %314 : vector<4x128xf32>
    %321 = vector.extract_strided_slice %319 {offsets = [0, 0], sizes = [4, 32], strides = [1, 1]} : vector<4x128xf32> to vector<4x32xf32>
    %322 = vector.extract_strided_slice %319 {offsets = [0, 32], sizes = [4, 32], strides = [1, 1]} : vector<4x128xf32> to vector<4x32xf32>
    %323 = vector.extract_strided_slice %320 {offsets = [0, 64], sizes = [4, 32], strides = [1, 1]} : vector<4x128xf32> to vector<4x32xf32>
    %324 = vector.extract_strided_slice %319 {offsets = [0, 96], sizes = [4, 32], strides = [1, 1]} : vector<4x128xf32> to vector<4x32xf32>
    %325 = arith.mulf %322, %233 : vector<4x32xf32>
    %326 = arith.mulf %321, %323 : vector<4x32xf32>
    %327 = arith.addf %325, %326 : vector<4x32xf32>
    %328 = math.tanh %327 : vector<4x32xf32>
    %329 = arith.mulf %324, %328 : vector<4x32xf32>
    %330 = vector.shape_cast %329 : vector<4x32xf32> to vector<4x1x32xf32>
    %331 = arith.truncf %330 : vector<4x1x32xf32> to vector<4x1x32xbf16>
    "tpu.trace_start"() <{level = 10 : i32, message = "eih,eht->eit"}> : () -> ()
    %cst_128 = arith.constant dense<0.000000e+00> : vector<4x1x8xf32>
    %332 = tpu.matmul %331, %1, %cst_128 {dimension_numbers = #tpu.dot_dimension_numbers<[2], [1], [1], [2], [0, 0, 0, 1, 1, 2], [0], [0]>} : vector<4x1x32xbf16>, vector<4x32x8xbf16>, vector<4x1x8xf32> -> vector<4x1x8xf32>
    "tpu.trace_stop"() : () -> ()
    %333 = vector.shape_cast %332 : vector<4x1x8xf32> to vector<4x8xf32>
    %cst_129 = arith.constant dense<0xFF800000> : vector<4xf32>
    %334 = vector.multi_reduction <maximumf>, %333, %cst_129 [1] : vector<4x8xf32> to vector<4xf32>
    %335 = vector.shape_cast %334 : vector<4xf32> to vector<4x1xf32>
    %336 = vector.broadcast %335 : vector<4x1xf32> to vector<4x8xf32>
    %337 = arith.subf %333, %336 : vector<4x8xf32>
    %338 = math.exp %337 : vector<4x8xf32>
    %cst_130 = arith.constant dense<0.000000e+00> : vector<4xf32>
    %339 = vector.multi_reduction <add>, %338, %cst_130 [1] : vector<4x8xf32> to vector<4xf32>
    %340 = vector.shape_cast %339 : vector<4xf32> to vector<4x1xf32>
    %341 = tpu.reciprocal %340 {approx = true} : vector<4x1xf32> -> vector<4x1xf32>
    %342 = vector.broadcast %341 : vector<4x1xf32> to vector<4x8xf32>
    %343 = arith.mulf %338, %342 : vector<4x8xf32>
    %344 = vector.shape_cast %343 : vector<4x8xf32> to vector<4x1x8xf32>
    %345 = arith.truncf %344 : vector<4x1x8xf32> to vector<4x1x8xbf16>
    "tpu.trace_start"() <{level = 10 : i32, message = "eit,eth->eih"}> : () -> ()
    %cst_131 = arith.constant dense<0.000000e+00> : vector<4x1x32xf32>
    %346 = tpu.matmul %345, %0, %cst_131 {dimension_numbers = #tpu.dot_dimension_numbers<[2], [1], [1], [2], [0, 0, 0, 1, 1, 2], [0], [0]>} : vector<4x1x8xbf16>, vector<4x8x32xbf16>, vector<4x1x32xf32> -> vector<4x1x32xf32>
    "tpu.trace_stop"() : () -> ()
    %347 = vector.shape_cast %346 : vector<4x1x32xf32> to vector<4x32xf32>
    %348 = vector.shape_cast %329 : vector<4x32xf32> to vector<4x1x32xf32>
    %349 = arith.truncf %348 : vector<4x1x32xf32> to vector<4x1x32xbf16>
    %c0_132 = arith.constant 0 : index
    %c0_133 = arith.constant 0 : index
    %c0_134 = arith.constant 0 : index
    %350 = vector.load %arg6[%c0_132, %c0_133, %c0_134] : memref<4x32x10xbf16, #tpu.memory_space<vmem>>, vector<4x32x10xbf16>
    "tpu.trace_start"() <{level = 10 : i32, message = "eik,ekc->eic"}> : () -> ()
    %cst_135 = arith.constant dense<0.000000e+00> : vector<4x1x10xf32>
    %351 = tpu.matmul %349, %350, %cst_135 {dimension_numbers = #tpu.dot_dimension_numbers<[2], [1], [1], [2], [0, 0, 0, 1, 1, 2], [0], [0]>} : vector<4x1x32xbf16>, vector<4x32x10xbf16>, vector<4x1x10xf32> -> vector<4x1x10xf32>
    "tpu.trace_stop"() : () -> ()
    %352 = vector.shape_cast %347 : vector<4x32xf32> to vector<4x1x32xf32>
    %353 = arith.truncf %352 : vector<4x1x32xf32> to vector<4x1x32xbf16>
    %c0_136 = arith.constant 0 : index
    %c0_137 = arith.constant 0 : index
    %c0_138 = arith.constant 0 : index
    %354 = vector.load %arg7[%c0_136, %c0_137, %c0_138] : memref<4x32x10xbf16, #tpu.memory_space<vmem>>, vector<4x32x10xbf16>
    "tpu.trace_start"() <{level = 10 : i32, message = "eik,ekc->eic"}> : () -> ()
    %cst_139 = arith.constant dense<0.000000e+00> : vector<4x1x10xf32>
    %355 = tpu.matmul %353, %354, %cst_139 {dimension_numbers = #tpu.dot_dimension_numbers<[2], [1], [1], [2], [0, 0, 0, 1, 1, 2], [0], [0]>} : vector<4x1x32xbf16>, vector<4x32x10xbf16>, vector<4x1x10xf32> -> vector<4x1x10xf32>
    "tpu.trace_stop"() : () -> ()
    %356 = arith.addf %351, %355 : vector<4x1x10xf32>
    %357 = vector.shape_cast %356 : vector<4x1x10xf32> to vector<4x10xf32>
    %358 = arith.addf %357, %3 : vector<4x10xf32>
    %cst_140 = arith.constant dense<0xFF800000> : vector<4xf32>
    %359 = vector.multi_reduction <maximumf>, %358, %cst_140 [1] : vector<4x10xf32> to vector<4xf32>
    %360 = vector.shape_cast %359 : vector<4xf32> to vector<4x1xf32>
    %361 = vector.broadcast %360 : vector<4x1xf32> to vector<4x10xf32>
    %362 = arith.subf %358, %361 : vector<4x10xf32>
    %363 = math.exp %362 : vector<4x10xf32>
    %cst_141 = arith.constant dense<0.000000e+00> : vector<4xf32>
    %364 = vector.multi_reduction <add>, %363, %cst_141 [1] : vector<4x10xf32> to vector<4xf32>
    %365 = vector.shape_cast %364 : vector<4xf32> to vector<4x1xf32>
    %366 = vector.broadcast %365 : vector<4x1xf32> to vector<4x10xf32>
    %367 = arith.divf %363, %366 : vector<4x10xf32>
    %cst_142 = arith.constant dense<0.000000e+00> : vector<10xf32>
    %368 = vector.multi_reduction <add>, %367, %cst_142 [0] : vector<4x10xf32> to vector<10xf32>
    %369 = vector.shape_cast %368 : vector<10xf32> to vector<1x10xf32>
    %cst_143 = arith.constant 4.000000e+00 : f32
    %370 = vector.broadcast %cst_143 : f32 to vector<1x10xf32>
    %371 = arith.divf %369, %370 : vector<1x10xf32>
    %372 = math.log %371 : vector<1x10xf32>
    %373 = arith.index_cast %c3_i32 : i32 to index
    %c0_144 = arith.constant 0 : index
    %374 = vector.load %arg9[%373, %c0_144] : memref<6x10xf32, #tpu.memory_space<vmem>>, vector<1x10xf32>
    tpu.vector_store %arg9[%373, %c0_144], %372 {strides = array<i32>} : memref<6x10xf32, #tpu.memory_space<vmem>>, vector<1x10xf32>,
    %375 = vector.shape_cast %343 : vector<4x8xf32> to vector<1x4x8xf32>
    %376 = arith.index_cast %c3_i32 : i32 to index
    %c0_145 = arith.constant 0 : index
    %c0_146 = arith.constant 0 : index
    %377 = vector.load %arg10[%376, %c0_145, %c0_146] : memref<6x4x8xf32, #tpu.memory_space<vmem>>, vector<1x4x8xf32>
    tpu.vector_store %arg10[%376, %c0_145, %c0_146], %375 {strides = array<i32>} : memref<6x4x8xf32, #tpu.memory_space<vmem>>, vector<1x4x8xf32>,
    %cst_147 = arith.constant dense<0xFF800000> : vector<1xf32>
    %378 = vector.multi_reduction <maximumf>, %372, %cst_147 [1] : vector<1x10xf32> to vector<1xf32>
    %379 = vector.shape_cast %378 : vector<1xf32> to vector<1x1xf32>
    %380 = vector.broadcast %379 : vector<1x1xf32> to vector<1x10xf32>
    %381 = arith.cmpf oge, %372, %380 : vector<1x10xf32>
    %c10_i32_148 = arith.constant 10 : i32
    %382 = vector.broadcast %c10_i32_148 : i32 to vector<1x10xi32>
    %383 = arith.select %381, %4, %382 : vector<1x10xi1>, vector<1x10xi32>
    %cst_149 = arith.constant dense<2147483647> : vector<1xi32>
    %384 = vector.multi_reduction <minsi>, %383, %cst_149 [1] : vector<1x10xi32> to vector<1xi32>
    %385 = vector.shape_cast %384 : vector<1xi32> to vector<1x1xi32>
    %386 = vector.broadcast %385 : vector<1x1xi32> to vector<1x10xi32>
    %387 = arith.cmpi eq, %4, %386 : vector<1x10xi32>
    %388 = arith.extui %387 : vector<1x10xi1> to vector<1x10xi32>
    %389 = arith.sitofp %388 : vector<1x10xi32> to vector<1x10xf32>
    %c4_i32 = arith.constant 4 : i32
    %390 = vector.shape_cast %347 : vector<4x32xf32> to vector<4x1x32xf32>
    %391 = arith.truncf %390 : vector<4x1x32xf32> to vector<4x1x32xbf16>
    %c0_150 = arith.constant 0 : index
    %c0_151 = arith.constant 0 : index
    %c0_152 = arith.constant 0 : index
    %392 = vector.load %arg3[%c0_150, %c0_151, %c0_152] : memref<4x32x128xbf16, #tpu.memory_space<vmem>>, vector<4x32x128xbf16>
    "tpu.trace_start"() <{level = 10 : i32, message = "eik,ekg->eig"}> : () -> ()
    %cst_153 = arith.constant dense<0.000000e+00> : vector<4x1x128xf32>
    %393 = tpu.matmul %391, %392, %cst_153 {dimension_numbers = #tpu.dot_dimension_numbers<[2], [1], [1], [2], [0, 0, 0, 1, 1, 2], [0], [0]>} : vector<4x1x32xbf16>, vector<4x32x128xbf16>, vector<4x1x128xf32> -> vector<4x1x128xf32>
    "tpu.trace_stop"() : () -> ()
    %394 = vector.shape_cast %329 : vector<4x32xf32> to vector<4x1x32xf32>
    %395 = arith.truncf %394 : vector<4x1x32xf32> to vector<4x1x32xbf16>
    %c0_154 = arith.constant 0 : index
    %c0_155 = arith.constant 0 : index
    %c0_156 = arith.constant 0 : index
    %396 = vector.load %arg4[%c0_154, %c0_155, %c0_156] : memref<4x32x128xbf16, #tpu.memory_space<vmem>>, vector<4x32x128xbf16>
    "tpu.trace_start"() <{level = 10 : i32, message = "eik,ekg->eig"}> : () -> ()
    %cst_157 = arith.constant dense<0.000000e+00> : vector<4x1x128xf32>
    %397 = tpu.matmul %395, %396, %cst_157 {dimension_numbers = #tpu.dot_dimension_numbers<[2], [1], [1], [2], [0, 0, 0, 1, 1, 2], [0], [0]>} : vector<4x1x32xbf16>, vector<4x32x128xbf16>, vector<4x1x128xf32> -> vector<4x1x128xf32>
    "tpu.trace_stop"() : () -> ()
    %398 = arith.addf %393, %397 : vector<4x1x128xf32>
    %399 = vector.shape_cast %398 : vector<4x1x128xf32> to vector<4x128xf32>
    %400 = vector.shape_cast %389 : vector<1x10xf32> to vector<1x10xf32>
    %401 = vector.broadcast %400 : vector<1x10xf32> to vector<4x10xf32>
    %402 = vector.shape_cast %401 : vector<4x10xf32> to vector<4x1x10xf32>
    %403 = arith.truncf %402 : vector<4x1x10xf32> to vector<4x1x10xbf16>
    %c0_158 = arith.constant 0 : index
    %c0_159 = arith.constant 0 : index
    %c0_160 = arith.constant 0 : index
    %404 = vector.load %arg2[%c0_158, %c0_159, %c0_160] : memref<4x10x128xbf16, #tpu.memory_space<vmem>>, vector<4x10x128xbf16>
    "tpu.trace_start"() <{level = 10 : i32, message = "eik,ekg->eig"}> : () -> ()
    %cst_161 = arith.constant dense<0.000000e+00> : vector<4x1x128xf32>
    %405 = tpu.matmul %403, %404, %cst_161 {dimension_numbers = #tpu.dot_dimension_numbers<[2], [1], [1], [2], [0, 0, 0, 1, 1, 2], [0], [0]>} : vector<4x1x10xbf16>, vector<4x10x128xbf16>, vector<4x1x128xf32> -> vector<4x1x128xf32>
    "tpu.trace_stop"() : () -> ()
    %406 = vector.shape_cast %405 : vector<4x1x128xf32> to vector<4x128xf32>
    %407 = arith.addf %399, %406 : vector<4x128xf32>
    %408 = arith.addf %407, %2 : vector<4x128xf32>
    %409 = arith.negf %408 : vector<4x128xf32>
    %410 = math.exp %409 : vector<4x128xf32>
    %cst_162 = arith.constant 1.000000e+00 : f32
    %411 = vector.broadcast %cst_162 : f32 to vector<4x128xf32>
    %412 = arith.addf %411, %410 : vector<4x128xf32>
    %413 = arith.divf %411, %412 : vector<4x128xf32>
    %414 = math.tanh %408 : vector<4x128xf32>
    %415 = vector.extract_strided_slice %413 {offsets = [0, 0], sizes = [4, 32], strides = [1, 1]} : vector<4x128xf32> to vector<4x32xf32>
    %416 = vector.extract_strided_slice %413 {offsets = [0, 32], sizes = [4, 32], strides = [1, 1]} : vector<4x128xf32> to vector<4x32xf32>
    %417 = vector.extract_strided_slice %414 {offsets = [0, 64], sizes = [4, 32], strides = [1, 1]} : vector<4x128xf32> to vector<4x32xf32>
    %418 = vector.extract_strided_slice %413 {offsets = [0, 96], sizes = [4, 32], strides = [1, 1]} : vector<4x128xf32> to vector<4x32xf32>
    %419 = arith.mulf %416, %327 : vector<4x32xf32>
    %420 = arith.mulf %415, %417 : vector<4x32xf32>
    %421 = arith.addf %419, %420 : vector<4x32xf32>
    %422 = math.tanh %421 : vector<4x32xf32>
    %423 = arith.mulf %418, %422 : vector<4x32xf32>
    %424 = vector.shape_cast %423 : vector<4x32xf32> to vector<4x1x32xf32>
    %425 = arith.truncf %424 : vector<4x1x32xf32> to vector<4x1x32xbf16>
    "tpu.trace_start"() <{level = 10 : i32, message = "eih,eht->eit"}> : () -> ()
    %cst_163 = arith.constant dense<0.000000e+00> : vector<4x1x8xf32>
    %426 = tpu.matmul %425, %1, %cst_163 {dimension_numbers = #tpu.dot_dimension_numbers<[2], [1], [1], [2], [0, 0, 0, 1, 1, 2], [0], [0]>} : vector<4x1x32xbf16>, vector<4x32x8xbf16>, vector<4x1x8xf32> -> vector<4x1x8xf32>
    "tpu.trace_stop"() : () -> ()
    %427 = vector.shape_cast %426 : vector<4x1x8xf32> to vector<4x8xf32>
    %cst_164 = arith.constant dense<0xFF800000> : vector<4xf32>
    %428 = vector.multi_reduction <maximumf>, %427, %cst_164 [1] : vector<4x8xf32> to vector<4xf32>
    %429 = vector.shape_cast %428 : vector<4xf32> to vector<4x1xf32>
    %430 = vector.broadcast %429 : vector<4x1xf32> to vector<4x8xf32>
    %431 = arith.subf %427, %430 : vector<4x8xf32>
    %432 = math.exp %431 : vector<4x8xf32>
    %cst_165 = arith.constant dense<0.000000e+00> : vector<4xf32>
    %433 = vector.multi_reduction <add>, %432, %cst_165 [1] : vector<4x8xf32> to vector<4xf32>
    %434 = vector.shape_cast %433 : vector<4xf32> to vector<4x1xf32>
    %435 = tpu.reciprocal %434 {approx = true} : vector<4x1xf32> -> vector<4x1xf32>
    %436 = vector.broadcast %435 : vector<4x1xf32> to vector<4x8xf32>
    %437 = arith.mulf %432, %436 : vector<4x8xf32>
    %438 = vector.shape_cast %437 : vector<4x8xf32> to vector<4x1x8xf32>
    %439 = arith.truncf %438 : vector<4x1x8xf32> to vector<4x1x8xbf16>
    "tpu.trace_start"() <{level = 10 : i32, message = "eit,eth->eih"}> : () -> ()
    %cst_166 = arith.constant dense<0.000000e+00> : vector<4x1x32xf32>
    %440 = tpu.matmul %439, %0, %cst_166 {dimension_numbers = #tpu.dot_dimension_numbers<[2], [1], [1], [2], [0, 0, 0, 1, 1, 2], [0], [0]>} : vector<4x1x8xbf16>, vector<4x8x32xbf16>, vector<4x1x32xf32> -> vector<4x1x32xf32>
    "tpu.trace_stop"() : () -> ()
    %441 = vector.shape_cast %440 : vector<4x1x32xf32> to vector<4x32xf32>
    %442 = vector.shape_cast %423 : vector<4x32xf32> to vector<4x1x32xf32>
    %443 = arith.truncf %442 : vector<4x1x32xf32> to vector<4x1x32xbf16>
    %c0_167 = arith.constant 0 : index
    %c0_168 = arith.constant 0 : index
    %c0_169 = arith.constant 0 : index
    %444 = vector.load %arg6[%c0_167, %c0_168, %c0_169] : memref<4x32x10xbf16, #tpu.memory_space<vmem>>, vector<4x32x10xbf16>
    "tpu.trace_start"() <{level = 10 : i32, message = "eik,ekc->eic"}> : () -> ()
    %cst_170 = arith.constant dense<0.000000e+00> : vector<4x1x10xf32>
    %445 = tpu.matmul %443, %444, %cst_170 {dimension_numbers = #tpu.dot_dimension_numbers<[2], [1], [1], [2], [0, 0, 0, 1, 1, 2], [0], [0]>} : vector<4x1x32xbf16>, vector<4x32x10xbf16>, vector<4x1x10xf32> -> vector<4x1x10xf32>
    "tpu.trace_stop"() : () -> ()
    %446 = vector.shape_cast %441 : vector<4x32xf32> to vector<4x1x32xf32>
    %447 = arith.truncf %446 : vector<4x1x32xf32> to vector<4x1x32xbf16>
    %c0_171 = arith.constant 0 : index
    %c0_172 = arith.constant 0 : index
    %c0_173 = arith.constant 0 : index
    %448 = vector.load %arg7[%c0_171, %c0_172, %c0_173] : memref<4x32x10xbf16, #tpu.memory_space<vmem>>, vector<4x32x10xbf16>
    "tpu.trace_start"() <{level = 10 : i32, message = "eik,ekc->eic"}> : () -> ()
    %cst_174 = arith.constant dense<0.000000e+00> : vector<4x1x10xf32>
    %449 = tpu.matmul %447, %448, %cst_174 {dimension_numbers = #tpu.dot_dimension_numbers<[2], [1], [1], [2], [0, 0, 0, 1, 1, 2], [0], [0]>} : vector<4x1x32xbf16>, vector<4x32x10xbf16>, vector<4x1x10xf32> -> vector<4x1x10xf32>
    "tpu.trace_stop"() : () -> ()
    %450 = arith.addf %445, %449 : vector<4x1x10xf32>
    %451 = vector.shape_cast %450 : vector<4x1x10xf32> to vector<4x10xf32>
    %452 = arith.addf %451, %3 : vector<4x10xf32>
    %cst_175 = arith.constant dense<0xFF800000> : vector<4xf32>
    %453 = vector.multi_reduction <maximumf>, %452, %cst_175 [1] : vector<4x10xf32> to vector<4xf32>
    %454 = vector.shape_cast %453 : vector<4xf32> to vector<4x1xf32>
    %455 = vector.broadcast %454 : vector<4x1xf32> to vector<4x10xf32>
    %456 = arith.subf %452, %455 : vector<4x10xf32>
    %457 = math.exp %456 : vector<4x10xf32>
    %cst_176 = arith.constant dense<0.000000e+00> : vector<4xf32>
    %458 = vector.multi_reduction <add>, %457, %cst_176 [1] : vector<4x10xf32> to vector<4xf32>
    %459 = vector.shape_cast %458 : vector<4xf32> to vector<4x1xf32>
    %460 = vector.broadcast %459 : vector<4x1xf32> to vector<4x10xf32>
    %461 = arith.divf %457, %460 : vector<4x10xf32>
    %cst_177 = arith.constant dense<0.000000e+00> : vector<10xf32>
    %462 = vector.multi_reduction <add>, %461, %cst_177 [0] : vector<4x10xf32> to vector<10xf32>
    %463 = vector.shape_cast %462 : vector<10xf32> to vector<1x10xf32>
    %cst_178 = arith.constant 4.000000e+00 : f32
    %464 = vector.broadcast %cst_178 : f32 to vector<1x10xf32>
    %465 = arith.divf %463, %464 : vector<1x10xf32>
    %466 = math.log %465 : vector<1x10xf32>
    %467 = arith.index_cast %c4_i32 : i32 to index
    %c0_179 = arith.constant 0 : index
    %468 = vector.load %arg9[%467, %c0_179] : memref<6x10xf32, #tpu.memory_space<vmem>>, vector<1x10xf32>
    tpu.vector_store %arg9[%467, %c0_179], %466 {strides = array<i32>} : memref<6x10xf32, #tpu.memory_space<vmem>>, vector<1x10xf32>,
    %469 = vector.shape_cast %437 : vector<4x8xf32> to vector<1x4x8xf32>
    %470 = arith.index_cast %c4_i32 : i32 to index
    %c0_180 = arith.constant 0 : index
    %c0_181 = arith.constant 0 : index
    %471 = vector.load %arg10[%470, %c0_180, %c0_181] : memref<6x4x8xf32, #tpu.memory_space<vmem>>, vector<1x4x8xf32>
    tpu.vector_store %arg10[%470, %c0_180, %c0_181], %469 {strides = array<i32>} : memref<6x4x8xf32, #tpu.memory_space<vmem>>, vector<1x4x8xf32>,
    %cst_182 = arith.constant dense<0xFF800000> : vector<1xf32>
    %472 = vector.multi_reduction <maximumf>, %466, %cst_182 [1] : vector<1x10xf32> to vector<1xf32>
    %473 = vector.shape_cast %472 : vector<1xf32> to vector<1x1xf32>
    %474 = vector.broadcast %473 : vector<1x1xf32> to vector<1x10xf32>
    %475 = arith.cmpf oge, %466, %474 : vector<1x10xf32>
    %c10_i32_183 = arith.constant 10 : i32
    %476 = vector.broadcast %c10_i32_183 : i32 to vector<1x10xi32>
    %477 = arith.select %475, %4, %476 : vector<1x10xi1>, vector<1x10xi32>
    %cst_184 = arith.constant dense<2147483647> : vector<1xi32>
    %478 = vector.multi_reduction <minsi>, %477, %cst_184 [1] : vector<1x10xi32> to vector<1xi32>
    %479 = vector.shape_cast %478 : vector<1xi32> to vector<1x1xi32>
    %480 = vector.broadcast %479 : vector<1x1xi32> to vector<1x10xi32>
    %481 = arith.cmpi eq, %4, %480 : vector<1x10xi32>
    %482 = arith.extui %481 : vector<1x10xi1> to vector<1x10xi32>
    %483 = arith.sitofp %482 : vector<1x10xi32> to vector<1x10xf32>
    %c5_i32 = arith.constant 5 : i32
    %484 = vector.shape_cast %441 : vector<4x32xf32> to vector<4x1x32xf32>
    %485 = arith.truncf %484 : vector<4x1x32xf32> to vector<4x1x32xbf16>
    %c0_185 = arith.constant 0 : index
    %c0_186 = arith.constant 0 : index
    %c0_187 = arith.constant 0 : index
    %486 = vector.load %arg3[%c0_185, %c0_186, %c0_187] : memref<4x32x128xbf16, #tpu.memory_space<vmem>>, vector<4x32x128xbf16>
    "tpu.trace_start"() <{level = 10 : i32, message = "eik,ekg->eig"}> : () -> ()
    %cst_188 = arith.constant dense<0.000000e+00> : vector<4x1x128xf32>
    %487 = tpu.matmul %485, %486, %cst_188 {dimension_numbers = #tpu.dot_dimension_numbers<[2], [1], [1], [2], [0, 0, 0, 1, 1, 2], [0], [0]>} : vector<4x1x32xbf16>, vector<4x32x128xbf16>, vector<4x1x128xf32> -> vector<4x1x128xf32>
    "tpu.trace_stop"() : () -> ()
    %488 = vector.shape_cast %423 : vector<4x32xf32> to vector<4x1x32xf32>
    %489 = arith.truncf %488 : vector<4x1x32xf32> to vector<4x1x32xbf16>
    %c0_189 = arith.constant 0 : index
    %c0_190 = arith.constant 0 : index
    %c0_191 = arith.constant 0 : index
    %490 = vector.load %arg4[%c0_189, %c0_190, %c0_191] : memref<4x32x128xbf16, #tpu.memory_space<vmem>>, vector<4x32x128xbf16>
    "tpu.trace_start"() <{level = 10 : i32, message = "eik,ekg->eig"}> : () -> ()
    %cst_192 = arith.constant dense<0.000000e+00> : vector<4x1x128xf32>
    %491 = tpu.matmul %489, %490, %cst_192 {dimension_numbers = #tpu.dot_dimension_numbers<[2], [1], [1], [2], [0, 0, 0, 1, 1, 2], [0], [0]>} : vector<4x1x32xbf16>, vector<4x32x128xbf16>, vector<4x1x128xf32> -> vector<4x1x128xf32>
    "tpu.trace_stop"() : () -> ()
    %492 = arith.addf %487, %491 : vector<4x1x128xf32>
    %493 = vector.shape_cast %492 : vector<4x1x128xf32> to vector<4x128xf32>
    %494 = vector.shape_cast %483 : vector<1x10xf32> to vector<1x10xf32>
    %495 = vector.broadcast %494 : vector<1x10xf32> to vector<4x10xf32>
    %496 = vector.shape_cast %495 : vector<4x10xf32> to vector<4x1x10xf32>
    %497 = arith.truncf %496 : vector<4x1x10xf32> to vector<4x1x10xbf16>
    %c0_193 = arith.constant 0 : index
    %c0_194 = arith.constant 0 : index
    %c0_195 = arith.constant 0 : index
    %498 = vector.load %arg2[%c0_193, %c0_194, %c0_195] : memref<4x10x128xbf16, #tpu.memory_space<vmem>>, vector<4x10x128xbf16>
    "tpu.trace_start"() <{level = 10 : i32, message = "eik,ekg->eig"}> : () -> ()
    %cst_196 = arith.constant dense<0.000000e+00> : vector<4x1x128xf32>
    %499 = tpu.matmul %497, %498, %cst_196 {dimension_numbers = #tpu.dot_dimension_numbers<[2], [1], [1], [2], [0, 0, 0, 1, 1, 2], [0], [0]>} : vector<4x1x10xbf16>, vector<4x10x128xbf16>, vector<4x1x128xf32> -> vector<4x1x128xf32>
    "tpu.trace_stop"() : () -> ()
    %500 = vector.shape_cast %499 : vector<4x1x128xf32> to vector<4x128xf32>
    %501 = arith.addf %493, %500 : vector<4x128xf32>
    %502 = arith.addf %501, %2 : vector<4x128xf32>
    %503 = arith.negf %502 : vector<4x128xf32>
    %504 = math.exp %503 : vector<4x128xf32>
    %cst_197 = arith.constant 1.000000e+00 : f32
    %505 = vector.broadcast %cst_197 : f32 to vector<4x128xf32>
    %506 = arith.addf %505, %504 : vector<4x128xf32>
    %507 = arith.divf %505, %506 : vector<4x128xf32>
    %508 = math.tanh %502 : vector<4x128xf32>
    %509 = vector.extract_strided_slice %507 {offsets = [0, 0], sizes = [4, 32], strides = [1, 1]} : vector<4x128xf32> to vector<4x32xf32>
    %510 = vector.extract_strided_slice %507 {offsets = [0, 32], sizes = [4, 32], strides = [1, 1]} : vector<4x128xf32> to vector<4x32xf32>
    %511 = vector.extract_strided_slice %508 {offsets = [0, 64], sizes = [4, 32], strides = [1, 1]} : vector<4x128xf32> to vector<4x32xf32>
    %512 = vector.extract_strided_slice %507 {offsets = [0, 96], sizes = [4, 32], strides = [1, 1]} : vector<4x128xf32> to vector<4x32xf32>
    %513 = arith.mulf %510, %421 : vector<4x32xf32>
    %514 = arith.mulf %509, %511 : vector<4x32xf32>
    %515 = arith.addf %513, %514 : vector<4x32xf32>
    %516 = math.tanh %515 : vector<4x32xf32>
    %517 = arith.mulf %512, %516 : vector<4x32xf32>
    %518 = vector.shape_cast %517 : vector<4x32xf32> to vector<4x1x32xf32>
    %519 = arith.truncf %518 : vector<4x1x32xf32> to vector<4x1x32xbf16>
    "tpu.trace_start"() <{level = 10 : i32, message = "eih,eht->eit"}> : () -> ()
    %cst_198 = arith.constant dense<0.000000e+00> : vector<4x1x8xf32>
    %520 = tpu.matmul %519, %1, %cst_198 {dimension_numbers = #tpu.dot_dimension_numbers<[2], [1], [1], [2], [0, 0, 0, 1, 1, 2], [0], [0]>} : vector<4x1x32xbf16>, vector<4x32x8xbf16>, vector<4x1x8xf32> -> vector<4x1x8xf32>
    "tpu.trace_stop"() : () -> ()
    %521 = vector.shape_cast %520 : vector<4x1x8xf32> to vector<4x8xf32>
    %cst_199 = arith.constant dense<0xFF800000> : vector<4xf32>
    %522 = vector.multi_reduction <maximumf>, %521, %cst_199 [1] : vector<4x8xf32> to vector<4xf32>
    %523 = vector.shape_cast %522 : vector<4xf32> to vector<4x1xf32>
    %524 = vector.broadcast %523 : vector<4x1xf32> to vector<4x8xf32>
    %525 = arith.subf %521, %524 : vector<4x8xf32>
    %526 = math.exp %525 : vector<4x8xf32>
    %cst_200 = arith.constant dense<0.000000e+00> : vector<4xf32>
    %527 = vector.multi_reduction <add>, %526, %cst_200 [1] : vector<4x8xf32> to vector<4xf32>
    %528 = vector.shape_cast %527 : vector<4xf32> to vector<4x1xf32>
    %529 = tpu.reciprocal %528 {approx = true} : vector<4x1xf32> -> vector<4x1xf32>
    %530 = vector.broadcast %529 : vector<4x1xf32> to vector<4x8xf32>
    %531 = arith.mulf %526, %530 : vector<4x8xf32>
    %532 = vector.shape_cast %531 : vector<4x8xf32> to vector<4x1x8xf32>
    %533 = arith.truncf %532 : vector<4x1x8xf32> to vector<4x1x8xbf16>
    "tpu.trace_start"() <{level = 10 : i32, message = "eit,eth->eih"}> : () -> ()
    %cst_201 = arith.constant dense<0.000000e+00> : vector<4x1x32xf32>
    %534 = tpu.matmul %533, %0, %cst_201 {dimension_numbers = #tpu.dot_dimension_numbers<[2], [1], [1], [2], [0, 0, 0, 1, 1, 2], [0], [0]>} : vector<4x1x8xbf16>, vector<4x8x32xbf16>, vector<4x1x32xf32> -> vector<4x1x32xf32>
    "tpu.trace_stop"() : () -> ()
    %535 = vector.shape_cast %534 : vector<4x1x32xf32> to vector<4x32xf32>
    %536 = vector.shape_cast %517 : vector<4x32xf32> to vector<4x1x32xf32>
    %537 = arith.truncf %536 : vector<4x1x32xf32> to vector<4x1x32xbf16>
    %c0_202 = arith.constant 0 : index
    %c0_203 = arith.constant 0 : index
    %c0_204 = arith.constant 0 : index
    %538 = vector.load %arg6[%c0_202, %c0_203, %c0_204] : memref<4x32x10xbf16, #tpu.memory_space<vmem>>, vector<4x32x10xbf16>
    "tpu.trace_start"() <{level = 10 : i32, message = "eik,ekc->eic"}> : () -> ()
    %cst_205 = arith.constant dense<0.000000e+00> : vector<4x1x10xf32>
    %539 = tpu.matmul %537, %538, %cst_205 {dimension_numbers = #tpu.dot_dimension_numbers<[2], [1], [1], [2], [0, 0, 0, 1, 1, 2], [0], [0]>} : vector<4x1x32xbf16>, vector<4x32x10xbf16>, vector<4x1x10xf32> -> vector<4x1x10xf32>
    "tpu.trace_stop"() : () -> ()
    %540 = vector.shape_cast %535 : vector<4x32xf32> to vector<4x1x32xf32>
    %541 = arith.truncf %540 : vector<4x1x32xf32> to vector<4x1x32xbf16>
    %c0_206 = arith.constant 0 : index
    %c0_207 = arith.constant 0 : index
    %c0_208 = arith.constant 0 : index
    %542 = vector.load %arg7[%c0_206, %c0_207, %c0_208] : memref<4x32x10xbf16, #tpu.memory_space<vmem>>, vector<4x32x10xbf16>
    "tpu.trace_start"() <{level = 10 : i32, message = "eik,ekc->eic"}> : () -> ()
    %cst_209 = arith.constant dense<0.000000e+00> : vector<4x1x10xf32>
    %543 = tpu.matmul %541, %542, %cst_209 {dimension_numbers = #tpu.dot_dimension_numbers<[2], [1], [1], [2], [0, 0, 0, 1, 1, 2], [0], [0]>} : vector<4x1x32xbf16>, vector<4x32x10xbf16>, vector<4x1x10xf32> -> vector<4x1x10xf32>
    "tpu.trace_stop"() : () -> ()
    %544 = arith.addf %539, %543 : vector<4x1x10xf32>
    %545 = vector.shape_cast %544 : vector<4x1x10xf32> to vector<4x10xf32>
    %546 = arith.addf %545, %3 : vector<4x10xf32>
    %cst_210 = arith.constant dense<0xFF800000> : vector<4xf32>
    %547 = vector.multi_reduction <maximumf>, %546, %cst_210 [1] : vector<4x10xf32> to vector<4xf32>
    %548 = vector.shape_cast %547 : vector<4xf32> to vector<4x1xf32>
    %549 = vector.broadcast %548 : vector<4x1xf32> to vector<4x10xf32>
    %550 = arith.subf %546, %549 : vector<4x10xf32>
    %551 = math.exp %550 : vector<4x10xf32>
    %cst_211 = arith.constant dense<0.000000e+00> : vector<4xf32>
    %552 = vector.multi_reduction <add>, %551, %cst_211 [1] : vector<4x10xf32> to vector<4xf32>
    %553 = vector.shape_cast %552 : vector<4xf32> to vector<4x1xf32>
    %554 = vector.broadcast %553 : vector<4x1xf32> to vector<4x10xf32>
    %555 = arith.divf %551, %554 : vector<4x10xf32>
    %cst_212 = arith.constant dense<0.000000e+00> : vector<10xf32>
    %556 = vector.multi_reduction <add>, %555, %cst_212 [0] : vector<4x10xf32> to vector<10xf32>
    %557 = vector.shape_cast %556 : vector<10xf32> to vector<1x10xf32>
    %cst_213 = arith.constant 4.000000e+00 : f32
    %558 = vector.broadcast %cst_213 : f32 to vector<1x10xf32>
    %559 = arith.divf %557, %558 : vector<1x10xf32>
    %560 = math.log %559 : vector<1x10xf32>
    %561 = arith.index_cast %c5_i32 : i32 to index
    %c0_214 = arith.constant 0 : index
    %562 = vector.load %arg9[%561, %c0_214] : memref<6x10xf32, #tpu.memory_space<vmem>>, vector<1x10xf32>
    tpu.vector_store %arg9[%561, %c0_214], %560 {strides = array<i32>} : memref<6x10xf32, #tpu.memory_space<vmem>>, vector<1x10xf32>,
    %563 = vector.shape_cast %531 : vector<4x8xf32> to vector<1x4x8xf32>
    %564 = arith.index_cast %c5_i32 : i32 to index
    %c0_215 = arith.constant 0 : index
    %c0_216 = arith.constant 0 : index
    %565 = vector.load %arg10[%564, %c0_215, %c0_216] : memref<6x4x8xf32, #tpu.memory_space<vmem>>, vector<1x4x8xf32>
    tpu.vector_store %arg10[%564, %c0_215, %c0_216], %563 {strides = array<i32>} : memref<6x4x8xf32, #tpu.memory_space<vmem>>, vector<1x4x8xf32>,
    %cst_217 = arith.constant dense<0xFF800000> : vector<1xf32>
    %566 = vector.multi_reduction <maximumf>, %560, %cst_217 [1] : vector<1x10xf32> to vector<1xf32>
    %567 = vector.shape_cast %566 : vector<1xf32> to vector<1x1xf32>
    %568 = vector.broadcast %567 : vector<1x1xf32> to vector<1x10xf32>
    %569 = arith.cmpf oge, %560, %568 : vector<1x10xf32>
    %c10_i32_218 = arith.constant 10 : i32
    %570 = vector.broadcast %c10_i32_218 : i32 to vector<1x10xi32>
    %571 = arith.select %569, %4, %570 : vector<1x10xi1>, vector<1x10xi32>
    %cst_219 = arith.constant dense<2147483647> : vector<1xi32>
    %572 = vector.multi_reduction <minsi>, %571, %cst_219 [1] : vector<1x10xi32> to vector<1xi32>
    %573 = vector.shape_cast %572 : vector<1xi32> to vector<1x1xi32>
    %574 = vector.broadcast %573 : vector<1x1xi32> to vector<1x10xi32>
    %575 = arith.cmpi eq, %4, %574 : vector<1x10xi32>
    %576 = arith.extui %575 : vector<1x10xi1> to vector<1x10xi32>
    %577 = arith.sitofp %576 : vector<1x10xi32> to vector<1x10xf32>
    %c6_i32 = arith.constant 6 : i32
    return
  }
}

</mosaic_0001>

<bundles_post_ra>
// kernel: tpu_custom_call.1
= control target key start
LH: loop header
LB: loop body
LE: loop exit
PB: predicated region body
PF: predicated region fallthrough
CT: control target
= control target key end

     0   :  { %16 = vsyncpa [#allocation3], 0  ;;  %v13896_v1 = vmov 0.0   ;;  %vm13897_vm0 = vmmov 0   ;;  %v59_v7 = vlaneseq  ;;  %v13898_v8 = vmov 0   ;;  %s16400_s0 = inlined_call_operand.vmem [shape: bf16[4,8,32], index: 0, kind: input, shape index: {}]   ;;  %s16401_s1 = inlined_call_operand.vmem [shape: bf16[4,32,8], index: 1, kind: input, shape index: {}]   ;;  %s16402_s2 = inlined_call_operand.vmem [shape: bf16[4,10,128], index: 2, kind: input, shape index: {}]   ;;  %s16403_s3 = inlined_call_operand.vmem [shape: bf16[4,32,128], index: 3, kind: input, shape index: {}]   ;;  %s16404_s4 = inlined_call_operand.vmem [shape: bf16[4,32,128], index: 4, kind: input, shape index: {}]   ;;  %s16405_s5 = inlined_call_operand.vmem [shape: f32[4,128], index: 5, kind: input, shape index: {}]   ;;  %s16406_s6 = inlined_call_operand.vmem [shape: bf16[4,32,10], index: 6, kind: input, shape index: {}]   ;;  %s16407_s7 = inlined_call_operand.vmem [shape: bf16[4,32,10], index: 7, kind: input, shape index: {}]   ;;  %s16408_s8 = inlined_call_operand.vmem [shape: f32[4,10], index: 8, kind: input, shape index: {}]   ;;  %s16409_s9 = inlined_call_operand.hbm [shape: f32[6,10], index: 9, kind: output, shape index: {0}]   ;;  %s16410_s10 = inlined_call_operand.hbm [shape: f32[6,4,8], index: 10, kind: output, shape index: {1}]  }
   0x1   :  { %v13208_v0 = vld [vmem:[%s16404_s4] sm:$0xff]   ;;  %11951 = vmatprep.subr.bf16.mxu0 %v13896_v1  ;;  %11959 = vmatprep.subr.bf16.mxu1 %v13896_v1  ;;  %v13209_v2 = vld [vmem:[%s16404_s4 + $0x10] sm:$0xff]   ;;  %v13210_v3 = vld [vmem:[%s16404_s4 + $0x8] sm:$0xff]   ;;  %vm116_vm1 = vcmask 261120   ;;  %vm586_vm2 = vcmask 1044480   ;;  %vm582_vm4 = vcmask 80896  }
   0x2   :  { %11952 = vmatpush3.bf16.msra.mxu0 %v13208_v0  ;;  %11955 = vmatprep.mubr.msk.bf16.mxu0 %vm13897_vm0, %v13896_v1  ;;  %v13211_v4 = vld [vmem:[%s16404_s4 + $0x18] sm:$0xff]   ;;  %v13212_v5 = vld [vmem:[%s16404_s4 + $0x20] sm:$0xff]   ;;  %v13213_v6 = vld [vmem:[%s16404_s4 + $0x30] sm:$0xff]   ;;  %v13998_v11 = vand.u32 127, %v59_v7  ;;  %v13899_v21 = vmov 1966171168  }
   0x3   :  { %11960 = vmatpush3.bf16.msra.mxu1 %v13209_v2  ;;  %11953 = vmatprep.subr.bf16.mxu0 %v13896_v1  ;;  %v13214_v9 = vld [vmem:[%s16404_s4 + $0x28] sm:$0xff]   ;;  %v13215_v10 = vld [vmem:[%s16404_s4 + $0x38] sm:$0xff]   ;;  %v13216_v12 = vld [vmem:[%s16403_s3] sm:$0xff]   ;;  %v538_v22 = vunpack.c.l.s4 %v13899_v21  ;;  %v14036_v23 = vshrl.u32 %v59_v7, 7 }
   0x4   :  { %11961 = vmatprep.subr.bf16.mxu1 %v13896_v1  ;;  %11963 = vmatprep.mubr.msk.bf16.mxu1 %vm13897_vm0, %v13896_v1  ;;  %v13217_v13 = vld [vmem:[%s16403_s3 + $0x10] sm:$0xff]   ;;  %v13218_v14 = vld [vmem:[%s16403_s3 + $0x8] sm:$0xff]   ;;  %v37_v15 = vld [vmem:[%s16400_s0] sm:$0xf]  ;;  %vm61_vm3 = vcmp.eq.s32.totalorder %v13998_v11, 0 }
   0x5   :  { %v13219_v16 = vld [vmem:[%s16403_s3 + $0x18] sm:$0xff]   ;;  %v38_v17 = vld [vmem:[%s16400_s0 + $0x4] sm:$0xf]  ;;  %v13229_v19 = vld [vmem:[%s16402_s2 + $0x8] sm:$0x1f]   ;;  %v11074_v25 = vcombine.low %v37_v15, %v37_v15  ;;  %v11073_v27 = vsel %vm61_vm3, 1.0, %v13896_v1  ;;  %v539_v31 = vunpack.c.0.s8 %v538_v22 }
   0x6   :  { %11954 = vmatpush3.bf16.msra.mxu0 %v13210_v3  ;;  %v13228_v18 = vld [vmem:[%s16402_s2] sm:$0x1f]   ;;  %v13230_v24 = vld [vmem:[%s16402_s2 + $0x10] sm:$0x1f]   ;;  %v11075_v28 = vcombine.low %v38_v17, %v38_v17  ;;  %v639_v30 = vsel %vm586_vm2, %v13229_v19, 0  ;;  %v13224_v33 = vld [vmem:[%s16403_s3 + $0x28] sm:$0xff]  }
   0x7   :  { %11962 = vmatpush3.bf16.msra.mxu1 %v13211_v4  ;;  %11967 = vmatprep.subr.bf16.mxu0 %v13896_v1  ;;  %v13222_v20 = vld [vmem:[%s16403_s3 + $0x20] sm:$0xff]   ;;  %v13223_v26 = vld [vmem:[%s16403_s3 + $0x30] sm:$0xff]   ;;  %v588_v29 = vsel %vm586_vm2, %v13228_v18, 0  ;;  %v13231_v32 = vld [vmem:[%s16402_s2 + $0x18] sm:$0x1f]   ;;  %v14063_v35 = vsub.s32 %v539_v31, %v14036_v23  ;;  %v690_v36 = vsel %vm586_vm2, %v13230_v24, 0 }
   0x8   :  { %11975 = vmatprep.subr.bf16.mxu1 %v13896_v1  ;;  %v39_v34 = vld [vmem:[%s16400_s0 + $0x8] sm:$0xf]  ;;  %v741_v37 = vsel %vm586_vm2, %v13231_v32, 0  ;;  %v13225_v38 = vld [vmem:[%s16403_s3 + $0x38] sm:$0xff]   ;;  %v40_v39 = vld [vmem:[%s16400_s0 + $0xc] sm:$0xf] }
   0x9   :  { %11956 = vmatmul.mubr.bf16.vlgmr.msra.gmra.mrb[0].mxu0 %v13898_v8  ;;  %v543_v40 = vrot.slane %v11073_v27, %v14063_v35  ;;  %v11076_v41 = vcombine.low %v39_v34, %v39_v34  ;;  %v11077_v42 = vcombine.low %v40_v39, %v40_v39 }
   0xa   :  { %11964 = vmatmul.mubr.bf16.vlgmr.msra.gmra.mrb[0].mxu1 %v13898_v8  ;;  %11968 = vmatpush3.bf16.msra.mxu0 %v13212_v5 }
   0xb   :  { %11976 = vmatpush3.bf16.msra.mxu1 %v13213_v6  ;;  %11969 = vmatprep.subr.bf16.mxu0 %v13896_v1  ;;  %v544_v43 = vcombine.high %v543_v40, %v543_v40  ;;  %v551_v44 = vrot.slane %v543_v40, %v14063_v35 }
   0xc   :  { %11977 = vmatprep.subr.bf16.mxu1 %v13896_v1  ;;  %11971 = vmatprep.mubr.msk.bf16.mxu0 %vm13897_vm0, %v13896_v1 }
   0xd   :  { %11979 = vmatprep.mubr.msk.bf16.mxu1 %vm13897_vm0, %v13896_v1  ;;  %v558_v45 = vrot.slane %v544_v43, %v14063_v35  ;;  %v565_v46 = vpack.c.bf16 %v551_v44, %v551_v44  ;;  %v559_v48 = vcombine.high %v551_v44, %v551_v44 }
   0xe   :  { %11970 = vmatpush3.bf16.msra.mxu0 %v13214_v9 }
   0xf   :  { %11978 = vmatpush3.bf16.msra.mxu1 %v13215_v10  ;;  %11983 = vmatprep.subr.bf16.mxu0 %v13896_v1  ;;  %v566_v47 = vpack.c.bf16 %v558_v45, %v558_v45  ;;  %v560_v49 = vcombine.high %v558_v45, %v558_v45  ;;  %v567_v50 = vpack.c.bf16 %v559_v48, %v559_v48 }
  0x10   :  { %11991 = vmatprep.subr.bf16.mxu1 %v13896_v1 }
  0x11   :  { %11972 = vmatmul.mubr.bf16.vlgmr.msra.gmra.mrb[4].mxu0 %v13898_v8  ;;  %v568_v51 = vpack.c.bf16 %v560_v49, %v560_v49 }
  0x12   :  { %11980 = vmatmul.mubr.bf16.vlgmr.msra.gmra.mrb[4].mxu1 %v13898_v8  ;;  %11984 = vmatpush3.bf16.msra.mxu0 %v13216_v12 }
  0x13   :  { %11992 = vmatpush3.bf16.msra.mxu1 %v13217_v13  ;;  %11985 = vmatprep.subr.bf16.mxu0 %v13896_v1 }
  0x14   :  { %11993 = vmatprep.subr.bf16.mxu1 %v13896_v1  ;;  %11987 = vmatprep.mubr.msk.bf16.mxu0 %vm13897_vm0, %v13896_v1 }
  0x15   :  { %11995 = vmatprep.mubr.msk.bf16.mxu1 %vm13897_vm0, %v13896_v1 }
  0x16   :  { %11986 = vmatpush3.bf16.msra.mxu0 %v13218_v14 }
  0x17   :  { %11994 = vmatpush3.bf16.msra.mxu1 %v13219_v16  ;;  %11999 = vmatprep.subr.bf16.mxu0 %v13896_v1 }
  0x18   :  { %12007 = vmatprep.subr.bf16.mxu1 %v13896_v1 }
  0x19   :  { %11988 = vmatmul.mubr.msk.bf16.vlgmr.msra.gmra.mrb[8].mxu0 %vm116_vm1, %v11074_v25 }
  0x1a   :  { %11996 = vmatmul.mubr.msk.bf16.vlgmr.msra.gmra.mrb[8].mxu1 %vm116_vm1, %v11075_v28  ;;  %12000 = vmatpush3.bf16.msra.mxu0 %v13222_v20 }
  0x1b   :  { %12008 = vmatpush3.bf16.msra.mxu1 %v13223_v26  ;;  %12001 = vmatprep.subr.bf16.mxu0 %v13896_v1 }
  0x1c   :  { %12009 = vmatprep.subr.bf16.mxu1 %v13896_v1  ;;  %12003 = vmatprep.mubr.msk.bf16.mxu0 %vm13897_vm0, %v13896_v1 }
  0x1d   :  { %12011 = vmatprep.mubr.msk.bf16.mxu1 %vm13897_vm0, %v13896_v1 }
  0x1e   :  { %12002 = vmatpush3.bf16.msra.mxu0 %v13224_v33 }
  0x1f   :  { %12010 = vmatpush3.bf16.msra.mxu1 %v13225_v38  ;;  %12015 = vmatprep.subr.bf16.mxu0 %v13896_v1 }
  0x20   :  { %12021 = vmatprep.subr.bf16.mxu1 %v13896_v1 }
  0x21   :  { %12004 = vmatmul.mubr.msk.bf16.vlgmr.msra.gmra.mrb[12].mxu0 %vm116_vm1, %v11076_v41 }
  0x22   :  { %12012 = vmatmul.mubr.msk.bf16.vlgmr.msra.gmra.mrb[12].mxu1 %vm116_vm1, %v11077_v42  ;;  %12016 = vmatpush3.bf16.msra.mxu0 %v588_v29 }
  0x23   :  { %12022 = vmatpush3.bf16.msra.mxu1 %v639_v30  ;;  %12017 = vmatprep.mubr.msk.bf16.mxu0 %vm13897_vm0, %v13896_v1 }
  0x24   :  { %12023 = vmatprep.mubr.msk.bf16.mxu1 %vm13897_vm0, %v13896_v1  ;;  %12027 = vmatprep.subr.bf16.mxu0 %v13896_v1 }
  0x25   :  { %12033 = vmatprep.subr.bf16.mxu1 %v13896_v1 }
  0x29   :  { %12018 = vmatmul.mubr.msk.bf16.vlgmr.msra.gmra.mrb[16].mxu0 %vm582_vm4, %v565_v46 }
  0x2a   :  { %12024 = vmatmul.mubr.msk.bf16.vlgmr.msra.gmra.mrb[16].mxu1 %vm582_vm4, %v566_v47  ;;  %12028 = vmatpush3.bf16.msra.mxu0 %v690_v36 }
  0x2b   :  { %12034 = vmatpush3.bf16.msra.mxu1 %v741_v37  ;;  %12029 = vmatprep.mubr.msk.bf16.mxu0 %vm13897_vm0, %v13896_v1 }
  0x2c   :  { %12035 = vmatprep.mubr.msk.bf16.mxu1 %vm13897_vm0, %v13896_v1  ;;  %12039 = vmatprep.subr.bf16.mxu0 %v13896_v1 }
  0x2d   :  { %12047 = vmatprep.subr.bf16.mxu1 %v13896_v1 }
  0x31   :  { %12030 = vmatmul.mubr.msk.bf16.vlgmr.msra.gmra.mrb[20].mxu0 %vm582_vm4, %v567_v50 }
  0x32   :  { %12036 = vmatmul.mubr.msk.bf16.vlgmr.msra.gmra.mrb[20].mxu1 %vm582_vm4, %v568_v51  ;;  %12043 = vmatprep.mubr.msk.bf16.mxu0 %vm13897_vm0, %v13896_v1 }
  0x33   :  { %12051 = vmatprep.mubr.msk.bf16.mxu1 %vm13897_vm0, %v13896_v1 }
  0x34   :  { %17 = vsyncpa [#allocation5], 0  ;;  %v57_v27 = vld [vmem:[%s16405_s5] sm:$0xf]  ;;  %s13900_s23 = smov 64   ;;  %s13901_s24 = smov 32  }
  0x35   :  { %v14111_v31 = vrot.slane %v57_v27, 1  ;;  %v14114_v42 = vrot.slane %v57_v27, 2  ;;  %v14116_v46 = vrot.slane %v57_v27, 3  ;;  %vm1136_vm5 = vcmask 1041409  }
  0x36   :  { %vm1139_vm6 = vcmask 1042434   ;;  %vm1142_vm7 = vcmask 1043459   ;;  %vm1145_vm8 = vcmask 60416   ;;  %vm1204_vm9 = vcmask 1043456  }
  0x37   :  { %vm1200_vm10 = vcmask 64512   ;;  %vm1873_vm11 = vcmask 76800   ;;  %vm1949_vm12 = vcmask 73728  }
  0xdc   :  { %v154_v52 = vpop.f32.mrb[0].mxu0 }
  0xdd   :  { %v11957_v53 = vpop.f32.mrb[1].mxu0  ;;  %v206_v54 = vpop.f32.mrb[0].mxu1 }
  0xde   :  { %v157_v55 = vpop.f32.mrb[2].mxu0  ;;  %v11965_v56 = vpop.f32.mrb[1].mxu1 }
  0xdf   :  { %v11958_v57 = vpop.f32.mrb[3].mxu0  ;;  %v209_v58 = vpop.f32.mrb[2].mxu1 }
  0xe0   :  { %v11966_v59 = vpop.f32.mrb[3].mxu1 }
  0xe4   :  { %v258_v60 = vpop.f32.mrb[4].mxu0 }
  0xe5   :  { %v11973_v61 = vpop.f32.mrb[5].mxu0  ;;  %v310_v62 = vpop.f32.mrb[4].mxu1 }
  0xe6   :  { %v261_v63 = vpop.f32.mrb[6].mxu0  ;;  %v11981_v0 = vpop.f32.mrb[5].mxu1 }
  0xe7   :  { %v11974_v2 = vpop.f32.mrb[7].mxu0  ;;  %v313_v3 = vpop.f32.mrb[6].mxu1 }
  0xe8   :  { %v11982_v4 = vpop.f32.mrb[7].mxu1 }
  0xec   :  { %v365_v5 = vpop.f32.mrb[8].mxu0 }
  0xed   :  { %v366_v6 = vadd.f32 %v365_v5, %v154_v52  ;;  %v420_v7 = vpop.f32.mrb[8].mxu1  ;;  %v11989_v8 = vpop.f32.mrb[9].mxu0 }
  0xee   :  { %v421_v9 = vadd.f32 %v420_v7, %v206_v54  ;;  %v368_v10 = vpop.f32.mrb[10].mxu0  ;;  %v11997_v12 = vpop.f32.mrb[9].mxu1 }
  0xef   :  { %v11990_v13 = vpop.f32.mrb[11].mxu0  ;;  %v423_v14 = vpop.f32.mrb[10].mxu1 }
  0xf0   :  { %v11998_v15 = vpop.f32.mrb[11].mxu1 }
  0xf4   :  { %v475_v16 = vpop.f32.mrb[12].mxu0 }
  0xf5   :  { %v476_v17 = vadd.f32 %v475_v16, %v258_v60  ;;  %v530_v18 = vpop.f32.mrb[12].mxu1  ;;  %v12005_v19 = vpop.f32.mrb[13].mxu0 }
  0xf6   :  { %v531_v20 = vadd.f32 %v530_v18, %v310_v62  ;;  %v478_v21 = vpop.f32.mrb[14].mxu0  ;;  %v12013_v22 = vpop.f32.mrb[13].mxu1 }
  0xf7   :  { %v12006_v24 = vpop.f32.mrb[15].mxu0  ;;  %v533_v25 = vpop.f32.mrb[14].mxu1 }
  0xf8   :  { %v12014_v26 = vpop.f32.mrb[15].mxu1 }
  0xfc   :  { %v624_v28 = vpop.f32.mrb[16].mxu0 }
  0xfd   :  { %v783_v29 = vadd.f32 %v624_v28, %v366_v6  ;;  %v675_v30 = vpop.f32.mrb[16].mxu1  ;;  %v12019_v32 = vpop.f32.mrb[17].mxu0 }
  0xfe   :  { %v784_v33 = vadd.f32 %v675_v30, %v421_v9  ;;  %v627_v34 = vpop.f32.mrb[18].mxu0  ;;  %v12025_v36 = vpop.f32.mrb[17].mxu1 }
  0xff   :  { %v795_v37 = vadd.f32 %v783_v29, %v57_v27  ;;  %v12020_v38 = vpop.f32.mrb[19].mxu0  ;;  %v678_v39 = vpop.f32.mrb[18].mxu1 }
 0x100   :  { %v12026_v40 = vpop.f32.mrb[19].mxu1  ;;  %v796_v41 = vadd.f32 %v14111_v31, %v784_v33  ;;  %v14144_v39 = vld [vmem:[%s16401_s1] sm:$0xff]  }
 0x101   :  { %13436 = vtanh.f32 %v795_v37  ;;  %v11106_v60 = vmul.f32 -1.442695, %v795_v37  ;;  %v13234_v40 = vld [vmem:[%s16401_s1 + $0x10] sm:$0xff]   ;;  %12040 = vmatpush3.bf16.msra.mxu0 %v14144_v39 }
 0x102   :  { %13438 = vtanh.f32 %v796_v41  ;;  %v11107_v61 = vmul.f32 -1.442695, %v796_v41  ;;  %v13233_v41 = vld [vmem:[%s16401_s1 + $0x8] sm:$0xff]   ;;  %12048 = vmatpush3.bf16.msra.mxu1 %v13234_v40  ;;  %12041 = vmatprep.subr.bf16.mxu0 %v13896_v1 }
 0x103   :  { %12049 = vmatprep.subr.bf16.mxu1 %v13896_v1 }
 0x104   :  { %v726_v43 = vpop.f32.mrb[20].mxu0 }
 0x105   :  { %v785_v44 = vadd.f32 %v726_v43, %v476_v17  ;;  %v777_v45 = vpop.f32.mrb[20].mxu1  ;;  %v12031_v47 = vpop.f32.mrb[21].mxu0  ;;  %12042 = vmatpush3.bf16.msra.mxu0 %v13233_v41 }
 0x106   :  { %v786_v48 = vadd.f32 %v777_v45, %v531_v20  ;;  %v729_v49 = vpop.f32.mrb[22].mxu0  ;;  %v12037_v50 = vpop.f32.mrb[21].mxu1  ;;  %12055 = vmatprep.subr.bf16.mxu0 %v13896_v1  ;;  %v14162_v45 = vld [vmem:[%s16401_s1 + $0x18] sm:$0xff]  }
 0x107   :  { %v797_v51 = vadd.f32 %v14114_v42, %v785_v44  ;;  %v12032_v52 = vpop.f32.mrb[23].mxu0  ;;  %v780_v53 = vpop.f32.mrb[22].mxu1  ;;  %12050 = vmatpush3.bf16.msra.mxu1 %v14162_v45 }
 0x108   :  { %v12038_v54 = vpop.f32.mrb[23].mxu1  ;;  %v798_v55 = vadd.f32 %v14116_v46, %v786_v48  ;;  %12063 = vmatprep.subr.bf16.mxu1 %v13896_v1 }
 0x109   :  { %13440 = vtanh.f32 %v797_v51  ;;  %v11108_v62 = vmul.f32 -1.442695, %v797_v51 }
 0x10a   :  { %13442 = vtanh.f32 %v798_v55  ;;  %v11109_v63 = vmul.f32 -1.442695, %v798_v55 }
 0x10b   :  { %v13437_v56 = vpop.eup %13436  ;;  %13444 = vpow2.f32 %v11106_v60 }
 0x10c   :  { %835 = vrot.lane.b32.xlu0 %v13437_v56, %s13900_s23  ;;  %v13439_v57 = vpop.eup %13438  ;;  %13446 = vpow2.f32 %v11107_v61  ;;  %v13237_v61 = vld [vmem:[%s16401_s1 + $0x28] sm:$0xff]  }
 0x10d   :  { %13448 = vpow2.f32 %v11108_v62  ;;  %v13238_v62 = vld [vmem:[%s16401_s1 + $0x30] sm:$0xff]  }
 0x10e   :  { %13450 = vpow2.f32 %v11109_v63 }
 0x110   :  { %837 = vrot.lane.b32.xlu0 %v13439_v57, %s13900_s23 }
 0x113   :  { %v13441_v58 = vpop.eup %13440 }
 0x114   :  { %839 = vrot.lane.b32.xlu1 %v13441_v58, %s13900_s23  ;;  %v13443_v59 = vpop.eup %13442 }
 0x115   :  { %v13445_v0 = vpop.eup %13444 }
 0x116   :  { %v811_v2 = vadd.f32 1.0, %v13445_v0  ;;  %v13447_v3 = vpop.eup %13446  ;;  %v13239_v0 = vld [vmem:[%s16401_s1 + $0x38] sm:$0xff]  }
 0x117   :  { %v812_v4 = vadd.f32 1.0, %v13447_v3  ;;  %v13449_v5 = vpop.eup %13448 }
 0x118   :  { %841 = vrot.lane.b32.xlu1 %v13443_v59, %s13900_s23  ;;  %13452 = vrcp.f32 %v811_v2  ;;  %v813_v6 = vadd.f32 1.0, %v13449_v5  ;;  %v13451_v7 = vpop.eup %13450  ;;  %v13236_v59 = vld [vmem:[%s16401_s1 + $0x20] sm:$0xff]  }
 0x119   :  { %13454 = vrcp.f32 %v812_v4  ;;  %v814_v8 = vadd.f32 1.0, %v13451_v7 }
 0x11a   :  { %13456 = vrcp.f32 %v813_v6 }
 0x11b   :  { %13458 = vrcp.f32 %v814_v8 }
 0x122   :  { %v13453_v9 = vpop.eup %13452 }
 0x123   :  { %v13455_v13 = vpop.eup %13454  ;;  %v827_v22 = vmul.f32 0.0, %v13453_v9 }
 0x124   :  { %v13457_v16 = vpop.eup %13456  ;;  %v828_v26 = vmul.f32 0.0, %v13455_v13 }
 0x125   :  { %v13459_v19 = vpop.eup %13458  ;;  %v829_v29 = vmul.f32 0.0, %v13457_v16 }
 0x126   :  { %v830_v33 = vmul.f32 0.0, %v13459_v19 }
 0x17e   :  { %v836_v10 = vpop.permute.xlu0 %835 }
 0x17f   :  { %v847_v12 = vmul.f32 %v13453_v9, %v836_v10 }
 0x181   :  { %855 = vrot.lane.b32.xlu0 %v847_v12, %s13901_s24 }
 0x182   :  { %v838_v14 = vpop.permute.xlu0 %837 }
 0x183   :  { %v848_v15 = vmul.f32 %v13455_v13, %v838_v14 }
 0x185   :  { %857 = vrot.lane.b32.xlu1 %v848_v15, %s13901_s24 }
 0x186   :  { %v840_v17 = vpop.permute.xlu1 %839 }
 0x187   :  { %v849_v18 = vmul.f32 %v13457_v16, %v840_v17 }
 0x189   :  { %859 = vrot.lane.b32.xlu0 %v849_v18, %s13901_s24 }
 0x18a   :  { %v842_v20 = vpop.permute.xlu1 %841 }
 0x18b   :  { %v850_v21 = vmul.f32 %v13459_v19, %v842_v20 }
 0x18d   :  { %861 = vrot.lane.b32.xlu1 %v850_v21, %s13901_s24 }
 0x1f3   :  { %v856_v24 = vpop.permute.xlu0 %855 }
 0x1f4   :  { %v14128_v25 = vadd.f32 %v856_v24, %v827_v22 }
 0x1f6   :  { %13460 = vtanh.f32 %v14128_v25 }
 0x1f7   :  { %v858_v27 = vpop.permute.xlu1 %857 }
 0x1f8   :  { %v14131_v28 = vadd.f32 %v858_v27, %v828_v26 }
 0x1fa   :  { %13462 = vtanh.f32 %v14131_v28 }
 0x1fb   :  { %v860_v30 = vpop.permute.xlu0 %859 }
 0x1fc   :  { %v14134_v32 = vadd.f32 %v860_v30, %v829_v29 }
 0x1fe   :  { %13464 = vtanh.f32 %v14134_v32 }
 0x1ff   :  { %v862_v34 = vpop.permute.xlu1 %861 }
 0x200   :  { %v13461_v36 = vpop.eup %13460  ;;  %v14137_v37 = vadd.f32 %v862_v34, %v830_v33 }
 0x201   :  { %879 = vrot.lane.b32.xlu0 %v13461_v36, %s13900_s23 }
 0x202   :  { %13466 = vtanh.f32 %v14137_v37 }
 0x204   :  { %v13463_v38 = vpop.eup %13462 }
 0x205   :  { %881 = vrot.lane.b32.xlu1 %v13463_v38, %s13900_s23 }
 0x208   :  { %v13465_v43 = vpop.eup %13464 }
 0x209   :  { %883 = vrot.lane.b32.xlu0 %v13465_v43, %s13900_s23 }
 0x20c   :  { %v13467_v44 = vpop.eup %13466 }
 0x20d   :  { %885 = vrot.lane.b32.xlu1 %v13467_v44, %s13900_s23 }
 0x273   :  { %v880_v47 = vpop.permute.xlu0 %879 }
 0x274   :  { %v891_v48 = vmul.f32 %v13453_v9, %v880_v47 }
 0x276   :  { %v895_v49 = vpack.c.bf16 %v891_v48, %v891_v48 }
 0x277   :  { %v882_v50 = vpop.permute.xlu1 %881 }
 0x278   :  { %v892_v51 = vmul.f32 %v13455_v13, %v882_v50  ;;  %900 = vrot.lane.b32.xlu0 %v895_v49, %s13901_s24 }
 0x27a   :  { %v896_v52 = vpack.c.bf16 %v892_v51, %v892_v51 }
 0x27b   :  { %v884_v53 = vpop.permute.xlu0 %883 }
 0x27c   :  { %v893_v54 = vmul.f32 %v13457_v16, %v884_v53  ;;  %958 = vrot.lane.b32.xlu1 %v896_v52, %s13901_s24 }
 0x27e   :  { %v897_v55 = vpack.c.bf16 %v893_v54, %v893_v54 }
 0x27f   :  { %v886_v56 = vpop.permute.xlu1 %885 }
 0x280   :  { %v894_v57 = vmul.f32 %v13459_v19, %v886_v56  ;;  %1016 = vrot.lane.b32.xlu0 %v897_v55, %s13901_s24 }
 0x282   :  { %v898_v58 = vpack.c.bf16 %v894_v57, %v894_v57 }
 0x284   :  { %1074 = vrot.lane.b32.xlu1 %v898_v58, %s13901_s24 }
 0x2ea   :  { %v14173_v60 = vpop.permute.xlu0 %900 }
 0x2eb   :  { %12044 = vmatmul.mubr.msk.bf16.vlgmr.msra.gmra.mrb[24].mxu0 %vm116_vm1, %v14173_v60 }
 0x2ec   :  { %12056 = vmatpush3.bf16.msra.mxu0 %v13236_v59  ;;  %12059 = vmatprep.mubr.msk.bf16.mxu0 %vm13897_vm0, %v13896_v1 }
 0x2ed   :  { %12057 = vmatprep.subr.bf16.mxu0 %v13896_v1 }
 0x2ee   :  { %v14186_v63 = vpop.permute.xlu1 %958 }
 0x2ef   :  { %12052 = vmatmul.mubr.msk.bf16.vlgmr.msra.gmra.mrb[24].mxu1 %vm116_vm1, %v14186_v63 }
 0x2f0   :  { %12058 = vmatpush3.bf16.msra.mxu0 %v13237_v61  ;;  %12064 = vmatpush3.bf16.msra.mxu1 %v13238_v62 }
 0x2f1   :  { %12065 = vmatprep.subr.bf16.mxu1 %v13896_v1  ;;  %12067 = vmatprep.mubr.msk.bf16.mxu1 %vm13897_vm0, %v13896_v1 }
 0x2f2   :  { %v14196_v2 = vpop.permute.xlu0 %1016  ;;  %12071 = vmatprep.subr.bf16.mxu0 %v13896_v1 }
 0x2f3   :  { %12060 = vmatmul.mubr.msk.bf16.vlgmr.msra.gmra.mrb[28].mxu0 %vm116_vm1, %v14196_v2 }
 0x2f4   :  { %12066 = vmatpush3.bf16.msra.mxu1 %v13239_v0  ;;  %12073 = vmatprep.mubr.msk.bf16.mxu0 %vm13897_vm0, %v13896_v1  ;;  %v13796_v0 = vld [vmem:[%s16400_s0] sm:$0xf] }
 0x2f5   :  { %12077 = vmatprep.subr.bf16.mxu1 %v13896_v1 }
 0x2f6   :  { %v14204_v3 = vpop.permute.xlu1 %1074 }
 0x2f7   :  { %12068 = vmatmul.mubr.msk.bf16.vlgmr.msra.gmra.mrb[28].mxu1 %vm116_vm1, %v14204_v3 }
 0x2f8   :  { %12079 = vmatprep.mubr.msk.bf16.mxu1 %vm13897_vm0, %v13896_v1 }
 0x3be   :  { %v951_v4 = vpop.f32.mrb[24].mxu0 }
 0x3bf   :  { %v12045_v5 = vpop.f32.mrb[25].mxu0 }
 0x3c0   :  { %v954_v6 = vpop.f32.mrb[26].mxu0  ;;  %v13797_v5 = vld [vmem:[%s16400_s0 + $0x4] sm:$0xf] }
 0x3c1   :  { %v12046_v7 = vpop.f32.mrb[27].mxu0  ;;  %v14228_v6 = vsel %vm1204_vm9, %v13797_v5, 0 }
 0x3c2   :  { %v1009_v8 = vpop.f32.mrb[24].mxu1  ;;  %12078 = vmatpush3.bf16.msra.mxu1 %v14228_v6 }
 0x3c3   :  { %v1135_v9 = vrot.slane %v1009_v8, 7  ;;  %v12053_v10 = vpop.f32.mrb[25].mxu1  ;;  %12089 = vmatprep.subr.bf16.mxu1 %v13896_v1 }
 0x3c4   :  { %v1012_v12 = vpop.f32.mrb[26].mxu1 }
 0x3c5   :  { %v12054_v13 = vpop.f32.mrb[27].mxu1  ;;  %v1137_v14 = vsel %vm1136_vm5, %v1135_v9, %v951_v4 }
 0x3c6   :  { %v1067_v15 = vpop.f32.mrb[28].mxu0 }
 0x3c7   :  { %v1138_v16 = vrot.slane %v1067_v15, 6  ;;  %v12061_v17 = vpop.f32.mrb[29].mxu0 }
 0x3c8   :  { %v1070_v18 = vpop.f32.mrb[30].mxu0 }
 0x3c9   :  { %v12062_v19 = vpop.f32.mrb[31].mxu0  ;;  %v1140_v20 = vsel %vm1139_vm6, %v1138_v16, %v1137_v14  ;;  %v13798_v14 = vld [vmem:[%s16400_s0 + $0x8] sm:$0xf] }
 0x3ca   :  { %v1125_v21 = vpop.f32.mrb[28].mxu1 }
 0x3cb   :  { %v1141_v22 = vrot.slane %v1125_v21, 5  ;;  %v12069_v24 = vpop.f32.mrb[29].mxu1 }
 0x3cc   :  { %v1128_v26 = vpop.f32.mrb[30].mxu1 }
 0x3cd   :  { %v12070_v27 = vpop.f32.mrb[31].mxu1  ;;  %v1143_v29 = vsel %vm1142_vm7, %v1141_v22, %v1140_v20  ;;  %v13799_v22 = vld [vmem:[%s16400_s0 + $0xc] sm:$0xf] }
 0x3ce   :  { %v1146_v30 = vsel %vm1145_vm8, %v1143_v29, -inf  ;;  %v14245_v24 = vsel %vm1204_vm9, %v13799_v22, 0  ;;  %v13255_v22 = vld [vmem:[%s16406_s6 + $0x38] sm:$0xff]  }
 0x3cf   :  { %1147 = vmax.xlane.f32.xlu0 %v1146_v30 }
 0x45c   :  { %v1148_v33 = vpop.xlane.xlu0 %1147 }
 0x45d   :  { %v1150_v34 = vrot.slane %v1148_v33, 1  ;;  %v1151_v36 = vrot.slane %v1148_v33, 2  ;;  %v1152_v38 = vrot.slane %v1148_v33, 3  ;;  %v1157_v40 = vsub.f32 %v951_v4, %v1148_v33 }
 0x45e   :  { %v14222_v4 = vsel %vm1204_vm9, %v13796_v0, 0 }
 0x45f   :  { %v1158_v41 = vsub.f32 %v1009_v8, %v1150_v34  ;;  %v1159_v43 = vsub.f32 %v1067_v15, %v1151_v36  ;;  %v1160_v44 = vsub.f32 %v1125_v21, %v1152_v38  ;;  %v1161_v47 = vmul.f32 1.442695, %v1157_v40  ;;  %12072 = vmatpush3.bf16.msra.mxu0 %v14222_v4  ;;  %v13240_v34 = vld [vmem:[%s16407_s7] sm:$0xff]   ;;  %v13241_v38 = vld [vmem:[%s16407_s7 + $0x10] sm:$0xff]  }
 0x460   :  { %12083 = vmatprep.subr.bf16.mxu0 %v13896_v1  ;;  %v14238_v15 = vsel %vm1204_vm9, %v13798_v14, 0 }
 0x461   :  { %v1163_v48 = vmul.f32 1.442695, %v1158_v41  ;;  %v1165_v49 = vmul.f32 1.442695, %v1159_v43  ;;  %v1167_v50 = vmul.f32 1.442695, %v1160_v44  ;;  %13468 = vpow2.f32 %v1161_v47 }
 0x462   :  { %v13242_v41 = vld [vmem:[%s16407_s7 + $0x8] sm:$0xff]   ;;  %v13243_v43 = vld [vmem:[%s16407_s7 + $0x18] sm:$0xff]   ;;  %v13244_v47 = vld [vmem:[%s16407_s7 + $0x20] sm:$0xff]  }
 0x463   :  { %13470 = vpow2.f32 %v1163_v48 }
 0x464   :  { %13472 = vpow2.f32 %v1165_v49 }
 0x465   :  { %13474 = vpow2.f32 %v1167_v50 }
 0x46b   :  { %v13469_v51 = vpop.eup %13468 }
 0x46d   :  { %v13471_v52 = vpop.eup %13470 }
 0x46e   :  { %v13473_v53 = vpop.eup %13472  ;;  %v1173_v54 = vrot.slane %v13471_v52, 7 }
 0x46f   :  { %v13475_v55 = vpop.eup %13474  ;;  %v1175_v56 = vrot.slane %v13473_v53, 6 }
 0x470   :  { %v1174_v57 = vsel %vm1136_vm5, %v1173_v54, %v13469_v51  ;;  %v1177_v58 = vrot.slane %v13475_v55, 5 }
 0x471   :  { %v1176_v59 = vsel %vm1139_vm6, %v1175_v56, %v1174_v57  ;;  %v13246_v57 = vld [vmem:[%s16407_s7 + $0x28] sm:$0xff]  }
 0x472   :  { %v1178_v61 = vsel %vm1142_vm7, %v1177_v58, %v1176_v59  ;;  %v13247_v59 = vld [vmem:[%s16407_s7 + $0x38] sm:$0xff]  }
 0x473   :  { %v1180_v62 = vsel %vm1145_vm8, %v1178_v61, 0.0 }
 0x474   :  { %1181 = vadd.xlane.f32.xlu1 %v1180_v62  ;;  %v13248_v62 = vld [vmem:[%s16406_s6] sm:$0xff]  }
 0x501   :  { %v1182_v7 = vpop.xlane.xlu1 %1181 }
 0x502   :  { %13476 = vrcp.f32 %v1182_v7 }
 0x50c   :  { %v13477_v8 = vpop.eup %13476 }
 0x50d   :  { %v1192_v9 = vmul.f32 %v13477_v8, %v13469_v51  ;;  %v1185_v10 = vrot.slane %v13477_v8, 1  ;;  %v1186_v12 = vrot.slane %v13477_v8, 2  ;;  %v1187_v13 = vrot.slane %v13477_v8, 3 }
 0x50f   :  { %v1196_v16 = vpack.c.bf16 %v1192_v9, %v1192_v9  ;;  %v1193_v17 = vmul.f32 %v13471_v52, %v1185_v10  ;;  %v1194_v18 = vmul.f32 %v13473_v53, %v1186_v12  ;;  %v1195_v19 = vmul.f32 %v13475_v55, %v1187_v13  ;;  %v13245_v52 = vld [vmem:[%s16407_s7 + $0x30] sm:$0xff]  }
 0x511   :  { %12074 = vmatmul.mubr.msk.bf16.vlgmr.msra.gmra.mrb[32].mxu0 %vm1200_vm10, %v1196_v16  ;;  %v1197_v20 = vpack.c.bf16 %v1193_v17, %v1193_v17  ;;  %v1955_v21 = vrot.slane %v1193_v17, 7  ;;  %v1957_v26 = vrot.slane %v1194_v18, 6  ;;  %v1959_v29 = vrot.slane %v1195_v19, 5  ;;  %v13250_v16 = vld [vmem:[%s16406_s6 + $0x8] sm:$0xff]  }
 0x512   :  { %12084 = vmatpush3.bf16.msra.mxu0 %v14238_v15  ;;  %12085 = vmatprep.mubr.msk.bf16.mxu0 %vm13897_vm0, %v13896_v1  ;;  %v1198_v36 = vpack.c.bf16 %v1194_v18, %v1194_v18  ;;  %v1199_v40 = vpack.c.bf16 %v1195_v19, %v1195_v19  ;;  %v13251_v18 = vld [vmem:[%s16406_s6 + $0x18] sm:$0xff]   ;;  %v13252_v19 = vld [vmem:[%s16406_s6 + $0x20] sm:$0xff]  }
 0x513   :  { %12080 = vmatmul.mubr.msk.bf16.vlgmr.msra.gmra.mrb[32].mxu1 %vm1200_vm10, %v1197_v20  ;;  %v1956_v27 = vsel %vm1136_vm5, %v1955_v21, %v1192_v9  ;;  %12095 = vmatprep.subr.bf16.mxu0 %v13896_v1  ;;  %v13249_v9 = vld [vmem:[%s16406_s6 + $0x10] sm:$0xff]   ;;  %v13254_v21 = vld [vmem:[%s16406_s6 + $0x28] sm:$0xff]  }
 0x514   :  { %12090 = vmatpush3.bf16.msra.mxu1 %v14245_v24  ;;  %v1958_v30 = vsel %vm1139_vm6, %v1957_v26, %v1956_v27  ;;  %12091 = vmatprep.mubr.msk.bf16.mxu1 %vm13897_vm0, %v13896_v1  ;;  %v13253_v20 = vld [vmem:[%s16406_s6 + $0x30] sm:$0xff]   ;;  %v13256_v26 = vld [vmem:[%s16404_s4] sm:$0xff]  }
 0x515   :  { %v1960_v33 = vsel %vm1142_vm7, %v1959_v29, %v1958_v30  ;;  %12103 = vmatprep.subr.bf16.mxu1 %v13896_v1  ;;  %v13257_v27 = vld [vmem:[%s16404_s4 + $0x10] sm:$0xff]   ;;  %v13258_v29 = vld [vmem:[%s16404_s4 + $0x8] sm:$0xff]   ;;  %v13259_v30 = vld [vmem:[%s16404_s4 + $0x18] sm:$0xff]  }
 0x516   :  { %1962 = vst.msk [vmem:[#allocation4] sm:$0xf] %vm1145_vm8, %v1960_v33  ;;  %v13260_v33 = vld [vmem:[%s16404_s4 + $0x20] sm:$0xff]  }
 0x519   :  { %12086 = vmatmul.mubr.msk.bf16.vlgmr.msra.gmra.mrb[36].mxu0 %vm1200_vm10, %v1198_v36  ;;  %v13262_v36 = vld [vmem:[%s16404_s4 + $0x28] sm:$0xff]  }
 0x51a   :  { %12096 = vmatpush3.bf16.msra.mxu0 %v13240_v34  ;;  %12099 = vmatprep.mubr.msk.bf16.mxu0 %vm13897_vm0, %v13896_v1  ;;  %v13261_v34 = vld [vmem:[%s16404_s4 + $0x30] sm:$0xff]  }
 0x51b   :  { %12092 = vmatmul.mubr.msk.bf16.vlgmr.msra.gmra.mrb[36].mxu1 %vm1200_vm10, %v1199_v40  ;;  %12097 = vmatprep.subr.bf16.mxu0 %v13896_v1  ;;  %v13266_v40 = vld [vmem:[%s16403_s3 + $0x8] sm:$0xff]  }
 0x51c   :  { %12104 = vmatpush3.bf16.msra.mxu1 %v13241_v38  ;;  %12107 = vmatprep.mubr.msk.bf16.mxu1 %vm13897_vm0, %v13896_v1  ;;  %v13264_v38 = vld [vmem:[%s16403_s3] sm:$0xff]  }
 0x51d   :  { %12105 = vmatprep.subr.bf16.mxu1 %v13896_v1 }
 0x51e   :  { %12098 = vmatpush3.bf16.msra.mxu0 %v13242_v41  ;;  %v13268_v41 = vld [vmem:[%s16403_s3 + $0x20] sm:$0xff]  }
 0x51f   :  { %12111 = vmatprep.subr.bf16.mxu0 %v13896_v1 }
 0x520   :  { %12106 = vmatpush3.bf16.msra.mxu1 %v13243_v43  ;;  %v13270_v43 = vld [vmem:[%s16403_s3 + $0x28] sm:$0xff]  }
 0x521   :  { %12119 = vmatprep.subr.bf16.mxu1 %v13896_v1 }
 0x5e4   :  { %v1242_v44 = vpop.f32.mrb[32].mxu0 }
 0x5e5   :  { %v14285_v48 = vpack.c.bf16 %v1242_v44, %v1242_v44  ;;  %v12075_v49 = vpop.f32.mrb[33].mxu0  ;;  %v13271_v44 = vld [vmem:[%s16403_s3 + $0x38] sm:$0xff]  }
 0x5e6   :  { %v1245_v50 = vpop.f32.mrb[34].mxu0  ;;  %v1288_v51 = vpop.f32.mrb[32].mxu1 }
 0x5e7   :  { %v14290_v53 = vpack.c.bf16 %v1288_v51, %v1288_v51  ;;  %v12076_v54 = vpop.f32.mrb[35].mxu0  ;;  %v12081_v55 = vpop.f32.mrb[33].mxu1  ;;  %12100 = vmatmul.mubr.msk.bf16.vlgmr.msra.gmra.mrb[40].mxu0 %vm116_vm1, %v14285_v48 }
 0x5e8   :  { %v1291_v56 = vpop.f32.mrb[34].mxu1  ;;  %12112 = vmatpush3.bf16.msra.mxu0 %v13244_v47  ;;  %12115 = vmatprep.mubr.msk.bf16.mxu0 %vm13897_vm0, %v13896_v1 }
 0x5e9   :  { %v12082_v58 = vpop.f32.mrb[35].mxu1  ;;  %12108 = vmatmul.mubr.msk.bf16.vlgmr.msra.gmra.mrb[40].mxu1 %vm116_vm1, %v14290_v53  ;;  %12113 = vmatprep.subr.bf16.mxu0 %v13896_v1 }
 0x5ea   :  { %12120 = vmatpush3.bf16.msra.mxu1 %v13245_v52  ;;  %12123 = vmatprep.mubr.msk.bf16.mxu1 %vm13897_vm0, %v13896_v1 }
 0x5eb   :  { %12121 = vmatprep.subr.bf16.mxu1 %v13896_v1 }
 0x5ec   :  { %v1334_v61 = vpop.f32.mrb[36].mxu0  ;;  %12114 = vmatpush3.bf16.msra.mxu0 %v13246_v57 }
 0x5ed   :  { %v14311_v0 = vpack.c.bf16 %v1334_v61, %v1334_v61  ;;  %v12087_v5 = vpop.f32.mrb[37].mxu0  ;;  %12127 = vmatprep.subr.bf16.mxu0 %v13896_v1 }
 0x5ee   :  { %v1337_v7 = vpop.f32.mrb[38].mxu0  ;;  %v1380_v8 = vpop.f32.mrb[36].mxu1  ;;  %12122 = vmatpush3.bf16.msra.mxu1 %v13247_v59  ;;  %v58_v5 = vld [vmem:[%s16408_s8] sm:$0xf] }
 0x5ef   :  { %v14317_v10 = vpack.c.bf16 %v1380_v8, %v1380_v8  ;;  %v12088_v12 = vpop.f32.mrb[39].mxu0  ;;  %v12093_v13 = vpop.f32.mrb[37].mxu1  ;;  %12116 = vmatmul.mubr.msk.bf16.vlgmr.msra.gmra.mrb[44].mxu0 %vm116_vm1, %v14311_v0  ;;  %12135 = vmatprep.subr.bf16.mxu1 %v13896_v1 }
 0x5f0   :  { %v1383_v14 = vpop.f32.mrb[38].mxu1  ;;  %12128 = vmatpush3.bf16.msra.mxu0 %v13248_v62  ;;  %12131 = vmatprep.mubr.msk.bf16.mxu0 %vm13897_vm0, %v13896_v1  ;;  %v14469_v13 = vrot.slane %v58_v5, 1 }
 0x5f1   :  { %v12094_v17 = vpop.f32.mrb[39].mxu1  ;;  %12124 = vmatmul.mubr.msk.bf16.vlgmr.msra.gmra.mrb[44].mxu1 %vm116_vm1, %v14317_v10  ;;  %12129 = vmatprep.subr.bf16.mxu0 %v13896_v1 }
 0x5f2   :  { %12136 = vmatpush3.bf16.msra.mxu1 %v13249_v9  ;;  %12139 = vmatprep.mubr.msk.bf16.mxu1 %vm13897_vm0, %v13896_v1 }
 0x5f3   :  { %12137 = vmatprep.subr.bf16.mxu1 %v13896_v1 }
 0x5f4   :  { %12130 = vmatpush3.bf16.msra.mxu0 %v13250_v16 }
 0x5f5   :  { %12143 = vmatprep.subr.bf16.mxu0 %v13896_v1 }
 0x5f6   :  { %12138 = vmatpush3.bf16.msra.mxu1 %v13251_v18 }
 0x5f7   :  { %12132 = vmatmul.mubr.msk.bf16.vlgmr.msra.gmra.mrb[48].mxu0 %vm116_vm1, %v14173_v60  ;;  %12151 = vmatprep.subr.bf16.mxu1 %v13896_v1 }
 0x5f8   :  { %12144 = vmatpush3.bf16.msra.mxu0 %v13252_v19  ;;  %12147 = vmatprep.mubr.msk.bf16.mxu0 %vm13897_vm0, %v13896_v1 }
 0x5f9   :  { %12140 = vmatmul.mubr.msk.bf16.vlgmr.msra.gmra.mrb[48].mxu1 %vm116_vm1, %v14186_v63  ;;  %12145 = vmatprep.subr.bf16.mxu0 %v13896_v1 }
 0x5fa   :  { %12152 = vmatpush3.bf16.msra.mxu1 %v13253_v20  ;;  %12155 = vmatprep.mubr.msk.bf16.mxu1 %vm13897_vm0, %v13896_v1 }
 0x5fb   :  { %12153 = vmatprep.subr.bf16.mxu1 %v13896_v1 }
 0x5fc   :  { %12146 = vmatpush3.bf16.msra.mxu0 %v13254_v21  ;;  %v14474_v21 = vrot.slane %v58_v5, 2 }
 0x5fd   :  { %12159 = vmatprep.subr.bf16.mxu0 %v13896_v1 }
 0x5fe   :  { %12154 = vmatpush3.bf16.msra.mxu1 %v13255_v22 }
 0x5ff   :  { %12148 = vmatmul.mubr.msk.bf16.vlgmr.msra.gmra.mrb[52].mxu0 %vm116_vm1, %v14196_v2  ;;  %12167 = vmatprep.subr.bf16.mxu1 %v13896_v1 }
 0x600   :  { %12160 = vmatpush3.bf16.msra.mxu0 %v13256_v26  ;;  %12163 = vmatprep.mubr.msk.bf16.mxu0 %vm13897_vm0, %v13896_v1 }
 0x601   :  { %12156 = vmatmul.mubr.msk.bf16.vlgmr.msra.gmra.mrb[52].mxu1 %vm116_vm1, %v14204_v3  ;;  %12161 = vmatprep.subr.bf16.mxu0 %v13896_v1 }
 0x602   :  { %12168 = vmatpush3.bf16.msra.mxu1 %v13257_v27  ;;  %12171 = vmatprep.mubr.msk.bf16.mxu1 %vm13897_vm0, %v13896_v1 }
 0x603   :  { %12169 = vmatprep.subr.bf16.mxu1 %v13896_v1 }
 0x604   :  { %12162 = vmatpush3.bf16.msra.mxu0 %v13258_v29  ;;  %v14476_v29 = vrot.slane %v58_v5, 3 }
 0x605   :  { %12175 = vmatprep.subr.bf16.mxu0 %v13896_v1 }
 0x606   :  { %12170 = vmatpush3.bf16.msra.mxu1 %v13259_v30 }
 0x607   :  { %12164 = vmatmul.mubr.msk.bf16.vlgmr.msra.gmra.mrb[56].mxu0 %vm116_vm1, %v14173_v60  ;;  %12183 = vmatprep.subr.bf16.mxu1 %v13896_v1  ;;  %v13263_v60 = vld [vmem:[%s16404_s4 + $0x38] sm:$0xff]  }
 0x608   :  { %12176 = vmatpush3.bf16.msra.mxu0 %v13260_v33  ;;  %12179 = vmatprep.mubr.msk.bf16.mxu0 %vm13897_vm0, %v13896_v1 }
 0x609   :  { %12172 = vmatmul.mubr.msk.bf16.vlgmr.msra.gmra.mrb[56].mxu1 %vm116_vm1, %v14186_v63  ;;  %12177 = vmatprep.subr.bf16.mxu0 %v13896_v1  ;;  %v13265_v63 = vld [vmem:[%s16403_s3 + $0x10] sm:$0xff]  }
 0x60a   :  { %12184 = vmatpush3.bf16.msra.mxu1 %v13261_v34  ;;  %12187 = vmatprep.mubr.msk.bf16.mxu1 %vm13897_vm0, %v13896_v1 }
 0x60b   :  { %12185 = vmatprep.subr.bf16.mxu1 %v13896_v1 }
 0x60c   :  { %12178 = vmatpush3.bf16.msra.mxu0 %v13262_v36 }
 0x60d   :  { %12191 = vmatprep.subr.bf16.mxu0 %v13896_v1 }
 0x60e   :  { %12186 = vmatpush3.bf16.msra.mxu1 %v13263_v60 }
 0x60f   :  { %12180 = vmatmul.mubr.msk.bf16.vlgmr.msra.gmra.mrb[60].mxu0 %vm116_vm1, %v14196_v2  ;;  %12199 = vmatprep.subr.bf16.mxu1 %v13896_v1  ;;  %v13267_v2 = vld [vmem:[%s16403_s3 + $0x18] sm:$0xff]  }
 0x610   :  { %12192 = vmatpush3.bf16.msra.mxu0 %v13264_v38  ;;  %12195 = vmatprep.mubr.msk.bf16.mxu0 %vm13897_vm0, %v13896_v1 }
 0x611   :  { %12188 = vmatmul.mubr.msk.bf16.vlgmr.msra.gmra.mrb[60].mxu1 %vm116_vm1, %v14204_v3  ;;  %12193 = vmatprep.subr.bf16.mxu0 %v13896_v1  ;;  %v13269_v3 = vld [vmem:[%s16403_s3 + $0x30] sm:$0xff]  }
 0x612   :  { %12200 = vmatpush3.bf16.msra.mxu1 %v13265_v63  ;;  %12203 = vmatprep.mubr.msk.bf16.mxu1 %vm13897_vm0, %v13896_v1 }
 0x613   :  { %12201 = vmatprep.subr.bf16.mxu1 %v13896_v1 }
 0x614   :  { %12194 = vmatpush3.bf16.msra.mxu0 %v13266_v40 }
 0x615   :  { %12207 = vmatprep.subr.bf16.mxu0 %v13896_v1 }
 0x616   :  { %12202 = vmatpush3.bf16.msra.mxu1 %v13267_v2 }
 0x617   :  { %12196 = vmatmul.mubr.msk.bf16.vlgmr.msra.gmra.mrb[64].mxu0 %vm116_vm1, %v14285_v48  ;;  %12215 = vmatprep.subr.bf16.mxu1 %v13896_v1 }
 0x618   :  { %12208 = vmatpush3.bf16.msra.mxu0 %v13268_v41  ;;  %12211 = vmatprep.mubr.msk.bf16.mxu0 %vm13897_vm0, %v13896_v1 }
 0x619   :  { %12204 = vmatmul.mubr.msk.bf16.vlgmr.msra.gmra.mrb[64].mxu1 %vm116_vm1, %v14290_v53  ;;  %12209 = vmatprep.subr.bf16.mxu0 %v13896_v1 }
 0x61a   :  { %12216 = vmatpush3.bf16.msra.mxu1 %v13269_v3  ;;  %12219 = vmatprep.mubr.msk.bf16.mxu1 %vm13897_vm0, %v13896_v1 }
 0x61b   :  { %12217 = vmatprep.subr.bf16.mxu1 %v13896_v1 }
 0x61c   :  { %12210 = vmatpush3.bf16.msra.mxu0 %v13270_v43 }
 0x61d   :  { %12223 = vmatprep.subr.bf16.mxu0 %v13896_v1 }
 0x61e   :  { %12218 = vmatpush3.bf16.msra.mxu1 %v13271_v44 }
 0x61f   :  { %12212 = vmatmul.mubr.msk.bf16.vlgmr.msra.gmra.mrb[68].mxu0 %vm116_vm1, %v14311_v0  ;;  %12229 = vmatprep.subr.bf16.mxu1 %v13896_v1 }
 0x620   :  { %12225 = vmatprep.mubr.msk.bf16.mxu0 %vm13897_vm0, %v13896_v1 }
 0x621   :  { %12220 = vmatmul.mubr.msk.bf16.vlgmr.msra.gmra.mrb[68].mxu1 %vm116_vm1, %v14317_v10 }
 0x622   :  { %12231 = vmatprep.mubr.msk.bf16.mxu1 %vm13897_vm0, %v13896_v1 }
 0x6ba   :  { %v1471_v47 = vpop.f32.mrb[40].mxu0 }
 0x6bb   :  { %v12101_v48 = vpop.f32.mrb[41].mxu0 }
 0x6bc   :  { %v1474_v49 = vpop.f32.mrb[42].mxu0  ;;  %v1526_v50 = vpop.f32.mrb[40].mxu1 }
 0x6bd   :  { %v12102_v51 = vpop.f32.mrb[43].mxu0  ;;  %v12109_v52 = vpop.f32.mrb[41].mxu1 }
 0x6be   :  { %v1529_v53 = vpop.f32.mrb[42].mxu1 }
 0x6bf   :  { %v12110_v54 = vpop.f32.mrb[43].mxu1 }
 0x6c2   :  { %v1581_v55 = vpop.f32.mrb[44].mxu0 }
 0x6c3   :  { %v12117_v56 = vpop.f32.mrb[45].mxu0 }
 0x6c4   :  { %v1584_v57 = vpop.f32.mrb[46].mxu0  ;;  %v1636_v58 = vpop.f32.mrb[44].mxu1 }
 0x6c5   :  { %v12118_v59 = vpop.f32.mrb[47].mxu0  ;;  %v12125_v61 = vpop.f32.mrb[45].mxu1 }
 0x6c6   :  { %v1639_v62 = vpop.f32.mrb[46].mxu1 }
 0x6c7   :  { %v12126_v0 = vpop.f32.mrb[47].mxu1 }
 0x6ca   :  { %v1688_v7 = vpop.f32.mrb[48].mxu0 }
 0x6cb   :  { %v1689_v8 = vadd.f32 %v1688_v7, %v1471_v47  ;;  %v12133_v9 = vpop.f32.mrb[49].mxu0 }
 0x6cc   :  { %v1691_v10 = vpop.f32.mrb[50].mxu0  ;;  %v1740_v12 = vpop.f32.mrb[48].mxu1 }
 0x6cd   :  { %v1741_v14 = vadd.f32 %v1740_v12, %v1526_v50  ;;  %v12134_v16 = vpop.f32.mrb[51].mxu0  ;;  %v12141_v17 = vpop.f32.mrb[49].mxu1  ;;  %v1858_v40 = vadd.f32 %v1689_v8, %v58_v5 }
 0x6ce   :  { %v1743_v18 = vpop.f32.mrb[50].mxu1 }
 0x6cf   :  { %v12142_v19 = vpop.f32.mrb[51].mxu1  ;;  %v14472_v20 = vadd.f32 %v14469_v13, %v1741_v14 }
 0x6d1   :  { %v1866_v30 = vrot.slane %v14472_v20, 7 }
 0x6d2   :  { %v1792_v22 = vpop.f32.mrb[52].mxu0 }
 0x6d3   :  { %v1793_v26 = vadd.f32 %v1792_v22, %v1581_v55  ;;  %v12149_v27 = vpop.f32.mrb[53].mxu0  ;;  %v1867_v44 = vsel %vm1136_vm5, %v1866_v30, %v1858_v40 }
 0x6d4   :  { %v1795_v33 = vpop.f32.mrb[54].mxu0  ;;  %v1844_v34 = vpop.f32.mrb[52].mxu1 }
 0x6d5   :  { %v1860_v36 = vadd.f32 %v14474_v21, %v1793_v26  ;;  %v1845_v60 = vadd.f32 %v1844_v34, %v1636_v58  ;;  %v12150_v38 = vpop.f32.mrb[55].mxu0  ;;  %v12157_v63 = vpop.f32.mrb[53].mxu1 }
 0x6d6   :  { %v1847_v2 = vpop.f32.mrb[54].mxu1 }
 0x6d7   :  { %v1868_v41 = vrot.slane %v1860_v36, 6  ;;  %v1861_v3 = vadd.f32 %v14476_v29, %v1845_v60  ;;  %v12158_v43 = vpop.f32.mrb[55].mxu1 }
 0x6d9   :  { %v1869_v47 = vsel %vm1139_vm6, %v1868_v41, %v1867_v44  ;;  %v1870_v48 = vrot.slane %v1861_v3, 5 }
 0x6da   :  { %v2064_v49 = vpop.f32.mrb[56].mxu0 }
 0x6db   :  { %v12165_v50 = vpop.f32.mrb[57].mxu0  ;;  %v1871_v51 = vsel %vm1142_vm7, %v1870_v48, %v1869_v47 }
 0x6dc   :  { %v2067_v52 = vpop.f32.mrb[58].mxu0  ;;  %v2116_v53 = vpop.f32.mrb[56].mxu1  ;;  %v1874_v54 = vsel %vm1873_vm11, %v1871_v51, -inf }
 0x6dd   :  { %v12173_v55 = vpop.f32.mrb[57].mxu1  ;;  %1875 = vmax.xlane.f32.xlu0 %v1874_v54  ;;  %v12166_v56 = vpop.f32.mrb[59].mxu0 }
 0x6de   :  { %v2119_v57 = vpop.f32.mrb[58].mxu1 }
 0x6df   :  { %v12174_v58 = vpop.f32.mrb[59].mxu1 }
 0x6e2   :  { %v2168_v59 = vpop.f32.mrb[60].mxu0 }
 0x6e3   :  { %v12181_v61 = vpop.f32.mrb[61].mxu0 }
 0x6e4   :  { %v2171_v62 = vpop.f32.mrb[62].mxu0  ;;  %v2220_v0 = vpop.f32.mrb[60].mxu1 }
 0x6e5   :  { %v12182_v5 = vpop.f32.mrb[63].mxu0  ;;  %v12189_v7 = vpop.f32.mrb[61].mxu1 }
 0x6e6   :  { %v2223_v8 = vpop.f32.mrb[62].mxu1 }
 0x6e7   :  { %v12190_v9 = vpop.f32.mrb[63].mxu1 }
 0x6ea   :  { %v2272_v10 = vpop.f32.mrb[64].mxu0 }
 0x6eb   :  { %v14485_v12 = vadd.f32 %v2272_v10, %v2064_v49  ;;  %v12197_v14 = vpop.f32.mrb[65].mxu0 }
 0x6ec   :  { %v2275_v16 = vpop.f32.mrb[66].mxu0  ;;  %v2324_v17 = vpop.f32.mrb[64].mxu1 }
 0x6ed   :  { %v14487_v18 = vadd.f32 %v2324_v17, %v2116_v53  ;;  %v12198_v19 = vpop.f32.mrb[67].mxu0  ;;  %v12205_v22 = vpop.f32.mrb[65].mxu1 }
 0x6ee   :  { %v2327_v26 = vpop.f32.mrb[66].mxu1 }
 0x6ef   :  { %v12206_v27 = vpop.f32.mrb[67].mxu1 }
 0x6f2   :  { %v2376_v30 = vpop.f32.mrb[68].mxu0 }
 0x6f3   :  { %v14489_v33 = vadd.f32 %v2376_v30, %v2168_v59  ;;  %v12213_v34 = vpop.f32.mrb[69].mxu0 }
 0x6f4   :  { %v2379_v60 = vpop.f32.mrb[70].mxu0  ;;  %v2428_v38 = vpop.f32.mrb[68].mxu1 }
 0x6f5   :  { %v14491_v63 = vadd.f32 %v2428_v38, %v2220_v0  ;;  %v12214_v2 = vpop.f32.mrb[71].mxu0  ;;  %v12221_v41 = vpop.f32.mrb[69].mxu1 }
 0x6f6   :  { %v2431_v43 = vpop.f32.mrb[70].mxu1 }
 0x6f7   :  { %v12222_v44 = vpop.f32.mrb[71].mxu1 }
 0x76a   :  { %v1876_v47 = vpop.xlane.xlu0 %1875 }
 0x76b   :  { %v1878_v48 = vrot.slane %v1876_v47, 1  ;;  %v1879_v49 = vrot.slane %v1876_v47, 2  ;;  %v1880_v50 = vrot.slane %v1876_v47, 3  ;;  %v1885_v51 = vsub.f32 %v1858_v40, %v1876_v47 }
 0x76d   :  { %v1886_v52 = vsub.f32 %v14472_v20, %v1878_v48  ;;  %v1887_v53 = vsub.f32 %v1860_v36, %v1879_v49  ;;  %v1888_v54 = vsub.f32 %v1861_v3, %v1880_v50  ;;  %v1889_v55 = vmul.f32 1.442695, %v1885_v51 }
 0x76f   :  { %v1891_v56 = vmul.f32 1.442695, %v1886_v52  ;;  %v1893_v57 = vmul.f32 1.442695, %v1887_v53  ;;  %v1895_v58 = vmul.f32 1.442695, %v1888_v54  ;;  %13478 = vpow2.f32 %v1889_v55 }
 0x771   :  { %13480 = vpow2.f32 %v1891_v56 }
 0x772   :  { %13482 = vpow2.f32 %v1893_v57 }
 0x773   :  { %13484 = vpow2.f32 %v1895_v58 }
 0x779   :  { %v13479_v59 = vpop.eup %13478 }
 0x77b   :  { %v13481_v61 = vpop.eup %13480 }
 0x77c   :  { %v13483_v62 = vpop.eup %13482  ;;  %v1901_v0 = vrot.slane %v13481_v61, 7 }
 0x77d   :  { %v13485_v5 = vpop.eup %13484  ;;  %v1903_v7 = vrot.slane %v13483_v62, 6 }
 0x77e   :  { %v1902_v40 = vsel %vm1136_vm5, %v1901_v0, %v13479_v59  ;;  %v1905_v8 = vrot.slane %v13485_v5, 5 }
 0x77f   :  { %v1904_v20 = vsel %vm1139_vm6, %v1903_v7, %v1902_v40 }
 0x780   :  { %v1906_v36 = vsel %vm1142_vm7, %v1905_v8, %v1904_v20 }
 0x781   :  { %v1908_v3 = vsel %vm1873_vm11, %v1906_v36, 0.0  ;;  %v13272_v36 = vld [vmem:[%s16402_s2] sm:$0x1f]  }
 0x782   :  { %1909 = vadd.xlane.f32.xlu0 %v1908_v3  ;;  %v2488_v3 = vsel %vm586_vm2, %v13272_v36, 0 }
 0x783   :  { %12224 = vmatpush3.bf16.msra.mxu0 %v2488_v3 }
 0x784   :  { %12235 = vmatprep.subr.bf16.mxu0 %v13896_v1 }
 0x80f   :  { %v1910_v9 = vpop.xlane.xlu0 %1909 }
 0x810   :  { %v1912_v10 = vrot.slane %v1910_v9, 1  ;;  %v1913_v14 = vrot.slane %v1910_v9, 2  ;;  %v1914_v16 = vrot.slane %v1910_v9, 3  ;;  %13486 = vrcp.f32 %v1910_v9  ;;  %v13273_v9 = vld [vmem:[%s16402_s2 + $0x8] sm:$0x1f]  }
 0x812   :  { %13488 = vrcp.f32 %v1912_v10  ;;  %v2539_v10 = vsel %vm586_vm2, %v13273_v9, 0 }
 0x813   :  { %13490 = vrcp.f32 %v1913_v14  ;;  %12230 = vmatpush3.bf16.msra.mxu1 %v2539_v10 }
 0x814   :  { %13492 = vrcp.f32 %v1914_v16  ;;  %12241 = vmatprep.subr.bf16.mxu1 %v13896_v1 }
 0x81a   :  { %v13487_v17 = vpop.eup %13486 }
 0x81b   :  { %v1920_v34 = vmul.f32 %v13487_v17, %v13479_v59 }
 0x81c   :  { %v13489_v19 = vpop.eup %13488 }
 0x81d   :  { %v13491_v22 = vpop.eup %13490  ;;  %v1922_v26 = vmul.f32 %v13489_v19, %v13481_v61 }
 0x81e   :  { %v13493_v27 = vpop.eup %13492  ;;  %v1924_v30 = vmul.f32 %v13491_v22, %v13483_v62  ;;  %v14517_v22 = vsub.s32 0, %v14036_v23  ;;  %v13275_v23 = vld [vmem:[%s16402_s2 + $0x18] sm:$0x1f]  }
 0x81f   :  { %v1931_v60 = vrot.slane %v1922_v26, 7  ;;  %v1926_v38 = vmul.f32 %v13493_v27, %v13485_v5 }
 0x820   :  { %v1933_v2 = vrot.slane %v1924_v30, 6 }
 0x821   :  { %v1932_v41 = vsel %vm1136_vm5, %v1931_v60, %v1920_v34  ;;  %v1935_v43 = vrot.slane %v1926_v38, 5  ;;  %v13274_v60 = vld [vmem:[%s16402_s2 + $0x10] sm:$0x1f]  }
 0x822   :  { %v1934_v44 = vsel %vm1139_vm6, %v1933_v2, %v1932_v41 }
 0x823   :  { %v1936_v47 = vsel %vm1142_vm7, %v1935_v43, %v1934_v44  ;;  %v2590_v44 = vsel %vm586_vm2, %v13274_v60, 0 }
 0x824   :  { %v1938_v48 = vsel %vm1873_vm11, %v1936_v47, 0.0 }
 0x825   :  { %v1939_v49 = vrot.slane %v1938_v48, 4 }
 0x827   :  { %v1940_v50 = vadd.f32 %v1939_v49, %v1938_v48  ;;  %v2641_v48 = vsel %vm586_vm2, %v13275_v23, 0 }
 0x829   :  { %v1941_v51 = vrot.slane %v1940_v50, 2 }
 0x82b   :  { %v1942_v52 = vadd.f32 %v1941_v51, %v1940_v50 }
 0x82d   :  { %v1943_v53 = vrot.slane %v1942_v52, 1 }
 0x82f   :  { %v1944_v54 = vadd.f32 %v1943_v53, %v1942_v52  ;;  %v13800_v53 = vld [vmem:[%s16401_s1 + $0x10] sm:$0xff]  }
 0x831   :  { %v1946_v55 = vmul.f32 0.25, %v1944_v54 }
 0x833   :  { %13494 = vlog2.f32 %v1946_v55 }
 0x83d   :  { %v13495_v56 = vpop.eup %13494 }
 0x83e   :  { %v1948_v57 = vmul.f32 0.6931472, %v13495_v56 }
 0x840   :  { %v1963_v58 = vsel %vm1949_vm12, %v1948_v57, -inf  ;;  %1950 = vst.msk [vmem:[#allocation2] sm:$0x1] %vm1949_vm12, %v1948_v57 }
 0x841   :  { %1964 = vmax.xlane.f32.xlu1 %v1963_v58 }
 0x8ce   :  { %v1965_v59 = vpop.xlane.xlu1 %1964 }
 0x8cf   :  { %vm1966_vm13 = vcmp.ge.f32.partialorder %v1948_v57, %v1965_v59  ;;  %v13802_v59 = vld [vmem:[%s16405_s5] sm:$0xf] }
 0x8d0   :  { %v1967_v61 = vsel %vm1966_vm13, %v13998_v11, 10 }
 0x8d1   :  { %v1968_v62 = vsel %vm1949_vm12, %v1967_v61, 2147483647 }
 0x8d2   :  { %v1970_v0 = vshra.s32 %v1968_v62, 16  ;;  %v1969_v7 = vand.u32 65535, %v1968_v62 }
 0x8d4   :  { %v1972_v5 = vcvt.s32.f32 %v1970_v0  ;;  %v1971_v8 = vcvt.s32.f32 %v1969_v7 }
 0x8d6   :  { %1973 = vmin.xlane.f32.xlu0 %v1972_v5 }
 0x963   :  { %v1974_v40 = vpop.xlane.xlu0 %1973 }
 0x964   :  { %vm1975_vm14 = vcmp.eq.f32.partialorder %v1972_v5, %v1974_v40  ;;  %v1980_v14 = vcvt.f32.s32 %v1974_v40 }
 0x965   :  { %v1976_v20 = vsel %vm1975_vm14, %v1971_v8, inf }
 0x966   :  { %1977 = vmin.xlane.f32.xlu1 %v1976_v20  ;;  %v1981_v17 = vshll.u32 %v1980_v14, 16 }
 0x9f3   :  { %v1978_v16 = vpop.xlane.xlu1 %1977 }
 0x9f4   :  { %v1979_v19 = vcvt.f32.s32 %v1978_v16 }
 0x9f6   :  { %v1982_v26 = vadd.s32 %v1981_v17, %v1979_v19 }
 0x9f8   :  { %vm1983_vm15 = vcmp.eq.s32.totalorder %v13998_v11, %v1982_v26 }
 0x9f9   :  { %v11150_v27 = vsel %vm1983_vm15, 1.0, %v13896_v1 }
 0x9fa   :  { %v2437_v30 = vrot.slane %v11150_v27, %v14517_v22 }
 0x9fc   :  { %v2445_v34 = vrot.slane %v2437_v30, %v14063_v35 }
 0x9fe   :  { %v2446_v38 = vcombine.high %v2445_v34, %v2445_v34  ;;  %v2453_v2 = vrot.slane %v2445_v34, %v14063_v35 }
 0xa00   :  { %v2460_v41 = vrot.slane %v2446_v38, %v14063_v35  ;;  %v2467_v43 = vpack.c.bf16 %v2453_v2, %v2453_v2  ;;  %v2461_v49 = vcombine.high %v2453_v2, %v2453_v2 }
 0xa02   :  { %12226 = vmatmul.mubr.msk.bf16.vlgmr.msra.gmra.mrb[72].mxu0 %vm582_vm4, %v2467_v43  ;;  %v2468_v47 = vpack.c.bf16 %v2460_v41, %v2460_v41  ;;  %v2462_v50 = vcombine.high %v2460_v41, %v2460_v41  ;;  %v2469_v51 = vpack.c.bf16 %v2461_v49, %v2461_v49 }
 0xa03   :  { %12236 = vmatpush3.bf16.msra.mxu0 %v2590_v44  ;;  %12237 = vmatprep.mubr.msk.bf16.mxu0 %vm13897_vm0, %v13896_v1 }
 0xa04   :  { %12232 = vmatmul.mubr.msk.bf16.vlgmr.msra.gmra.mrb[72].mxu1 %vm582_vm4, %v2468_v47  ;;  %12247 = vmatprep.subr.bf16.mxu0 %v13896_v1  ;;  %v2470_v52 = vpack.c.bf16 %v2462_v50, %v2462_v50 }
 0xa05   :  { %12242 = vmatpush3.bf16.msra.mxu1 %v2641_v48  ;;  %12243 = vmatprep.mubr.msk.bf16.mxu1 %vm13897_vm0, %v13896_v1 }
 0xa06   :  { %12255 = vmatprep.subr.bf16.mxu1 %v13896_v1 }
 0xa0a   :  { %12238 = vmatmul.mubr.msk.bf16.vlgmr.msra.gmra.mrb[76].mxu0 %vm582_vm4, %v2469_v51 }
 0xa0b   :  { %12248 = vmatpush3.bf16.msra.mxu0 %v14144_v39  ;;  %12251 = vmatprep.mubr.msk.bf16.mxu0 %vm13897_vm0, %v13896_v1  ;;  %v13801_v39 = vld [vmem:[%s16401_s1 + $0x8] sm:$0xff]  }
 0xa0c   :  { %12244 = vmatmul.mubr.msk.bf16.vlgmr.msra.gmra.mrb[76].mxu1 %vm582_vm4, %v2470_v52  ;;  %12249 = vmatprep.subr.bf16.mxu0 %v13896_v1 }
 0xa0d   :  { %12256 = vmatpush3.bf16.msra.mxu1 %v13800_v53  ;;  %12259 = vmatprep.mubr.msk.bf16.mxu1 %vm13897_vm0, %v13896_v1 }
 0xa0e   :  { %12257 = vmatprep.subr.bf16.mxu1 %v13896_v1 }
 0xa0f   :  { %12250 = vmatpush3.bf16.msra.mxu0 %v13801_v39 }
 0xa10   :  { %12263 = vmatprep.subr.bf16.mxu0 %v13896_v1 }
 0xa11   :  { %12258 = vmatpush3.bf16.msra.mxu1 %v14162_v45 }
 0xa12   :  { %12271 = vmatprep.subr.bf16.mxu1 %v13896_v1 }
 0xad5   :  { %v2524_v54 = vpop.f32.mrb[72].mxu0 }
 0xad6   :  { %v2683_v55 = vadd.f32 %v2524_v54, %v14485_v12  ;;  %v12227_v56 = vpop.f32.mrb[73].mxu0 }
 0xad7   :  { %v2527_v57 = vpop.f32.mrb[74].mxu0  ;;  %v2575_v58 = vpop.f32.mrb[72].mxu1 }
 0xad8   :  { %v2687_v61 = vadd.f32 %v13802_v59, %v2683_v55  ;;  %v2684_v62 = vadd.f32 %v2575_v58, %v14487_v18  ;;  %v12228_v0 = vpop.f32.mrb[75].mxu0  ;;  %v12233_v5 = vpop.f32.mrb[73].mxu1 }
 0xad9   :  { %v2578_v7 = vpop.f32.mrb[74].mxu1 }
 0xada   :  { %13496 = vtanh.f32 %v2687_v61  ;;  %v2688_v45 = vadd.f32 %v2684_v62, %v14111_v31  ;;  %v12234_v40 = vpop.f32.mrb[75].mxu1 }
 0xadc   :  { %13498 = vtanh.f32 %v2688_v45  ;;  %v11184_v34 = vmul.f32 -1.442695, %v2688_v45 }
 0xadd   :  { %v2626_v8 = vpop.f32.mrb[76].mxu0 }
 0xade   :  { %v2685_v12 = vadd.f32 %v2626_v8, %v14489_v33  ;;  %v12239_v20 = vpop.f32.mrb[77].mxu0 }
 0xadf   :  { %v2629_v36 = vpop.f32.mrb[78].mxu0  ;;  %v2677_v3 = vpop.f32.mrb[76].mxu1 }
 0xae0   :  { %v2689_v9 = vadd.f32 %v2685_v12, %v14114_v42  ;;  %v2686_v10 = vadd.f32 %v2677_v3, %v14491_v63  ;;  %v12240_v14 = vpop.f32.mrb[79].mxu0  ;;  %v12245_v18 = vpop.f32.mrb[77].mxu1  ;;  %v11183_v63 = vmul.f32 -1.442695, %v2687_v61 }
 0xae1   :  { %v2680_v16 = vpop.f32.mrb[78].mxu1 }
 0xae2   :  { %13500 = vtanh.f32 %v2689_v9  ;;  %v2690_v17 = vadd.f32 %v2686_v10, %v14116_v46  ;;  %v12246_v19 = vpop.f32.mrb[79].mxu1  ;;  %v11185_v60 = vmul.f32 -1.442695, %v2689_v9 }
 0xae4   :  { %v13497_v26 = vpop.eup %13496  ;;  %13502 = vtanh.f32 %v2690_v17  ;;  %v11186_v38 = vmul.f32 -1.442695, %v2690_v17 }
 0xae5   :  { %2727 = vrot.lane.b32.xlu0 %v13497_v26, %s13900_s23  ;;  %13504 = vpow2.f32 %v11183_v63 }
 0xae6   :  { %v13499_v27 = vpop.eup %13498  ;;  %13506 = vpow2.f32 %v11184_v34 }
 0xae7   :  { %2729 = vrot.lane.b32.xlu1 %v13499_v27, %s13900_s23  ;;  %13508 = vpow2.f32 %v11185_v60 }
 0xae8   :  { %13510 = vpow2.f32 %v11186_v38  ;;  %v13803_v38 = vld [vmem:[%s16401_s1 + $0x20] sm:$0xff]  }
 0xaec   :  { %v13501_v33 = vpop.eup %13500 }
 0xaed   :  { %2731 = vrot.lane.b32.xlu1 %v13501_v33, %s13900_s23 }
 0xaee   :  { %v13503_v30 = vpop.eup %13502 }
 0xaef   :  { %2733 = vrot.lane.b32.xlu0 %v13503_v30, %s13900_s23  ;;  %v13505_v2 = vpop.eup %13504 }
 0xaf0   :  { %v13507_v23 = vpop.eup %13506  ;;  %v2703_v41 = vadd.f32 1.0, %v13505_v2 }
 0xaf1   :  { %v2704_v43 = vadd.f32 1.0, %v13507_v23  ;;  %v13509_v44 = vpop.eup %13508  ;;  %v13804_v23 = vld [vmem:[%s16401_s1 + $0x30] sm:$0xff]  }
 0xaf2   :  { %13512 = vrcp.f32 %v2703_v41  ;;  %v13511_v47 = vpop.eup %13510  ;;  %v2705_v48 = vadd.f32 1.0, %v13509_v44  ;;  %v13805_v41 = vld [vmem:[%s16401_s1 + $0x28] sm:$0xff]   ;;  %v13806_v44 = vld [vmem:[%s16401_s1 + $0x38] sm:$0xff]  }
 0xaf3   :  { %13514 = vrcp.f32 %v2704_v43  ;;  %v2706_v49 = vadd.f32 1.0, %v13511_v47 }
 0xaf4   :  { %13516 = vrcp.f32 %v2705_v48 }
 0xaf5   :  { %13518 = vrcp.f32 %v2706_v49 }
 0xafc   :  { %v13513_v50 = vpop.eup %13512 }
 0xafd   :  { %v13515_v53 = vpop.eup %13514  ;;  %v2719_v62 = vmul.f32 %v13513_v50, %v14128_v25 }
 0xafe   :  { %v13517_v55 = vpop.eup %13516  ;;  %v2720_v7 = vmul.f32 %v13515_v53, %v14131_v28 }
 0xaff   :  { %v13519_v58 = vpop.eup %13518  ;;  %v2721_v8 = vmul.f32 %v13517_v55, %v14134_v32 }
 0xb00   :  { %v2722_v36 = vmul.f32 %v13519_v58, %v14137_v37 }
 0xb57   :  { %v2728_v51 = vpop.permute.xlu0 %2727 }
 0xb58   :  { %v2739_v52 = vmul.f32 %v13513_v50, %v2728_v51 }
 0xb59   :  { %v2730_v39 = vpop.permute.xlu1 %2729 }
 0xb5a   :  { %2747 = vrot.lane.b32.xlu1 %v2739_v52, %s13901_s24  ;;  %v2740_v54 = vmul.f32 %v13515_v53, %v2730_v39 }
 0xb5c   :  { %2749 = vrot.lane.b32.xlu0 %v2740_v54, %s13901_s24 }
 0xb5f   :  { %v2732_v56 = vpop.permute.xlu1 %2731 }
 0xb60   :  { %v2741_v57 = vmul.f32 %v13517_v55, %v2732_v56 }
 0xb61   :  { %v2734_v59 = vpop.permute.xlu0 %2733 }
 0xb62   :  { %2751 = vrot.lane.b32.xlu1 %v2741_v57, %s13901_s24  ;;  %v2742_v61 = vmul.f32 %v13519_v58, %v2734_v59 }
 0xb64   :  { %2753 = vrot.lane.b32.xlu0 %v2742_v61, %s13901_s24 }
 0xbcc   :  { %v2748_v0 = vpop.permute.xlu1 %2747 }
 0xbcd   :  { %v14578_v5 = vadd.f32 %v2748_v0, %v2719_v62 }
 0xbce   :  { %v2750_v45 = vpop.permute.xlu0 %2749 }
 0xbcf   :  { %13520 = vtanh.f32 %v14578_v5  ;;  %v14582_v40 = vadd.f32 %v2750_v45, %v2720_v7 }
 0xbd1   :  { %13522 = vtanh.f32 %v14582_v40 }
 0xbd4   :  { %v2752_v12 = vpop.permute.xlu1 %2751 }
 0xbd5   :  { %v14586_v20 = vadd.f32 %v2752_v12, %v2721_v8 }
 0xbd6   :  { %v2754_v25 = vpop.permute.xlu0 %2753 }
 0xbd7   :  { %13524 = vtanh.f32 %v14586_v20  ;;  %v14590_v3 = vadd.f32 %v2754_v25, %v2722_v36 }
 0xbd9   :  { %v13521_v28 = vpop.eup %13520  ;;  %13526 = vtanh.f32 %v14590_v3 }
 0xbda   :  { %2771 = vrot.lane.b32.xlu1 %v13521_v28, %s13900_s23 }
 0xbdb   :  { %v13523_v9 = vpop.eup %13522 }
 0xbdc   :  { %2773 = vrot.lane.b32.xlu0 %v13523_v9, %s13900_s23 }
 0xbe1   :  { %v13525_v10 = vpop.eup %13524 }
 0xbe2   :  { %2775 = vrot.lane.b32.xlu1 %v13525_v10, %s13900_s23 }
 0xbe3   :  { %v13527_v32 = vpop.eup %13526 }
 0xbe4   :  { %2777 = vrot.lane.b32.xlu0 %v13527_v32, %s13900_s23 }
 0xc4c   :  { %v2772_v37 = vpop.permute.xlu1 %2771 }
 0xc4d   :  { %v2783_v14 = vmul.f32 %v13513_v50, %v2772_v37 }
 0xc4e   :  { %v2774_v16 = vpop.permute.xlu0 %2773 }
 0xc4f   :  { %v2787_v18 = vpack.c.bf16 %v2783_v14, %v2783_v14  ;;  %v2784_v17 = vmul.f32 %v13515_v53, %v2774_v16 }
 0xc51   :  { %2792 = vrot.lane.b32.xlu1 %v2787_v18, %s13901_s24  ;;  %v2788_v19 = vpack.c.bf16 %v2784_v17, %v2784_v17 }
 0xc53   :  { %2838 = vrot.lane.b32.xlu0 %v2788_v19, %s13901_s24 }
 0xc54   :  { %v2776_v26 = vpop.permute.xlu1 %2775 }
 0xc55   :  { %v2785_v27 = vmul.f32 %v13517_v55, %v2776_v26 }
 0xc56   :  { %v2778_v30 = vpop.permute.xlu0 %2777 }
 0xc57   :  { %v2789_v33 = vpack.c.bf16 %v2785_v27, %v2785_v27  ;;  %v2786_v63 = vmul.f32 %v13519_v58, %v2778_v30 }
 0xc59   :  { %2884 = vrot.lane.b32.xlu1 %v2789_v33, %s13901_s24  ;;  %v2790_v34 = vpack.c.bf16 %v2786_v63, %v2786_v63 }
 0xc5b   :  { %2930 = vrot.lane.b32.xlu0 %v2790_v34, %s13901_s24 }
 0xcc3   :  { %v14601_v60 = vpop.permute.xlu1 %2792 }
 0xcc4   :  { %12252 = vmatmul.mubr.msk.bf16.vlgmr.msra.gmra.mrb[80].mxu0 %vm116_vm1, %v14601_v60 }
 0xcc5   :  { %12264 = vmatpush3.bf16.msra.mxu0 %v13803_v38  ;;  %12267 = vmatprep.mubr.msk.bf16.mxu0 %vm13897_vm0, %v13896_v1  ;;  %v14610_v2 = vpop.permute.xlu0 %2838 }
 0xcc6   :  { %12265 = vmatprep.subr.bf16.mxu0 %v13896_v1  ;;  %12260 = vmatmul.mubr.msk.bf16.vlgmr.msra.gmra.mrb[80].mxu1 %vm116_vm1, %v14610_v2 }
 0xcc7   :  { %12272 = vmatpush3.bf16.msra.mxu1 %v13804_v23  ;;  %12275 = vmatprep.mubr.msk.bf16.mxu1 %vm13897_vm0, %v13896_v1 }
 0xcc8   :  { %12273 = vmatprep.subr.bf16.mxu1 %v13896_v1 }
 0xcc9   :  { %12266 = vmatpush3.bf16.msra.mxu0 %v13805_v41 }
 0xcca   :  { %12279 = vmatprep.subr.bf16.mxu0 %v13896_v1 }
 0xccb   :  { %v14625_v43 = vpop.permute.xlu1 %2884  ;;  %12274 = vmatpush3.bf16.msra.mxu1 %v13806_v44 }
 0xccc   :  { %12268 = vmatmul.mubr.msk.bf16.vlgmr.msra.gmra.mrb[84].mxu0 %vm116_vm1, %v14625_v43  ;;  %12285 = vmatprep.subr.bf16.mxu1 %v13896_v1 }
 0xccd   :  { %12280 = vmatpush3.bf16.msra.mxu0 %v14222_v4  ;;  %v14634_v47 = vpop.permute.xlu0 %2930  ;;  %12281 = vmatprep.mubr.msk.bf16.mxu0 %vm13897_vm0, %v13896_v1 }
 0xcce   :  { %12291 = vmatprep.subr.bf16.mxu0 %v13896_v1  ;;  %12276 = vmatmul.mubr.msk.bf16.vlgmr.msra.gmra.mrb[84].mxu1 %vm116_vm1, %v14634_v47 }
 0xccf   :  { %12286 = vmatpush3.bf16.msra.mxu1 %v14228_v6  ;;  %12287 = vmatprep.mubr.msk.bf16.mxu1 %vm13897_vm0, %v13896_v1 }
 0xcd0   :  { %12297 = vmatprep.subr.bf16.mxu1 %v13896_v1 }
 0xd97   :  { %v2831_v48 = vpop.f32.mrb[80].mxu0 }
 0xd98   :  { %v12253_v49 = vpop.f32.mrb[81].mxu0 }
 0xd99   :  { %v2834_v50 = vpop.f32.mrb[82].mxu0  ;;  %v2877_v51 = vpop.f32.mrb[80].mxu1 }
 0xd9a   :  { %v12254_v52 = vpop.f32.mrb[83].mxu0  ;;  %v2979_v53 = vrot.slane %v2877_v51, 7  ;;  %v12261_v39 = vpop.f32.mrb[81].mxu1 }
 0xd9b   :  { %v2880_v54 = vpop.f32.mrb[82].mxu1 }
 0xd9c   :  { %v12262_v55 = vpop.f32.mrb[83].mxu1  ;;  %v2980_v56 = vsel %vm1136_vm5, %v2979_v53, %v2831_v48 }
 0xd9f   :  { %v2923_v57 = vpop.f32.mrb[84].mxu0 }
 0xda0   :  { %v2981_v58 = vrot.slane %v2923_v57, 6  ;;  %v12269_v59 = vpop.f32.mrb[85].mxu0 }
 0xda1   :  { %v2926_v61 = vpop.f32.mrb[86].mxu0  ;;  %v2969_v62 = vpop.f32.mrb[84].mxu1 }
 0xda2   :  { %v12270_v0 = vpop.f32.mrb[87].mxu0  ;;  %v2982_v7 = vsel %vm1139_vm6, %v2981_v58, %v2980_v56  ;;  %v2983_v45 = vrot.slane %v2969_v62, 5  ;;  %v12277_v8 = vpop.f32.mrb[85].mxu1 }
 0xda3   :  { %v2972_v12 = vpop.f32.mrb[86].mxu1 }
 0xda4   :  { %v12278_v36 = vpop.f32.mrb[87].mxu1  ;;  %v2984_v25 = vsel %vm1142_vm7, %v2983_v45, %v2982_v7 }
 0xda5   :  { %v2986_v28 = vsel %vm1145_vm8, %v2984_v25, -inf  ;;  %v13276_v25 = vld [vmem:[%s16407_s7] sm:$0xff]  }
 0xda6   :  { %2987 = vmax.xlane.f32.xlu1 %v2986_v28 }
 0xe33   :  { %v2988_v9 = vpop.xlane.xlu1 %2987 }
 0xe34   :  { %v2990_v10 = vrot.slane %v2988_v9, 1  ;;  %v2991_v32 = vrot.slane %v2988_v9, 2  ;;  %v2992_v37 = vrot.slane %v2988_v9, 3  ;;  %v2997_v14 = vsub.f32 %v2831_v48, %v2988_v9  ;;  %v13277_v9 = vld [vmem:[%s16407_s7 + $0x10] sm:$0xff]  }
 0xe36   :  { %v2998_v18 = vsub.f32 %v2877_v51, %v2990_v10  ;;  %v2999_v16 = vsub.f32 %v2923_v57, %v2991_v32  ;;  %v3000_v17 = vsub.f32 %v2969_v62, %v2992_v37  ;;  %v3001_v19 = vmul.f32 1.442695, %v2997_v14  ;;  %v13278_v32 = vld [vmem:[%s16407_s7 + $0x8] sm:$0xff]   ;;  %v13279_v37 = vld [vmem:[%s16407_s7 + $0x18] sm:$0xff]  }
 0xe38   :  { %v3003_v26 = vmul.f32 1.442695, %v2998_v18  ;;  %v3005_v27 = vmul.f32 1.442695, %v2999_v16  ;;  %v3007_v33 = vmul.f32 1.442695, %v3000_v17  ;;  %13528 = vpow2.f32 %v3001_v19 }
 0xe39   :  { %v13280_v18 = vld [vmem:[%s16407_s7 + $0x20] sm:$0xff]  }
 0xe3a   :  { %13530 = vpow2.f32 %v3003_v26 }
 0xe3b   :  { %13532 = vpow2.f32 %v3005_v27  ;;  %v13281_v27 = vld [vmem:[%s16407_s7 + $0x30] sm:$0xff]  }
 0xe3c   :  { %13534 = vpow2.f32 %v3007_v33 }
 0xe42   :  { %v13529_v30 = vpop.eup %13528 }
 0xe44   :  { %v13531_v63 = vpop.eup %13530 }
 0xe45   :  { %v13533_v34 = vpop.eup %13532  ;;  %v3013_v38 = vrot.slane %v13531_v63, 7 }
 0xe46   :  { %v13535_v23 = vpop.eup %13534  ;;  %v3015_v41 = vrot.slane %v13533_v34, 6 }
 0xe47   :  { %v3014_v44 = vsel %vm1136_vm5, %v3013_v38, %v13529_v30  ;;  %v3017_v48 = vrot.slane %v13535_v23, 5  ;;  %v13282_v38 = vld [vmem:[%s16407_s7 + $0x28] sm:$0xff]  }
 0xe48   :  { %v3016_v49 = vsel %vm1139_vm6, %v3015_v41, %v3014_v44  ;;  %v13283_v41 = vld [vmem:[%s16407_s7 + $0x38] sm:$0xff]  }
 0xe49   :  { %v3018_v50 = vsel %vm1142_vm7, %v3017_v48, %v3016_v49  ;;  %v13284_v48 = vld [vmem:[%s16406_s6] sm:$0xff]  }
 0xe4a   :  { %v3020_v51 = vsel %vm1145_vm8, %v3018_v50, 0.0 }
 0xe4b   :  { %3021 = vadd.xlane.f32.xlu0 %v3020_v51 }
 0xed8   :  { %v3022_v52 = vpop.xlane.xlu0 %3021 }
 0xed9   :  { %13536 = vrcp.f32 %v3022_v52 }
 0xee3   :  { %v13537_v53 = vpop.eup %13536 }
 0xee4   :  { %v3032_v39 = vmul.f32 %v13537_v53, %v13529_v30  ;;  %v3025_v54 = vrot.slane %v13537_v53, 1  ;;  %v3026_v55 = vrot.slane %v13537_v53, 2  ;;  %v3027_v56 = vrot.slane %v13537_v53, 3  ;;  %v13285_v53 = vld [vmem:[%s16406_s6 + $0x10] sm:$0xff]  }
 0xee6   :  { %v3036_v57 = vpack.c.bf16 %v3032_v39, %v3032_v39  ;;  %v3033_v58 = vmul.f32 %v13531_v63, %v3025_v54  ;;  %v3034_v59 = vmul.f32 %v13533_v34, %v3026_v55  ;;  %v3035_v61 = vmul.f32 %v13535_v23, %v3027_v56 }
 0xee8   :  { %12282 = vmatmul.mubr.msk.bf16.vlgmr.msra.gmra.mrb[88].mxu0 %vm1200_vm10, %v3036_v57  ;;  %v3037_v62 = vpack.c.bf16 %v3033_v58, %v3033_v58  ;;  %v3770_v0 = vrot.slane %v3033_v58, 7  ;;  %v3772_v7 = vrot.slane %v3034_v59, 6  ;;  %v3774_v8 = vrot.slane %v3035_v61, 5  ;;  %v13286_v57 = vld [vmem:[%s16406_s6 + $0x8] sm:$0xff]  }
 0xee9   :  { %12292 = vmatpush3.bf16.msra.mxu0 %v14238_v15  ;;  %12293 = vmatprep.mubr.msk.bf16.mxu0 %vm13897_vm0, %v13896_v1  ;;  %v3038_v28 = vpack.c.bf16 %v3034_v59, %v3034_v59  ;;  %v3039_v10 = vpack.c.bf16 %v3035_v61, %v3035_v61  ;;  %v13287_v59 = vld [vmem:[%s16406_s6 + $0x18] sm:$0xff]   ;;  %v13288_v61 = vld [vmem:[%s16406_s6 + $0x20] sm:$0xff]  }
 0xeea   :  { %12288 = vmatmul.mubr.msk.bf16.vlgmr.msra.gmra.mrb[88].mxu1 %vm1200_vm10, %v3037_v62  ;;  %v3771_v45 = vsel %vm1136_vm5, %v3770_v0, %v3032_v39  ;;  %12303 = vmatprep.subr.bf16.mxu0 %v13896_v1  ;;  %v13289_v62 = vld [vmem:[%s16406_s6 + $0x30] sm:$0xff]   ;;  %v13290_v0 = vld [vmem:[%s16406_s6 + $0x28] sm:$0xff]  }
 0xeeb   :  { %12298 = vmatpush3.bf16.msra.mxu1 %v14245_v24  ;;  %v3773_v12 = vsel %vm1139_vm6, %v3772_v7, %v3771_v45  ;;  %12299 = vmatprep.mubr.msk.bf16.mxu1 %vm13897_vm0, %v13896_v1  ;;  %v13291_v7 = vld [vmem:[%s16406_s6 + $0x38] sm:$0xff]   ;;  %v13292_v45 = vld [vmem:[%s16404_s4] sm:$0xff]  }
 0xeec   :  { %v3775_v36 = vsel %vm1142_vm7, %v3774_v8, %v3773_v12  ;;  %12311 = vmatprep.subr.bf16.mxu1 %v13896_v1  ;;  %v13293_v8 = vld [vmem:[%s16404_s4 + $0x10] sm:$0xff]   ;;  %v13294_v12 = vld [vmem:[%s16404_s4 + $0x8] sm:$0xff]  }
 0xeed   :  { %3778 = vst.msk [vmem:[#allocation4 + $0x4] sm:$0xf] %vm1145_vm8, %v3775_v36  ;;  %v13295_v36 = vld [vmem:[%s16404_s4 + $0x18] sm:$0xff]  }
 0xef0   :  { %12294 = vmatmul.mubr.msk.bf16.vlgmr.msra.gmra.mrb[92].mxu0 %vm1200_vm10, %v3038_v28  ;;  %v13297_v28 = vld [vmem:[%s16404_s4 + $0x30] sm:$0xff]  }
 0xef1   :  { %12304 = vmatpush3.bf16.msra.mxu0 %v13276_v25  ;;  %12307 = vmatprep.mubr.msk.bf16.mxu0 %vm13897_vm0, %v13896_v1  ;;  %v13296_v25 = vld [vmem:[%s16404_s4 + $0x20] sm:$0xff]  }
 0xef2   :  { %12300 = vmatmul.mubr.msk.bf16.vlgmr.msra.gmra.mrb[92].mxu1 %vm1200_vm10, %v3039_v10  ;;  %12305 = vmatprep.subr.bf16.mxu0 %v13896_v1  ;;  %v13300_v10 = vld [vmem:[%s16403_s3] sm:$0xff]  }
 0xef3   :  { %12312 = vmatpush3.bf16.msra.mxu1 %v13277_v9  ;;  %12315 = vmatprep.mubr.msk.bf16.mxu1 %vm13897_vm0, %v13896_v1  ;;  %v13298_v9 = vld [vmem:[%s16404_s4 + $0x28] sm:$0xff]  }
 0xef4   :  { %12313 = vmatprep.subr.bf16.mxu1 %v13896_v1 }
 0xef5   :  { %12306 = vmatpush3.bf16.msra.mxu0 %v13278_v32  ;;  %v13302_v32 = vld [vmem:[%s16403_s3 + $0x8] sm:$0xff]  }
 0xef6   :  { %12319 = vmatprep.subr.bf16.mxu0 %v13896_v1 }
 0xef7   :  { %12314 = vmatpush3.bf16.msra.mxu1 %v13279_v37  ;;  %v13304_v37 = vld [vmem:[%s16403_s3 + $0x20] sm:$0xff]  }
 0xef8   :  { %12327 = vmatprep.subr.bf16.mxu1 %v13896_v1 }
 0xfbb   :  { %v3077_v14 = vpop.f32.mrb[88].mxu0 }
 0xfbc   :  { %v14692_v16 = vpack.c.bf16 %v3077_v14, %v3077_v14  ;;  %v12283_v17 = vpop.f32.mrb[89].mxu0  ;;  %v13306_v14 = vld [vmem:[%s16403_s3 + $0x28] sm:$0xff]  }
 0xfbd   :  { %v3080_v19 = vpop.f32.mrb[90].mxu0  ;;  %v3120_v26 = vpop.f32.mrb[88].mxu1 }
 0xfbe   :  { %v14697_v33 = vpack.c.bf16 %v3120_v26, %v3120_v26  ;;  %v12284_v30 = vpop.f32.mrb[91].mxu0  ;;  %v12289_v63 = vpop.f32.mrb[89].mxu1  ;;  %12308 = vmatmul.mubr.msk.bf16.vlgmr.msra.gmra.mrb[96].mxu0 %vm116_vm1, %v14692_v16 }
 0xfbf   :  { %v3123_v34 = vpop.f32.mrb[90].mxu1  ;;  %12320 = vmatpush3.bf16.msra.mxu0 %v13280_v18  ;;  %12323 = vmatprep.mubr.msk.bf16.mxu0 %vm13897_vm0, %v13896_v1  ;;  %v13307_v18 = vld [vmem:[%s16403_s3 + $0x38] sm:$0xff]  }
 0xfc0   :  { %v12290_v23 = vpop.f32.mrb[91].mxu1  ;;  %12316 = vmatmul.mubr.msk.bf16.vlgmr.msra.gmra.mrb[96].mxu1 %vm116_vm1, %v14697_v33  ;;  %12321 = vmatprep.subr.bf16.mxu0 %v13896_v1 }
 0xfc1   :  { %12328 = vmatpush3.bf16.msra.mxu1 %v13281_v27  ;;  %12331 = vmatprep.mubr.msk.bf16.mxu1 %vm13897_vm0, %v13896_v1 }
 0xfc2   :  { %12329 = vmatprep.subr.bf16.mxu1 %v13896_v1 }
 0xfc3   :  { %v3163_v44 = vpop.f32.mrb[92].mxu0  ;;  %12322 = vmatpush3.bf16.msra.mxu0 %v13282_v38 }
 0xfc4   :  { %v14718_v49 = vpack.c.bf16 %v3163_v44, %v3163_v44  ;;  %v12295_v50 = vpop.f32.mrb[93].mxu0  ;;  %12335 = vmatprep.subr.bf16.mxu0 %v13896_v1 }
 0xfc5   :  { %v3166_v51 = vpop.f32.mrb[94].mxu0  ;;  %v3206_v52 = vpop.f32.mrb[92].mxu1  ;;  %12330 = vmatpush3.bf16.msra.mxu1 %v13283_v41 }
 0xfc6   :  { %v14724_v39 = vpack.c.bf16 %v3206_v52, %v3206_v52  ;;  %v12296_v54 = vpop.f32.mrb[95].mxu0  ;;  %v12301_v55 = vpop.f32.mrb[93].mxu1  ;;  %12324 = vmatmul.mubr.msk.bf16.vlgmr.msra.gmra.mrb[100].mxu0 %vm116_vm1, %v14718_v49  ;;  %12343 = vmatprep.subr.bf16.mxu1 %v13896_v1 }
 0xfc7   :  { %v3209_v56 = vpop.f32.mrb[94].mxu1  ;;  %12336 = vmatpush3.bf16.msra.mxu0 %v13284_v48  ;;  %12339 = vmatprep.mubr.msk.bf16.mxu0 %vm13897_vm0, %v13896_v1 }
 0xfc8   :  { %v12302_v58 = vpop.f32.mrb[95].mxu1  ;;  %12332 = vmatmul.mubr.msk.bf16.vlgmr.msra.gmra.mrb[100].mxu1 %vm116_vm1, %v14724_v39  ;;  %12337 = vmatprep.subr.bf16.mxu0 %v13896_v1 }
 0xfc9   :  { %12344 = vmatpush3.bf16.msra.mxu1 %v13285_v53  ;;  %12347 = vmatprep.mubr.msk.bf16.mxu1 %vm13897_vm0, %v13896_v1 }
 0xfca   :  { %12345 = vmatprep.subr.bf16.mxu1 %v13896_v1 }
 0xfcb   :  { %12338 = vmatpush3.bf16.msra.mxu0 %v13286_v57 }
 0xfcc   :  { %12351 = vmatprep.subr.bf16.mxu0 %v13896_v1 }
 0xfcd   :  { %12346 = vmatpush3.bf16.msra.mxu1 %v13287_v59 }
 0xfce   :  { %12340 = vmatmul.mubr.msk.bf16.vlgmr.msra.gmra.mrb[104].mxu0 %vm116_vm1, %v14601_v60  ;;  %12359 = vmatprep.subr.bf16.mxu1 %v13896_v1 }
 0xfcf   :  { %12352 = vmatpush3.bf16.msra.mxu0 %v13288_v61  ;;  %12355 = vmatprep.mubr.msk.bf16.mxu0 %vm13897_vm0, %v13896_v1 }
 0xfd0   :  { %12348 = vmatmul.mubr.msk.bf16.vlgmr.msra.gmra.mrb[104].mxu1 %vm116_vm1, %v14610_v2  ;;  %12353 = vmatprep.subr.bf16.mxu0 %v13896_v1 }
 0xfd1   :  { %12360 = vmatpush3.bf16.msra.mxu1 %v13289_v62  ;;  %12363 = vmatprep.mubr.msk.bf16.mxu1 %vm13897_vm0, %v13896_v1 }
 0xfd2   :  { %12361 = vmatprep.subr.bf16.mxu1 %v13896_v1 }
 0xfd3   :  { %12354 = vmatpush3.bf16.msra.mxu0 %v13290_v0 }
 0xfd4   :  { %12367 = vmatprep.subr.bf16.mxu0 %v13896_v1 }
 0xfd5   :  { %12362 = vmatpush3.bf16.msra.mxu1 %v13291_v7 }
 0xfd6   :  { %12356 = vmatmul.mubr.msk.bf16.vlgmr.msra.gmra.mrb[108].mxu0 %vm116_vm1, %v14625_v43  ;;  %12375 = vmatprep.subr.bf16.mxu1 %v13896_v1 }
 0xfd7   :  { %12368 = vmatpush3.bf16.msra.mxu0 %v13292_v45  ;;  %12371 = vmatprep.mubr.msk.bf16.mxu0 %vm13897_vm0, %v13896_v1 }
 0xfd8   :  { %12364 = vmatmul.mubr.msk.bf16.vlgmr.msra.gmra.mrb[108].mxu1 %vm116_vm1, %v14634_v47  ;;  %12369 = vmatprep.subr.bf16.mxu0 %v13896_v1 }
 0xfd9   :  { %12376 = vmatpush3.bf16.msra.mxu1 %v13293_v8  ;;  %12379 = vmatprep.mubr.msk.bf16.mxu1 %vm13897_vm0, %v13896_v1 }
 0xfda   :  { %12377 = vmatprep.subr.bf16.mxu1 %v13896_v1 }
 0xfdb   :  { %12370 = vmatpush3.bf16.msra.mxu0 %v13294_v12 }
 0xfdc   :  { %12383 = vmatprep.subr.bf16.mxu0 %v13896_v1 }
 0xfdd   :  { %12378 = vmatpush3.bf16.msra.mxu1 %v13295_v36 }
 0xfde   :  { %12372 = vmatmul.mubr.msk.bf16.vlgmr.msra.gmra.mrb[112].mxu0 %vm116_vm1, %v14601_v60  ;;  %12391 = vmatprep.subr.bf16.mxu1 %v13896_v1  ;;  %v13299_v60 = vld [vmem:[%s16404_s4 + $0x38] sm:$0xff]  }
 0xfdf   :  { %12384 = vmatpush3.bf16.msra.mxu0 %v13296_v25  ;;  %12387 = vmatprep.mubr.msk.bf16.mxu0 %vm13897_vm0, %v13896_v1 }
 0xfe0   :  { %12380 = vmatmul.mubr.msk.bf16.vlgmr.msra.gmra.mrb[112].mxu1 %vm116_vm1, %v14610_v2  ;;  %12385 = vmatprep.subr.bf16.mxu0 %v13896_v1  ;;  %v13301_v2 = vld [vmem:[%s16403_s3 + $0x10] sm:$0xff]  }
 0xfe1   :  { %12392 = vmatpush3.bf16.msra.mxu1 %v13297_v28  ;;  %12395 = vmatprep.mubr.msk.bf16.mxu1 %vm13897_vm0, %v13896_v1 }
 0xfe2   :  { %12393 = vmatprep.subr.bf16.mxu1 %v13896_v1 }
 0xfe3   :  { %12386 = vmatpush3.bf16.msra.mxu0 %v13298_v9 }
 0xfe4   :  { %12399 = vmatprep.subr.bf16.mxu0 %v13896_v1 }
 0xfe5   :  { %12394 = vmatpush3.bf16.msra.mxu1 %v13299_v60  ;;  %v13807_v60 = vld [vmem:[%s16408_s8] sm:$0xf] }
 0xfe6   :  { %12388 = vmatmul.mubr.msk.bf16.vlgmr.msra.gmra.mrb[116].mxu0 %vm116_vm1, %v14625_v43  ;;  %12407 = vmatprep.subr.bf16.mxu1 %v13896_v1  ;;  %v13303_v43 = vld [vmem:[%s16403_s3 + $0x18] sm:$0xff]  }
 0xfe7   :  { %12400 = vmatpush3.bf16.msra.mxu0 %v13300_v10  ;;  %12403 = vmatprep.mubr.msk.bf16.mxu0 %vm13897_vm0, %v13896_v1 }
 0xfe8   :  { %12396 = vmatmul.mubr.msk.bf16.vlgmr.msra.gmra.mrb[116].mxu1 %vm116_vm1, %v14634_v47  ;;  %12401 = vmatprep.subr.bf16.mxu0 %v13896_v1  ;;  %v13305_v47 = vld [vmem:[%s16403_s3 + $0x30] sm:$0xff]  }
 0xfe9   :  { %12408 = vmatpush3.bf16.msra.mxu1 %v13301_v2  ;;  %12411 = vmatprep.mubr.msk.bf16.mxu1 %vm13897_vm0, %v13896_v1 }
 0xfea   :  { %12409 = vmatprep.subr.bf16.mxu1 %v13896_v1 }
 0xfeb   :  { %12402 = vmatpush3.bf16.msra.mxu0 %v13302_v32 }
 0xfec   :  { %12415 = vmatprep.subr.bf16.mxu0 %v13896_v1 }
 0xfed   :  { %12410 = vmatpush3.bf16.msra.mxu1 %v13303_v43 }
 0xfee   :  { %12404 = vmatmul.mubr.msk.bf16.vlgmr.msra.gmra.mrb[120].mxu0 %vm116_vm1, %v14692_v16  ;;  %12423 = vmatprep.subr.bf16.mxu1 %v13896_v1 }
 0xfef   :  { %12416 = vmatpush3.bf16.msra.mxu0 %v13304_v37  ;;  %12419 = vmatprep.mubr.msk.bf16.mxu0 %vm13897_vm0, %v13896_v1 }
 0xff0   :  { %12412 = vmatmul.mubr.msk.bf16.vlgmr.msra.gmra.mrb[120].mxu1 %vm116_vm1, %v14697_v33  ;;  %12417 = vmatprep.subr.bf16.mxu0 %v13896_v1 }
 0xff1   :  { %12424 = vmatpush3.bf16.msra.mxu1 %v13305_v47  ;;  %12427 = vmatprep.mubr.msk.bf16.mxu1 %vm13897_vm0, %v13896_v1 }
 0xff2   :  { %12425 = vmatprep.subr.bf16.mxu1 %v13896_v1 }
 0xff3   :  { %12418 = vmatpush3.bf16.msra.mxu0 %v13306_v14 }
 0xff4   :  { %12431 = vmatprep.subr.bf16.mxu0 %v13896_v1 }
 0xff5   :  { %12426 = vmatpush3.bf16.msra.mxu1 %v13307_v18 }
 0xff6   :  { %12420 = vmatmul.mubr.msk.bf16.vlgmr.msra.gmra.mrb[124].mxu0 %vm116_vm1, %v14718_v49  ;;  %12437 = vmatprep.subr.bf16.mxu1 %v13896_v1 }
 0xff7   :  { %12433 = vmatprep.mubr.msk.bf16.mxu0 %vm13897_vm0, %v13896_v1 }
 0xff8   :  { %12428 = vmatmul.mubr.msk.bf16.vlgmr.msra.gmra.mrb[124].mxu1 %vm116_vm1, %v14724_v39 }
 0xff9   :  { %12439 = vmatprep.mubr.msk.bf16.mxu1 %vm13897_vm0, %v13896_v1 }
0x1091   :  { %v3297_v16 = vpop.f32.mrb[96].mxu0 }
0x1092   :  { %v12309_v17 = vpop.f32.mrb[97].mxu0 }
0x1093   :  { %v3300_v19 = vpop.f32.mrb[98].mxu0  ;;  %v3352_v26 = vpop.f32.mrb[96].mxu1 }
0x1094   :  { %v12310_v27 = vpop.f32.mrb[99].mxu0  ;;  %v12317_v33 = vpop.f32.mrb[97].mxu1 }
0x1095   :  { %v3355_v30 = vpop.f32.mrb[98].mxu1 }
0x1096   :  { %v12318_v63 = vpop.f32.mrb[99].mxu1 }
0x1099   :  { %v3407_v34 = vpop.f32.mrb[100].mxu0 }
0x109a   :  { %v12325_v38 = vpop.f32.mrb[101].mxu0 }
0x109b   :  { %v3410_v23 = vpop.f32.mrb[102].mxu0  ;;  %v3462_v41 = vpop.f32.mrb[100].mxu1 }
0x109c   :  { %v12326_v44 = vpop.f32.mrb[103].mxu0  ;;  %v12333_v48 = vpop.f32.mrb[101].mxu1 }
0x109d   :  { %v3465_v49 = vpop.f32.mrb[102].mxu1 }
0x109e   :  { %v12334_v50 = vpop.f32.mrb[103].mxu1 }
0x10a1   :  { %v3514_v51 = vpop.f32.mrb[104].mxu0 }
0x10a2   :  { %v3515_v52 = vadd.f32 %v3514_v51, %v3297_v16  ;;  %v12341_v53 = vpop.f32.mrb[105].mxu0 }
0x10a3   :  { %v3517_v39 = vpop.f32.mrb[106].mxu0  ;;  %v3566_v54 = vpop.f32.mrb[104].mxu1 }
0x10a4   :  { %v3567_v55 = vadd.f32 %v3566_v54, %v3352_v26  ;;  %v12342_v56 = vpop.f32.mrb[107].mxu0  ;;  %v12349_v57 = vpop.f32.mrb[105].mxu1  ;;  %v3676_v10 = vadd.f32 %v13807_v60, %v3515_v52 }
0x10a5   :  { %v3569_v58 = vpop.f32.mrb[106].mxu1 }
0x10a6   :  { %v12350_v59 = vpop.f32.mrb[107].mxu1  ;;  %v14874_v61 = vadd.f32 %v3567_v55, %v14469_v13 }
0x10a8   :  { %v3684_v45 = vrot.slane %v14874_v61, 7 }
0x10a9   :  { %v3618_v62 = vpop.f32.mrb[108].mxu0 }
0x10aa   :  { %v3619_v0 = vadd.f32 %v3618_v62, %v3407_v34  ;;  %v12357_v7 = vpop.f32.mrb[109].mxu0  ;;  %v3685_v47 = vsel %vm1136_vm5, %v3684_v45, %v3676_v10 }
0x10ab   :  { %v3621_v8 = vpop.f32.mrb[110].mxu0  ;;  %v3670_v12 = vpop.f32.mrb[108].mxu1 }
0x10ac   :  { %v3678_v36 = vadd.f32 %v3619_v0, %v14474_v21  ;;  %v3671_v25 = vadd.f32 %v3670_v12, %v3462_v41  ;;  %v12358_v28 = vpop.f32.mrb[111].mxu0  ;;  %v12365_v9 = vpop.f32.mrb[109].mxu1 }
0x10ad   :  { %v3673_v2 = vpop.f32.mrb[110].mxu1 }
0x10ae   :  { %v3686_v32 = vrot.slane %v3678_v36, 6  ;;  %v3679_v43 = vadd.f32 %v3671_v25, %v14476_v29  ;;  %v12366_v37 = vpop.f32.mrb[111].mxu1 }
0x10b0   :  { %v3688_v14 = vrot.slane %v3679_v43, 5  ;;  %v3687_v18 = vsel %vm1139_vm6, %v3686_v32, %v3685_v47 }
0x10b1   :  { %v3880_v16 = vpop.f32.mrb[112].mxu0 }
0x10b2   :  { %v12373_v17 = vpop.f32.mrb[113].mxu0  ;;  %v3689_v19 = vsel %vm1142_vm7, %v3688_v14, %v3687_v18 }
0x10b3   :  { %v3883_v26 = vpop.f32.mrb[114].mxu0  ;;  %v3932_v27 = vpop.f32.mrb[112].mxu1  ;;  %v3691_v33 = vsel %vm1873_vm11, %v3689_v19, -inf }
0x10b4   :  { %v12381_v30 = vpop.f32.mrb[113].mxu1  ;;  %3692 = vmax.xlane.f32.xlu0 %v3691_v33  ;;  %v12374_v63 = vpop.f32.mrb[115].mxu0 }
0x10b5   :  { %v3935_v34 = vpop.f32.mrb[114].mxu1 }
0x10b6   :  { %v12382_v38 = vpop.f32.mrb[115].mxu1 }
0x10b9   :  { %v3984_v23 = vpop.f32.mrb[116].mxu0 }
0x10ba   :  { %v12389_v41 = vpop.f32.mrb[117].mxu0 }
0x10bb   :  { %v3987_v44 = vpop.f32.mrb[118].mxu0  ;;  %v4036_v48 = vpop.f32.mrb[116].mxu1 }
0x10bc   :  { %v12390_v49 = vpop.f32.mrb[119].mxu0  ;;  %v12397_v50 = vpop.f32.mrb[117].mxu1 }
0x10bd   :  { %v4039_v51 = vpop.f32.mrb[118].mxu1 }
0x10be   :  { %v12398_v52 = vpop.f32.mrb[119].mxu1 }
0x10c1   :  { %v4088_v53 = vpop.f32.mrb[120].mxu0 }
0x10c2   :  { %v14886_v39 = vadd.f32 %v4088_v53, %v3880_v16  ;;  %v12405_v54 = vpop.f32.mrb[121].mxu0 }
0x10c3   :  { %v4091_v55 = vpop.f32.mrb[122].mxu0  ;;  %v4140_v56 = vpop.f32.mrb[120].mxu1 }
0x10c4   :  { %v14888_v57 = vadd.f32 %v4140_v56, %v3932_v27  ;;  %v12406_v58 = vpop.f32.mrb[123].mxu0  ;;  %v12413_v59 = vpop.f32.mrb[121].mxu1 }
0x10c5   :  { %v4143_v62 = vpop.f32.mrb[122].mxu1 }
0x10c6   :  { %v12414_v0 = vpop.f32.mrb[123].mxu1 }
0x10c9   :  { %v4192_v7 = vpop.f32.mrb[124].mxu0 }
0x10ca   :  { %v14890_v45 = vadd.f32 %v4192_v7, %v3984_v23  ;;  %v12421_v8 = vpop.f32.mrb[125].mxu0 }
0x10cb   :  { %v4195_v12 = vpop.f32.mrb[126].mxu0  ;;  %v4244_v25 = vpop.f32.mrb[124].mxu1 }
0x10cc   :  { %v14892_v28 = vadd.f32 %v4244_v25, %v4036_v48  ;;  %v12422_v9 = vpop.f32.mrb[127].mxu0  ;;  %v12429_v60 = vpop.f32.mrb[125].mxu1 }
0x10cd   :  { %v4247_v2 = vpop.f32.mrb[126].mxu1 }
0x10ce   :  { %v12430_v32 = vpop.f32.mrb[127].mxu1 }
0x1141   :  { %v3693_v37 = vpop.xlane.xlu0 %3692 }
0x1142   :  { %v3695_v47 = vrot.slane %v3693_v37, 1  ;;  %v3696_v14 = vrot.slane %v3693_v37, 2  ;;  %v3697_v18 = vrot.slane %v3693_v37, 3  ;;  %v3702_v16 = vsub.f32 %v3676_v10, %v3693_v37 }
0x1144   :  { %v3703_v17 = vsub.f32 %v14874_v61, %v3695_v47  ;;  %v3704_v19 = vsub.f32 %v3678_v36, %v3696_v14  ;;  %v3705_v26 = vsub.f32 %v3679_v43, %v3697_v18  ;;  %v3706_v27 = vmul.f32 1.442695, %v3702_v16 }
0x1146   :  { %v3708_v33 = vmul.f32 1.442695, %v3703_v17  ;;  %v3710_v30 = vmul.f32 1.442695, %v3704_v19  ;;  %v3712_v63 = vmul.f32 1.442695, %v3705_v26  ;;  %13538 = vpow2.f32 %v3706_v27 }
0x1148   :  { %13540 = vpow2.f32 %v3708_v33 }
0x1149   :  { %13542 = vpow2.f32 %v3710_v30 }
0x114a   :  { %13544 = vpow2.f32 %v3712_v63 }
0x1150   :  { %v13539_v34 = vpop.eup %13538 }
0x1152   :  { %v13541_v38 = vpop.eup %13540 }
0x1153   :  { %v13543_v23 = vpop.eup %13542  ;;  %v3718_v41 = vrot.slane %v13541_v38, 7 }
0x1154   :  { %v13545_v44 = vpop.eup %13544  ;;  %v3720_v48 = vrot.slane %v13543_v23, 6 }
0x1155   :  { %v3719_v10 = vsel %vm1136_vm5, %v3718_v41, %v13539_v34  ;;  %v3722_v49 = vrot.slane %v13545_v44, 5 }
0x1156   :  { %v3721_v61 = vsel %vm1139_vm6, %v3720_v48, %v3719_v10 }
0x1157   :  { %v3723_v36 = vsel %vm1142_vm7, %v3722_v49, %v3721_v61  ;;  %v13308_v49 = vld [vmem:[%s16402_s2] sm:$0x1f]  }
0x1158   :  { %v3725_v43 = vsel %vm1873_vm11, %v3723_v36, 0.0  ;;  %v4304_v61 = vsel %vm586_vm2, %v13308_v49, 0  ;;  %v13309_v36 = vld [vmem:[%s16402_s2 + $0x8] sm:$0x1f]  }
0x1159   :  { %3726 = vadd.xlane.f32.xlu1 %v3725_v43  ;;  %12432 = vmatpush3.bf16.msra.mxu0 %v4304_v61  ;;  %v4355_v43 = vsel %vm586_vm2, %v13309_v36, 0 }
0x115a   :  { %12443 = vmatprep.subr.bf16.mxu0 %v13896_v1  ;;  %12438 = vmatpush3.bf16.msra.mxu1 %v4355_v43 }
0x115b   :  { %12449 = vmatprep.subr.bf16.mxu1 %v13896_v1 }
0x11e6   :  { %v3727_v50 = vpop.xlane.xlu1 %3726 }
0x11e7   :  { %v3729_v51 = vrot.slane %v3727_v50, 1  ;;  %v3730_v52 = vrot.slane %v3727_v50, 2  ;;  %v3731_v53 = vrot.slane %v3727_v50, 3  ;;  %13546 = vrcp.f32 %v3727_v50 }
0x11e9   :  { %13548 = vrcp.f32 %v3729_v51 }
0x11ea   :  { %13550 = vrcp.f32 %v3730_v52 }
0x11eb   :  { %13552 = vrcp.f32 %v3731_v53 }
0x11f1   :  { %v13547_v54 = vpop.eup %13546 }
0x11f2   :  { %v3737_v0 = vmul.f32 %v13547_v54, %v13539_v34 }
0x11f3   :  { %v13549_v55 = vpop.eup %13548 }
0x11f4   :  { %v13551_v56 = vpop.eup %13550  ;;  %v3739_v58 = vmul.f32 %v13549_v55, %v13541_v38 }
0x11f5   :  { %v13553_v59 = vpop.eup %13552  ;;  %v3741_v62 = vmul.f32 %v13551_v56, %v13543_v23 }
0x11f6   :  { %v3743_v7 = vmul.f32 %v13553_v59, %v13545_v44  ;;  %v3748_v8 = vrot.slane %v3739_v58, 7  ;;  %v13310_v59 = vld [vmem:[%s16402_s2 + $0x10] sm:$0x1f]  }
0x11f7   :  { %v3750_v12 = vrot.slane %v3741_v62, 6 }
0x11f8   :  { %v3752_v25 = vrot.slane %v3743_v7, 5  ;;  %v3749_v9 = vsel %vm1136_vm5, %v3748_v8, %v3737_v0  ;;  %v13311_v7 = vld [vmem:[%s16402_s2 + $0x18] sm:$0x1f]  }
0x11f9   :  { %v3751_v60 = vsel %vm1139_vm6, %v3750_v12, %v3749_v9 }
0x11fa   :  { %v3753_v2 = vsel %vm1142_vm7, %v3752_v25, %v3751_v60  ;;  %v4406_v25 = vsel %vm586_vm2, %v13310_v59, 0  ;;  %v4457_v60 = vsel %vm586_vm2, %v13311_v7, 0 }
0x11fb   :  { %v3755_v32 = vsel %vm1873_vm11, %v3753_v2, 0.0 }
0x11fc   :  { %v3756_v37 = vrot.slane %v3755_v32, 4 }
0x11fe   :  { %v3757_v47 = vadd.f32 %v3756_v37, %v3755_v32 }
0x1200   :  { %v3758_v14 = vrot.slane %v3757_v47, 2 }
0x1202   :  { %v3759_v18 = vadd.f32 %v3758_v14, %v3757_v47  ;;  %v13808_v14 = vld [vmem:[%s16401_s1] sm:$0xff]  }
0x1204   :  { %v3760_v16 = vrot.slane %v3759_v18, 1 }
0x1206   :  { %v3761_v17 = vadd.f32 %v3760_v16, %v3759_v18  ;;  %v13809_v18 = vld [vmem:[%s16401_s1 + $0x10] sm:$0xff]   ;;  %v13810_v16 = vld [vmem:[%s16401_s1 + $0x8] sm:$0xff]  }
0x1208   :  { %v3762_v19 = vmul.f32 0.25, %v3761_v17  ;;  %v13811_v17 = vld [vmem:[%s16401_s1 + $0x18] sm:$0xff]  }
0x120a   :  { %13554 = vlog2.f32 %v3762_v19 }
0x1214   :  { %v13555_v26 = vpop.eup %13554 }
0x1215   :  { %v3764_v27 = vmul.f32 0.6931472, %v13555_v26 }
0x1217   :  { %v3779_v33 = vsel %vm1949_vm12, %v3764_v27, -inf  ;;  %3765 = vst.msk [vmem:[#allocation2 + $0x1] sm:$0x1] %vm1949_vm12, %v3764_v27 }
0x1218   :  { %3780 = vmax.xlane.f32.xlu0 %v3779_v33 }
0x12a5   :  { %v3781_v30 = vpop.xlane.xlu0 %3780 }
0x12a6   :  { %vm3782_vm3 = vcmp.ge.f32.partialorder %v3764_v27, %v3781_v30 }
0x12a7   :  { %v3783_v63 = vsel %vm3782_vm3, %v13998_v11, 10 }
0x12a8   :  { %v3784_v34 = vsel %vm1949_vm12, %v3783_v63, 2147483647  ;;  %v13812_v63 = vld [vmem:[%s16405_s5] sm:$0xf] }
0x12a9   :  { %v3786_v38 = vshra.s32 %v3784_v34, 16  ;;  %v3785_v41 = vand.u32 65535, %v3784_v34 }
0x12ab   :  { %v3788_v23 = vcvt.s32.f32 %v3786_v38  ;;  %v3787_v48 = vcvt.s32.f32 %v3785_v41 }
0x12ad   :  { %3789 = vmin.xlane.f32.xlu1 %v3788_v23 }
0x133a   :  { %v3790_v44 = vpop.xlane.xlu1 %3789 }
0x133b   :  { %vm3791_vm9 = vcmp.eq.f32.partialorder %v3788_v23, %v3790_v44  ;;  %v3796_v50 = vcvt.f32.s32 %v3790_v44 }
0x133c   :  { %v3792_v10 = vsel %vm3791_vm9, %v3787_v48, inf }
0x133d   :  { %3793 = vmin.xlane.f32.xlu0 %v3792_v10  ;;  %v3797_v52 = vshll.u32 %v3796_v50, 16 }
0x13ca   :  { %v3794_v51 = vpop.xlane.xlu0 %3793 }
0x13cb   :  { %v3795_v53 = vcvt.f32.s32 %v3794_v51 }
0x13cd   :  { %v3798_v54 = vadd.s32 %v3797_v52, %v3795_v53 }
0x13cf   :  { %vm3799_vm13 = vcmp.eq.s32.totalorder %v13998_v11, %v3798_v54 }
0x13d0   :  { %v11219_v55 = vsel %vm3799_vm13, 1.0, %v13896_v1 }
0x13d1   :  { %v4253_v56 = vrot.slane %v11219_v55, %v14517_v22 }
0x13d3   :  { %v4261_v58 = vrot.slane %v4253_v56, %v14063_v35 }
0x13d5   :  { %v4262_v62 = vcombine.high %v4261_v58, %v4261_v58  ;;  %v4269_v0 = vrot.slane %v4261_v58, %v14063_v35 }
0x13d7   :  { %v4276_v8 = vrot.slane %v4262_v62, %v14063_v35  ;;  %v4283_v12 = vpack.c.bf16 %v4269_v0, %v4269_v0  ;;  %v4277_v2 = vcombine.high %v4269_v0, %v4269_v0 }
0x13d9   :  { %12434 = vmatmul.mubr.msk.bf16.vlgmr.msra.gmra.mrb[128].mxu0 %vm582_vm4, %v4283_v12  ;;  %v4284_v9 = vpack.c.bf16 %v4276_v8, %v4276_v8  ;;  %v4278_v32 = vcombine.high %v4276_v8, %v4276_v8  ;;  %v4285_v37 = vpack.c.bf16 %v4277_v2, %v4277_v2 }
0x13da   :  { %12444 = vmatpush3.bf16.msra.mxu0 %v4406_v25  ;;  %12445 = vmatprep.mubr.msk.bf16.mxu0 %vm13897_vm0, %v13896_v1 }
0x13db   :  { %12440 = vmatmul.mubr.msk.bf16.vlgmr.msra.gmra.mrb[128].mxu1 %vm582_vm4, %v4284_v9  ;;  %12455 = vmatprep.subr.bf16.mxu0 %v13896_v1  ;;  %v4286_v47 = vpack.c.bf16 %v4278_v32, %v4278_v32 }
0x13dc   :  { %12450 = vmatpush3.bf16.msra.mxu1 %v4457_v60  ;;  %12451 = vmatprep.mubr.msk.bf16.mxu1 %vm13897_vm0, %v13896_v1 }
0x13dd   :  { %12463 = vmatprep.subr.bf16.mxu1 %v13896_v1 }
0x13e1   :  { %12446 = vmatmul.mubr.msk.bf16.vlgmr.msra.gmra.mrb[132].mxu0 %vm582_vm4, %v4285_v37 }
0x13e2   :  { %12456 = vmatpush3.bf16.msra.mxu0 %v13808_v14  ;;  %12459 = vmatprep.mubr.msk.bf16.mxu0 %vm13897_vm0, %v13896_v1 }
0x13e3   :  { %12452 = vmatmul.mubr.msk.bf16.vlgmr.msra.gmra.mrb[132].mxu1 %vm582_vm4, %v4286_v47  ;;  %12457 = vmatprep.subr.bf16.mxu0 %v13896_v1 }
0x13e4   :  { %12464 = vmatpush3.bf16.msra.mxu1 %v13809_v18  ;;  %12467 = vmatprep.mubr.msk.bf16.mxu1 %vm13897_vm0, %v13896_v1 }
0x13e5   :  { %12465 = vmatprep.subr.bf16.mxu1 %v13896_v1 }
0x13e6   :  { %12458 = vmatpush3.bf16.msra.mxu0 %v13810_v16 }
0x13e7   :  { %12471 = vmatprep.subr.bf16.mxu0 %v13896_v1 }
0x13e8   :  { %12466 = vmatpush3.bf16.msra.mxu1 %v13811_v17 }
0x13e9   :  { %12479 = vmatprep.subr.bf16.mxu1 %v13896_v1 }
0x14ac   :  { %v4340_v19 = vpop.f32.mrb[128].mxu0 }
0x14ad   :  { %v4499_v26 = vadd.f32 %v4340_v19, %v14886_v39  ;;  %v12435_v27 = vpop.f32.mrb[129].mxu0 }
0x14ae   :  { %v4343_v33 = vpop.f32.mrb[130].mxu0  ;;  %v4391_v30 = vpop.f32.mrb[128].mxu1 }
0x14af   :  { %v4503_v34 = vadd.f32 %v13812_v63, %v4499_v26  ;;  %v4500_v38 = vadd.f32 %v4391_v30, %v14888_v57  ;;  %v12436_v23 = vpop.f32.mrb[131].mxu0  ;;  %v12441_v41 = vpop.f32.mrb[129].mxu1 }
0x14b0   :  { %v4394_v44 = vpop.f32.mrb[130].mxu1 }
0x14b1   :  { %13556 = vtanh.f32 %v4503_v34  ;;  %v4504_v48 = vadd.f32 %v4500_v38, %v14111_v31  ;;  %v12442_v10 = vpop.f32.mrb[131].mxu1 }
0x14b3   :  { %13558 = vtanh.f32 %v4504_v48  ;;  %v11253_v62 = vmul.f32 -1.442695, %v4504_v48 }
0x14b4   :  { %v4442_v49 = vpop.f32.mrb[132].mxu0 }
0x14b5   :  { %v4501_v39 = vadd.f32 %v4442_v49, %v14890_v45  ;;  %v12447_v61 = vpop.f32.mrb[133].mxu0 }
0x14b6   :  { %v4445_v36 = vpop.f32.mrb[134].mxu0  ;;  %v4493_v43 = vpop.f32.mrb[132].mxu1 }
0x14b7   :  { %v4505_v50 = vadd.f32 %v4501_v39, %v14114_v42  ;;  %v4502_v51 = vadd.f32 %v4493_v43, %v14892_v28  ;;  %v12448_v52 = vpop.f32.mrb[135].mxu0  ;;  %v12453_v57 = vpop.f32.mrb[133].mxu1  ;;  %v11252_v28 = vmul.f32 -1.442695, %v4503_v34 }
0x14b8   :  { %v4496_v53 = vpop.f32.mrb[134].mxu1 }
0x14b9   :  { %13560 = vtanh.f32 %v4505_v50  ;;  %v4506_v54 = vadd.f32 %v4502_v51, %v14116_v46  ;;  %v12454_v55 = vpop.f32.mrb[135].mxu1  ;;  %v11254_v0 = vmul.f32 -1.442695, %v4505_v50 }
0x14bb   :  { %v13557_v56 = vpop.eup %13556  ;;  %13562 = vtanh.f32 %v4506_v54  ;;  %v11255_v7 = vmul.f32 -1.442695, %v4506_v54 }
0x14bc   :  { %4543 = vrot.lane.b32.xlu1 %v13557_v56, %s13900_s23  ;;  %13564 = vpow2.f32 %v11252_v28 }
0x14bd   :  { %v13559_v58 = vpop.eup %13558  ;;  %13566 = vpow2.f32 %v11253_v62 }
0x14be   :  { %4545 = vrot.lane.b32.xlu0 %v13559_v58, %s13900_s23  ;;  %13568 = vpow2.f32 %v11254_v0 }
0x14bf   :  { %13570 = vpow2.f32 %v11255_v7  ;;  %v13813_v7 = vld [vmem:[%s16401_s1 + $0x20] sm:$0xff]  }
0x14c3   :  { %v13561_v45 = vpop.eup %13560 }
0x14c4   :  { %4547 = vrot.lane.b32.xlu1 %v13561_v45, %s13900_s23 }
0x14c5   :  { %v13563_v59 = vpop.eup %13562 }
0x14c6   :  { %v13565_v8 = vpop.eup %13564 }
0x14c7   :  { %v13567_v12 = vpop.eup %13566  ;;  %v4519_v25 = vadd.f32 1.0, %v13565_v8 }
0x14c8   :  { %4549 = vrot.lane.b32.xlu1 %v13563_v59, %s13900_s23  ;;  %v4520_v9 = vadd.f32 1.0, %v13567_v12  ;;  %v13569_v60 = vpop.eup %13568  ;;  %v13814_v12 = vld [vmem:[%s16401_s1 + $0x30] sm:$0xff]  }
0x14c9   :  { %13572 = vrcp.f32 %v4519_v25  ;;  %v4521_v2 = vadd.f32 1.0, %v13569_v60  ;;  %v13571_v32 = vpop.eup %13570  ;;  %v13815_v25 = vld [vmem:[%s16401_s1 + $0x28] sm:$0xff]   ;;  %v13816_v60 = vld [vmem:[%s16401_s1 + $0x38] sm:$0xff]  }
0x14ca   :  { %13574 = vrcp.f32 %v4520_v9  ;;  %v4522_v37 = vadd.f32 1.0, %v13571_v32 }
0x14cb   :  { %13576 = vrcp.f32 %v4521_v2 }
0x14cc   :  { %13578 = vrcp.f32 %v4522_v37 }
0x14d3   :  { %v13573_v47 = vpop.eup %13572 }
0x14d4   :  { %v13575_v16 = vpop.eup %13574  ;;  %v4535_v38 = vmul.f32 %v13573_v47, %v14578_v5 }
0x14d5   :  { %v13577_v26 = vpop.eup %13576  ;;  %v4536_v44 = vmul.f32 %v13575_v16, %v14582_v40 }
0x14d6   :  { %v13579_v30 = vpop.eup %13578  ;;  %v4537_v49 = vmul.f32 %v13577_v26, %v14586_v20 }
0x14d7   :  { %v4538_v5 = vmul.f32 %v13579_v30, %v14590_v3 }
0x152e   :  { %v4544_v14 = vpop.permute.xlu1 %4543 }
0x152f   :  { %v4555_v18 = vmul.f32 %v13573_v47, %v4544_v14 }
0x1530   :  { %v4546_v17 = vpop.permute.xlu0 %4545 }
0x1531   :  { %4563 = vrot.lane.b32.xlu0 %v4555_v18, %s13901_s24  ;;  %v4556_v19 = vmul.f32 %v13575_v16, %v4546_v17 }
0x1533   :  { %4565 = vrot.lane.b32.xlu1 %v4556_v19, %s13901_s24 }
0x1536   :  { %v4548_v27 = vpop.permute.xlu1 %4547 }
0x1537   :  { %v4557_v33 = vmul.f32 %v13577_v26, %v4548_v27 }
0x1539   :  { %4567 = vrot.lane.b32.xlu0 %v4557_v33, %s13901_s24 }
0x153a   :  { %v4550_v63 = vpop.permute.xlu1 %4549 }
0x153b   :  { %v4558_v34 = vmul.f32 %v13579_v30, %v4550_v63 }
0x153d   :  { %4569 = vrot.lane.b32.xlu1 %v4558_v34, %s13901_s24 }
0x15a3   :  { %v4564_v23 = vpop.permute.xlu0 %4563 }
0x15a4   :  { %v14980_v41 = vadd.f32 %v4564_v23, %v4535_v38 }
0x15a5   :  { %v4566_v48 = vpop.permute.xlu1 %4565 }
0x15a6   :  { %13580 = vtanh.f32 %v14980_v41  ;;  %v14984_v10 = vadd.f32 %v4566_v48, %v4536_v44 }
0x15a8   :  { %13582 = vtanh.f32 %v14984_v10 }
0x15ab   :  { %v4568_v39 = vpop.permute.xlu0 %4567 }
0x15ac   :  { %v14988_v61 = vadd.f32 %v4568_v39, %v4537_v49 }
0x15ae   :  { %13584 = vtanh.f32 %v14988_v61 }
0x15af   :  { %v4570_v36 = vpop.permute.xlu1 %4569 }
0x15b0   :  { %v13581_v43 = vpop.eup %13580  ;;  %v14992_v50 = vadd.f32 %v4570_v36, %v4538_v5 }
0x15b1   :  { %4587 = vrot.lane.b32.xlu0 %v13581_v43, %s13900_s23 }
0x15b2   :  { %13586 = vtanh.f32 %v14992_v50  ;;  %v13583_v40 = vpop.eup %13582 }
0x15b3   :  { %4589 = vrot.lane.b32.xlu1 %v13583_v40, %s13900_s23 }
0x15b8   :  { %v13585_v51 = vpop.eup %13584 }
0x15b9   :  { %4591 = vrot.lane.b32.xlu0 %v13585_v51, %s13900_s23 }
0x15bc   :  { %v13587_v20 = vpop.eup %13586 }
0x15bd   :  { %4593 = vrot.lane.b32.xlu1 %v13587_v20, %s13900_s23 }
0x1623   :  { %v4588_v52 = vpop.permute.xlu0 %4587 }
0x1624   :  { %v4599_v57 = vmul.f32 %v13573_v47, %v4588_v52 }
0x1625   :  { %v4590_v53 = vpop.permute.xlu1 %4589 }
0x1626   :  { %v4603_v3 = vpack.c.bf16 %v4599_v57, %v4599_v57  ;;  %v4600_v54 = vmul.f32 %v13575_v16, %v4590_v53 }
0x1628   :  { %4608 = vrot.lane.b32.xlu0 %v4603_v3, %s13901_s24  ;;  %v4604_v55 = vpack.c.bf16 %v4600_v54, %v4600_v54 }
0x162a   :  { %4654 = vrot.lane.b32.xlu1 %v4604_v55, %s13901_s24 }
0x162b   :  { %v4592_v56 = vpop.permute.xlu0 %4591 }
0x162c   :  { %v4601_v58 = vmul.f32 %v13577_v26, %v4592_v56 }
0x162e   :  { %v4605_v45 = vpack.c.bf16 %v4601_v58, %v4601_v58 }
0x162f   :  { %v4594_v59 = vpop.permute.xlu1 %4593 }
0x1630   :  { %v4602_v28 = vmul.f32 %v13579_v30, %v4594_v59  ;;  %4700 = vrot.lane.b32.xlu0 %v4605_v45, %s13901_s24 }
0x1632   :  { %v4606_v62 = vpack.c.bf16 %v4602_v28, %v4602_v28 }
0x1634   :  { %4746 = vrot.lane.b32.xlu1 %v4606_v62, %s13901_s24 }
0x169a   :  { %v15003_v0 = vpop.permute.xlu0 %4608 }
0x169b   :  { %12460 = vmatmul.mubr.msk.bf16.vlgmr.msra.gmra.mrb[136].mxu0 %vm116_vm1, %v15003_v0 }
0x169c   :  { %12472 = vmatpush3.bf16.msra.mxu0 %v13813_v7  ;;  %12475 = vmatprep.mubr.msk.bf16.mxu0 %vm13897_vm0, %v13896_v1  ;;  %v15012_v8 = vpop.permute.xlu1 %4654 }
0x169d   :  { %12473 = vmatprep.subr.bf16.mxu0 %v13896_v1  ;;  %12468 = vmatmul.mubr.msk.bf16.vlgmr.msra.gmra.mrb[136].mxu1 %vm116_vm1, %v15012_v8 }
0x169e   :  { %12480 = vmatpush3.bf16.msra.mxu1 %v13814_v12  ;;  %12483 = vmatprep.mubr.msk.bf16.mxu1 %vm13897_vm0, %v13896_v1 }
0x169f   :  { %12481 = vmatprep.subr.bf16.mxu1 %v13896_v1 }
0x16a0   :  { %12474 = vmatpush3.bf16.msra.mxu0 %v13815_v25 }
0x16a1   :  { %12487 = vmatprep.subr.bf16.mxu0 %v13896_v1 }
0x16a2   :  { %v15027_v9 = vpop.permute.xlu0 %4700  ;;  %12482 = vmatpush3.bf16.msra.mxu1 %v13816_v60 }
0x16a3   :  { %12476 = vmatmul.mubr.msk.bf16.vlgmr.msra.gmra.mrb[140].mxu0 %vm116_vm1, %v15027_v9  ;;  %12493 = vmatprep.subr.bf16.mxu1 %v13896_v1 }
0x16a4   :  { %12488 = vmatpush3.bf16.msra.mxu0 %v14222_v4  ;;  %12489 = vmatprep.mubr.msk.bf16.mxu0 %vm13897_vm0, %v13896_v1 }
0x16a5   :  { %12499 = vmatprep.subr.bf16.mxu0 %v13896_v1 }
0x16a6   :  { %v15039_v2 = vpop.permute.xlu1 %4746 }
0x16a7   :  { %12484 = vmatmul.mubr.msk.bf16.vlgmr.msra.gmra.mrb[140].mxu1 %vm116_vm1, %v15039_v2 }
0x16a8   :  { %12494 = vmatpush3.bf16.msra.mxu1 %v14228_v6  ;;  %12495 = vmatprep.mubr.msk.bf16.mxu1 %vm13897_vm0, %v13896_v1 }
0x16a9   :  { %12505 = vmatprep.subr.bf16.mxu1 %v13896_v1 }
0x176e   :  { %v4647_v32 = vpop.f32.mrb[136].mxu0 }
0x176f   :  { %v12461_v37 = vpop.f32.mrb[137].mxu0 }
0x1770   :  { %v4650_v47 = vpop.f32.mrb[138].mxu0  ;;  %v4693_v14 = vpop.f32.mrb[136].mxu1 }
0x1771   :  { %v12462_v18 = vpop.f32.mrb[139].mxu0  ;;  %v4795_v16 = vrot.slane %v4693_v14, 7  ;;  %v12469_v17 = vpop.f32.mrb[137].mxu1 }
0x1772   :  { %v4696_v19 = vpop.f32.mrb[138].mxu1 }
0x1773   :  { %v12470_v26 = vpop.f32.mrb[139].mxu1  ;;  %v4796_v27 = vsel %vm1136_vm5, %v4795_v16, %v4647_v32 }
0x1776   :  { %v4739_v33 = vpop.f32.mrb[140].mxu0 }
0x1777   :  { %v4797_v30 = vrot.slane %v4739_v33, 6  ;;  %v12477_v63 = vpop.f32.mrb[141].mxu0 }
0x1778   :  { %v4742_v34 = vpop.f32.mrb[142].mxu0 }
0x1779   :  { %v12478_v38 = vpop.f32.mrb[143].mxu0  ;;  %v4798_v23 = vsel %vm1139_vm6, %v4797_v30, %v4796_v27 }
0x177a   :  { %v4785_v44 = vpop.f32.mrb[140].mxu1 }
0x177b   :  { %v4799_v48 = vrot.slane %v4785_v44, 5  ;;  %v12485_v49 = vpop.f32.mrb[141].mxu1 }
0x177c   :  { %v4788_v39 = vpop.f32.mrb[142].mxu1 }
0x177d   :  { %v12486_v5 = vpop.f32.mrb[143].mxu1  ;;  %v4800_v36 = vsel %vm1142_vm7, %v4799_v48, %v4798_v23 }
0x177e   :  { %v4802_v43 = vsel %vm1145_vm8, %v4800_v36, -inf  ;;  %v13312_v36 = vld [vmem:[%s16407_s7] sm:$0xff]  }
0x177f   :  { %4803 = vmax.xlane.f32.xlu0 %v4802_v43 }
0x180c   :  { %v4804_v40 = vpop.xlane.xlu0 %4803 }
0x180d   :  { %v4806_v51 = vrot.slane %v4804_v40, 1  ;;  %v4807_v20 = vrot.slane %v4804_v40, 2  ;;  %v4808_v52 = vrot.slane %v4804_v40, 3  ;;  %v4813_v57 = vsub.f32 %v4647_v32, %v4804_v40  ;;  %v13313_v40 = vld [vmem:[%s16407_s7 + $0x10] sm:$0xff]  }
0x180f   :  { %v4814_v3 = vsub.f32 %v4693_v14, %v4806_v51  ;;  %v4815_v53 = vsub.f32 %v4739_v33, %v4807_v20  ;;  %v4816_v54 = vsub.f32 %v4785_v44, %v4808_v52  ;;  %v4817_v55 = vmul.f32 1.442695, %v4813_v57  ;;  %v13314_v20 = vld [vmem:[%s16407_s7 + $0x8] sm:$0xff]   ;;  %v13315_v52 = vld [vmem:[%s16407_s7 + $0x18] sm:$0xff]  }
0x1811   :  { %v4819_v56 = vmul.f32 1.442695, %v4814_v3  ;;  %v4821_v58 = vmul.f32 1.442695, %v4815_v53  ;;  %v4823_v45 = vmul.f32 1.442695, %v4816_v54  ;;  %13588 = vpow2.f32 %v4817_v55 }
0x1812   :  { %v13316_v3 = vld [vmem:[%s16407_s7 + $0x20] sm:$0xff]  }
0x1813   :  { %13590 = vpow2.f32 %v4819_v56 }
0x1814   :  { %13592 = vpow2.f32 %v4821_v58  ;;  %v13317_v58 = vld [vmem:[%s16407_s7 + $0x30] sm:$0xff]  }
0x1815   :  { %13594 = vpow2.f32 %v4823_v45 }
0x181b   :  { %v13589_v59 = vpop.eup %13588 }
0x181d   :  { %v13591_v28 = vpop.eup %13590 }
0x181e   :  { %v13593_v62 = vpop.eup %13592  ;;  %v4829_v7 = vrot.slane %v13591_v28, 7 }
0x181f   :  { %v13595_v12 = vpop.eup %13594  ;;  %v4831_v25 = vrot.slane %v13593_v62, 6 }
0x1820   :  { %v4830_v60 = vsel %vm1136_vm5, %v4829_v7, %v13589_v59  ;;  %v4833_v32 = vrot.slane %v13595_v12, 5  ;;  %v13318_v7 = vld [vmem:[%s16407_s7 + $0x28] sm:$0xff]  }
0x1821   :  { %v4832_v37 = vsel %vm1139_vm6, %v4831_v25, %v4830_v60  ;;  %v13319_v25 = vld [vmem:[%s16407_s7 + $0x38] sm:$0xff]  }
0x1822   :  { %v4834_v47 = vsel %vm1142_vm7, %v4833_v32, %v4832_v37  ;;  %v13320_v32 = vld [vmem:[%s16406_s6] sm:$0xff]  }
0x1823   :  { %v4836_v14 = vsel %vm1145_vm8, %v4834_v47, 0.0 }
0x1824   :  { %4837 = vadd.xlane.f32.xlu1 %v4836_v14 }
0x18b1   :  { %v4838_v18 = vpop.xlane.xlu1 %4837 }
0x18b2   :  { %13596 = vrcp.f32 %v4838_v18 }
0x18bc   :  { %v13597_v16 = vpop.eup %13596 }
0x18bd   :  { %v4848_v17 = vmul.f32 %v13597_v16, %v13589_v59  ;;  %v4841_v19 = vrot.slane %v13597_v16, 1  ;;  %v4842_v26 = vrot.slane %v13597_v16, 2  ;;  %v4843_v27 = vrot.slane %v13597_v16, 3  ;;  %v13321_v16 = vld [vmem:[%s16406_s6 + $0x10] sm:$0xff]  }
0x18bf   :  { %v4852_v33 = vpack.c.bf16 %v4848_v17, %v4848_v17  ;;  %v4849_v30 = vmul.f32 %v13591_v28, %v4841_v19  ;;  %v4850_v63 = vmul.f32 %v13593_v62, %v4842_v26  ;;  %v4851_v34 = vmul.f32 %v13595_v12, %v4843_v27 }
0x18c1   :  { %12490 = vmatmul.mubr.msk.bf16.vlgmr.msra.gmra.mrb[144].mxu0 %vm1200_vm10, %v4852_v33  ;;  %v4853_v38 = vpack.c.bf16 %v4849_v30, %v4849_v30  ;;  %v5586_v23 = vrot.slane %v4849_v30, 7  ;;  %v5588_v44 = vrot.slane %v4850_v63, 6  ;;  %v5590_v49 = vrot.slane %v4851_v34, 5  ;;  %v13322_v33 = vld [vmem:[%s16406_s6 + $0x8] sm:$0xff]  }
0x18c2   :  { %12500 = vmatpush3.bf16.msra.mxu0 %v14238_v15  ;;  %12501 = vmatprep.mubr.msk.bf16.mxu0 %vm13897_vm0, %v13896_v1  ;;  %v4854_v43 = vpack.c.bf16 %v4850_v63, %v4850_v63  ;;  %v4855_v51 = vpack.c.bf16 %v4851_v34, %v4851_v34  ;;  %v13323_v63 = vld [vmem:[%s16406_s6 + $0x18] sm:$0xff]   ;;  %v13324_v34 = vld [vmem:[%s16406_s6 + $0x20] sm:$0xff]  }
0x18c3   :  { %12496 = vmatmul.mubr.msk.bf16.vlgmr.msra.gmra.mrb[144].mxu1 %vm1200_vm10, %v4853_v38  ;;  %v5587_v48 = vsel %vm1136_vm5, %v5586_v23, %v4848_v17  ;;  %12511 = vmatprep.subr.bf16.mxu0 %v13896_v1  ;;  %v13325_v38 = vld [vmem:[%s16406_s6 + $0x30] sm:$0xff]   ;;  %v13326_v23 = vld [vmem:[%s16406_s6 + $0x28] sm:$0xff]  }
0x18c4   :  { %12506 = vmatpush3.bf16.msra.mxu1 %v14245_v24  ;;  %v5589_v39 = vsel %vm1139_vm6, %v5588_v44, %v5587_v48  ;;  %12507 = vmatprep.mubr.msk.bf16.mxu1 %vm13897_vm0, %v13896_v1  ;;  %v13327_v44 = vld [vmem:[%s16406_s6 + $0x38] sm:$0xff]   ;;  %v13328_v48 = vld [vmem:[%s16404_s4] sm:$0xff]  }
0x18c5   :  { %v5591_v5 = vsel %vm1142_vm7, %v5590_v49, %v5589_v39  ;;  %12519 = vmatprep.subr.bf16.mxu1 %v13896_v1  ;;  %v13329_v49 = vld [vmem:[%s16404_s4 + $0x10] sm:$0xff]   ;;  %v13330_v39 = vld [vmem:[%s16404_s4 + $0x8] sm:$0xff]  }
0x18c6   :  { %5594 = vst.msk [vmem:[#allocation4 + $0x8] sm:$0xf] %vm1145_vm8, %v5591_v5  ;;  %v13331_v5 = vld [vmem:[%s16404_s4 + $0x18] sm:$0xff]  }
0x18c9   :  { %12502 = vmatmul.mubr.msk.bf16.vlgmr.msra.gmra.mrb[148].mxu0 %vm1200_vm10, %v4854_v43  ;;  %v13333_v43 = vld [vmem:[%s16404_s4 + $0x30] sm:$0xff]  }
0x18ca   :  { %12512 = vmatpush3.bf16.msra.mxu0 %v13312_v36  ;;  %12515 = vmatprep.mubr.msk.bf16.mxu0 %vm13897_vm0, %v13896_v1  ;;  %v13332_v36 = vld [vmem:[%s16404_s4 + $0x20] sm:$0xff]  }
0x18cb   :  { %12508 = vmatmul.mubr.msk.bf16.vlgmr.msra.gmra.mrb[148].mxu1 %vm1200_vm10, %v4855_v51  ;;  %12513 = vmatprep.subr.bf16.mxu0 %v13896_v1  ;;  %v13336_v51 = vld [vmem:[%s16403_s3] sm:$0xff]  }
0x18cc   :  { %12520 = vmatpush3.bf16.msra.mxu1 %v13313_v40  ;;  %12523 = vmatprep.mubr.msk.bf16.mxu1 %vm13897_vm0, %v13896_v1  ;;  %v13334_v40 = vld [vmem:[%s16404_s4 + $0x28] sm:$0xff]  }
0x18cd   :  { %12521 = vmatprep.subr.bf16.mxu1 %v13896_v1 }
0x18ce   :  { %12514 = vmatpush3.bf16.msra.mxu0 %v13314_v20  ;;  %v13338_v20 = vld [vmem:[%s16403_s3 + $0x8] sm:$0xff]  }
0x18cf   :  { %12527 = vmatprep.subr.bf16.mxu0 %v13896_v1 }
0x18d0   :  { %12522 = vmatpush3.bf16.msra.mxu1 %v13315_v52  ;;  %v13340_v52 = vld [vmem:[%s16403_s3 + $0x20] sm:$0xff]  }
0x18d1   :  { %12535 = vmatprep.subr.bf16.mxu1 %v13896_v1 }
0x1994   :  { %v4893_v57 = vpop.f32.mrb[144].mxu0 }
0x1995   :  { %v15094_v53 = vpack.c.bf16 %v4893_v57, %v4893_v57  ;;  %v12491_v54 = vpop.f32.mrb[145].mxu0  ;;  %v13342_v57 = vld [vmem:[%s16403_s3 + $0x28] sm:$0xff]  }
0x1996   :  { %v4896_v55 = vpop.f32.mrb[146].mxu0  ;;  %v4936_v56 = vpop.f32.mrb[144].mxu1 }
0x1997   :  { %v15099_v45 = vpack.c.bf16 %v4936_v56, %v4936_v56  ;;  %v12492_v59 = vpop.f32.mrb[147].mxu0  ;;  %v12497_v28 = vpop.f32.mrb[145].mxu1  ;;  %12516 = vmatmul.mubr.msk.bf16.vlgmr.msra.gmra.mrb[152].mxu0 %vm116_vm1, %v15094_v53 }
0x1998   :  { %v4939_v62 = vpop.f32.mrb[146].mxu1  ;;  %12528 = vmatpush3.bf16.msra.mxu0 %v13316_v3  ;;  %12531 = vmatprep.mubr.msk.bf16.mxu0 %vm13897_vm0, %v13896_v1  ;;  %v13343_v3 = vld [vmem:[%s16403_s3 + $0x38] sm:$0xff]  }
0x1999   :  { %v12498_v12 = vpop.f32.mrb[147].mxu1  ;;  %12524 = vmatmul.mubr.msk.bf16.vlgmr.msra.gmra.mrb[152].mxu1 %vm116_vm1, %v15099_v45  ;;  %12529 = vmatprep.subr.bf16.mxu0 %v13896_v1 }
0x199a   :  { %12536 = vmatpush3.bf16.msra.mxu1 %v13317_v58  ;;  %12539 = vmatprep.mubr.msk.bf16.mxu1 %vm13897_vm0, %v13896_v1 }
0x199b   :  { %12537 = vmatprep.subr.bf16.mxu1 %v13896_v1 }
0x199c   :  { %v4979_v60 = vpop.f32.mrb[148].mxu0  ;;  %12530 = vmatpush3.bf16.msra.mxu0 %v13318_v7 }
0x199d   :  { %v15120_v37 = vpack.c.bf16 %v4979_v60, %v4979_v60  ;;  %v12503_v47 = vpop.f32.mrb[149].mxu0  ;;  %12543 = vmatprep.subr.bf16.mxu0 %v13896_v1 }
0x199e   :  { %v4982_v14 = vpop.f32.mrb[150].mxu0  ;;  %v5022_v18 = vpop.f32.mrb[148].mxu1  ;;  %12538 = vmatpush3.bf16.msra.mxu1 %v13319_v25 }
0x199f   :  { %v15126_v17 = vpack.c.bf16 %v5022_v18, %v5022_v18  ;;  %v12504_v19 = vpop.f32.mrb[151].mxu0  ;;  %v12509_v26 = vpop.f32.mrb[149].mxu1  ;;  %12532 = vmatmul.mubr.msk.bf16.vlgmr.msra.gmra.mrb[156].mxu0 %vm116_vm1, %v15120_v37  ;;  %12551 = vmatprep.subr.bf16.mxu1 %v13896_v1 }
0x19a0   :  { %v5025_v27 = vpop.f32.mrb[150].mxu1  ;;  %12544 = vmatpush3.bf16.msra.mxu0 %v13320_v32  ;;  %12547 = vmatprep.mubr.msk.bf16.mxu0 %vm13897_vm0, %v13896_v1 }
0x19a1   :  { %v12510_v30 = vpop.f32.mrb[151].mxu1  ;;  %12540 = vmatmul.mubr.msk.bf16.vlgmr.msra.gmra.mrb[156].mxu1 %vm116_vm1, %v15126_v17  ;;  %12545 = vmatprep.subr.bf16.mxu0 %v13896_v1 }
0x19a2   :  { %12552 = vmatpush3.bf16.msra.mxu1 %v13321_v16  ;;  %12555 = vmatprep.mubr.msk.bf16.mxu1 %vm13897_vm0, %v13896_v1 }
0x19a3   :  { %12553 = vmatprep.subr.bf16.mxu1 %v13896_v1 }
0x19a4   :  { %12546 = vmatpush3.bf16.msra.mxu0 %v13322_v33 }
0x19a5   :  { %12559 = vmatprep.subr.bf16.mxu0 %v13896_v1 }
0x19a6   :  { %12554 = vmatpush3.bf16.msra.mxu1 %v13323_v63 }
0x19a7   :  { %12548 = vmatmul.mubr.msk.bf16.vlgmr.msra.gmra.mrb[160].mxu0 %vm116_vm1, %v15003_v0  ;;  %12567 = vmatprep.subr.bf16.mxu1 %v13896_v1 }
0x19a8   :  { %12560 = vmatpush3.bf16.msra.mxu0 %v13324_v34  ;;  %12563 = vmatprep.mubr.msk.bf16.mxu0 %vm13897_vm0, %v13896_v1 }
0x19a9   :  { %12556 = vmatmul.mubr.msk.bf16.vlgmr.msra.gmra.mrb[160].mxu1 %vm116_vm1, %v15012_v8  ;;  %12561 = vmatprep.subr.bf16.mxu0 %v13896_v1 }
0x19aa   :  { %12568 = vmatpush3.bf16.msra.mxu1 %v13325_v38  ;;  %12571 = vmatprep.mubr.msk.bf16.mxu1 %vm13897_vm0, %v13896_v1 }
0x19ab   :  { %12569 = vmatprep.subr.bf16.mxu1 %v13896_v1 }
0x19ac   :  { %12562 = vmatpush3.bf16.msra.mxu0 %v13326_v23 }
0x19ad   :  { %12575 = vmatprep.subr.bf16.mxu0 %v13896_v1 }
0x19ae   :  { %12570 = vmatpush3.bf16.msra.mxu1 %v13327_v44 }
0x19af   :  { %12564 = vmatmul.mubr.msk.bf16.vlgmr.msra.gmra.mrb[164].mxu0 %vm116_vm1, %v15027_v9  ;;  %12583 = vmatprep.subr.bf16.mxu1 %v13896_v1 }
0x19b0   :  { %12576 = vmatpush3.bf16.msra.mxu0 %v13328_v48  ;;  %12579 = vmatprep.mubr.msk.bf16.mxu0 %vm13897_vm0, %v13896_v1 }
0x19b1   :  { %12572 = vmatmul.mubr.msk.bf16.vlgmr.msra.gmra.mrb[164].mxu1 %vm116_vm1, %v15039_v2  ;;  %12577 = vmatprep.subr.bf16.mxu0 %v13896_v1 }
0x19b2   :  { %12584 = vmatpush3.bf16.msra.mxu1 %v13329_v49  ;;  %12587 = vmatprep.mubr.msk.bf16.mxu1 %vm13897_vm0, %v13896_v1 }
0x19b3   :  { %12585 = vmatprep.subr.bf16.mxu1 %v13896_v1 }
0x19b4   :  { %12578 = vmatpush3.bf16.msra.mxu0 %v13330_v39 }
0x19b5   :  { %12591 = vmatprep.subr.bf16.mxu0 %v13896_v1 }
0x19b6   :  { %12586 = vmatpush3.bf16.msra.mxu1 %v13331_v5 }
0x19b7   :  { %12580 = vmatmul.mubr.msk.bf16.vlgmr.msra.gmra.mrb[168].mxu0 %vm116_vm1, %v15003_v0  ;;  %12599 = vmatprep.subr.bf16.mxu1 %v13896_v1  ;;  %v13335_v0 = vld [vmem:[%s16404_s4 + $0x38] sm:$0xff]  }
0x19b8   :  { %12592 = vmatpush3.bf16.msra.mxu0 %v13332_v36  ;;  %12595 = vmatprep.mubr.msk.bf16.mxu0 %vm13897_vm0, %v13896_v1 }
0x19b9   :  { %12588 = vmatmul.mubr.msk.bf16.vlgmr.msra.gmra.mrb[168].mxu1 %vm116_vm1, %v15012_v8  ;;  %12593 = vmatprep.subr.bf16.mxu0 %v13896_v1  ;;  %v13337_v8 = vld [vmem:[%s16403_s3 + $0x10] sm:$0xff]  }
0x19ba   :  { %12600 = vmatpush3.bf16.msra.mxu1 %v13333_v43  ;;  %12603 = vmatprep.mubr.msk.bf16.mxu1 %vm13897_vm0, %v13896_v1 }
0x19bb   :  { %12601 = vmatprep.subr.bf16.mxu1 %v13896_v1 }
0x19bc   :  { %12594 = vmatpush3.bf16.msra.mxu0 %v13334_v40 }
0x19bd   :  { %12607 = vmatprep.subr.bf16.mxu0 %v13896_v1 }
0x19be   :  { %12602 = vmatpush3.bf16.msra.mxu1 %v13335_v0  ;;  %v13817_v0 = vld [vmem:[%s16408_s8] sm:$0xf] }
0x19bf   :  { %12596 = vmatmul.mubr.msk.bf16.vlgmr.msra.gmra.mrb[172].mxu0 %vm116_vm1, %v15027_v9  ;;  %12615 = vmatprep.subr.bf16.mxu1 %v13896_v1  ;;  %v13339_v9 = vld [vmem:[%s16403_s3 + $0x18] sm:$0xff]  }
0x19c0   :  { %12608 = vmatpush3.bf16.msra.mxu0 %v13336_v51  ;;  %12611 = vmatprep.mubr.msk.bf16.mxu0 %vm13897_vm0, %v13896_v1 }
0x19c1   :  { %12604 = vmatmul.mubr.msk.bf16.vlgmr.msra.gmra.mrb[172].mxu1 %vm116_vm1, %v15039_v2  ;;  %12609 = vmatprep.subr.bf16.mxu0 %v13896_v1  ;;  %v13341_v2 = vld [vmem:[%s16403_s3 + $0x30] sm:$0xff]  }
0x19c2   :  { %12616 = vmatpush3.bf16.msra.mxu1 %v13337_v8  ;;  %12619 = vmatprep.mubr.msk.bf16.mxu1 %vm13897_vm0, %v13896_v1 }
0x19c3   :  { %12617 = vmatprep.subr.bf16.mxu1 %v13896_v1 }
0x19c4   :  { %12610 = vmatpush3.bf16.msra.mxu0 %v13338_v20 }
0x19c5   :  { %12623 = vmatprep.subr.bf16.mxu0 %v13896_v1 }
0x19c6   :  { %12618 = vmatpush3.bf16.msra.mxu1 %v13339_v9 }
0x19c7   :  { %12612 = vmatmul.mubr.msk.bf16.vlgmr.msra.gmra.mrb[176].mxu0 %vm116_vm1, %v15094_v53  ;;  %12631 = vmatprep.subr.bf16.mxu1 %v13896_v1 }
0x19c8   :  { %12624 = vmatpush3.bf16.msra.mxu0 %v13340_v52  ;;  %12627 = vmatprep.mubr.msk.bf16.mxu0 %vm13897_vm0, %v13896_v1 }
0x19c9   :  { %12620 = vmatmul.mubr.msk.bf16.vlgmr.msra.gmra.mrb[176].mxu1 %vm116_vm1, %v15099_v45  ;;  %12625 = vmatprep.subr.bf16.mxu0 %v13896_v1 }
0x19ca   :  { %12632 = vmatpush3.bf16.msra.mxu1 %v13341_v2  ;;  %12635 = vmatprep.mubr.msk.bf16.mxu1 %vm13897_vm0, %v13896_v1 }
0x19cb   :  { %12633 = vmatprep.subr.bf16.mxu1 %v13896_v1 }
0x19cc   :  { %12626 = vmatpush3.bf16.msra.mxu0 %v13342_v57 }
0x19cd   :  { %12639 = vmatprep.subr.bf16.mxu0 %v13896_v1 }
0x19ce   :  { %12634 = vmatpush3.bf16.msra.mxu1 %v13343_v3 }
0x19cf   :  { %12628 = vmatmul.mubr.msk.bf16.vlgmr.msra.gmra.mrb[180].mxu0 %vm116_vm1, %v15120_v37  ;;  %12645 = vmatprep.subr.bf16.mxu1 %v13896_v1 }
0x19d0   :  { %12641 = vmatprep.mubr.msk.bf16.mxu0 %vm13897_vm0, %v13896_v1 }
0x19d1   :  { %12636 = vmatmul.mubr.msk.bf16.vlgmr.msra.gmra.mrb[180].mxu1 %vm116_vm1, %v15126_v17 }
0x19d2   :  { %12647 = vmatprep.mubr.msk.bf16.mxu1 %vm13897_vm0, %v13896_v1 }
0x1a6a   :  { %v5113_v53 = vpop.f32.mrb[152].mxu0 }
0x1a6b   :  { %v12517_v54 = vpop.f32.mrb[153].mxu0 }
0x1a6c   :  { %v5116_v55 = vpop.f32.mrb[154].mxu0  ;;  %v5168_v56 = vpop.f32.mrb[152].mxu1 }
0x1a6d   :  { %v12518_v58 = vpop.f32.mrb[155].mxu0  ;;  %v12525_v45 = vpop.f32.mrb[153].mxu1 }
0x1a6e   :  { %v5171_v59 = vpop.f32.mrb[154].mxu1 }
0x1a6f   :  { %v12526_v28 = vpop.f32.mrb[155].mxu1 }
0x1a72   :  { %v5223_v62 = vpop.f32.mrb[156].mxu0 }
0x1a73   :  { %v12533_v7 = vpop.f32.mrb[157].mxu0 }
0x1a74   :  { %v5226_v12 = vpop.f32.mrb[158].mxu0  ;;  %v5278_v25 = vpop.f32.mrb[156].mxu1 }
0x1a75   :  { %v12534_v60 = vpop.f32.mrb[159].mxu0  ;;  %v12541_v32 = vpop.f32.mrb[157].mxu1 }
0x1a76   :  { %v5281_v37 = vpop.f32.mrb[158].mxu1 }
0x1a77   :  { %v12542_v47 = vpop.f32.mrb[159].mxu1 }
0x1a7a   :  { %v5330_v14 = vpop.f32.mrb[160].mxu0 }
0x1a7b   :  { %v5331_v18 = vadd.f32 %v5330_v14, %v5113_v53  ;;  %v12549_v16 = vpop.f32.mrb[161].mxu0 }
0x1a7c   :  { %v5333_v17 = vpop.f32.mrb[162].mxu0  ;;  %v5382_v19 = vpop.f32.mrb[160].mxu1 }
0x1a7d   :  { %v5383_v26 = vadd.f32 %v5382_v19, %v5168_v56  ;;  %v12550_v27 = vpop.f32.mrb[163].mxu0  ;;  %v12557_v33 = vpop.f32.mrb[161].mxu1  ;;  %v5492_v51 = vadd.f32 %v13817_v0, %v5331_v18 }
0x1a7e   :  { %v5385_v30 = vpop.f32.mrb[162].mxu1 }
0x1a7f   :  { %v12558_v63 = vpop.f32.mrb[163].mxu1  ;;  %v15276_v34 = vadd.f32 %v5383_v26, %v14469_v13 }
0x1a81   :  { %v5500_v48 = vrot.slane %v15276_v34, 7 }
0x1a82   :  { %v5434_v38 = vpop.f32.mrb[164].mxu0 }
0x1a83   :  { %v5435_v23 = vadd.f32 %v5434_v38, %v5223_v62  ;;  %v12565_v44 = vpop.f32.mrb[165].mxu0  ;;  %v5501_v2 = vsel %vm1136_vm5, %v5500_v48, %v5492_v51 }
0x1a84   :  { %v5437_v49 = vpop.f32.mrb[166].mxu0  ;;  %v5486_v39 = vpop.f32.mrb[164].mxu1 }
0x1a85   :  { %v5494_v5 = vadd.f32 %v5435_v23, %v14474_v21  ;;  %v5487_v36 = vadd.f32 %v5486_v39, %v5278_v25  ;;  %v12566_v43 = vpop.f32.mrb[167].mxu0  ;;  %v12573_v40 = vpop.f32.mrb[165].mxu1 }
0x1a86   :  { %v5489_v8 = vpop.f32.mrb[166].mxu1 }
0x1a87   :  { %v5502_v20 = vrot.slane %v5494_v5, 6  ;;  %v5495_v9 = vadd.f32 %v5487_v36, %v14476_v29  ;;  %v12574_v52 = vpop.f32.mrb[167].mxu1 }
0x1a89   :  { %v5504_v57 = vrot.slane %v5495_v9, 5  ;;  %v5503_v3 = vsel %vm1139_vm6, %v5502_v20, %v5501_v2 }
0x1a8a   :  { %v5696_v53 = vpop.f32.mrb[168].mxu0 }
0x1a8b   :  { %v12581_v54 = vpop.f32.mrb[169].mxu0  ;;  %v5505_v55 = vsel %vm1142_vm7, %v5504_v57, %v5503_v3 }
0x1a8c   :  { %v5699_v56 = vpop.f32.mrb[170].mxu0  ;;  %v5748_v58 = vpop.f32.mrb[168].mxu1  ;;  %v5507_v45 = vsel %vm1873_vm11, %v5505_v55, -inf }
0x1a8d   :  { %v12589_v59 = vpop.f32.mrb[169].mxu1  ;;  %5508 = vmax.xlane.f32.xlu0 %v5507_v45  ;;  %v12582_v28 = vpop.f32.mrb[171].mxu0 }
0x1a8e   :  { %v5751_v62 = vpop.f32.mrb[170].mxu1 }
0x1a8f   :  { %v12590_v7 = vpop.f32.mrb[171].mxu1 }
0x1a92   :  { %v5800_v12 = vpop.f32.mrb[172].mxu0 }
0x1a93   :  { %v12597_v25 = vpop.f32.mrb[173].mxu0 }
0x1a94   :  { %v5803_v60 = vpop.f32.mrb[174].mxu0  ;;  %v5852_v32 = vpop.f32.mrb[172].mxu1 }
0x1a95   :  { %v12598_v37 = vpop.f32.mrb[175].mxu0  ;;  %v12605_v47 = vpop.f32.mrb[173].mxu1 }
0x1a96   :  { %v5855_v14 = vpop.f32.mrb[174].mxu1 }
0x1a97   :  { %v12606_v18 = vpop.f32.mrb[175].mxu1 }
0x1a9a   :  { %v5904_v16 = vpop.f32.mrb[176].mxu0 }
0x1a9b   :  { %v15288_v17 = vadd.f32 %v5904_v16, %v5696_v53  ;;  %v12613_v19 = vpop.f32.mrb[177].mxu0 }
0x1a9c   :  { %v5907_v26 = vpop.f32.mrb[178].mxu0  ;;  %v5956_v27 = vpop.f32.mrb[176].mxu1 }
0x1a9d   :  { %v15290_v33 = vadd.f32 %v5956_v27, %v5748_v58  ;;  %v12614_v30 = vpop.f32.mrb[179].mxu0  ;;  %v12621_v63 = vpop.f32.mrb[177].mxu1 }
0x1a9e   :  { %v5959_v38 = vpop.f32.mrb[178].mxu1 }
0x1a9f   :  { %v12622_v23 = vpop.f32.mrb[179].mxu1 }
0x1aa2   :  { %v6008_v44 = vpop.f32.mrb[180].mxu0 }
0x1aa3   :  { %v15292_v48 = vadd.f32 %v6008_v44, %v5800_v12  ;;  %v12629_v49 = vpop.f32.mrb[181].mxu0 }
0x1aa4   :  { %v6011_v39 = vpop.f32.mrb[182].mxu0  ;;  %v6060_v36 = vpop.f32.mrb[180].mxu1 }
0x1aa5   :  { %v15294_v43 = vadd.f32 %v6060_v36, %v5852_v32  ;;  %v12630_v40 = vpop.f32.mrb[183].mxu0  ;;  %v12637_v0 = vpop.f32.mrb[181].mxu1 }
0x1aa6   :  { %v6063_v8 = vpop.f32.mrb[182].mxu1 }
0x1aa7   :  { %v12638_v20 = vpop.f32.mrb[183].mxu1 }
0x1b1a   :  { %v5509_v52 = vpop.xlane.xlu0 %5508 }
0x1b1b   :  { %v5511_v2 = vrot.slane %v5509_v52, 1  ;;  %v5512_v57 = vrot.slane %v5509_v52, 2  ;;  %v5513_v3 = vrot.slane %v5509_v52, 3  ;;  %v5518_v53 = vsub.f32 %v5492_v51, %v5509_v52 }
0x1b1d   :  { %v5519_v54 = vsub.f32 %v15276_v34, %v5511_v2  ;;  %v5520_v55 = vsub.f32 %v5494_v5, %v5512_v57  ;;  %v5521_v56 = vsub.f32 %v5495_v9, %v5513_v3  ;;  %v5522_v58 = vmul.f32 1.442695, %v5518_v53 }
0x1b1f   :  { %v5524_v45 = vmul.f32 1.442695, %v5519_v54  ;;  %v5526_v59 = vmul.f32 1.442695, %v5520_v55  ;;  %v5528_v28 = vmul.f32 1.442695, %v5521_v56  ;;  %13598 = vpow2.f32 %v5522_v58 }
0x1b21   :  { %13600 = vpow2.f32 %v5524_v45 }
0x1b22   :  { %13602 = vpow2.f32 %v5526_v59 }
0x1b23   :  { %13604 = vpow2.f32 %v5528_v28 }
0x1b29   :  { %v13599_v62 = vpop.eup %13598 }
0x1b2b   :  { %v13601_v7 = vpop.eup %13600 }
0x1b2c   :  { %v13603_v12 = vpop.eup %13602  ;;  %v5534_v25 = vrot.slane %v13601_v7, 7 }
0x1b2d   :  { %v13605_v60 = vpop.eup %13604  ;;  %v5536_v32 = vrot.slane %v13603_v12, 6 }
0x1b2e   :  { %v5535_v51 = vsel %vm1136_vm5, %v5534_v25, %v13599_v62  ;;  %v5538_v37 = vrot.slane %v13605_v60, 5 }
0x1b2f   :  { %v5537_v34 = vsel %vm1139_vm6, %v5536_v32, %v5535_v51 }
0x1b30   :  { %v5539_v5 = vsel %vm1142_vm7, %v5538_v37, %v5537_v34  ;;  %v13344_v37 = vld [vmem:[%s16402_s2] sm:$0x1f]  }
0x1b31   :  { %v5541_v9 = vsel %vm1873_vm11, %v5539_v5, 0.0  ;;  %v6120_v34 = vsel %vm586_vm2, %v13344_v37, 0  ;;  %v13345_v5 = vld [vmem:[%s16402_s2 + $0x8] sm:$0x1f]  }
0x1b32   :  { %5542 = vadd.xlane.f32.xlu0 %v5541_v9  ;;  %12640 = vmatpush3.bf16.msra.mxu0 %v6120_v34  ;;  %v6171_v9 = vsel %vm586_vm2, %v13345_v5, 0 }
0x1b33   :  { %12651 = vmatprep.subr.bf16.mxu0 %v13896_v1  ;;  %12646 = vmatpush3.bf16.msra.mxu1 %v6171_v9 }
0x1b34   :  { %12657 = vmatprep.subr.bf16.mxu1 %v13896_v1 }
0x1bbf   :  { %v5543_v47 = vpop.xlane.xlu0 %5542 }
0x1bc0   :  { %v5545_v14 = vrot.slane %v5543_v47, 1  ;;  %v5546_v18 = vrot.slane %v5543_v47, 2  ;;  %v5547_v16 = vrot.slane %v5543_v47, 3  ;;  %13606 = vrcp.f32 %v5543_v47 }
0x1bc2   :  { %13608 = vrcp.f32 %v5545_v14 }
0x1bc3   :  { %13610 = vrcp.f32 %v5546_v18 }
0x1bc4   :  { %13612 = vrcp.f32 %v5547_v16 }
0x1bca   :  { %v13607_v19 = vpop.eup %13606 }
0x1bcb   :  { %v5553_v23 = vmul.f32 %v13607_v19, %v13599_v62 }
0x1bcc   :  { %v13609_v26 = vpop.eup %13608 }
0x1bcd   :  { %v13611_v27 = vpop.eup %13610  ;;  %v5555_v30 = vmul.f32 %v13609_v26, %v13601_v7 }
0x1bce   :  { %v13613_v63 = vpop.eup %13612  ;;  %v5557_v38 = vmul.f32 %v13611_v27, %v13603_v12 }
0x1bcf   :  { %v5559_v44 = vmul.f32 %v13613_v63, %v13605_v60  ;;  %v5564_v49 = vrot.slane %v5555_v30, 7  ;;  %v13346_v63 = vld [vmem:[%s16402_s2 + $0x10] sm:$0x1f]  }
0x1bd0   :  { %v5566_v39 = vrot.slane %v5557_v38, 6 }
0x1bd1   :  { %v5568_v36 = vrot.slane %v5559_v44, 5  ;;  %v5565_v40 = vsel %vm1136_vm5, %v5564_v49, %v5553_v23  ;;  %v13347_v44 = vld [vmem:[%s16402_s2 + $0x18] sm:$0x1f]  }
0x1bd2   :  { %v5567_v0 = vsel %vm1139_vm6, %v5566_v39, %v5565_v40 }
0x1bd3   :  { %v5569_v8 = vsel %vm1142_vm7, %v5568_v36, %v5567_v0  ;;  %v6222_v36 = vsel %vm586_vm2, %v13346_v63, 0  ;;  %v6273_v0 = vsel %vm586_vm2, %v13347_v44, 0 }
0x1bd4   :  { %v5571_v20 = vsel %vm1873_vm11, %v5569_v8, 0.0 }
0x1bd5   :  { %v5572_v52 = vrot.slane %v5571_v20, 4 }
0x1bd7   :  { %v5573_v2 = vadd.f32 %v5572_v52, %v5571_v20 }
0x1bd9   :  { %v5574_v57 = vrot.slane %v5573_v2, 2 }
0x1bdb   :  { %v5575_v3 = vadd.f32 %v5574_v57, %v5573_v2  ;;  %v13818_v57 = vld [vmem:[%s16401_s1] sm:$0xff]  }
0x1bdd   :  { %v5576_v53 = vrot.slane %v5575_v3, 1 }
0x1bdf   :  { %v5577_v54 = vadd.f32 %v5576_v53, %v5575_v3  ;;  %v13819_v3 = vld [vmem:[%s16401_s1 + $0x10] sm:$0xff]   ;;  %v13820_v53 = vld [vmem:[%s16401_s1 + $0x8] sm:$0xff]  }
0x1be1   :  { %v5578_v55 = vmul.f32 0.25, %v5577_v54  ;;  %v13821_v54 = vld [vmem:[%s16401_s1 + $0x18] sm:$0xff]  }
0x1be3   :  { %13614 = vlog2.f32 %v5578_v55 }
0x1bed   :  { %v13615_v56 = vpop.eup %13614 }
0x1bee   :  { %v5580_v58 = vmul.f32 0.6931472, %v13615_v56 }
0x1bf0   :  { %v5595_v45 = vsel %vm1949_vm12, %v5580_v58, -inf  ;;  %5581 = vst.msk [vmem:[#allocation2 + $0x2] sm:$0x1] %vm1949_vm12, %v5580_v58 }
0x1bf1   :  { %5596 = vmax.xlane.f32.xlu1 %v5595_v45 }
0x1c7e   :  { %v5597_v59 = vpop.xlane.xlu1 %5596 }
0x1c7f   :  { %vm5598_vm14 = vcmp.ge.f32.partialorder %v5580_v58, %v5597_v59 }
0x1c80   :  { %v5599_v28 = vsel %vm5598_vm14, %v13998_v11, 10 }
0x1c81   :  { %v5600_v62 = vsel %vm1949_vm12, %v5599_v28, 2147483647  ;;  %v13822_v28 = vld [vmem:[%s16405_s5] sm:$0xf] }
0x1c82   :  { %v5602_v7 = vshra.s32 %v5600_v62, 16  ;;  %v5601_v25 = vand.u32 65535, %v5600_v62 }
0x1c84   :  { %v5604_v12 = vcvt.s32.f32 %v5602_v7  ;;  %v5603_v32 = vcvt.s32.f32 %v5601_v25 }
0x1c86   :  { %5605 = vmin.xlane.f32.xlu0 %v5604_v12 }
0x1d13   :  { %v5606_v60 = vpop.xlane.xlu0 %5605 }
0x1d14   :  { %vm5607_vm15 = vcmp.eq.f32.partialorder %v5604_v12, %v5606_v60  ;;  %v5612_v47 = vcvt.f32.s32 %v5606_v60 }
0x1d15   :  { %v5608_v51 = vsel %vm5607_vm15, %v5603_v32, inf }
0x1d16   :  { %5609 = vmin.xlane.f32.xlu1 %v5608_v51  ;;  %v5613_v18 = vshll.u32 %v5612_v47, 16 }
0x1da3   :  { %v5610_v14 = vpop.xlane.xlu1 %5609 }
0x1da4   :  { %v5611_v16 = vcvt.f32.s32 %v5610_v14 }
0x1da6   :  { %v5614_v19 = vadd.s32 %v5613_v18, %v5611_v16 }
0x1da8   :  { %vm5615_vm3 = vcmp.eq.s32.totalorder %v13998_v11, %v5614_v19 }
0x1da9   :  { %v11288_v26 = vsel %vm5615_vm3, 1.0, %v13896_v1 }
0x1daa   :  { %v6069_v27 = vrot.slane %v11288_v26, %v14517_v22 }
0x1dac   :  { %v6077_v30 = vrot.slane %v6069_v27, %v14063_v35 }
0x1dae   :  { %v6078_v38 = vcombine.high %v6077_v30, %v6077_v30  ;;  %v6085_v23 = vrot.slane %v6077_v30, %v14063_v35 }
0x1db0   :  { %v6092_v49 = vrot.slane %v6078_v38, %v14063_v35  ;;  %v6099_v39 = vpack.c.bf16 %v6085_v23, %v6085_v23  ;;  %v6093_v8 = vcombine.high %v6085_v23, %v6085_v23 }
0x1db2   :  { %12642 = vmatmul.mubr.msk.bf16.vlgmr.msra.gmra.mrb[184].mxu0 %vm582_vm4, %v6099_v39  ;;  %v6100_v40 = vpack.c.bf16 %v6092_v49, %v6092_v49  ;;  %v6094_v20 = vcombine.high %v6092_v49, %v6092_v49  ;;  %v6101_v52 = vpack.c.bf16 %v6093_v8, %v6093_v8 }
0x1db3   :  { %12652 = vmatpush3.bf16.msra.mxu0 %v6222_v36  ;;  %12653 = vmatprep.mubr.msk.bf16.mxu0 %vm13897_vm0, %v13896_v1 }
0x1db4   :  { %12648 = vmatmul.mubr.msk.bf16.vlgmr.msra.gmra.mrb[184].mxu1 %vm582_vm4, %v6100_v40  ;;  %12663 = vmatprep.subr.bf16.mxu0 %v13896_v1  ;;  %v6102_v2 = vpack.c.bf16 %v6094_v20, %v6094_v20 }
0x1db5   :  { %12658 = vmatpush3.bf16.msra.mxu1 %v6273_v0  ;;  %12659 = vmatprep.mubr.msk.bf16.mxu1 %vm13897_vm0, %v13896_v1 }
0x1db6   :  { %12671 = vmatprep.subr.bf16.mxu1 %v13896_v1 }
0x1dba   :  { %12654 = vmatmul.mubr.msk.bf16.vlgmr.msra.gmra.mrb[188].mxu0 %vm582_vm4, %v6101_v52 }
0x1dbb   :  { %12664 = vmatpush3.bf16.msra.mxu0 %v13818_v57  ;;  %12667 = vmatprep.mubr.msk.bf16.mxu0 %vm13897_vm0, %v13896_v1 }
0x1dbc   :  { %12660 = vmatmul.mubr.msk.bf16.vlgmr.msra.gmra.mrb[188].mxu1 %vm582_vm4, %v6102_v2  ;;  %12665 = vmatprep.subr.bf16.mxu0 %v13896_v1 }
0x1dbd   :  { %12672 = vmatpush3.bf16.msra.mxu1 %v13819_v3  ;;  %12675 = vmatprep.mubr.msk.bf16.mxu1 %vm13897_vm0, %v13896_v1 }
0x1dbe   :  { %12673 = vmatprep.subr.bf16.mxu1 %v13896_v1 }
0x1dbf   :  { %12666 = vmatpush3.bf16.msra.mxu0 %v13820_v53 }
0x1dc0   :  { %12679 = vmatprep.subr.bf16.mxu0 %v13896_v1 }
0x1dc1   :  { %12674 = vmatpush3.bf16.msra.mxu1 %v13821_v54 }
0x1dc2   :  { %12687 = vmatprep.subr.bf16.mxu1 %v13896_v1 }
0x1e85   :  { %v6156_v55 = vpop.f32.mrb[184].mxu0 }
0x1e86   :  { %v6315_v56 = vadd.f32 %v6156_v55, %v15288_v17  ;;  %v12643_v58 = vpop.f32.mrb[185].mxu0 }
0x1e87   :  { %v6159_v45 = vpop.f32.mrb[186].mxu0  ;;  %v6207_v59 = vpop.f32.mrb[184].mxu1 }
0x1e88   :  { %v6319_v62 = vadd.f32 %v13822_v28, %v6315_v56  ;;  %v6316_v7 = vadd.f32 %v6207_v59, %v15290_v33  ;;  %v12644_v12 = vpop.f32.mrb[187].mxu0  ;;  %v12649_v25 = vpop.f32.mrb[185].mxu1 }
0x1e89   :  { %v6210_v60 = vpop.f32.mrb[186].mxu1 }
0x1e8a   :  { %13616 = vtanh.f32 %v6319_v62  ;;  %v6320_v32 = vadd.f32 %v6316_v7, %v14111_v31  ;;  %v12650_v51 = vpop.f32.mrb[187].mxu1 }
0x1e8c   :  { %13618 = vtanh.f32 %v6320_v32  ;;  %v11322_v38 = vmul.f32 -1.442695, %v6320_v32 }
0x1e8d   :  { %v6258_v37 = vpop.f32.mrb[188].mxu0 }
0x1e8e   :  { %v6317_v17 = vadd.f32 %v6258_v37, %v15292_v48  ;;  %v12655_v34 = vpop.f32.mrb[189].mxu0 }
0x1e8f   :  { %v6261_v5 = vpop.f32.mrb[190].mxu0  ;;  %v6309_v9 = vpop.f32.mrb[188].mxu1 }
0x1e90   :  { %v6321_v47 = vadd.f32 %v6317_v17, %v14114_v42  ;;  %v6318_v14 = vadd.f32 %v6309_v9, %v15294_v43  ;;  %v12656_v18 = vpop.f32.mrb[191].mxu0  ;;  %v12661_v33 = vpop.f32.mrb[189].mxu1  ;;  %v11321_v43 = vmul.f32 -1.442695, %v6319_v62 }
0x1e91   :  { %v6312_v16 = vpop.f32.mrb[190].mxu1 }
0x1e92   :  { %13620 = vtanh.f32 %v6321_v47  ;;  %v6322_v19 = vadd.f32 %v6318_v14, %v14116_v46  ;;  %v12662_v26 = vpop.f32.mrb[191].mxu1  ;;  %v11323_v23 = vmul.f32 -1.442695, %v6321_v47 }
0x1e94   :  { %v13617_v27 = vpop.eup %13616  ;;  %13622 = vtanh.f32 %v6322_v19  ;;  %v11324_v44 = vmul.f32 -1.442695, %v6322_v19 }
0x1e95   :  { %6359 = vrot.lane.b32.xlu0 %v13617_v27, %s13900_s23  ;;  %13624 = vpow2.f32 %v11321_v43 }
0x1e96   :  { %v13619_v30 = vpop.eup %13618  ;;  %13626 = vpow2.f32 %v11322_v38 }
0x1e97   :  { %6361 = vrot.lane.b32.xlu1 %v13619_v30, %s13900_s23  ;;  %13628 = vpow2.f32 %v11323_v23 }
0x1e98   :  { %13630 = vpow2.f32 %v11324_v44  ;;  %v13823_v44 = vld [vmem:[%s16401_s1 + $0x20] sm:$0xff]  }
0x1e9c   :  { %v13621_v48 = vpop.eup %13620 }
0x1e9d   :  { %6363 = vrot.lane.b32.xlu1 %v13621_v48, %s13900_s23 }
0x1e9e   :  { %v13623_v63 = vpop.eup %13622 }
0x1e9f   :  { %6365 = vrot.lane.b32.xlu0 %v13623_v63, %s13900_s23  ;;  %v13625_v49 = vpop.eup %13624 }
0x1ea0   :  { %v13627_v39 = vpop.eup %13626  ;;  %v6335_v36 = vadd.f32 1.0, %v13625_v49 }
0x1ea1   :  { %v6336_v40 = vadd.f32 1.0, %v13627_v39  ;;  %v13629_v0 = vpop.eup %13628  ;;  %v13824_v39 = vld [vmem:[%s16401_s1 + $0x30] sm:$0xff]  }
0x1ea2   :  { %13632 = vrcp.f32 %v6335_v36  ;;  %v13631_v8 = vpop.eup %13630  ;;  %v6337_v20 = vadd.f32 1.0, %v13629_v0  ;;  %v13825_v36 = vld [vmem:[%s16401_s1 + $0x28] sm:$0xff]   ;;  %v13826_v0 = vld [vmem:[%s16401_s1 + $0x38] sm:$0xff]  }
0x1ea3   :  { %13634 = vrcp.f32 %v6336_v40  ;;  %v6338_v52 = vadd.f32 1.0, %v13631_v8 }
0x1ea4   :  { %13636 = vrcp.f32 %v6337_v20 }
0x1ea5   :  { %13638 = vrcp.f32 %v6338_v52 }
0x1eac   :  { %v13633_v2 = vpop.eup %13632 }
0x1ead   :  { %v13635_v53 = vpop.eup %13634  ;;  %v6351_v7 = vmul.f32 %v13633_v2, %v14980_v41 }
0x1eae   :  { %v13637_v56 = vpop.eup %13636  ;;  %v6352_v60 = vmul.f32 %v13635_v53, %v14984_v10 }
0x1eaf   :  { %v13639_v59 = vpop.eup %13638  ;;  %v6353_v37 = vmul.f32 %v13637_v56, %v14988_v61 }
0x1eb0   :  { %v6354_v5 = vmul.f32 %v13639_v59, %v14992_v50 }
0x1f07   :  { %v6360_v57 = vpop.permute.xlu0 %6359 }
0x1f08   :  { %v6371_v3 = vmul.f32 %v13633_v2, %v6360_v57 }
0x1f09   :  { %v6362_v54 = vpop.permute.xlu1 %6361 }
0x1f0a   :  { %6379 = vrot.lane.b32.xlu1 %v6371_v3, %s13901_s24  ;;  %v6372_v55 = vmul.f32 %v13635_v53, %v6362_v54 }
0x1f0c   :  { %6381 = vrot.lane.b32.xlu0 %v6372_v55, %s13901_s24 }
0x1f0f   :  { %v6364_v58 = vpop.permute.xlu1 %6363 }
0x1f10   :  { %v6373_v45 = vmul.f32 %v13637_v56, %v6364_v58 }
0x1f11   :  { %v6366_v28 = vpop.permute.xlu0 %6365 }
0x1f12   :  { %6383 = vrot.lane.b32.xlu1 %v6373_v45, %s13901_s24  ;;  %v6374_v62 = vmul.f32 %v13639_v59, %v6366_v28 }
0x1f14   :  { %6385 = vrot.lane.b32.xlu0 %v6374_v62, %s13901_s24 }
0x1f7c   :  { %v6380_v12 = vpop.permute.xlu1 %6379 }
0x1f7d   :  { %v15382_v25 = vadd.f32 %v6380_v12, %v6351_v7 }
0x1f7e   :  { %v6382_v32 = vpop.permute.xlu0 %6381 }
0x1f7f   :  { %13640 = vtanh.f32 %v15382_v25  ;;  %v15386_v51 = vadd.f32 %v6382_v32, %v6352_v60 }
0x1f81   :  { %13642 = vtanh.f32 %v15386_v51 }
0x1f84   :  { %v6384_v17 = vpop.permute.xlu1 %6383 }
0x1f85   :  { %v15390_v34 = vadd.f32 %v6384_v17, %v6353_v37 }
0x1f86   :  { %v6386_v41 = vpop.permute.xlu0 %6385 }
0x1f87   :  { %13644 = vtanh.f32 %v15390_v34  ;;  %v15394_v9 = vadd.f32 %v6386_v41, %v6354_v5 }
0x1f89   :  { %v13641_v10 = vpop.eup %13640  ;;  %13646 = vtanh.f32 %v15394_v9 }
0x1f8a   :  { %6403 = vrot.lane.b32.xlu1 %v13641_v10, %s13900_s23 }
0x1f8b   :  { %v13643_v47 = vpop.eup %13642 }
0x1f8c   :  { %6405 = vrot.lane.b32.xlu0 %v13643_v47, %s13900_s23 }
0x1f91   :  { %v13645_v14 = vpop.eup %13644 }
0x1f92   :  { %6407 = vrot.lane.b32.xlu1 %v13645_v14, %s13900_s23 }
0x1f93   :  { %v13647_v61 = vpop.eup %13646 }
0x1f94   :  { %6409 = vrot.lane.b32.xlu0 %v13647_v61, %s13900_s23 }
0x1ffc   :  { %v6404_v50 = vpop.permute.xlu1 %6403 }
0x1ffd   :  { %v6415_v18 = vmul.f32 %v13633_v2, %v6404_v50 }
0x1ffe   :  { %v6406_v16 = vpop.permute.xlu0 %6405 }
0x1fff   :  { %v6419_v33 = vpack.c.bf16 %v6415_v18, %v6415_v18  ;;  %v6416_v19 = vmul.f32 %v13635_v53, %v6406_v16 }
0x2001   :  { %6424 = vrot.lane.b32.xlu1 %v6419_v33, %s13901_s24  ;;  %v6420_v26 = vpack.c.bf16 %v6416_v19, %v6416_v19 }
0x2003   :  { %6470 = vrot.lane.b32.xlu0 %v6420_v26, %s13901_s24 }
0x2004   :  { %v6408_v27 = vpop.permute.xlu1 %6407 }
0x2005   :  { %v6417_v30 = vmul.f32 %v13637_v56, %v6408_v27 }
0x2006   :  { %v6410_v63 = vpop.permute.xlu0 %6409 }
0x2007   :  { %v6421_v48 = vpack.c.bf16 %v6417_v30, %v6417_v30  ;;  %v6418_v43 = vmul.f32 %v13639_v59, %v6410_v63 }
0x2009   :  { %6516 = vrot.lane.b32.xlu1 %v6421_v48, %s13901_s24  ;;  %v6422_v38 = vpack.c.bf16 %v6418_v43, %v6418_v43 }
0x200b   :  { %6562 = vrot.lane.b32.xlu0 %v6422_v38, %s13901_s24 }
0x2073   :  { %v15405_v23 = vpop.permute.xlu1 %6424 }
0x2074   :  { %12668 = vmatmul.mubr.msk.bf16.vlgmr.msra.gmra.mrb[192].mxu0 %vm116_vm1, %v15405_v23 }
0x2075   :  { %12680 = vmatpush3.bf16.msra.mxu0 %v13823_v44  ;;  %12683 = vmatprep.mubr.msk.bf16.mxu0 %vm13897_vm0, %v13896_v1  ;;  %v15414_v49 = vpop.permute.xlu0 %6470 }
0x2076   :  { %12681 = vmatprep.subr.bf16.mxu0 %v13896_v1  ;;  %12676 = vmatmul.mubr.msk.bf16.vlgmr.msra.gmra.mrb[192].mxu1 %vm116_vm1, %v15414_v49 }
0x2077   :  { %12688 = vmatpush3.bf16.msra.mxu1 %v13824_v39  ;;  %12691 = vmatprep.mubr.msk.bf16.mxu1 %vm13897_vm0, %v13896_v1 }
0x2078   :  { %12689 = vmatprep.subr.bf16.mxu1 %v13896_v1 }
0x2079   :  { %12682 = vmatpush3.bf16.msra.mxu0 %v13825_v36 }
0x207a   :  { %12695 = vmatprep.subr.bf16.mxu0 %v13896_v1 }
0x207b   :  { %v15429_v40 = vpop.permute.xlu1 %6516  ;;  %12690 = vmatpush3.bf16.msra.mxu1 %v13826_v0 }
0x207c   :  { %12684 = vmatmul.mubr.msk.bf16.vlgmr.msra.gmra.mrb[196].mxu0 %vm116_vm1, %v15429_v40  ;;  %12701 = vmatprep.subr.bf16.mxu1 %v13896_v1 }
0x207d   :  { %12696 = vmatpush3.bf16.msra.mxu0 %v14222_v4  ;;  %v15438_v8 = vpop.permute.xlu0 %6562  ;;  %12697 = vmatprep.mubr.msk.bf16.mxu0 %vm13897_vm0, %v13896_v1 }
0x207e   :  { %12707 = vmatprep.subr.bf16.mxu0 %v13896_v1  ;;  %12692 = vmatmul.mubr.msk.bf16.vlgmr.msra.gmra.mrb[196].mxu1 %vm116_vm1, %v15438_v8 }
0x207f   :  { %12702 = vmatpush3.bf16.msra.mxu1 %v14228_v6  ;;  %12703 = vmatprep.mubr.msk.bf16.mxu1 %vm13897_vm0, %v13896_v1 }
0x2080   :  { %12713 = vmatprep.subr.bf16.mxu1 %v13896_v1 }
0x2147   :  { %v6463_v20 = vpop.f32.mrb[192].mxu0 }
0x2148   :  { %v12669_v52 = vpop.f32.mrb[193].mxu0 }
0x2149   :  { %v6466_v2 = vpop.f32.mrb[194].mxu0  ;;  %v6509_v57 = vpop.f32.mrb[192].mxu1 }
0x214a   :  { %v12670_v3 = vpop.f32.mrb[195].mxu0  ;;  %v6611_v53 = vrot.slane %v6509_v57, 7  ;;  %v12677_v54 = vpop.f32.mrb[193].mxu1 }
0x214b   :  { %v6512_v55 = vpop.f32.mrb[194].mxu1 }
0x214c   :  { %v12678_v56 = vpop.f32.mrb[195].mxu1  ;;  %v6612_v58 = vsel %vm1136_vm5, %v6611_v53, %v6463_v20 }
0x214f   :  { %v6555_v45 = vpop.f32.mrb[196].mxu0 }
0x2150   :  { %v6613_v59 = vrot.slane %v6555_v45, 6  ;;  %v12685_v28 = vpop.f32.mrb[197].mxu0 }
0x2151   :  { %v6558_v62 = vpop.f32.mrb[198].mxu0  ;;  %v6601_v7 = vpop.f32.mrb[196].mxu1 }
0x2152   :  { %v12686_v12 = vpop.f32.mrb[199].mxu0  ;;  %v6614_v60 = vsel %vm1139_vm6, %v6613_v59, %v6612_v58  ;;  %v6615_v32 = vrot.slane %v6601_v7, 5  ;;  %v12693_v37 = vpop.f32.mrb[197].mxu1 }
0x2153   :  { %v6604_v17 = vpop.f32.mrb[198].mxu1 }
0x2154   :  { %v12694_v5 = vpop.f32.mrb[199].mxu1  ;;  %v6616_v41 = vsel %vm1142_vm7, %v6615_v32, %v6614_v60 }
0x2155   :  { %v6618_v10 = vsel %vm1145_vm8, %v6616_v41, -inf  ;;  %v13348_v41 = vld [vmem:[%s16407_s7] sm:$0xff]  }
0x2156   :  { %6619 = vmax.xlane.f32.xlu1 %v6618_v10 }
0x21e3   :  { %v6620_v47 = vpop.xlane.xlu1 %6619 }
0x21e4   :  { %v6622_v14 = vrot.slane %v6620_v47, 1  ;;  %v6623_v61 = vrot.slane %v6620_v47, 2  ;;  %v6624_v50 = vrot.slane %v6620_v47, 3  ;;  %v6629_v18 = vsub.f32 %v6463_v20, %v6620_v47  ;;  %v13349_v47 = vld [vmem:[%s16407_s7 + $0x10] sm:$0xff]  }
0x21e6   :  { %v6630_v33 = vsub.f32 %v6509_v57, %v6622_v14  ;;  %v6631_v16 = vsub.f32 %v6555_v45, %v6623_v61  ;;  %v6632_v19 = vsub.f32 %v6601_v7, %v6624_v50  ;;  %v6633_v26 = vmul.f32 1.442695, %v6629_v18  ;;  %v13350_v61 = vld [vmem:[%s16407_s7 + $0x8] sm:$0xff]   ;;  %v13351_v50 = vld [vmem:[%s16407_s7 + $0x18] sm:$0xff]  }
0x21e8   :  { %v6635_v27 = vmul.f32 1.442695, %v6630_v33  ;;  %v6637_v30 = vmul.f32 1.442695, %v6631_v16  ;;  %v6639_v48 = vmul.f32 1.442695, %v6632_v19  ;;  %13648 = vpow2.f32 %v6633_v26 }
0x21e9   :  { %v13352_v33 = vld [vmem:[%s16407_s7 + $0x20] sm:$0xff]  }
0x21ea   :  { %13650 = vpow2.f32 %v6635_v27 }
0x21eb   :  { %13652 = vpow2.f32 %v6637_v30  ;;  %v13353_v30 = vld [vmem:[%s16407_s7 + $0x30] sm:$0xff]  }
0x21ec   :  { %13654 = vpow2.f32 %v6639_v48 }
0x21f2   :  { %v13649_v63 = vpop.eup %13648 }
0x21f4   :  { %v13651_v43 = vpop.eup %13650 }
0x21f5   :  { %v13653_v38 = vpop.eup %13652  ;;  %v6645_v44 = vrot.slane %v13651_v43, 7 }
0x21f6   :  { %v13655_v39 = vpop.eup %13654  ;;  %v6647_v36 = vrot.slane %v13653_v38, 6 }
0x21f7   :  { %v6646_v0 = vsel %vm1136_vm5, %v6645_v44, %v13649_v63  ;;  %v6649_v20 = vrot.slane %v13655_v39, 5  ;;  %v13354_v44 = vld [vmem:[%s16407_s7 + $0x28] sm:$0xff]  }
0x21f8   :  { %v6648_v52 = vsel %vm1139_vm6, %v6647_v36, %v6646_v0  ;;  %v13355_v36 = vld [vmem:[%s16407_s7 + $0x38] sm:$0xff]  }
0x21f9   :  { %v6650_v2 = vsel %vm1142_vm7, %v6649_v20, %v6648_v52  ;;  %v13356_v20 = vld [vmem:[%s16406_s6] sm:$0xff]  }
0x21fa   :  { %v6652_v57 = vsel %vm1145_vm8, %v6650_v2, 0.0 }
0x21fb   :  { %6653 = vadd.xlane.f32.xlu0 %v6652_v57 }
0x2288   :  { %v6654_v3 = vpop.xlane.xlu0 %6653 }
0x2289   :  { %13656 = vrcp.f32 %v6654_v3 }
0x2293   :  { %v13657_v53 = vpop.eup %13656 }
0x2294   :  { %v6664_v54 = vmul.f32 %v13657_v53, %v13649_v63  ;;  %v6657_v55 = vrot.slane %v13657_v53, 1  ;;  %v6658_v56 = vrot.slane %v13657_v53, 2  ;;  %v6659_v58 = vrot.slane %v13657_v53, 3  ;;  %v13357_v53 = vld [vmem:[%s16406_s6 + $0x10] sm:$0xff]  }
0x2296   :  { %v6668_v45 = vpack.c.bf16 %v6664_v54, %v6664_v54  ;;  %v6665_v59 = vmul.f32 %v13651_v43, %v6657_v55  ;;  %v6666_v28 = vmul.f32 %v13653_v38, %v6658_v56  ;;  %v6667_v62 = vmul.f32 %v13655_v39, %v6659_v58 }
0x2298   :  { %12698 = vmatmul.mubr.msk.bf16.vlgmr.msra.gmra.mrb[200].mxu0 %vm1200_vm10, %v6668_v45  ;;  %v6669_v7 = vpack.c.bf16 %v6665_v59, %v6665_v59  ;;  %v7402_v12 = vrot.slane %v6665_v59, 7  ;;  %v7404_v60 = vrot.slane %v6666_v28, 6  ;;  %v7406_v37 = vrot.slane %v6667_v62, 5  ;;  %v13358_v45 = vld [vmem:[%s16406_s6 + $0x8] sm:$0xff]  }
0x2299   :  { %12708 = vmatpush3.bf16.msra.mxu0 %v14238_v15  ;;  %12709 = vmatprep.mubr.msk.bf16.mxu0 %vm13897_vm0, %v13896_v1  ;;  %v6670_v10 = vpack.c.bf16 %v6666_v28, %v6666_v28  ;;  %v6671_v14 = vpack.c.bf16 %v6667_v62, %v6667_v62  ;;  %v13359_v28 = vld [vmem:[%s16406_s6 + $0x18] sm:$0xff]   ;;  %v13360_v62 = vld [vmem:[%s16406_s6 + $0x20] sm:$0xff]  }
0x229a   :  { %12704 = vmatmul.mubr.msk.bf16.vlgmr.msra.gmra.mrb[200].mxu1 %vm1200_vm10, %v6669_v7  ;;  %v7403_v32 = vsel %vm1136_vm5, %v7402_v12, %v6664_v54  ;;  %12719 = vmatprep.subr.bf16.mxu0 %v13896_v1  ;;  %v13361_v7 = vld [vmem:[%s16406_s6 + $0x30] sm:$0xff]   ;;  %v13362_v12 = vld [vmem:[%s16406_s6 + $0x28] sm:$0xff]  }
0x229b   :  { %12714 = vmatpush3.bf16.msra.mxu1 %v14245_v24  ;;  %v7405_v17 = vsel %vm1139_vm6, %v7404_v60, %v7403_v32  ;;  %12715 = vmatprep.mubr.msk.bf16.mxu1 %vm13897_vm0, %v13896_v1  ;;  %v13363_v60 = vld [vmem:[%s16406_s6 + $0x38] sm:$0xff]   ;;  %v13364_v32 = vld [vmem:[%s16404_s4] sm:$0xff]  }
0x229c   :  { %v7407_v5 = vsel %vm1142_vm7, %v7406_v37, %v7405_v17  ;;  %12727 = vmatprep.subr.bf16.mxu1 %v13896_v1  ;;  %v13365_v37 = vld [vmem:[%s16404_s4 + $0x10] sm:$0xff]   ;;  %v13366_v17 = vld [vmem:[%s16404_s4 + $0x8] sm:$0xff]  }
0x229d   :  { %7410 = vst.msk [vmem:[#allocation4 + $0xc] sm:$0xf] %vm1145_vm8, %v7407_v5  ;;  %v13367_v5 = vld [vmem:[%s16404_s4 + $0x18] sm:$0xff]  }
0x22a0   :  { %12710 = vmatmul.mubr.msk.bf16.vlgmr.msra.gmra.mrb[204].mxu0 %vm1200_vm10, %v6670_v10  ;;  %v13369_v10 = vld [vmem:[%s16404_s4 + $0x30] sm:$0xff]  }
0x22a1   :  { %12720 = vmatpush3.bf16.msra.mxu0 %v13348_v41  ;;  %12723 = vmatprep.mubr.msk.bf16.mxu0 %vm13897_vm0, %v13896_v1  ;;  %v13368_v41 = vld [vmem:[%s16404_s4 + $0x20] sm:$0xff]  }
0x22a2   :  { %12716 = vmatmul.mubr.msk.bf16.vlgmr.msra.gmra.mrb[204].mxu1 %vm1200_vm10, %v6671_v14  ;;  %12721 = vmatprep.subr.bf16.mxu0 %v13896_v1  ;;  %v13372_v14 = vld [vmem:[%s16403_s3] sm:$0xff]  }
0x22a3   :  { %12728 = vmatpush3.bf16.msra.mxu1 %v13349_v47  ;;  %12731 = vmatprep.mubr.msk.bf16.mxu1 %vm13897_vm0, %v13896_v1  ;;  %v13370_v47 = vld [vmem:[%s16404_s4 + $0x28] sm:$0xff]  }
0x22a4   :  { %12729 = vmatprep.subr.bf16.mxu1 %v13896_v1 }
0x22a5   :  { %12722 = vmatpush3.bf16.msra.mxu0 %v13350_v61  ;;  %v13374_v61 = vld [vmem:[%s16403_s3 + $0x8] sm:$0xff]  }
0x22a6   :  { %12735 = vmatprep.subr.bf16.mxu0 %v13896_v1 }
0x22a7   :  { %12730 = vmatpush3.bf16.msra.mxu1 %v13351_v50  ;;  %v13376_v50 = vld [vmem:[%s16403_s3 + $0x20] sm:$0xff]  }
0x22a8   :  { %12743 = vmatprep.subr.bf16.mxu1 %v13896_v1 }
0x236b   :  { %v6709_v18 = vpop.f32.mrb[200].mxu0 }
0x236c   :  { %v15496_v16 = vpack.c.bf16 %v6709_v18, %v6709_v18  ;;  %v12699_v19 = vpop.f32.mrb[201].mxu0  ;;  %v13378_v18 = vld [vmem:[%s16403_s3 + $0x28] sm:$0xff]  }
0x236d   :  { %v6712_v26 = vpop.f32.mrb[202].mxu0  ;;  %v6752_v27 = vpop.f32.mrb[200].mxu1 }
0x236e   :  { %v15501_v48 = vpack.c.bf16 %v6752_v27, %v6752_v27  ;;  %v12700_v63 = vpop.f32.mrb[203].mxu0  ;;  %v12705_v43 = vpop.f32.mrb[201].mxu1  ;;  %12724 = vmatmul.mubr.msk.bf16.vlgmr.msra.gmra.mrb[208].mxu0 %vm116_vm1, %v15496_v16 }
0x236f   :  { %v6755_v38 = vpop.f32.mrb[202].mxu1  ;;  %12736 = vmatpush3.bf16.msra.mxu0 %v13352_v33  ;;  %12739 = vmatprep.mubr.msk.bf16.mxu0 %vm13897_vm0, %v13896_v1  ;;  %v13379_v33 = vld [vmem:[%s16403_s3 + $0x38] sm:$0xff]  }
0x2370   :  { %v12706_v39 = vpop.f32.mrb[203].mxu1  ;;  %12732 = vmatmul.mubr.msk.bf16.vlgmr.msra.gmra.mrb[208].mxu1 %vm116_vm1, %v15501_v48  ;;  %12737 = vmatprep.subr.bf16.mxu0 %v13896_v1 }
0x2371   :  { %12744 = vmatpush3.bf16.msra.mxu1 %v13353_v30  ;;  %12747 = vmatprep.mubr.msk.bf16.mxu1 %vm13897_vm0, %v13896_v1 }
0x2372   :  { %12745 = vmatprep.subr.bf16.mxu1 %v13896_v1 }
0x2373   :  { %v6795_v0 = vpop.f32.mrb[204].mxu0  ;;  %12738 = vmatpush3.bf16.msra.mxu0 %v13354_v44 }
0x2374   :  { %v15522_v52 = vpack.c.bf16 %v6795_v0, %v6795_v0  ;;  %v12711_v2 = vpop.f32.mrb[205].mxu0  ;;  %12751 = vmatprep.subr.bf16.mxu0 %v13896_v1 }
0x2375   :  { %v6798_v57 = vpop.f32.mrb[206].mxu0  ;;  %v6838_v3 = vpop.f32.mrb[204].mxu1  ;;  %12746 = vmatpush3.bf16.msra.mxu1 %v13355_v36 }
0x2376   :  { %v15528_v54 = vpack.c.bf16 %v6838_v3, %v6838_v3  ;;  %v12712_v55 = vpop.f32.mrb[207].mxu0  ;;  %v12717_v56 = vpop.f32.mrb[205].mxu1  ;;  %12740 = vmatmul.mubr.msk.bf16.vlgmr.msra.gmra.mrb[212].mxu0 %vm116_vm1, %v15522_v52  ;;  %12759 = vmatprep.subr.bf16.mxu1 %v13896_v1 }
0x2377   :  { %v6841_v58 = vpop.f32.mrb[206].mxu1  ;;  %12752 = vmatpush3.bf16.msra.mxu0 %v13356_v20  ;;  %12755 = vmatprep.mubr.msk.bf16.mxu0 %vm13897_vm0, %v13896_v1 }
0x2378   :  { %v12718_v59 = vpop.f32.mrb[207].mxu1  ;;  %12748 = vmatmul.mubr.msk.bf16.vlgmr.msra.gmra.mrb[212].mxu1 %vm116_vm1, %v15528_v54  ;;  %12753 = vmatprep.subr.bf16.mxu0 %v13896_v1 }
0x2379   :  { %12760 = vmatpush3.bf16.msra.mxu1 %v13357_v53  ;;  %12763 = vmatprep.mubr.msk.bf16.mxu1 %vm13897_vm0, %v13896_v1 }
0x237a   :  { %12761 = vmatprep.subr.bf16.mxu1 %v13896_v1 }
0x237b   :  { %12754 = vmatpush3.bf16.msra.mxu0 %v13358_v45 }
0x237c   :  { %12767 = vmatprep.subr.bf16.mxu0 %v13896_v1 }
0x237d   :  { %12762 = vmatpush3.bf16.msra.mxu1 %v13359_v28 }
0x237e   :  { %12756 = vmatmul.mubr.msk.bf16.vlgmr.msra.gmra.mrb[216].mxu0 %vm116_vm1, %v15405_v23  ;;  %12775 = vmatprep.subr.bf16.mxu1 %v13896_v1 }
0x237f   :  { %12768 = vmatpush3.bf16.msra.mxu0 %v13360_v62  ;;  %12771 = vmatprep.mubr.msk.bf16.mxu0 %vm13897_vm0, %v13896_v1 }
0x2380   :  { %12764 = vmatmul.mubr.msk.bf16.vlgmr.msra.gmra.mrb[216].mxu1 %vm116_vm1, %v15414_v49  ;;  %12769 = vmatprep.subr.bf16.mxu0 %v13896_v1 }
0x2381   :  { %12776 = vmatpush3.bf16.msra.mxu1 %v13361_v7  ;;  %12779 = vmatprep.mubr.msk.bf16.mxu1 %vm13897_vm0, %v13896_v1 }
0x2382   :  { %12777 = vmatprep.subr.bf16.mxu1 %v13896_v1 }
0x2383   :  { %12770 = vmatpush3.bf16.msra.mxu0 %v13362_v12 }
0x2384   :  { %12783 = vmatprep.subr.bf16.mxu0 %v13896_v1 }
0x2385   :  { %12778 = vmatpush3.bf16.msra.mxu1 %v13363_v60 }
0x2386   :  { %12772 = vmatmul.mubr.msk.bf16.vlgmr.msra.gmra.mrb[220].mxu0 %vm116_vm1, %v15429_v40  ;;  %12791 = vmatprep.subr.bf16.mxu1 %v13896_v1 }
0x2387   :  { %12784 = vmatpush3.bf16.msra.mxu0 %v13364_v32  ;;  %12787 = vmatprep.mubr.msk.bf16.mxu0 %vm13897_vm0, %v13896_v1 }
0x2388   :  { %12780 = vmatmul.mubr.msk.bf16.vlgmr.msra.gmra.mrb[220].mxu1 %vm116_vm1, %v15438_v8  ;;  %12785 = vmatprep.subr.bf16.mxu0 %v13896_v1 }
0x2389   :  { %12792 = vmatpush3.bf16.msra.mxu1 %v13365_v37  ;;  %12795 = vmatprep.mubr.msk.bf16.mxu1 %vm13897_vm0, %v13896_v1 }
0x238a   :  { %12793 = vmatprep.subr.bf16.mxu1 %v13896_v1 }
0x238b   :  { %12786 = vmatpush3.bf16.msra.mxu0 %v13366_v17 }
0x238c   :  { %12799 = vmatprep.subr.bf16.mxu0 %v13896_v1 }
0x238d   :  { %12794 = vmatpush3.bf16.msra.mxu1 %v13367_v5 }
0x238e   :  { %12788 = vmatmul.mubr.msk.bf16.vlgmr.msra.gmra.mrb[224].mxu0 %vm116_vm1, %v15405_v23  ;;  %12807 = vmatprep.subr.bf16.mxu1 %v13896_v1  ;;  %v13371_v23 = vld [vmem:[%s16404_s4 + $0x38] sm:$0xff]  }
0x238f   :  { %12800 = vmatpush3.bf16.msra.mxu0 %v13368_v41  ;;  %12803 = vmatprep.mubr.msk.bf16.mxu0 %vm13897_vm0, %v13896_v1 }
0x2390   :  { %12796 = vmatmul.mubr.msk.bf16.vlgmr.msra.gmra.mrb[224].mxu1 %vm116_vm1, %v15414_v49  ;;  %12801 = vmatprep.subr.bf16.mxu0 %v13896_v1  ;;  %v13373_v49 = vld [vmem:[%s16403_s3 + $0x10] sm:$0xff]  }
0x2391   :  { %12808 = vmatpush3.bf16.msra.mxu1 %v13369_v10  ;;  %12811 = vmatprep.mubr.msk.bf16.mxu1 %vm13897_vm0, %v13896_v1 }
0x2392   :  { %12809 = vmatprep.subr.bf16.mxu1 %v13896_v1 }
0x2393   :  { %12802 = vmatpush3.bf16.msra.mxu0 %v13370_v47 }
0x2394   :  { %12815 = vmatprep.subr.bf16.mxu0 %v13896_v1 }
0x2395   :  { %12810 = vmatpush3.bf16.msra.mxu1 %v13371_v23  ;;  %v13827_v23 = vld [vmem:[%s16408_s8] sm:$0xf] }
0x2396   :  { %12804 = vmatmul.mubr.msk.bf16.vlgmr.msra.gmra.mrb[228].mxu0 %vm116_vm1, %v15429_v40  ;;  %12823 = vmatprep.subr.bf16.mxu1 %v13896_v1  ;;  %v13375_v40 = vld [vmem:[%s16403_s3 + $0x18] sm:$0xff]  }
0x2397   :  { %12816 = vmatpush3.bf16.msra.mxu0 %v13372_v14  ;;  %12819 = vmatprep.mubr.msk.bf16.mxu0 %vm13897_vm0, %v13896_v1 }
0x2398   :  { %12812 = vmatmul.mubr.msk.bf16.vlgmr.msra.gmra.mrb[228].mxu1 %vm116_vm1, %v15438_v8  ;;  %12817 = vmatprep.subr.bf16.mxu0 %v13896_v1  ;;  %v13377_v8 = vld [vmem:[%s16403_s3 + $0x30] sm:$0xff]  }
0x2399   :  { %12824 = vmatpush3.bf16.msra.mxu1 %v13373_v49  ;;  %12827 = vmatprep.mubr.msk.bf16.mxu1 %vm13897_vm0, %v13896_v1 }
0x239a   :  { %12825 = vmatprep.subr.bf16.mxu1 %v13896_v1 }
0x239b   :  { %12818 = vmatpush3.bf16.msra.mxu0 %v13374_v61 }
0x239c   :  { %12831 = vmatprep.subr.bf16.mxu0 %v13896_v1 }
0x239d   :  { %12826 = vmatpush3.bf16.msra.mxu1 %v13375_v40 }
0x239e   :  { %12820 = vmatmul.mubr.msk.bf16.vlgmr.msra.gmra.mrb[232].mxu0 %vm116_vm1, %v15496_v16  ;;  %12839 = vmatprep.subr.bf16.mxu1 %v13896_v1 }
0x239f   :  { %12832 = vmatpush3.bf16.msra.mxu0 %v13376_v50  ;;  %12835 = vmatprep.mubr.msk.bf16.mxu0 %vm13897_vm0, %v13896_v1 }
0x23a0   :  { %12828 = vmatmul.mubr.msk.bf16.vlgmr.msra.gmra.mrb[232].mxu1 %vm116_vm1, %v15501_v48  ;;  %12833 = vmatprep.subr.bf16.mxu0 %v13896_v1 }
0x23a1   :  { %12840 = vmatpush3.bf16.msra.mxu1 %v13377_v8  ;;  %12843 = vmatprep.mubr.msk.bf16.mxu1 %vm13897_vm0, %v13896_v1 }
0x23a2   :  { %12841 = vmatprep.subr.bf16.mxu1 %v13896_v1 }
0x23a3   :  { %12834 = vmatpush3.bf16.msra.mxu0 %v13378_v18 }
0x23a4   :  { %12847 = vmatprep.subr.bf16.mxu0 %v13896_v1 }
0x23a5   :  { %12842 = vmatpush3.bf16.msra.mxu1 %v13379_v33 }
0x23a6   :  { %12836 = vmatmul.mubr.msk.bf16.vlgmr.msra.gmra.mrb[236].mxu0 %vm116_vm1, %v15522_v52  ;;  %12853 = vmatprep.subr.bf16.mxu1 %v13896_v1 }
0x23a7   :  { %12849 = vmatprep.mubr.msk.bf16.mxu0 %vm13897_vm0, %v13896_v1 }
0x23a8   :  { %12844 = vmatmul.mubr.msk.bf16.vlgmr.msra.gmra.mrb[236].mxu1 %vm116_vm1, %v15528_v54 }
0x23a9   :  { %12855 = vmatprep.mubr.msk.bf16.mxu1 %vm13897_vm0, %v13896_v1 }
0x2441   :  { %v6929_v16 = vpop.f32.mrb[208].mxu0 }
0x2442   :  { %v12725_v19 = vpop.f32.mrb[209].mxu0 }
0x2443   :  { %v6932_v26 = vpop.f32.mrb[210].mxu0  ;;  %v6984_v27 = vpop.f32.mrb[208].mxu1 }
0x2444   :  { %v12726_v30 = vpop.f32.mrb[211].mxu0  ;;  %v12733_v48 = vpop.f32.mrb[209].mxu1 }
0x2445   :  { %v6987_v63 = vpop.f32.mrb[210].mxu1 }
0x2446   :  { %v12734_v43 = vpop.f32.mrb[211].mxu1 }
0x2449   :  { %v7039_v38 = vpop.f32.mrb[212].mxu0 }
0x244a   :  { %v12741_v44 = vpop.f32.mrb[213].mxu0 }
0x244b   :  { %v7042_v39 = vpop.f32.mrb[214].mxu0  ;;  %v7094_v36 = vpop.f32.mrb[212].mxu1 }
0x244c   :  { %v12742_v0 = vpop.f32.mrb[215].mxu0  ;;  %v12749_v20 = vpop.f32.mrb[213].mxu1 }
0x244d   :  { %v7097_v52 = vpop.f32.mrb[214].mxu1 }
0x244e   :  { %v12750_v2 = vpop.f32.mrb[215].mxu1 }
0x2451   :  { %v7146_v57 = vpop.f32.mrb[216].mxu0 }
0x2452   :  { %v7147_v3 = vadd.f32 %v7146_v57, %v6929_v16  ;;  %v12757_v53 = vpop.f32.mrb[217].mxu0 }
0x2453   :  { %v7149_v54 = vpop.f32.mrb[218].mxu0  ;;  %v7198_v55 = vpop.f32.mrb[216].mxu1 }
0x2454   :  { %v7199_v56 = vadd.f32 %v7198_v55, %v6984_v27  ;;  %v12758_v58 = vpop.f32.mrb[219].mxu0  ;;  %v12765_v45 = vpop.f32.mrb[217].mxu1  ;;  %v7308_v14 = vadd.f32 %v13827_v23, %v7147_v3 }
0x2455   :  { %v7201_v59 = vpop.f32.mrb[218].mxu1 }
0x2456   :  { %v12766_v28 = vpop.f32.mrb[219].mxu1  ;;  %v15678_v62 = vadd.f32 %v7199_v56, %v14469_v13 }
0x2458   :  { %v7316_v32 = vrot.slane %v15678_v62, 7 }
0x2459   :  { %v7250_v7 = vpop.f32.mrb[220].mxu0 }
0x245a   :  { %v7251_v12 = vadd.f32 %v7250_v7, %v7039_v38  ;;  %v12773_v60 = vpop.f32.mrb[221].mxu0  ;;  %v7317_v8 = vsel %vm1136_vm5, %v7316_v32, %v7308_v14 }
0x245b   :  { %v7253_v37 = vpop.f32.mrb[222].mxu0  ;;  %v7302_v17 = vpop.f32.mrb[220].mxu1 }
0x245c   :  { %v7310_v5 = vadd.f32 %v7251_v12, %v14474_v21  ;;  %v7303_v41 = vadd.f32 %v7302_v17, %v7094_v36  ;;  %v12774_v10 = vpop.f32.mrb[223].mxu0  ;;  %v12781_v47 = vpop.f32.mrb[221].mxu1 }
0x245d   :  { %v7305_v49 = vpop.f32.mrb[222].mxu1 }
0x245e   :  { %v7318_v61 = vrot.slane %v7310_v5, 6  ;;  %v7311_v40 = vadd.f32 %v7303_v41, %v14476_v29  ;;  %v12782_v50 = vpop.f32.mrb[223].mxu1 }
0x2460   :  { %v7320_v18 = vrot.slane %v7311_v40, 5  ;;  %v7319_v33 = vsel %vm1139_vm6, %v7318_v61, %v7317_v8 }
0x2461   :  { %v7512_v16 = vpop.f32.mrb[224].mxu0 }
0x2462   :  { %v12789_v19 = vpop.f32.mrb[225].mxu0  ;;  %v7321_v26 = vsel %vm1142_vm7, %v7320_v18, %v7319_v33 }
0x2463   :  { %v7515_v27 = vpop.f32.mrb[226].mxu0  ;;  %v7564_v30 = vpop.f32.mrb[224].mxu1  ;;  %v7323_v48 = vsel %vm1873_vm11, %v7321_v26, -inf }
0x2464   :  { %v12797_v63 = vpop.f32.mrb[225].mxu1  ;;  %7324 = vmax.xlane.f32.xlu0 %v7323_v48  ;;  %v12790_v43 = vpop.f32.mrb[227].mxu0 }
0x2465   :  { %v7567_v38 = vpop.f32.mrb[226].mxu1 }
0x2466   :  { %v12798_v44 = vpop.f32.mrb[227].mxu1 }
0x2469   :  { %v7616_v39 = vpop.f32.mrb[228].mxu0 }
0x246a   :  { %v12805_v36 = vpop.f32.mrb[229].mxu0 }
0x246b   :  { %v7619_v0 = vpop.f32.mrb[230].mxu0  ;;  %v7668_v20 = vpop.f32.mrb[228].mxu1 }
0x246c   :  { %v12806_v52 = vpop.f32.mrb[231].mxu0  ;;  %v12813_v2 = vpop.f32.mrb[229].mxu1 }
0x246d   :  { %v7671_v57 = vpop.f32.mrb[230].mxu1 }
0x246e   :  { %v12814_v3 = vpop.f32.mrb[231].mxu1 }
0x2471   :  { %v7720_v53 = vpop.f32.mrb[232].mxu0 }
0x2472   :  { %v15690_v54 = vadd.f32 %v7720_v53, %v7512_v16  ;;  %v12821_v55 = vpop.f32.mrb[233].mxu0 }
0x2473   :  { %v7723_v56 = vpop.f32.mrb[234].mxu0  ;;  %v7772_v58 = vpop.f32.mrb[232].mxu1 }
0x2474   :  { %v15692_v45 = vadd.f32 %v7772_v58, %v7564_v30  ;;  %v12822_v59 = vpop.f32.mrb[235].mxu0  ;;  %v12829_v28 = vpop.f32.mrb[233].mxu1 }
0x2475   :  { %v7775_v7 = vpop.f32.mrb[234].mxu1 }
0x2476   :  { %v12830_v12 = vpop.f32.mrb[235].mxu1 }
0x2479   :  { %v7824_v60 = vpop.f32.mrb[236].mxu0 }
0x247a   :  { %v15694_v32 = vadd.f32 %v7824_v60, %v7616_v39  ;;  %v12837_v37 = vpop.f32.mrb[237].mxu0 }
0x247b   :  { %v7827_v17 = vpop.f32.mrb[238].mxu0  ;;  %v7876_v41 = vpop.f32.mrb[236].mxu1 }
0x247c   :  { %v15696_v10 = vadd.f32 %v7876_v41, %v7668_v20  ;;  %v12838_v47 = vpop.f32.mrb[239].mxu0  ;;  %v12845_v23 = vpop.f32.mrb[237].mxu1 }
0x247d   :  { %v7879_v49 = vpop.f32.mrb[238].mxu1 }
0x247e   :  { %v12846_v61 = vpop.f32.mrb[239].mxu1 }
0x24f1   :  { %v7325_v50 = vpop.xlane.xlu0 %7324 }
0x24f2   :  { %v7327_v8 = vrot.slane %v7325_v50, 1  ;;  %v7328_v18 = vrot.slane %v7325_v50, 2  ;;  %v7329_v33 = vrot.slane %v7325_v50, 3  ;;  %v7334_v16 = vsub.f32 %v7308_v14, %v7325_v50 }
0x24f4   :  { %v7335_v19 = vsub.f32 %v15678_v62, %v7327_v8  ;;  %v7336_v26 = vsub.f32 %v7310_v5, %v7328_v18  ;;  %v7337_v27 = vsub.f32 %v7311_v40, %v7329_v33  ;;  %v7338_v30 = vmul.f32 1.442695, %v7334_v16 }
0x24f6   :  { %v7340_v48 = vmul.f32 1.442695, %v7335_v19  ;;  %v7342_v63 = vmul.f32 1.442695, %v7336_v26  ;;  %v7344_v43 = vmul.f32 1.442695, %v7337_v27  ;;  %13658 = vpow2.f32 %v7338_v30 }
0x24f8   :  { %13660 = vpow2.f32 %v7340_v48 }
0x24f9   :  { %13662 = vpow2.f32 %v7342_v63 }
0x24fa   :  { %13664 = vpow2.f32 %v7344_v43 }
0x2500   :  { %v13659_v38 = vpop.eup %13658 }
0x2502   :  { %v13661_v44 = vpop.eup %13660 }
0x2503   :  { %v13663_v39 = vpop.eup %13662  ;;  %v7350_v36 = vrot.slane %v13661_v44, 7 }
0x2504   :  { %v13665_v0 = vpop.eup %13664  ;;  %v7352_v20 = vrot.slane %v13663_v39, 6 }
0x2505   :  { %v7351_v14 = vsel %vm1136_vm5, %v7350_v36, %v13659_v38  ;;  %v7354_v52 = vrot.slane %v13665_v0, 5 }
0x2506   :  { %v7353_v62 = vsel %vm1139_vm6, %v7352_v20, %v7351_v14 }
0x2507   :  { %v7355_v5 = vsel %vm1142_vm7, %v7354_v52, %v7353_v62  ;;  %v13380_v52 = vld [vmem:[%s16402_s2] sm:$0x1f]  }
0x2508   :  { %v7357_v40 = vsel %vm1873_vm11, %v7355_v5, 0.0  ;;  %v7936_v62 = vsel %vm586_vm2, %v13380_v52, 0  ;;  %v13381_v5 = vld [vmem:[%s16402_s2 + $0x8] sm:$0x1f]  }
0x2509   :  { %7358 = vadd.xlane.f32.xlu1 %v7357_v40  ;;  %12848 = vmatpush3.bf16.msra.mxu0 %v7936_v62  ;;  %v7987_v40 = vsel %vm586_vm2, %v13381_v5, 0 }
0x250a   :  { %12859 = vmatprep.subr.bf16.mxu0 %v13896_v1  ;;  %12854 = vmatpush3.bf16.msra.mxu1 %v7987_v40 }
0x250b   :  { %12865 = vmatprep.subr.bf16.mxu1 %v13896_v1 }
0x2596   :  { %v7359_v2 = vpop.xlane.xlu1 %7358 }
0x2597   :  { %v7361_v57 = vrot.slane %v7359_v2, 1  ;;  %v7362_v3 = vrot.slane %v7359_v2, 2  ;;  %v7363_v53 = vrot.slane %v7359_v2, 3  ;;  %13666 = vrcp.f32 %v7359_v2 }
0x2599   :  { %13668 = vrcp.f32 %v7361_v57 }
0x259a   :  { %13670 = vrcp.f32 %v7362_v3 }
0x259b   :  { %13672 = vrcp.f32 %v7363_v53 }
0x25a1   :  { %v13667_v55 = vpop.eup %13666 }
0x25a2   :  { %v7369_v12 = vmul.f32 %v13667_v55, %v13659_v38 }
0x25a3   :  { %v13669_v56 = vpop.eup %13668 }
0x25a4   :  { %v13671_v58 = vpop.eup %13670  ;;  %v7371_v59 = vmul.f32 %v13669_v56, %v13661_v44 }
0x25a5   :  { %v13673_v28 = vpop.eup %13672  ;;  %v7373_v7 = vmul.f32 %v13671_v58, %v13663_v39 }
0x25a6   :  { %v7375_v60 = vmul.f32 %v13673_v28, %v13665_v0  ;;  %v7380_v37 = vrot.slane %v7371_v59, 7  ;;  %v13382_v28 = vld [vmem:[%s16402_s2 + $0x10] sm:$0x1f]  }
0x25a7   :  { %v7382_v17 = vrot.slane %v7373_v7, 6 }
0x25a8   :  { %v7384_v41 = vrot.slane %v7375_v60, 5  ;;  %v7381_v47 = vsel %vm1136_vm5, %v7380_v37, %v7369_v12  ;;  %v13383_v60 = vld [vmem:[%s16402_s2 + $0x18] sm:$0x1f]  }
0x25a9   :  { %v7383_v23 = vsel %vm1139_vm6, %v7382_v17, %v7381_v47 }
0x25aa   :  { %v7385_v49 = vsel %vm1142_vm7, %v7384_v41, %v7383_v23  ;;  %v8038_v41 = vsel %vm586_vm2, %v13382_v28, 0  ;;  %v8089_v23 = vsel %vm586_vm2, %v13383_v60, 0 }
0x25ab   :  { %v7387_v61 = vsel %vm1873_vm11, %v7385_v49, 0.0 }
0x25ac   :  { %v7388_v50 = vrot.slane %v7387_v61, 4 }
0x25ae   :  { %v7389_v8 = vadd.f32 %v7388_v50, %v7387_v61 }
0x25b0   :  { %v7390_v18 = vrot.slane %v7389_v8, 2 }
0x25b2   :  { %v7391_v33 = vadd.f32 %v7390_v18, %v7389_v8  ;;  %v13828_v18 = vld [vmem:[%s16401_s1] sm:$0xff]  }
0x25b4   :  { %v7392_v16 = vrot.slane %v7391_v33, 1 }
0x25b6   :  { %v7393_v19 = vadd.f32 %v7392_v16, %v7391_v33  ;;  %v13829_v33 = vld [vmem:[%s16401_s1 + $0x10] sm:$0xff]   ;;  %v13830_v16 = vld [vmem:[%s16401_s1 + $0x8] sm:$0xff]  }
0x25b8   :  { %v7394_v26 = vmul.f32 0.25, %v7393_v19  ;;  %v13831_v19 = vld [vmem:[%s16401_s1 + $0x18] sm:$0xff]  }
0x25ba   :  { %13674 = vlog2.f32 %v7394_v26 }
0x25c4   :  { %v13675_v27 = vpop.eup %13674 }
0x25c5   :  { %v7396_v30 = vmul.f32 0.6931472, %v13675_v27 }
0x25c7   :  { %v7411_v48 = vsel %vm1949_vm12, %v7396_v30, -inf  ;;  %7397 = vst.msk [vmem:[#allocation2 + $0x3] sm:$0x1] %vm1949_vm12, %v7396_v30 }
0x25c8   :  { %7412 = vmax.xlane.f32.xlu0 %v7411_v48 }
0x2655   :  { %v7413_v63 = vpop.xlane.xlu0 %7412 }
0x2656   :  { %vm7414_vm9 = vcmp.ge.f32.partialorder %v7396_v30, %v7413_v63 }
0x2657   :  { %v7415_v43 = vsel %vm7414_vm9, %v13998_v11, 10 }
0x2658   :  { %v7416_v38 = vsel %vm1949_vm12, %v7415_v43, 2147483647  ;;  %v13832_v43 = vld [vmem:[%s16405_s5] sm:$0xf] }
0x2659   :  { %v7418_v44 = vshra.s32 %v7416_v38, 16  ;;  %v7417_v36 = vand.u32 65535, %v7416_v38 }
0x265b   :  { %v7420_v39 = vcvt.s32.f32 %v7418_v44  ;;  %v7419_v20 = vcvt.s32.f32 %v7417_v36 }
0x265d   :  { %7421 = vmin.xlane.f32.xlu1 %v7420_v39 }
0x26ea   :  { %v7422_v0 = vpop.xlane.xlu1 %7421 }
0x26eb   :  { %vm7423_vm13 = vcmp.eq.f32.partialorder %v7420_v39, %v7422_v0  ;;  %v7428_v2 = vcvt.f32.s32 %v7422_v0 }
0x26ec   :  { %v7424_v14 = vsel %vm7423_vm13, %v7419_v20, inf }
0x26ed   :  { %7425 = vmin.xlane.f32.xlu0 %v7424_v14  ;;  %v7429_v3 = vshll.u32 %v7428_v2, 16 }
0x277a   :  { %v7426_v57 = vpop.xlane.xlu0 %7425 }
0x277b   :  { %v7427_v53 = vcvt.f32.s32 %v7426_v57 }
0x277d   :  { %v7430_v55 = vadd.s32 %v7429_v3, %v7427_v53 }
0x277f   :  { %vm7431_vm14 = vcmp.eq.s32.totalorder %v13998_v11, %v7430_v55 }
0x2780   :  { %v11357_v56 = vsel %vm7431_vm14, 1.0, %v13896_v1 }
0x2781   :  { %v7885_v58 = vrot.slane %v11357_v56, %v14517_v22 }
0x2783   :  { %v7893_v59 = vrot.slane %v7885_v58, %v14063_v35 }
0x2785   :  { %v7894_v7 = vcombine.high %v7893_v59, %v7893_v59  ;;  %v7901_v12 = vrot.slane %v7893_v59, %v14063_v35 }
0x2787   :  { %v7908_v37 = vrot.slane %v7894_v7, %v14063_v35  ;;  %v7915_v17 = vpack.c.bf16 %v7901_v12, %v7901_v12  ;;  %v7909_v49 = vcombine.high %v7901_v12, %v7901_v12 }
0x2789   :  { %12850 = vmatmul.mubr.msk.bf16.vlgmr.msra.gmra.mrb[240].mxu0 %vm582_vm4, %v7915_v17  ;;  %v7916_v47 = vpack.c.bf16 %v7908_v37, %v7908_v37  ;;  %v7910_v61 = vcombine.high %v7908_v37, %v7908_v37  ;;  %v7917_v50 = vpack.c.bf16 %v7909_v49, %v7909_v49 }
0x278a   :  { %12860 = vmatpush3.bf16.msra.mxu0 %v8038_v41  ;;  %12861 = vmatprep.mubr.msk.bf16.mxu0 %vm13897_vm0, %v13896_v1 }
0x278b   :  { %12856 = vmatmul.mubr.msk.bf16.vlgmr.msra.gmra.mrb[240].mxu1 %vm582_vm4, %v7916_v47  ;;  %12871 = vmatprep.subr.bf16.mxu0 %v13896_v1  ;;  %v7918_v8 = vpack.c.bf16 %v7910_v61, %v7910_v61 }
0x278c   :  { %12866 = vmatpush3.bf16.msra.mxu1 %v8089_v23  ;;  %12867 = vmatprep.mubr.msk.bf16.mxu1 %vm13897_vm0, %v13896_v1 }
0x278d   :  { %12879 = vmatprep.subr.bf16.mxu1 %v13896_v1 }
0x2791   :  { %12862 = vmatmul.mubr.msk.bf16.vlgmr.msra.gmra.mrb[244].mxu0 %vm582_vm4, %v7917_v50 }
0x2792   :  { %12872 = vmatpush3.bf16.msra.mxu0 %v13828_v18  ;;  %12875 = vmatprep.mubr.msk.bf16.mxu0 %vm13897_vm0, %v13896_v1 }
0x2793   :  { %12868 = vmatmul.mubr.msk.bf16.vlgmr.msra.gmra.mrb[244].mxu1 %vm582_vm4, %v7918_v8  ;;  %12873 = vmatprep.subr.bf16.mxu0 %v13896_v1 }
0x2794   :  { %12880 = vmatpush3.bf16.msra.mxu1 %v13829_v33  ;;  %12883 = vmatprep.mubr.msk.bf16.mxu1 %vm13897_vm0, %v13896_v1 }
0x2795   :  { %12881 = vmatprep.subr.bf16.mxu1 %v13896_v1 }
0x2796   :  { %12874 = vmatpush3.bf16.msra.mxu0 %v13830_v16 }
0x2797   :  { %12887 = vmatprep.subr.bf16.mxu0 %v13896_v1 }
0x2798   :  { %12882 = vmatpush3.bf16.msra.mxu1 %v13831_v19 }
0x2799   :  { %12895 = vmatprep.subr.bf16.mxu1 %v13896_v1 }
0x285c   :  { %v7972_v26 = vpop.f32.mrb[240].mxu0 }
0x285d   :  { %v8131_v27 = vadd.f32 %v7972_v26, %v15690_v54  ;;  %v12851_v30 = vpop.f32.mrb[241].mxu0 }
0x285e   :  { %v7975_v48 = vpop.f32.mrb[242].mxu0  ;;  %v8023_v63 = vpop.f32.mrb[240].mxu1 }
0x285f   :  { %v8135_v38 = vadd.f32 %v13832_v43, %v8131_v27  ;;  %v8132_v44 = vadd.f32 %v8023_v63, %v15692_v45  ;;  %v12852_v39 = vpop.f32.mrb[243].mxu0  ;;  %v12857_v36 = vpop.f32.mrb[241].mxu1 }
0x2860   :  { %v8026_v0 = vpop.f32.mrb[242].mxu1 }
0x2861   :  { %13676 = vtanh.f32 %v8135_v38  ;;  %v8136_v20 = vadd.f32 %v8132_v44, %v14111_v31  ;;  %v12858_v14 = vpop.f32.mrb[243].mxu1 }
0x2863   :  { %13678 = vtanh.f32 %v8136_v20  ;;  %v11391_v7 = vmul.f32 -1.442695, %v8136_v20 }
0x2864   :  { %v8074_v52 = vpop.f32.mrb[244].mxu0 }
0x2865   :  { %v8133_v54 = vadd.f32 %v8074_v52, %v15694_v32  ;;  %v12863_v62 = vpop.f32.mrb[245].mxu0 }
0x2866   :  { %v8077_v5 = vpop.f32.mrb[246].mxu0  ;;  %v8125_v40 = vpop.f32.mrb[244].mxu1 }
0x2867   :  { %v8137_v2 = vadd.f32 %v8133_v54, %v14114_v42  ;;  %v8134_v57 = vadd.f32 %v8125_v40, %v15696_v10  ;;  %v12864_v3 = vpop.f32.mrb[247].mxu0  ;;  %v12869_v45 = vpop.f32.mrb[245].mxu1  ;;  %v11390_v10 = vmul.f32 -1.442695, %v8135_v38 }
0x2868   :  { %v8128_v53 = vpop.f32.mrb[246].mxu1 }
0x2869   :  { %13680 = vtanh.f32 %v8137_v2  ;;  %v8138_v55 = vadd.f32 %v8134_v57, %v14116_v46  ;;  %v12870_v56 = vpop.f32.mrb[247].mxu1  ;;  %v11392_v12 = vmul.f32 -1.442695, %v8137_v2 }
0x286b   :  { %v13677_v58 = vpop.eup %13676  ;;  %13682 = vtanh.f32 %v8138_v55  ;;  %v11393_v60 = vmul.f32 -1.442695, %v8138_v55 }
0x286c   :  { %8175 = vrot.lane.b32.xlu1 %v13677_v58, %s13900_s23  ;;  %13684 = vpow2.f32 %v11390_v10 }
0x286d   :  { %v13679_v59 = vpop.eup %13678  ;;  %13686 = vpow2.f32 %v11391_v7 }
0x286e   :  { %8177 = vrot.lane.b32.xlu0 %v13679_v59, %s13900_s23  ;;  %13688 = vpow2.f32 %v11392_v12 }
0x286f   :  { %13690 = vpow2.f32 %v11393_v60  ;;  %v13833_v60 = vld [vmem:[%s16401_s1 + $0x20] sm:$0xff]  }
0x2873   :  { %v13681_v32 = vpop.eup %13680 }
0x2874   :  { %8179 = vrot.lane.b32.xlu1 %v13681_v32, %s13900_s23 }
0x2875   :  { %v13683_v28 = vpop.eup %13682 }
0x2876   :  { %v13685_v37 = vpop.eup %13684 }
0x2877   :  { %v13687_v17 = vpop.eup %13686  ;;  %v8151_v41 = vadd.f32 1.0, %v13685_v37 }
0x2878   :  { %8181 = vrot.lane.b32.xlu1 %v13683_v28, %s13900_s23  ;;  %v8152_v47 = vadd.f32 1.0, %v13687_v17  ;;  %v13689_v23 = vpop.eup %13688  ;;  %v13834_v17 = vld [vmem:[%s16401_s1 + $0x30] sm:$0xff]  }
0x2879   :  { %13692 = vrcp.f32 %v8151_v41  ;;  %v8153_v49 = vadd.f32 1.0, %v13689_v23  ;;  %v13691_v61 = vpop.eup %13690  ;;  %v13835_v41 = vld [vmem:[%s16401_s1 + $0x28] sm:$0xff]   ;;  %v13836_v23 = vld [vmem:[%s16401_s1 + $0x38] sm:$0xff]  }
0x287a   :  { %13694 = vrcp.f32 %v8152_v47  ;;  %v8154_v50 = vadd.f32 1.0, %v13691_v61 }
0x287b   :  { %13696 = vrcp.f32 %v8153_v49 }
0x287c   :  { %13698 = vrcp.f32 %v8154_v50 }
0x2883   :  { %v13693_v8 = vpop.eup %13692 }
0x2884   :  { %v13695_v16 = vpop.eup %13694  ;;  %v8167_v44 = vmul.f32 %v13693_v8, %v15382_v25 }
0x2885   :  { %v13697_v27 = vpop.eup %13696  ;;  %v8168_v0 = vmul.f32 %v13695_v16, %v15386_v51 }
0x2886   :  { %v13699_v63 = vpop.eup %13698  ;;  %v8169_v52 = vmul.f32 %v13697_v27, %v15390_v34 }
0x2887   :  { %v8170_v25 = vmul.f32 %v13699_v63, %v15394_v9 }
0x28de   :  { %v8176_v18 = vpop.permute.xlu1 %8175 }
0x28df   :  { %v8187_v33 = vmul.f32 %v13693_v8, %v8176_v18 }
0x28e0   :  { %v8178_v19 = vpop.permute.xlu0 %8177 }
0x28e1   :  { %8195 = vrot.lane.b32.xlu0 %v8187_v33, %s13901_s24  ;;  %v8188_v26 = vmul.f32 %v13695_v16, %v8178_v19 }
0x28e3   :  { %8197 = vrot.lane.b32.xlu1 %v8188_v26, %s13901_s24 }
0x28e6   :  { %v8180_v30 = vpop.permute.xlu1 %8179 }
0x28e7   :  { %v8189_v48 = vmul.f32 %v13697_v27, %v8180_v30 }
0x28e9   :  { %8199 = vrot.lane.b32.xlu0 %v8189_v48, %s13901_s24 }
0x28ea   :  { %v8182_v43 = vpop.permute.xlu1 %8181 }
0x28eb   :  { %v8190_v38 = vmul.f32 %v13699_v63, %v8182_v43 }
0x28ed   :  { %8201 = vrot.lane.b32.xlu1 %v8190_v38, %s13901_s24 }
0x2953   :  { %v8196_v39 = vpop.permute.xlu0 %8195 }
0x2954   :  { %v15784_v36 = vadd.f32 %v8196_v39, %v8167_v44 }
0x2955   :  { %v8198_v20 = vpop.permute.xlu1 %8197 }
0x2956   :  { %13700 = vtanh.f32 %v15784_v36  ;;  %v15788_v14 = vadd.f32 %v8198_v20, %v8168_v0 }
0x2958   :  { %13702 = vtanh.f32 %v15788_v14 }
0x295b   :  { %v8200_v54 = vpop.permute.xlu0 %8199 }
0x295c   :  { %v15792_v62 = vadd.f32 %v8200_v54, %v8169_v52 }
0x295e   :  { %13704 = vtanh.f32 %v15792_v62 }
0x295f   :  { %v8202_v5 = vpop.permute.xlu1 %8201 }
0x2960   :  { %v13701_v40 = vpop.eup %13700  ;;  %v15796_v2 = vadd.f32 %v8202_v5, %v8170_v25 }
0x2961   :  { %8219 = vrot.lane.b32.xlu0 %v13701_v40, %s13900_s23 }
0x2962   :  { %13706 = vtanh.f32 %v15796_v2  ;;  %v13703_v51 = vpop.eup %13702 }
0x2963   :  { %8221 = vrot.lane.b32.xlu1 %v13703_v51, %s13900_s23 }
0x2968   :  { %v13705_v57 = vpop.eup %13704 }
0x2969   :  { %8223 = vrot.lane.b32.xlu0 %v13705_v57, %s13900_s23 }
0x296c   :  { %v13707_v34 = vpop.eup %13706 }
0x296d   :  { %8225 = vrot.lane.b32.xlu1 %v13707_v34, %s13900_s23 }
0x29d3   :  { %v8220_v3 = vpop.permute.xlu0 %8219 }
0x29d4   :  { %v8231_v45 = vmul.f32 %v13693_v8, %v8220_v3 }
0x29d5   :  { %v8222_v53 = vpop.permute.xlu1 %8221 }
0x29d6   :  { %v8235_v9 = vpack.c.bf16 %v8231_v45, %v8231_v45  ;;  %v8232_v55 = vmul.f32 %v13695_v16, %v8222_v53 }
0x29d8   :  { %8240 = vrot.lane.b32.xlu0 %v8235_v9, %s13901_s24  ;;  %v8236_v56 = vpack.c.bf16 %v8232_v55, %v8232_v55 }
0x29da   :  { %8286 = vrot.lane.b32.xlu1 %v8236_v56, %s13901_s24 }
0x29db   :  { %v8224_v58 = vpop.permute.xlu0 %8223 }
0x29dc   :  { %v8233_v59 = vmul.f32 %v13697_v27, %v8224_v58 }
0x29de   :  { %v8237_v32 = vpack.c.bf16 %v8233_v59, %v8233_v59 }
0x29df   :  { %v8226_v28 = vpop.permute.xlu1 %8225 }
0x29e0   :  { %v8234_v10 = vmul.f32 %v13699_v63, %v8226_v28  ;;  %8332 = vrot.lane.b32.xlu0 %v8237_v32, %s13901_s24 }
0x29e2   :  { %v8238_v7 = vpack.c.bf16 %v8234_v10, %v8234_v10 }
0x29e4   :  { %8378 = vrot.lane.b32.xlu1 %v8238_v7, %s13901_s24 }
0x2a4a   :  { %v15807_v12 = vpop.permute.xlu0 %8240 }
0x2a4b   :  { %12876 = vmatmul.mubr.msk.bf16.vlgmr.msra.gmra.mrb[248].mxu0 %vm116_vm1, %v15807_v12 }
0x2a4c   :  { %12888 = vmatpush3.bf16.msra.mxu0 %v13833_v60  ;;  %12891 = vmatprep.mubr.msk.bf16.mxu0 %vm13897_vm0, %v13896_v1  ;;  %v15816_v37 = vpop.permute.xlu1 %8286 }
0x2a4d   :  { %12889 = vmatprep.subr.bf16.mxu0 %v13896_v1  ;;  %12884 = vmatmul.mubr.msk.bf16.vlgmr.msra.gmra.mrb[248].mxu1 %vm116_vm1, %v15816_v37 }
0x2a4e   :  { %12896 = vmatpush3.bf16.msra.mxu1 %v13834_v17  ;;  %12899 = vmatprep.mubr.msk.bf16.mxu1 %vm13897_vm0, %v13896_v1 }
0x2a4f   :  { %12897 = vmatprep.subr.bf16.mxu1 %v13896_v1 }
0x2a50   :  { %12890 = vmatpush3.bf16.msra.mxu0 %v13835_v41 }
0x2a51   :  { %12903 = vmatprep.subr.bf16.mxu0 %v13896_v1 }
0x2a52   :  { %v15831_v47 = vpop.permute.xlu0 %8332  ;;  %12898 = vmatpush3.bf16.msra.mxu1 %v13836_v23 }
0x2a53   :  { %12892 = vmatmul.mubr.msk.bf16.vlgmr.msra.gmra.mrb[252].mxu0 %vm116_vm1, %v15831_v47  ;;  %12909 = vmatprep.subr.bf16.mxu1 %v13896_v1 }
0x2a54   :  { %12904 = vmatpush3.bf16.msra.mxu0 %v14222_v4  ;;  %12905 = vmatprep.mubr.msk.bf16.mxu0 %vm13897_vm0, %v13896_v1 }
0x2a55   :  { %12915 = vmatprep.subr.bf16.mxu0 %v13896_v1 }
0x2a56   :  { %v15843_v49 = vpop.permute.xlu1 %8378 }
0x2a57   :  { %12900 = vmatmul.mubr.msk.bf16.vlgmr.msra.gmra.mrb[252].mxu1 %vm116_vm1, %v15843_v49 }
0x2a58   :  { %12910 = vmatpush3.bf16.msra.mxu1 %v14228_v6  ;;  %12911 = vmatprep.mubr.msk.bf16.mxu1 %vm13897_vm0, %v13896_v1 }
0x2a59   :  { %12921 = vmatprep.subr.bf16.mxu1 %v13896_v1 }
0x2b1e   :  { %v8279_v61 = vpop.f32.mrb[248].mxu0 }
0x2b1f   :  { %v12877_v50 = vpop.f32.mrb[249].mxu0 }
0x2b20   :  { %v8282_v8 = vpop.f32.mrb[250].mxu0  ;;  %v8325_v18 = vpop.f32.mrb[248].mxu1 }
0x2b21   :  { %v12878_v33 = vpop.f32.mrb[251].mxu0  ;;  %v8427_v16 = vrot.slane %v8325_v18, 7  ;;  %v12885_v19 = vpop.f32.mrb[249].mxu1 }
0x2b22   :  { %v8328_v26 = vpop.f32.mrb[250].mxu1 }
0x2b23   :  { %v8428_v27 = vsel %vm1136_vm5, %v8427_v16, %v8279_v61  ;;  %v12886_v30 = vpop.f32.mrb[251].mxu1 }
0x2b26   :  { %v8371_v48 = vpop.f32.mrb[252].mxu0 }
0x2b27   :  { %v8429_v63 = vrot.slane %v8371_v48, 6  ;;  %v12893_v43 = vpop.f32.mrb[253].mxu0 }
0x2b28   :  { %v8374_v38 = vpop.f32.mrb[254].mxu0 }
0x2b29   :  { %v12894_v44 = vpop.f32.mrb[255].mxu0  ;;  %v8430_v39 = vsel %vm1139_vm6, %v8429_v63, %v8428_v27 }
0x2b2a   :  { %v8417_v0 = vpop.f32.mrb[252].mxu1 }
0x2b2b   :  { %v8431_v20 = vrot.slane %v8417_v0, 5  ;;  %v12901_v52 = vpop.f32.mrb[253].mxu1 }
0x2b2c   :  { %v8420_v54 = vpop.f32.mrb[254].mxu1 }
0x2b2d   :  { %v12902_v25 = vpop.f32.mrb[255].mxu1  ;;  %v8432_v5 = vsel %vm1142_vm7, %v8431_v20, %v8430_v39 }
0x2b2e   :  { %v8434_v40 = vsel %vm1145_vm8, %v8432_v5, -inf  ;;  %v13384_v5 = vld [vmem:[%s16407_s7] sm:$0xff]  }
0x2b2f   :  { %8435 = vmax.xlane.f32.xlu0 %v8434_v40 }
0x2bbc   :  { %v8436_v51 = vpop.xlane.xlu0 %8435 }
0x2bbd   :  { %v8438_v57 = vrot.slane %v8436_v51, 1  ;;  %v8439_v34 = vrot.slane %v8436_v51, 2  ;;  %v8440_v3 = vrot.slane %v8436_v51, 3  ;;  %v8445_v45 = vsub.f32 %v8279_v61, %v8436_v51  ;;  %v13385_v51 = vld [vmem:[%s16407_s7 + $0x10] sm:$0xff]  }
0x2bbf   :  { %v8446_v9 = vsub.f32 %v8325_v18, %v8438_v57  ;;  %v8447_v53 = vsub.f32 %v8371_v48, %v8439_v34  ;;  %v8448_v55 = vsub.f32 %v8417_v0, %v8440_v3  ;;  %v8449_v56 = vmul.f32 1.442695, %v8445_v45  ;;  %v13386_v34 = vld [vmem:[%s16407_s7 + $0x8] sm:$0xff]   ;;  %v13387_v3 = vld [vmem:[%s16407_s7 + $0x18] sm:$0xff]  }
0x2bc1   :  { %v8451_v58 = vmul.f32 1.442695, %v8446_v9  ;;  %v8453_v59 = vmul.f32 1.442695, %v8447_v53  ;;  %v8455_v32 = vmul.f32 1.442695, %v8448_v55  ;;  %13708 = vpow2.f32 %v8449_v56 }
0x2bc2   :  { %v13388_v9 = vld [vmem:[%s16407_s7 + $0x20] sm:$0xff]  }
0x2bc3   :  { %13710 = vpow2.f32 %v8451_v58 }
0x2bc4   :  { %13712 = vpow2.f32 %v8453_v59  ;;  %v13389_v59 = vld [vmem:[%s16407_s7 + $0x30] sm:$0xff]  }
0x2bc5   :  { %13714 = vpow2.f32 %v8455_v32 }
0x2bcb   :  { %v13709_v28 = vpop.eup %13708 }
0x2bcd   :  { %v13711_v10 = vpop.eup %13710 }
0x2bce   :  { %v13713_v7 = vpop.eup %13712  ;;  %v8461_v60 = vrot.slane %v13711_v10, 7 }
0x2bcf   :  { %v13715_v17 = vpop.eup %13714  ;;  %v8463_v41 = vrot.slane %v13713_v7, 6 }
0x2bd0   :  { %v8462_v23 = vsel %vm1136_vm5, %v8461_v60, %v13709_v28  ;;  %v8465_v61 = vrot.slane %v13715_v17, 5  ;;  %v13390_v60 = vld [vmem:[%s16407_s7 + $0x28] sm:$0xff]  }
0x2bd1   :  { %v8464_v50 = vsel %vm1139_vm6, %v8463_v41, %v8462_v23  ;;  %v13391_v41 = vld [vmem:[%s16407_s7 + $0x38] sm:$0xff]  }
0x2bd2   :  { %v8466_v8 = vsel %vm1142_vm7, %v8465_v61, %v8464_v50  ;;  %v13392_v61 = vld [vmem:[%s16406_s6] sm:$0xff]  }
0x2bd3   :  { %v8468_v18 = vsel %vm1145_vm8, %v8466_v8, 0.0 }
0x2bd4   :  { %8469 = vadd.xlane.f32.xlu1 %v8468_v18 }
0x2c61   :  { %v8470_v33 = vpop.xlane.xlu1 %8469 }
0x2c62   :  { %13716 = vrcp.f32 %v8470_v33 }
0x2c6c   :  { %v13717_v16 = vpop.eup %13716 }
0x2c6d   :  { %v8480_v19 = vmul.f32 %v13717_v16, %v13709_v28  ;;  %v8473_v26 = vrot.slane %v13717_v16, 1  ;;  %v8474_v27 = vrot.slane %v13717_v16, 2  ;;  %v8475_v30 = vrot.slane %v13717_v16, 3  ;;  %v13393_v16 = vld [vmem:[%s16406_s6 + $0x10] sm:$0xff]  }
0x2c6f   :  { %v8484_v48 = vpack.c.bf16 %v8480_v19, %v8480_v19  ;;  %v8481_v63 = vmul.f32 %v13711_v10, %v8473_v26  ;;  %v8482_v43 = vmul.f32 %v13713_v7, %v8474_v27  ;;  %v8483_v38 = vmul.f32 %v13715_v17, %v8475_v30 }
0x2c71   :  { %12906 = vmatmul.mubr.msk.bf16.vlgmr.msra.gmra.mrb[0].mxu0 %vm1200_vm10, %v8484_v48  ;;  %v8485_v44 = vpack.c.bf16 %v8481_v63, %v8481_v63  ;;  %v9218_v39 = vrot.slane %v8481_v63, 7  ;;  %v9220_v0 = vrot.slane %v8482_v43, 6  ;;  %v9222_v52 = vrot.slane %v8483_v38, 5  ;;  %v13394_v48 = vld [vmem:[%s16406_s6 + $0x8] sm:$0xff]  }
0x2c72   :  { %12916 = vmatpush3.bf16.msra.mxu0 %v14238_v15  ;;  %12917 = vmatprep.mubr.msk.bf16.mxu0 %vm13897_vm0, %v13896_v1  ;;  %v8486_v40 = vpack.c.bf16 %v8482_v43, %v8482_v43  ;;  %v8487_v57 = vpack.c.bf16 %v8483_v38, %v8483_v38  ;;  %v13395_v43 = vld [vmem:[%s16406_s6 + $0x18] sm:$0xff]   ;;  %v13396_v38 = vld [vmem:[%s16406_s6 + $0x20] sm:$0xff]  }
0x2c73   :  { %12912 = vmatmul.mubr.msk.bf16.vlgmr.msra.gmra.mrb[0].mxu1 %vm1200_vm10, %v8485_v44  ;;  %12927 = vmatprep.subr.bf16.mxu0 %v13896_v1  ;;  %v9219_v20 = vsel %vm1136_vm5, %v9218_v39, %v8480_v19  ;;  %v13397_v44 = vld [vmem:[%s16406_s6 + $0x30] sm:$0xff]   ;;  %v13398_v39 = vld [vmem:[%s16406_s6 + $0x28] sm:$0xff]  }
0x2c74   :  { %12922 = vmatpush3.bf16.msra.mxu1 %v14245_v24  ;;  %12923 = vmatprep.mubr.msk.bf16.mxu1 %vm13897_vm0, %v13896_v1  ;;  %v9221_v54 = vsel %vm1139_vm6, %v9220_v0, %v9219_v20  ;;  %v13399_v0 = vld [vmem:[%s16406_s6 + $0x38] sm:$0xff]   ;;  %v13400_v20 = vld [vmem:[%s16404_s4] sm:$0xff]  }
0x2c75   :  { %12935 = vmatprep.subr.bf16.mxu1 %v13896_v1  ;;  %v9223_v25 = vsel %vm1142_vm7, %v9222_v52, %v9221_v54  ;;  %v13401_v52 = vld [vmem:[%s16404_s4 + $0x10] sm:$0xff]   ;;  %v13402_v54 = vld [vmem:[%s16404_s4 + $0x8] sm:$0xff]  }
0x2c76   :  { %9226 = vst.msk [vmem:[#allocation4 + $0x10] sm:$0xf] %vm1145_vm8, %v9223_v25  ;;  %v13403_v25 = vld [vmem:[%s16404_s4 + $0x18] sm:$0xff]  }
0x2c79   :  { %12918 = vmatmul.mubr.msk.bf16.vlgmr.msra.gmra.mrb[4].mxu0 %vm1200_vm10, %v8486_v40  ;;  %v13405_v40 = vld [vmem:[%s16404_s4 + $0x30] sm:$0xff]  }
0x2c7a   :  { %12928 = vmatpush3.bf16.msra.mxu0 %v13384_v5  ;;  %12931 = vmatprep.mubr.msk.bf16.mxu0 %vm13897_vm0, %v13896_v1  ;;  %v13404_v5 = vld [vmem:[%s16404_s4 + $0x20] sm:$0xff]  }
0x2c7b   :  { %12924 = vmatmul.mubr.msk.bf16.vlgmr.msra.gmra.mrb[4].mxu1 %vm1200_vm10, %v8487_v57  ;;  %12929 = vmatprep.subr.bf16.mxu0 %v13896_v1  ;;  %v13408_v57 = vld [vmem:[%s16403_s3] sm:$0xff]  }
0x2c7c   :  { %12936 = vmatpush3.bf16.msra.mxu1 %v13385_v51  ;;  %12939 = vmatprep.mubr.msk.bf16.mxu1 %vm13897_vm0, %v13896_v1  ;;  %v13406_v51 = vld [vmem:[%s16404_s4 + $0x28] sm:$0xff]  }
0x2c7d   :  { %12937 = vmatprep.subr.bf16.mxu1 %v13896_v1 }
0x2c7e   :  { %12930 = vmatpush3.bf16.msra.mxu0 %v13386_v34  ;;  %v13410_v34 = vld [vmem:[%s16403_s3 + $0x8] sm:$0xff]  }
0x2c7f   :  { %12943 = vmatprep.subr.bf16.mxu0 %v13896_v1 }
0x2c80   :  { %12938 = vmatpush3.bf16.msra.mxu1 %v13387_v3  ;;  %v13412_v3 = vld [vmem:[%s16403_s3 + $0x20] sm:$0xff]  }
0x2c81   :  { %12951 = vmatprep.subr.bf16.mxu1 %v13896_v1 }
0x2d44   :  { %v8525_v45 = vpop.f32.mrb[0].mxu0 }
0x2d45   :  { %v15898_v53 = vpack.c.bf16 %v8525_v45, %v8525_v45  ;;  %v12907_v55 = vpop.f32.mrb[1].mxu0  ;;  %v13414_v45 = vld [vmem:[%s16403_s3 + $0x28] sm:$0xff]  }
0x2d46   :  { %v8528_v56 = vpop.f32.mrb[2].mxu0  ;;  %v8568_v58 = vpop.f32.mrb[0].mxu1 }
0x2d47   :  { %v15903_v32 = vpack.c.bf16 %v8568_v58, %v8568_v58  ;;  %v12908_v28 = vpop.f32.mrb[3].mxu0  ;;  %v12913_v10 = vpop.f32.mrb[1].mxu1  ;;  %12932 = vmatmul.mubr.msk.bf16.vlgmr.msra.gmra.mrb[8].mxu0 %vm116_vm1, %v15898_v53 }
0x2d48   :  { %v8571_v7 = vpop.f32.mrb[2].mxu1  ;;  %12944 = vmatpush3.bf16.msra.mxu0 %v13388_v9  ;;  %12947 = vmatprep.mubr.msk.bf16.mxu0 %vm13897_vm0, %v13896_v1  ;;  %v13415_v9 = vld [vmem:[%s16403_s3 + $0x38] sm:$0xff]  }
0x2d49   :  { %v12914_v17 = vpop.f32.mrb[3].mxu1  ;;  %12940 = vmatmul.mubr.msk.bf16.vlgmr.msra.gmra.mrb[8].mxu1 %vm116_vm1, %v15903_v32  ;;  %12945 = vmatprep.subr.bf16.mxu0 %v13896_v1 }
0x2d4a   :  { %12952 = vmatpush3.bf16.msra.mxu1 %v13389_v59  ;;  %12955 = vmatprep.mubr.msk.bf16.mxu1 %vm13897_vm0, %v13896_v1 }
0x2d4b   :  { %12953 = vmatprep.subr.bf16.mxu1 %v13896_v1 }
0x2d4c   :  { %v8611_v23 = vpop.f32.mrb[4].mxu0  ;;  %12946 = vmatpush3.bf16.msra.mxu0 %v13390_v60 }
0x2d4d   :  { %v15924_v50 = vpack.c.bf16 %v8611_v23, %v8611_v23  ;;  %v12919_v8 = vpop.f32.mrb[5].mxu0  ;;  %12959 = vmatprep.subr.bf16.mxu0 %v13896_v1 }
0x2d4e   :  { %v8614_v18 = vpop.f32.mrb[6].mxu0  ;;  %v8654_v33 = vpop.f32.mrb[4].mxu1  ;;  %12954 = vmatpush3.bf16.msra.mxu1 %v13391_v41 }
0x2d4f   :  { %v15930_v19 = vpack.c.bf16 %v8654_v33, %v8654_v33  ;;  %v12920_v26 = vpop.f32.mrb[7].mxu0  ;;  %v12925_v27 = vpop.f32.mrb[5].mxu1  ;;  %12948 = vmatmul.mubr.msk.bf16.vlgmr.msra.gmra.mrb[12].mxu0 %vm116_vm1, %v15924_v50  ;;  %12967 = vmatprep.subr.bf16.mxu1 %v13896_v1 }
0x2d50   :  { %v8657_v30 = vpop.f32.mrb[6].mxu1  ;;  %12960 = vmatpush3.bf16.msra.mxu0 %v13392_v61  ;;  %12963 = vmatprep.mubr.msk.bf16.mxu0 %vm13897_vm0, %v13896_v1 }
0x2d51   :  { %v12926_v63 = vpop.f32.mrb[7].mxu1  ;;  %12956 = vmatmul.mubr.msk.bf16.vlgmr.msra.gmra.mrb[12].mxu1 %vm116_vm1, %v15930_v19  ;;  %12961 = vmatprep.subr.bf16.mxu0 %v13896_v1 }
0x2d52   :  { %12968 = vmatpush3.bf16.msra.mxu1 %v13393_v16  ;;  %12971 = vmatprep.mubr.msk.bf16.mxu1 %vm13897_vm0, %v13896_v1 }
0x2d53   :  { %12969 = vmatprep.subr.bf16.mxu1 %v13896_v1 }
0x2d54   :  { %12962 = vmatpush3.bf16.msra.mxu0 %v13394_v48 }
0x2d55   :  { %12975 = vmatprep.subr.bf16.mxu0 %v13896_v1 }
0x2d56   :  { %12970 = vmatpush3.bf16.msra.mxu1 %v13395_v43 }
0x2d57   :  { %12964 = vmatmul.mubr.msk.bf16.vlgmr.msra.gmra.mrb[16].mxu0 %vm116_vm1, %v15807_v12  ;;  %12983 = vmatprep.subr.bf16.mxu1 %v13896_v1 }
0x2d58   :  { %12976 = vmatpush3.bf16.msra.mxu0 %v13396_v38  ;;  %12979 = vmatprep.mubr.msk.bf16.mxu0 %vm13897_vm0, %v13896_v1 }
0x2d59   :  { %12972 = vmatmul.mubr.msk.bf16.vlgmr.msra.gmra.mrb[16].mxu1 %vm116_vm1, %v15816_v37  ;;  %12977 = vmatprep.subr.bf16.mxu0 %v13896_v1 }
0x2d5a   :  { %12984 = vmatpush3.bf16.msra.mxu1 %v13397_v44  ;;  %12987 = vmatprep.mubr.msk.bf16.mxu1 %vm13897_vm0, %v13896_v1 }
0x2d5b   :  { %12985 = vmatprep.subr.bf16.mxu1 %v13896_v1 }
0x2d5c   :  { %12978 = vmatpush3.bf16.msra.mxu0 %v13398_v39 }
0x2d5d   :  { %12991 = vmatprep.subr.bf16.mxu0 %v13896_v1 }
0x2d5e   :  { %12986 = vmatpush3.bf16.msra.mxu1 %v13399_v0 }
0x2d5f   :  { %12980 = vmatmul.mubr.msk.bf16.vlgmr.msra.gmra.mrb[20].mxu0 %vm116_vm1, %v15831_v47  ;;  %12999 = vmatprep.subr.bf16.mxu1 %v13896_v1 }
0x2d60   :  { %12992 = vmatpush3.bf16.msra.mxu0 %v13400_v20  ;;  %12995 = vmatprep.mubr.msk.bf16.mxu0 %vm13897_vm0, %v13896_v1 }
0x2d61   :  { %12988 = vmatmul.mubr.msk.bf16.vlgmr.msra.gmra.mrb[20].mxu1 %vm116_vm1, %v15843_v49  ;;  %12993 = vmatprep.subr.bf16.mxu0 %v13896_v1 }
0x2d62   :  { %13000 = vmatpush3.bf16.msra.mxu1 %v13401_v52  ;;  %13003 = vmatprep.mubr.msk.bf16.mxu1 %vm13897_vm0, %v13896_v1 }
0x2d63   :  { %13001 = vmatprep.subr.bf16.mxu1 %v13896_v1 }
0x2d64   :  { %12994 = vmatpush3.bf16.msra.mxu0 %v13402_v54 }
0x2d65   :  { %13007 = vmatprep.subr.bf16.mxu0 %v13896_v1 }
0x2d66   :  { %13002 = vmatpush3.bf16.msra.mxu1 %v13403_v25 }
0x2d67   :  { %12996 = vmatmul.mubr.msk.bf16.vlgmr.msra.gmra.mrb[24].mxu0 %vm116_vm1, %v15807_v12  ;;  %13015 = vmatprep.subr.bf16.mxu1 %v13896_v1  ;;  %v13407_v12 = vld [vmem:[%s16404_s4 + $0x38] sm:$0xff]  }
0x2d68   :  { %13008 = vmatpush3.bf16.msra.mxu0 %v13404_v5  ;;  %13011 = vmatprep.mubr.msk.bf16.mxu0 %vm13897_vm0, %v13896_v1 }
0x2d69   :  { %13004 = vmatmul.mubr.msk.bf16.vlgmr.msra.gmra.mrb[24].mxu1 %vm116_vm1, %v15816_v37  ;;  %13009 = vmatprep.subr.bf16.mxu0 %v13896_v1  ;;  %v13409_v37 = vld [vmem:[%s16403_s3 + $0x10] sm:$0xff]  }
0x2d6a   :  { %13016 = vmatpush3.bf16.msra.mxu1 %v13405_v40  ;;  %13019 = vmatprep.mubr.msk.bf16.mxu1 %vm13897_vm0, %v13896_v1 }
0x2d6b   :  { %13017 = vmatprep.subr.bf16.mxu1 %v13896_v1 }
0x2d6c   :  { %13010 = vmatpush3.bf16.msra.mxu0 %v13406_v51 }
0x2d6d   :  { %13023 = vmatprep.subr.bf16.mxu0 %v13896_v1 }
0x2d6e   :  { %13018 = vmatpush3.bf16.msra.mxu1 %v13407_v12  ;;  %v13837_v12 = vld [vmem:[%s16408_s8] sm:$0xf] }
0x2d6f   :  { %13012 = vmatmul.mubr.msk.bf16.vlgmr.msra.gmra.mrb[28].mxu0 %vm116_vm1, %v15831_v47  ;;  %13031 = vmatprep.subr.bf16.mxu1 %v13896_v1  ;;  %v13411_v47 = vld [vmem:[%s16403_s3 + $0x18] sm:$0xff]  }
0x2d70   :  { %13024 = vmatpush3.bf16.msra.mxu0 %v13408_v57  ;;  %13027 = vmatprep.mubr.msk.bf16.mxu0 %vm13897_vm0, %v13896_v1 }
0x2d71   :  { %13020 = vmatmul.mubr.msk.bf16.vlgmr.msra.gmra.mrb[28].mxu1 %vm116_vm1, %v15843_v49  ;;  %13025 = vmatprep.subr.bf16.mxu0 %v13896_v1  ;;  %v13413_v49 = vld [vmem:[%s16403_s3 + $0x30] sm:$0xff]  }
0x2d72   :  { %13032 = vmatpush3.bf16.msra.mxu1 %v13409_v37  ;;  %13035 = vmatprep.mubr.msk.bf16.mxu1 %vm13897_vm0, %v13896_v1 }
0x2d73   :  { %13033 = vmatprep.subr.bf16.mxu1 %v13896_v1 }
0x2d74   :  { %13026 = vmatpush3.bf16.msra.mxu0 %v13410_v34 }
0x2d75   :  { %13039 = vmatprep.subr.bf16.mxu0 %v13896_v1 }
0x2d76   :  { %13034 = vmatpush3.bf16.msra.mxu1 %v13411_v47 }
0x2d77   :  { %13028 = vmatmul.mubr.msk.bf16.vlgmr.msra.gmra.mrb[32].mxu0 %vm116_vm1, %v15898_v53  ;;  %13047 = vmatprep.subr.bf16.mxu1 %v13896_v1 }
0x2d78   :  { %13040 = vmatpush3.bf16.msra.mxu0 %v13412_v3  ;;  %13043 = vmatprep.mubr.msk.bf16.mxu0 %vm13897_vm0, %v13896_v1 }
0x2d79   :  { %13036 = vmatmul.mubr.msk.bf16.vlgmr.msra.gmra.mrb[32].mxu1 %vm116_vm1, %v15903_v32  ;;  %13041 = vmatprep.subr.bf16.mxu0 %v13896_v1 }
0x2d7a   :  { %13048 = vmatpush3.bf16.msra.mxu1 %v13413_v49  ;;  %13051 = vmatprep.mubr.msk.bf16.mxu1 %vm13897_vm0, %v13896_v1 }
0x2d7b   :  { %13049 = vmatprep.subr.bf16.mxu1 %v13896_v1 }
0x2d7c   :  { %13042 = vmatpush3.bf16.msra.mxu0 %v13414_v45 }
0x2d7d   :  { %13055 = vmatprep.subr.bf16.mxu0 %v13896_v1 }
0x2d7e   :  { %13050 = vmatpush3.bf16.msra.mxu1 %v13415_v9 }
0x2d7f   :  { %13044 = vmatmul.mubr.msk.bf16.vlgmr.msra.gmra.mrb[36].mxu0 %vm116_vm1, %v15924_v50  ;;  %13061 = vmatprep.subr.bf16.mxu1 %v13896_v1 }
0x2d80   :  { %13057 = vmatprep.mubr.msk.bf16.mxu0 %vm13897_vm0, %v13896_v1 }
0x2d81   :  { %13052 = vmatmul.mubr.msk.bf16.vlgmr.msra.gmra.mrb[36].mxu1 %vm116_vm1, %v15930_v19 }
0x2d82   :  { %13063 = vmatprep.mubr.msk.bf16.mxu1 %vm13897_vm0, %v13896_v1 }
0x2e1a   :  { %v8745_v53 = vpop.f32.mrb[8].mxu0 }
0x2e1b   :  { %v12933_v55 = vpop.f32.mrb[9].mxu0 }
0x2e1c   :  { %v8748_v56 = vpop.f32.mrb[10].mxu0  ;;  %v8800_v58 = vpop.f32.mrb[8].mxu1 }
0x2e1d   :  { %v12934_v59 = vpop.f32.mrb[11].mxu0  ;;  %v12941_v32 = vpop.f32.mrb[9].mxu1 }
0x2e1e   :  { %v8803_v28 = vpop.f32.mrb[10].mxu1 }
0x2e1f   :  { %v12942_v10 = vpop.f32.mrb[11].mxu1 }
0x2e22   :  { %v8855_v7 = vpop.f32.mrb[12].mxu0 }
0x2e23   :  { %v12949_v60 = vpop.f32.mrb[13].mxu0 }
0x2e24   :  { %v8858_v17 = vpop.f32.mrb[14].mxu0  ;;  %v8910_v41 = vpop.f32.mrb[12].mxu1 }
0x2e25   :  { %v12950_v23 = vpop.f32.mrb[15].mxu0  ;;  %v12957_v61 = vpop.f32.mrb[13].mxu1 }
0x2e26   :  { %v8913_v50 = vpop.f32.mrb[14].mxu1 }
0x2e27   :  { %v12958_v8 = vpop.f32.mrb[15].mxu1 }
0x2e2a   :  { %v8962_v18 = vpop.f32.mrb[16].mxu0 }
0x2e2b   :  { %v8963_v33 = vadd.f32 %v8962_v18, %v8745_v53  ;;  %v12965_v16 = vpop.f32.mrb[17].mxu0 }
0x2e2c   :  { %v8965_v19 = vpop.f32.mrb[18].mxu0  ;;  %v9014_v26 = vpop.f32.mrb[16].mxu1 }
0x2e2d   :  { %v9015_v27 = vadd.f32 %v9014_v26, %v8800_v58  ;;  %v12966_v30 = vpop.f32.mrb[19].mxu0  ;;  %v12973_v48 = vpop.f32.mrb[17].mxu1  ;;  %v9124_v57 = vadd.f32 %v13837_v12, %v8963_v33 }
0x2e2e   :  { %v9017_v63 = vpop.f32.mrb[18].mxu1 }
0x2e2f   :  { %v12974_v43 = vpop.f32.mrb[19].mxu1  ;;  %v16080_v38 = vadd.f32 %v9015_v27, %v14469_v13 }
0x2e31   :  { %v9132_v20 = vrot.slane %v16080_v38, 7 }
0x2e32   :  { %v9066_v44 = vpop.f32.mrb[20].mxu0 }
0x2e33   :  { %v9067_v39 = vadd.f32 %v9066_v44, %v8855_v7  ;;  %v12981_v0 = vpop.f32.mrb[21].mxu0  ;;  %v9133_v49 = vsel %vm1136_vm5, %v9132_v20, %v9124_v57 }
0x2e34   :  { %v9069_v52 = vpop.f32.mrb[22].mxu0  ;;  %v9118_v54 = vpop.f32.mrb[20].mxu1 }
0x2e35   :  { %v9126_v25 = vadd.f32 %v9067_v39, %v14474_v21  ;;  %v9119_v5 = vadd.f32 %v9118_v54, %v8910_v41  ;;  %v12982_v40 = vpop.f32.mrb[23].mxu0  ;;  %v12989_v51 = vpop.f32.mrb[21].mxu1 }
0x2e36   :  { %v9121_v37 = vpop.f32.mrb[22].mxu1 }
0x2e37   :  { %v9134_v34 = vrot.slane %v9126_v25, 6  ;;  %v9127_v47 = vadd.f32 %v9119_v5, %v14476_v29  ;;  %v12990_v3 = vpop.f32.mrb[23].mxu1 }
0x2e39   :  { %v9136_v45 = vrot.slane %v9127_v47, 5  ;;  %v9135_v9 = vsel %vm1139_vm6, %v9134_v34, %v9133_v49 }
0x2e3a   :  { %v9328_v53 = vpop.f32.mrb[24].mxu0 }
0x2e3b   :  { %v12997_v55 = vpop.f32.mrb[25].mxu0  ;;  %v9137_v56 = vsel %vm1142_vm7, %v9136_v45, %v9135_v9 }
0x2e3c   :  { %v9331_v58 = vpop.f32.mrb[26].mxu0  ;;  %v9380_v59 = vpop.f32.mrb[24].mxu1  ;;  %v9139_v32 = vsel %vm1873_vm11, %v9137_v56, -inf }
0x2e3d   :  { %v13005_v28 = vpop.f32.mrb[25].mxu1  ;;  %9140 = vmax.xlane.f32.xlu0 %v9139_v32  ;;  %v12998_v10 = vpop.f32.mrb[27].mxu0 }
0x2e3e   :  { %v9383_v7 = vpop.f32.mrb[26].mxu1 }
0x2e3f   :  { %v13006_v60 = vpop.f32.mrb[27].mxu1 }
0x2e42   :  { %v9432_v17 = vpop.f32.mrb[28].mxu0 }
0x2e43   :  { %v13013_v41 = vpop.f32.mrb[29].mxu0 }
0x2e44   :  { %v9435_v23 = vpop.f32.mrb[30].mxu0  ;;  %v9484_v61 = vpop.f32.mrb[28].mxu1 }
0x2e45   :  { %v13014_v50 = vpop.f32.mrb[31].mxu0  ;;  %v13021_v8 = vpop.f32.mrb[29].mxu1 }
0x2e46   :  { %v9487_v18 = vpop.f32.mrb[30].mxu1 }
0x2e47   :  { %v13022_v33 = vpop.f32.mrb[31].mxu1 }
0x2e4a   :  { %v9536_v16 = vpop.f32.mrb[32].mxu0 }
0x2e4b   :  { %v16092_v19 = vadd.f32 %v9536_v16, %v9328_v53  ;;  %v13029_v26 = vpop.f32.mrb[33].mxu0 }
0x2e4c   :  { %v9539_v27 = vpop.f32.mrb[34].mxu0  ;;  %v9588_v30 = vpop.f32.mrb[32].mxu1 }
0x2e4d   :  { %v16094_v48 = vadd.f32 %v9588_v30, %v9380_v59  ;;  %v13030_v63 = vpop.f32.mrb[35].mxu0  ;;  %v13037_v43 = vpop.f32.mrb[33].mxu1 }
0x2e4e   :  { %v9591_v44 = vpop.f32.mrb[34].mxu1 }
0x2e4f   :  { %v13038_v39 = vpop.f32.mrb[35].mxu1 }
0x2e52   :  { %v9640_v0 = vpop.f32.mrb[36].mxu0 }
0x2e53   :  { %v16096_v20 = vadd.f32 %v9640_v0, %v9432_v17  ;;  %v13045_v52 = vpop.f32.mrb[37].mxu0 }
0x2e54   :  { %v9643_v54 = vpop.f32.mrb[38].mxu0  ;;  %v9692_v5 = vpop.f32.mrb[36].mxu1 }
0x2e55   :  { %v16098_v40 = vadd.f32 %v9692_v5, %v9484_v61  ;;  %v13046_v51 = vpop.f32.mrb[39].mxu0  ;;  %v13053_v12 = vpop.f32.mrb[37].mxu1 }
0x2e56   :  { %v9695_v37 = vpop.f32.mrb[38].mxu1 }
0x2e57   :  { %v13054_v34 = vpop.f32.mrb[39].mxu1 }
0x2eca   :  { %v9141_v3 = vpop.xlane.xlu0 %9140 }
0x2ecb   :  { %v9143_v49 = vrot.slane %v9141_v3, 1  ;;  %v9144_v45 = vrot.slane %v9141_v3, 2  ;;  %v9145_v9 = vrot.slane %v9141_v3, 3  ;;  %v9150_v53 = vsub.f32 %v9124_v57, %v9141_v3 }
0x2ecd   :  { %v9151_v55 = vsub.f32 %v16080_v38, %v9143_v49  ;;  %v9152_v56 = vsub.f32 %v9126_v25, %v9144_v45  ;;  %v9153_v58 = vsub.f32 %v9127_v47, %v9145_v9  ;;  %v9154_v59 = vmul.f32 1.442695, %v9150_v53 }
0x2ecf   :  { %v9156_v32 = vmul.f32 1.442695, %v9151_v55  ;;  %v9158_v28 = vmul.f32 1.442695, %v9152_v56  ;;  %v9160_v10 = vmul.f32 1.442695, %v9153_v58  ;;  %13718 = vpow2.f32 %v9154_v59 }
0x2ed1   :  { %13720 = vpow2.f32 %v9156_v32 }
0x2ed2   :  { %13722 = vpow2.f32 %v9158_v28 }
0x2ed3   :  { %13724 = vpow2.f32 %v9160_v10 }
0x2ed9   :  { %v13719_v7 = vpop.eup %13718 }
0x2edb   :  { %v13721_v60 = vpop.eup %13720 }
0x2edc   :  { %v13723_v17 = vpop.eup %13722  ;;  %v9166_v41 = vrot.slane %v13721_v60, 7 }
0x2edd   :  { %v13725_v23 = vpop.eup %13724  ;;  %v9168_v61 = vrot.slane %v13723_v17, 6 }
0x2ede   :  { %v9167_v57 = vsel %vm1136_vm5, %v9166_v41, %v13719_v7  ;;  %v9170_v50 = vrot.slane %v13725_v23, 5 }
0x2edf   :  { %v9169_v38 = vsel %vm1139_vm6, %v9168_v61, %v9167_v57 }
0x2ee0   :  { %v9171_v25 = vsel %vm1142_vm7, %v9170_v50, %v9169_v38  ;;  %v13416_v50 = vld [vmem:[%s16402_s2] sm:$0x1f]  }
0x2ee1   :  { %v9173_v47 = vsel %vm1873_vm11, %v9171_v25, 0.0  ;;  %v9752_v38 = vsel %vm586_vm2, %v13416_v50, 0  ;;  %v13417_v25 = vld [vmem:[%s16402_s2 + $0x8] sm:$0x1f]  }
0x2ee2   :  { %9174 = vadd.xlane.f32.xlu0 %v9173_v47  ;;  %13056 = vmatpush3.bf16.msra.mxu0 %v9752_v38  ;;  %v9803_v47 = vsel %vm586_vm2, %v13417_v25, 0 }
0x2ee3   :  { %13067 = vmatprep.subr.bf16.mxu0 %v13896_v1  ;;  %13062 = vmatpush3.bf16.msra.mxu1 %v9803_v47 }
0x2ee4   :  { %13073 = vmatprep.subr.bf16.mxu1 %v13896_v1 }
0x2f6f   :  { %v9175_v8 = vpop.xlane.xlu0 %9174 }
0x2f70   :  { %v9177_v18 = vrot.slane %v9175_v8, 1  ;;  %v9178_v33 = vrot.slane %v9175_v8, 2  ;;  %v9179_v16 = vrot.slane %v9175_v8, 3  ;;  %13726 = vrcp.f32 %v9175_v8 }
0x2f72   :  { %13728 = vrcp.f32 %v9177_v18 }
0x2f73   :  { %13730 = vrcp.f32 %v9178_v33 }
0x2f74   :  { %13732 = vrcp.f32 %v9179_v16 }
0x2f7a   :  { %v13727_v26 = vpop.eup %13726 }
0x2f7b   :  { %v9185_v39 = vmul.f32 %v13727_v26, %v13719_v7 }
0x2f7c   :  { %v13729_v27 = vpop.eup %13728 }
0x2f7d   :  { %v13731_v30 = vpop.eup %13730  ;;  %v9187_v63 = vmul.f32 %v13729_v27, %v13721_v60 }
0x2f7e   :  { %v13733_v43 = vpop.eup %13732  ;;  %v9189_v44 = vmul.f32 %v13731_v30, %v13723_v17 }
0x2f7f   :  { %v9191_v0 = vmul.f32 %v13733_v43, %v13725_v23  ;;  %v9196_v52 = vrot.slane %v9187_v63, 7  ;;  %v13418_v43 = vld [vmem:[%s16402_s2 + $0x10] sm:$0x1f]  }
0x2f80   :  { %v9198_v54 = vrot.slane %v9189_v44, 6 }
0x2f81   :  { %v9200_v5 = vrot.slane %v9191_v0, 5  ;;  %v9197_v51 = vsel %vm1136_vm5, %v9196_v52, %v9185_v39  ;;  %v13419_v0 = vld [vmem:[%s16402_s2 + $0x18] sm:$0x1f]  }
0x2f82   :  { %v9199_v12 = vsel %vm1139_vm6, %v9198_v54, %v9197_v51  ;;  %v9854_v54 = vsel %vm586_vm2, %v13418_v43, 0 }
0x2f83   :  { %v9201_v37 = vsel %vm1142_vm7, %v9200_v5, %v9199_v12 }
0x2f84   :  { %v9203_v34 = vsel %vm1873_vm11, %v9201_v37, 0.0 }
0x2f85   :  { %v9204_v3 = vrot.slane %v9203_v34, 4 }
0x2f87   :  { %v9205_v49 = vadd.f32 %v9204_v3, %v9203_v34  ;;  %v13838_v34 = vld [vmem:[%s16401_s1] sm:$0xff]   ;;  %v13839_v3 = vld [vmem:[%s16401_s1 + $0x10] sm:$0xff]  }
0x2f89   :  { %v9206_v45 = vrot.slane %v9205_v49, 2 }
0x2f8b   :  { %v9207_v9 = vadd.f32 %v9206_v45, %v9205_v49  ;;  %v13840_v49 = vld [vmem:[%s16401_s1 + $0x8] sm:$0xff]   ;;  %v13841_v45 = vld [vmem:[%s16401_s1 + $0x18] sm:$0xff]  }
0x2f8d   :  { %v9208_v53 = vrot.slane %v9207_v9, 1 }
0x2f8f   :  { %v9209_v55 = vadd.f32 %v9208_v53, %v9207_v9 }
0x2f91   :  { %v9210_v56 = vmul.f32 0.25, %v9209_v55 }
0x2f93   :  { %13734 = vlog2.f32 %v9210_v56 }
0x2f9d   :  { %v13735_v58 = vpop.eup %13734 }
0x2f9e   :  { %v9212_v59 = vmul.f32 0.6931472, %v13735_v58 }
0x2fa0   :  { %v9227_v32 = vsel %vm1949_vm12, %v9212_v59, -inf  ;;  %9213 = vst.msk [vmem:[#allocation2 + $0x4] sm:$0x1] %vm1949_vm12, %v9212_v59 }
0x2fa1   :  { %9228 = vmax.xlane.f32.xlu1 %v9227_v32 }
0x302e   :  { %v9229_v28 = vpop.xlane.xlu1 %9228 }
0x302f   :  { %vm9230_vm15 = vcmp.ge.f32.partialorder %v9212_v59, %v9229_v28  ;;  %v13842_v59 = vld [vmem:[%s16405_s5] sm:$0xf] }
0x3030   :  { %v9231_v10 = vsel %vm9230_vm15, %v13998_v11, 10 }
0x3031   :  { %v9232_v7 = vsel %vm1949_vm12, %v9231_v10, 2147483647 }
0x3032   :  { %v9234_v60 = vshra.s32 %v9232_v7, 16  ;;  %v9233_v41 = vand.u32 65535, %v9232_v7 }
0x3034   :  { %v9236_v17 = vcvt.s32.f32 %v9234_v60  ;;  %v9235_v61 = vcvt.s32.f32 %v9233_v41 }
0x3036   :  { %9237 = vmin.xlane.f32.xlu0 %v9236_v17 }
0x30c3   :  { %v9238_v23 = vpop.xlane.xlu0 %9237 }
0x30c4   :  { %vm9239_vm3 = vcmp.eq.f32.partialorder %v9236_v17, %v9238_v23  ;;  %v9244_v8 = vcvt.f32.s32 %v9238_v23 }
0x30c5   :  { %v9240_v57 = vsel %vm9239_vm3, %v9235_v61, inf }
0x30c6   :  { %9241 = vmin.xlane.f32.xlu1 %v9240_v57  ;;  %v9245_v33 = vshll.u32 %v9244_v8, 16 }
0x3153   :  { %v9242_v18 = vpop.xlane.xlu1 %9241 }
0x3154   :  { %v9243_v16 = vcvt.f32.s32 %v9242_v18 }
0x3156   :  { %v9246_v26 = vadd.s32 %v9245_v33, %v9243_v16 }
0x3158   :  { %vm9247_vm9 = vcmp.eq.s32.totalorder %v13998_v11, %v9246_v26 }
0x3159   :  { %v11426_v27 = vsel %vm9247_vm9, 1.0, %v13896_v1 }
0x315a   :  { %v9701_v30 = vrot.slane %v11426_v27, %v14517_v22  ;;  %v9905_v22 = vsel %vm586_vm2, %v13419_v0, 0 }
0x315c   :  { %v9709_v63 = vrot.slane %v9701_v30, %v14063_v35 }
0x315e   :  { %v9710_v44 = vcombine.high %v9709_v63, %v9709_v63  ;;  %v9717_v39 = vrot.slane %v9709_v63, %v14063_v35 }
0x3160   :  { %v9724_v52 = vrot.slane %v9710_v44, %v14063_v35  ;;  %v9731_v11 = vpack.c.bf16 %v9717_v39, %v9717_v39  ;;  %v9725_v51 = vcombine.high %v9717_v39, %v9717_v39 }
0x3162   :  { %v9732_v5 = vpack.c.bf16 %v9724_v52, %v9724_v52  ;;  %13058 = vmatmul.mubr.msk.bf16.vlgmr.msra.gmra.mrb[40].mxu0 %vm582_vm4, %v9731_v11  ;;  %v9726_v35 = vcombine.high %v9724_v52, %v9724_v52  ;;  %v9733_v12 = vpack.c.bf16 %v9725_v51, %v9725_v51 }
0x3163   :  { %13068 = vmatpush3.bf16.msra.mxu0 %v9854_v54  ;;  %13069 = vmatprep.mubr.msk.bf16.mxu0 %vm13897_vm0, %v13896_v1 }
0x3164   :  { %13064 = vmatmul.mubr.msk.bf16.vlgmr.msra.gmra.mrb[40].mxu1 %vm582_vm4, %v9732_v5  ;;  %13079 = vmatprep.subr.bf16.mxu0 %v13896_v1  ;;  %v9734_v37 = vpack.c.bf16 %v9726_v35, %v9726_v35 }
0x3165   :  { %13074 = vmatpush3.bf16.msra.mxu1 %v9905_v22  ;;  %13075 = vmatprep.mubr.msk.bf16.mxu1 %vm13897_vm0, %v13896_v1 }
0x3166   :  { %13087 = vmatprep.subr.bf16.mxu1 %v13896_v1 }
0x316a   :  { %13070 = vmatmul.mubr.msk.bf16.vlgmr.msra.gmra.mrb[44].mxu0 %vm582_vm4, %v9733_v12 }
0x316b   :  { %13080 = vmatpush3.bf16.msra.mxu0 %v13838_v34  ;;  %13083 = vmatprep.mubr.msk.bf16.mxu0 %vm13897_vm0, %v13896_v1 }
0x316c   :  { %13076 = vmatmul.mubr.msk.bf16.vlgmr.msra.gmra.mrb[44].mxu1 %vm582_vm4, %v9734_v37  ;;  %13081 = vmatprep.subr.bf16.mxu0 %v13896_v1 }
0x316d   :  { %13088 = vmatpush3.bf16.msra.mxu1 %v13839_v3  ;;  %13091 = vmatprep.mubr.msk.bf16.mxu1 %vm13897_vm0, %v13896_v1 }
0x316e   :  { %13089 = vmatprep.subr.bf16.mxu1 %v13896_v1 }
0x316f   :  { %13082 = vmatpush3.bf16.msra.mxu0 %v13840_v49 }
0x3170   :  { %13095 = vmatprep.subr.bf16.mxu0 %v13896_v1 }
0x3171   :  { %13090 = vmatpush3.bf16.msra.mxu1 %v13841_v45 }
0x3172   :  { %13103 = vmatprep.subr.bf16.mxu1 %v13896_v1 }
0x3235   :  { %v9788_v9 = vpop.f32.mrb[40].mxu0 }
0x3236   :  { %v9947_v53 = vadd.f32 %v9788_v9, %v16092_v19  ;;  %v13059_v55 = vpop.f32.mrb[41].mxu0 }
0x3237   :  { %v9791_v56 = vpop.f32.mrb[42].mxu0  ;;  %v9839_v58 = vpop.f32.mrb[40].mxu1 }
0x3238   :  { %v9951_v32 = vadd.f32 %v13842_v59, %v9947_v53  ;;  %v9948_v28 = vadd.f32 %v9839_v58, %v16094_v48  ;;  %v13060_v10 = vpop.f32.mrb[43].mxu0  ;;  %v13065_v7 = vpop.f32.mrb[41].mxu1 }
0x3239   :  { %v9842_v60 = vpop.f32.mrb[42].mxu1 }
0x323a   :  { %13736 = vtanh.f32 %v9951_v32  ;;  %v9952_v17 = vadd.f32 %v9948_v28, %v14111_v31  ;;  %v13066_v41 = vpop.f32.mrb[43].mxu1 }
0x323c   :  { %13738 = vtanh.f32 %v9952_v17  ;;  %v11460_v26 = vmul.f32 -1.442695, %v9952_v17 }
0x323d   :  { %v9890_v23 = vpop.f32.mrb[44].mxu0 }
0x323e   :  { %v9949_v19 = vadd.f32 %v9890_v23, %v16096_v20  ;;  %v13071_v61 = vpop.f32.mrb[45].mxu0 }
0x323f   :  { %v9893_v57 = vpop.f32.mrb[46].mxu0  ;;  %v9941_v50 = vpop.f32.mrb[44].mxu1 }
0x3240   :  { %v9953_v38 = vadd.f32 %v9949_v19, %v14114_v42  ;;  %v9950_v25 = vadd.f32 %v9941_v50, %v16098_v40  ;;  %v13072_v47 = vpop.f32.mrb[47].mxu0  ;;  %v13077_v48 = vpop.f32.mrb[45].mxu1  ;;  %v11459_v40 = vmul.f32 -1.442695, %v9951_v32 }
0x3241   :  { %v9944_v8 = vpop.f32.mrb[46].mxu1 }
0x3242   :  { %13740 = vtanh.f32 %v9953_v38  ;;  %v9954_v18 = vadd.f32 %v9950_v25, %v14116_v46  ;;  %v13078_v33 = vpop.f32.mrb[47].mxu1  ;;  %v11461_v27 = vmul.f32 -1.442695, %v9953_v38 }
0x3244   :  { %v13737_v31 = vpop.eup %13736  ;;  %13742 = vtanh.f32 %v9954_v18  ;;  %v11462_v46 = vmul.f32 -1.442695, %v9954_v18 }
0x3245   :  { %9991 = vrot.lane.b32.xlu0 %v13737_v31, %s13900_s23  ;;  %13744 = vpow2.f32 %v11459_v40  ;;  %v13845_v40 = vld [vmem:[%s16401_s1 + $0x28] sm:$0xff]  }
0x3246   :  { %v13739_v16 = vpop.eup %13738  ;;  %13746 = vpow2.f32 %v11460_v26 }
0x3247   :  { %9993 = vrot.lane.b32.xlu1 %v13739_v16, %s13900_s23  ;;  %13748 = vpow2.f32 %v11461_v27  ;;  %v13843_v16 = vld [vmem:[%s16401_s1 + $0x20] sm:$0xff]   ;;  %v13846_v27 = vld [vmem:[%s16401_s1 + $0x38] sm:$0xff]  }
0x3248   :  { %13750 = vpow2.f32 %v11462_v46 }
0x324c   :  { %v13741_v20 = vpop.eup %13740 }
0x324d   :  { %9995 = vrot.lane.b32.xlu1 %v13741_v20, %s13900_s23 }
0x324e   :  { %v13743_v42 = vpop.eup %13742 }
0x324f   :  { %9997 = vrot.lane.b32.xlu0 %v13743_v42, %s13900_s23  ;;  %v13745_v30 = vpop.eup %13744  ;;  %v13844_v42 = vld [vmem:[%s16401_s1 + $0x30] sm:$0xff]  }
0x3250   :  { %v13747_v63 = vpop.eup %13746  ;;  %v9967_v43 = vadd.f32 1.0, %v13745_v30 }
0x3251   :  { %v9968_v44 = vadd.f32 1.0, %v13747_v63  ;;  %v13749_v39 = vpop.eup %13748 }
0x3252   :  { %13752 = vrcp.f32 %v9967_v43  ;;  %v13751_v0 = vpop.eup %13750  ;;  %v9969_v52 = vadd.f32 1.0, %v13749_v39 }
0x3253   :  { %13754 = vrcp.f32 %v9968_v44  ;;  %v9970_v11 = vadd.f32 1.0, %v13751_v0 }
0x3254   :  { %13756 = vrcp.f32 %v9969_v52 }
0x3255   :  { %13758 = vrcp.f32 %v9970_v11 }
0x325c   :  { %v13753_v54 = vpop.eup %13752 }
0x325d   :  { %v13755_v51 = vpop.eup %13754  ;;  %v9983_v53 = vmul.f32 %v13753_v54, %v15784_v36 }
0x325e   :  { %v13757_v37 = vpop.eup %13756  ;;  %v9984_v58 = vmul.f32 %v13755_v51, %v15788_v14 }
0x325f   :  { %v13759_v49 = vpop.eup %13758  ;;  %v9985_v28 = vmul.f32 %v13757_v37, %v15792_v62 }
0x3260   :  { %v9986_v60 = vmul.f32 %v13759_v49, %v15796_v2 }
0x32b7   :  { %v9992_v5 = vpop.permute.xlu0 %9991 }
0x32b8   :  { %v10003_v22 = vmul.f32 %v13753_v54, %v9992_v5 }
0x32b9   :  { %v9994_v35 = vpop.permute.xlu1 %9993 }
0x32ba   :  { %10011 = vrot.lane.b32.xlu1 %v10003_v22, %s13901_s24  ;;  %v10004_v12 = vmul.f32 %v13755_v51, %v9994_v35 }
0x32bc   :  { %10013 = vrot.lane.b32.xlu0 %v10004_v12, %s13901_s24 }
0x32bf   :  { %v9996_v34 = vpop.permute.xlu1 %9995 }
0x32c0   :  { %v10005_v3 = vmul.f32 %v13757_v37, %v9996_v34 }
0x32c1   :  { %v9998_v45 = vpop.permute.xlu0 %9997 }
0x32c2   :  { %10015 = vrot.lane.b32.xlu1 %v10005_v3, %s13901_s24  ;;  %v10006_v9 = vmul.f32 %v13759_v49, %v9998_v45 }
0x32c4   :  { %10017 = vrot.lane.b32.xlu0 %v10006_v9, %s13901_s24 }
0x332c   :  { %v10012_v55 = vpop.permute.xlu1 %10011 }
0x332d   :  { %v10023_v56 = vadd.f32 %v10012_v55, %v9983_v53 }
0x332e   :  { %v10014_v59 = vpop.permute.xlu0 %10013 }
0x332f   :  { %13760 = vtanh.f32 %v10023_v56  ;;  %v10024_v32 = vadd.f32 %v10014_v59, %v9984_v58 }
0x3331   :  { %13762 = vtanh.f32 %v10024_v32 }
0x3334   :  { %v10016_v10 = vpop.permute.xlu1 %10015 }
0x3335   :  { %v10025_v7 = vadd.f32 %v10016_v10, %v9985_v28 }
0x3336   :  { %v10018_v17 = vpop.permute.xlu0 %10017 }
0x3337   :  { %13764 = vtanh.f32 %v10025_v7  ;;  %v10026_v41 = vadd.f32 %v10018_v17, %v9986_v60 }
0x3339   :  { %v13761_v23 = vpop.eup %13760  ;;  %13766 = vtanh.f32 %v10026_v41 }
0x333a   :  { %10035 = vrot.lane.b32.xlu1 %v13761_v23, %s13900_s23 }
0x333b   :  { %v13763_v36 = vpop.eup %13762 }
0x333c   :  { %10037 = vrot.lane.b32.xlu0 %v13763_v36, %s13900_s23 }
0x3341   :  { %v13765_v14 = vpop.eup %13764 }
0x3342   :  { %10039 = vrot.lane.b32.xlu1 %v13765_v14, %s13900_s23 }
0x3343   :  { %v13767_v19 = vpop.eup %13766 }
0x3344   :  { %10041 = vrot.lane.b32.xlu0 %v13767_v19, %s13900_s23 }
0x33ac   :  { %v10036_v62 = vpop.permute.xlu1 %10035 }
0x33ad   :  { %v10047_v61 = vmul.f32 %v13753_v54, %v10036_v62 }
0x33ae   :  { %v10038_v2 = vpop.permute.xlu0 %10037 }
0x33af   :  { %v10051_v57 = vpack.c.bf16 %v10047_v61, %v10047_v61  ;;  %v10048_v50 = vmul.f32 %v13755_v51, %v10038_v2 }
0x33b1   :  { %10056 = vrot.lane.b32.xlu1 %v10051_v57, %s13901_s24  ;;  %v10052_v38 = vpack.c.bf16 %v10048_v50, %v10048_v50 }
0x33b3   :  { %10102 = vrot.lane.b32.xlu0 %v10052_v38, %s13901_s24 }
0x33b4   :  { %v10040_v25 = vpop.permute.xlu1 %10039 }
0x33b5   :  { %v10049_v47 = vmul.f32 %v13757_v37, %v10040_v25 }
0x33b6   :  { %v10042_v8 = vpop.permute.xlu0 %10041 }
0x33b7   :  { %v10053_v48 = vpack.c.bf16 %v10049_v47, %v10049_v47  ;;  %v10050_v18 = vmul.f32 %v13759_v49, %v10042_v8 }
0x33b9   :  { %10148 = vrot.lane.b32.xlu1 %v10053_v48, %s13901_s24  ;;  %v10054_v33 = vpack.c.bf16 %v10050_v18, %v10050_v18 }
0x33bb   :  { %10194 = vrot.lane.b32.xlu0 %v10054_v33, %s13901_s24 }
0x3423   :  { %v16197_v31 = vpop.permute.xlu1 %10056 }
0x3424   :  { %13084 = vmatmul.mubr.msk.bf16.vlgmr.msra.gmra.mrb[48].mxu0 %vm116_vm1, %v16197_v31 }
0x3425   :  { %13096 = vmatpush3.bf16.msra.mxu0 %v13843_v16  ;;  %13099 = vmatprep.mubr.msk.bf16.mxu0 %vm13897_vm0, %v13896_v1  ;;  %v16206_v20 = vpop.permute.xlu0 %10102 }
0x3426   :  { %13097 = vmatprep.subr.bf16.mxu0 %v13896_v1  ;;  %13092 = vmatmul.mubr.msk.bf16.vlgmr.msra.gmra.mrb[48].mxu1 %vm116_vm1, %v16206_v20 }
0x3427   :  { %13104 = vmatpush3.bf16.msra.mxu1 %v13844_v42  ;;  %13107 = vmatprep.mubr.msk.bf16.mxu1 %vm13897_vm0, %v13896_v1 }
0x3428   :  { %13105 = vmatprep.subr.bf16.mxu1 %v13896_v1 }
0x3429   :  { %13098 = vmatpush3.bf16.msra.mxu0 %v13845_v40 }
0x342a   :  { %13111 = vmatprep.subr.bf16.mxu0 %v13896_v1 }
0x342b   :  { %v16221_v26 = vpop.permute.xlu1 %10148  ;;  %13106 = vmatpush3.bf16.msra.mxu1 %v13846_v27 }
0x342c   :  { %13100 = vmatmul.mubr.msk.bf16.vlgmr.msra.gmra.mrb[52].mxu0 %vm116_vm1, %v16221_v26  ;;  %13117 = vmatprep.subr.bf16.mxu1 %v13896_v1 }
0x342d   :  { %13112 = vmatpush3.bf16.msra.mxu0 %v14222_v4  ;;  %v16230_v46 = vpop.permute.xlu0 %10194  ;;  %13113 = vmatprep.mubr.msk.bf16.mxu0 %vm13897_vm0, %v13896_v1 }
0x342e   :  { %13123 = vmatprep.subr.bf16.mxu0 %v13896_v1  ;;  %13108 = vmatmul.mubr.msk.bf16.vlgmr.msra.gmra.mrb[52].mxu1 %vm116_vm1, %v16230_v46 }
0x342f   :  { %13118 = vmatpush3.bf16.msra.mxu1 %v14228_v6  ;;  %13119 = vmatprep.mubr.msk.bf16.mxu1 %vm13897_vm0, %v13896_v1 }
0x3430   :  { %13129 = vmatprep.subr.bf16.mxu1 %v13896_v1 }
0x34f7   :  { %v10095_v4 = vpop.f32.mrb[48].mxu0 }
0x34f8   :  { %v13085_v30 = vpop.f32.mrb[49].mxu0 }
0x34f9   :  { %v10098_v63 = vpop.f32.mrb[50].mxu0  ;;  %v10141_v43 = vpop.f32.mrb[48].mxu1 }
0x34fa   :  { %v13086_v44 = vpop.f32.mrb[51].mxu0  ;;  %v10243_v39 = vrot.slane %v10141_v43, 7  ;;  %v13093_v0 = vpop.f32.mrb[49].mxu1 }
0x34fb   :  { %v10144_v52 = vpop.f32.mrb[50].mxu1 }
0x34fc   :  { %v10244_v11 = vsel %vm1136_vm5, %v10243_v39, %v10095_v4  ;;  %v13094_v54 = vpop.f32.mrb[51].mxu1 }
0x34ff   :  { %v10187_v5 = vpop.f32.mrb[52].mxu0 }
0x3500   :  { %v10245_v22 = vrot.slane %v10187_v5, 6  ;;  %v13101_v51 = vpop.f32.mrb[53].mxu0 }
0x3501   :  { %v10190_v6 = vpop.f32.mrb[54].mxu0  ;;  %v10233_v35 = vpop.f32.mrb[52].mxu1  ;;  %v13423_v51 = vld [vmem:[%s16407_s7 + $0x18] sm:$0xff]  }
0x3502   :  { %v13102_v12 = vpop.f32.mrb[55].mxu0  ;;  %v10246_v37 = vsel %vm1139_vm6, %v10245_v22, %v10244_v11  ;;  %v10247_v34 = vrot.slane %v10233_v35, 5  ;;  %v13109_v3 = vpop.f32.mrb[53].mxu1  ;;  %v13420_v11 = vld [vmem:[%s16407_s7] sm:$0xff]   ;;  %v13422_v22 = vld [vmem:[%s16407_s7 + $0x8] sm:$0xff]  }
0x3503   :  { %v10236_v49 = vpop.f32.mrb[54].mxu1 }
0x3504   :  { %v13110_v45 = vpop.f32.mrb[55].mxu1  ;;  %v10248_v9 = vsel %vm1142_vm7, %v10247_v34, %v10246_v37  ;;  %v13425_v49 = vld [vmem:[%s16407_s7 + $0x30] sm:$0xff]  }
0x3505   :  { %v10250_v53 = vsel %vm1145_vm8, %v10248_v9, -inf }
0x3506   :  { %10251 = vmax.xlane.f32.xlu1 %v10250_v53 }
0x3593   :  { %v10252_v55 = vpop.xlane.xlu1 %10251 }
0x3594   :  { %v10254_v56 = vrot.slane %v10252_v55, 1  ;;  %v10255_v58 = vrot.slane %v10252_v55, 2  ;;  %v10256_v59 = vrot.slane %v10252_v55, 3  ;;  %v10261_v32 = vsub.f32 %v10095_v4, %v10252_v55 }
0x3596   :  { %v10262_v28 = vsub.f32 %v10141_v43, %v10254_v56  ;;  %v10263_v10 = vsub.f32 %v10187_v5, %v10255_v58  ;;  %v10264_v7 = vsub.f32 %v10233_v35, %v10256_v59  ;;  %v10265_v60 = vmul.f32 1.442695, %v10261_v32  ;;  %v13424_v35 = vld [vmem:[%s16407_s7 + $0x20] sm:$0xff]   ;;  %v13426_v56 = vld [vmem:[%s16407_s7 + $0x28] sm:$0xff]   ;;  %v13427_v59 = vld [vmem:[%s16407_s7 + $0x38] sm:$0xff]  }
0x3598   :  { %v10267_v17 = vmul.f32 1.442695, %v10262_v28  ;;  %v10269_v41 = vmul.f32 1.442695, %v10263_v10  ;;  %v10271_v23 = vmul.f32 1.442695, %v10264_v7  ;;  %13768 = vpow2.f32 %v10265_v60 }
0x3599   :  { %v13428_v28 = vld [vmem:[%s16406_s6] sm:$0xff]  }
0x359a   :  { %13770 = vpow2.f32 %v10267_v17 }
0x359b   :  { %13772 = vpow2.f32 %v10269_v41  ;;  %v13429_v41 = vld [vmem:[%s16406_s6 + $0x10] sm:$0xff]  }
0x359c   :  { %13774 = vpow2.f32 %v10271_v23 }
0x35a2   :  { %v13769_v36 = vpop.eup %13768 }
0x35a4   :  { %v13771_v14 = vpop.eup %13770 }
0x35a5   :  { %v13773_v19 = vpop.eup %13772  ;;  %v10277_v62 = vrot.slane %v13771_v14, 7 }
0x35a6   :  { %v13775_v61 = vpop.eup %13774  ;;  %v10279_v57 = vrot.slane %v13773_v19, 6 }
0x35a7   :  { %v10278_v2 = vsel %vm1136_vm5, %v10277_v62, %v13769_v36  ;;  %v10281_v50 = vrot.slane %v13775_v61, 5  ;;  %v13430_v62 = vld [vmem:[%s16406_s6 + $0x8] sm:$0xff]  }
0x35a8   :  { %v10280_v38 = vsel %vm1139_vm6, %v10279_v57, %v10278_v2  ;;  %v13431_v57 = vld [vmem:[%s16406_s6 + $0x18] sm:$0xff]   ;;  %v13432_v2 = vld [vmem:[%s16406_s6 + $0x20] sm:$0xff]  }
0x35a9   :  { %v10282_v25 = vsel %vm1142_vm7, %v10281_v50, %v10280_v38  ;;  %v13433_v50 = vld [vmem:[%s16406_s6 + $0x30] sm:$0xff]   ;;  %v13434_v38 = vld [vmem:[%s16406_s6 + $0x28] sm:$0xff]  }
0x35aa   :  { %v10284_v47 = vsel %vm1145_vm8, %v10282_v25, 0.0 }
0x35ab   :  { %10285 = vadd.xlane.f32.xlu0 %v10284_v47 }
0x3638   :  { %v10286_v48 = vpop.xlane.xlu0 %10285 }
0x3639   :  { %13776 = vrcp.f32 %v10286_v48 }
0x3643   :  { %v13777_v8 = vpop.eup %13776 }
0x3644   :  { %v10296_v18 = vmul.f32 %v13777_v8, %v13769_v36  ;;  %v10289_v33 = vrot.slane %v13777_v8, 1  ;;  %v10290_v16 = vrot.slane %v13777_v8, 2  ;;  %v10291_v42 = vrot.slane %v13777_v8, 3 }
0x3646   :  { %v10300_v40 = vpack.c.bf16 %v10296_v18, %v10296_v18  ;;  %v10297_v27 = vmul.f32 %v13771_v14, %v10289_v33  ;;  %v10298_v4 = vmul.f32 %v13773_v19, %v10290_v16  ;;  %v10299_v30 = vmul.f32 %v13775_v61, %v10291_v42 }
0x3648   :  { %13114 = vmatmul.mubr.msk.bf16.vlgmr.msra.gmra.mrb[56].mxu0 %vm1200_vm10, %v10300_v40  ;;  %v10301_v63 = vpack.c.bf16 %v10297_v27, %v10297_v27  ;;  %v11034_v43 = vrot.slane %v10297_v27, 7  ;;  %v11036_v44 = vrot.slane %v10298_v4, 6  ;;  %v11038_v0 = vrot.slane %v10299_v30, 5 }
0x3649   :  { %13124 = vmatpush3.bf16.msra.mxu0 %v14238_v15  ;;  %13125 = vmatprep.mubr.msk.bf16.mxu0 %vm13897_vm0, %v13896_v1  ;;  %v10302_v54 = vpack.c.bf16 %v10298_v4, %v10298_v4  ;;  %v10303_v5 = vpack.c.bf16 %v10299_v30, %v10299_v30 }
0x364a   :  { %13120 = vmatmul.mubr.msk.bf16.vlgmr.msra.gmra.mrb[56].mxu1 %vm1200_vm10, %v10301_v63  ;;  %13135 = vmatprep.subr.bf16.mxu0 %v13896_v1  ;;  %v11035_v39 = vsel %vm1136_vm5, %v11034_v43, %v10296_v18 }
0x364b   :  { %13130 = vmatpush3.bf16.msra.mxu1 %v14245_v24  ;;  %13131 = vmatprep.mubr.msk.bf16.mxu1 %vm13897_vm0, %v13896_v1  ;;  %v11037_v52 = vsel %vm1139_vm6, %v11036_v44, %v11035_v39  ;;  %v13421_v24 = vld [vmem:[%s16407_s7 + $0x10] sm:$0xff]  }
0x364c   :  { %13143 = vmatprep.subr.bf16.mxu1 %v13896_v1  ;;  %v11039_v15 = vsel %vm1142_vm7, %v11038_v0, %v11037_v52 }
0x364d   :  { %11042 = vst.msk [vmem:[#allocation4 + $0x14] sm:$0xf] %vm1145_vm8, %v11039_v15 }
0x3650   :  { %13126 = vmatmul.mubr.msk.bf16.vlgmr.msra.gmra.mrb[60].mxu0 %vm1200_vm10, %v10302_v54 }
0x3651   :  { %13136 = vmatpush3.bf16.msra.mxu0 %v13420_v11  ;;  %13139 = vmatprep.mubr.msk.bf16.mxu0 %vm13897_vm0, %v13896_v1 }
0x3652   :  { %13132 = vmatmul.mubr.msk.bf16.vlgmr.msra.gmra.mrb[60].mxu1 %vm1200_vm10, %v10303_v5  ;;  %13137 = vmatprep.subr.bf16.mxu0 %v13896_v1 }
0x3653   :  { %13144 = vmatpush3.bf16.msra.mxu1 %v13421_v24  ;;  %13147 = vmatprep.mubr.msk.bf16.mxu1 %vm13897_vm0, %v13896_v1 }
0x3654   :  { %13145 = vmatprep.subr.bf16.mxu1 %v13896_v1 }
0x3655   :  { %13138 = vmatpush3.bf16.msra.mxu0 %v13422_v22 }
0x3656   :  { %13151 = vmatprep.subr.bf16.mxu0 %v13896_v1 }
0x3657   :  { %13146 = vmatpush3.bf16.msra.mxu1 %v13423_v51 }
0x3658   :  { %13159 = vmatprep.subr.bf16.mxu1 %v13896_v1 }
0x371b   :  { %v10341_v6 = vpop.f32.mrb[56].mxu0 }
0x371c   :  { %v10492_v12 = vpack.c.bf16 %v10341_v6, %v10341_v6  ;;  %v13115_v37 = vpop.f32.mrb[57].mxu0 }
0x371d   :  { %v10344_v34 = vpop.f32.mrb[58].mxu0  ;;  %v10384_v3 = vpop.f32.mrb[56].mxu1 }
0x371e   :  { %v10493_v45 = vpack.c.bf16 %v10384_v3, %v10384_v3  ;;  %v13116_v9 = vpop.f32.mrb[59].mxu0  ;;  %v13121_v53 = vpop.f32.mrb[57].mxu1  ;;  %13140 = vmatmul.mubr.msk.bf16.vlgmr.msra.gmra.mrb[64].mxu0 %vm116_vm1, %v10492_v12 }
0x371f   :  { %v10387_v55 = vpop.f32.mrb[58].mxu1  ;;  %13152 = vmatpush3.bf16.msra.mxu0 %v13424_v35  ;;  %13155 = vmatprep.mubr.msk.bf16.mxu0 %vm13897_vm0, %v13896_v1  ;;  %v13847_v9 = vld [vmem:[%s16408_s8] sm:$0xf]  ;;  %s13902_s8 = smov [#allocation4]  }
0x3720   :  { %v13122_v58 = vpop.f32.mrb[59].mxu1  ;;  %13148 = vmatmul.mubr.msk.bf16.vlgmr.msra.gmra.mrb[64].mxu1 %vm116_vm1, %v10493_v45  ;;  %13153 = vmatprep.subr.bf16.mxu0 %v13896_v1  ;;  %s11058_s2 = sshll.u32 %s13902_s8, 4  ;;  %s11059_s2 = int_to_ptr.vmem [resolvable:$true] %s11058_s2 }
0x3721   :  { %13160 = vmatpush3.bf16.msra.mxu1 %v13425_v49  ;;  %13163 = vmatprep.mubr.msk.bf16.mxu1 %vm13897_vm0, %v13896_v1  ;;  %s13848_s29 = scalar_lea.vmem %s11059_s2, 384  ;;  %p13853_p1 = scmp.lt.s32.totalorder %s11059_s2, %s11059_s2 }
0x3722   :  { %13161 = vmatprep.subr.bf16.mxu1 %v13896_v1  ;;  %p13849_p0 = scmp.ne.s32.totalorder %s11059_s2, %s13848_s29  ;;  %p13854_p2 = scmp.lt.s32.totalorder %s13848_s29, %s13848_s29 }
0x3723   :  { %v10427_v32 = vpop.f32.mrb[60].mxu0  ;;  %13154 = vmatpush3.bf16.msra.mxu0 %v13426_v56 }
0x3724   :  { %v10494_v10 = vpack.c.bf16 %v10427_v32, %v10427_v32  ;;  %v13127_v7 = vpop.f32.mrb[61].mxu0  ;;  %13167 = vmatprep.subr.bf16.mxu0 %v13896_v1  ;;  %p13855_p3 = por %p13854_p2, %p13853_p1 }
0x3725   :  { %v10430_v60 = vpop.f32.mrb[62].mxu0  ;;  %v10470_v17 = vpop.f32.mrb[60].mxu1  ;;  %13162 = vmatpush3.bf16.msra.mxu1 %v13427_v59 }
0x3726   :  { %v10495_v23 = vpack.c.bf16 %v10470_v17, %v10470_v17  ;;  %v13128_v36 = vpop.f32.mrb[63].mxu0  ;;  %v13133_v14 = vpop.f32.mrb[61].mxu1  ;;  %13156 = vmatmul.mubr.msk.bf16.vlgmr.msra.gmra.mrb[68].mxu0 %vm116_vm1, %v10494_v10  ;;  %13175 = vmatprep.subr.bf16.mxu1 %v13896_v1  ;;  %p13856_p4 = pnand %p13855_p3, %p13849_p0 }
0x3727   :  { %v10473_v19 = vpop.f32.mrb[62].mxu1  ;;  %13168 = vmatpush3.bf16.msra.mxu0 %v13428_v28  ;;  %13171 = vmatprep.mubr.msk.bf16.mxu0 %vm13897_vm0, %v13896_v1 }
0x3728   :  { %v13134_v61 = vpop.f32.mrb[63].mxu1  ;;  %13164 = vmatmul.mubr.msk.bf16.vlgmr.msra.gmra.mrb[68].mxu1 %vm116_vm1, %v10495_v23  ;;  %13169 = vmatprep.subr.bf16.mxu0 %v13896_v1 }
0x3729   :  { %13176 = vmatpush3.bf16.msra.mxu1 %v13429_v41  ;;  %13179 = vmatprep.mubr.msk.bf16.mxu1 %vm13897_vm0, %v13896_v1 }
0x372a   :  { %13177 = vmatprep.subr.bf16.mxu1 %v13896_v1 }
0x372b   :  { %13170 = vmatpush3.bf16.msra.mxu0 %v13430_v62 }
0x372c   :  { %13183 = vmatprep.subr.bf16.mxu0 %v13896_v1 }
0x372d   :  { %13178 = vmatpush3.bf16.msra.mxu1 %v13431_v57 }
0x372e   :  { %13172 = vmatmul.mubr.msk.bf16.vlgmr.msra.gmra.mrb[72].mxu0 %vm116_vm1, %v16197_v31  ;;  %13191 = vmatprep.subr.bf16.mxu1 %v13896_v1  ;;  %v13435_v31 = vld [vmem:[%s16406_s6 + $0x38] sm:$0xff]  }
0x372f   :  { %13184 = vmatpush3.bf16.msra.mxu0 %v13432_v2  ;;  %13187 = vmatprep.mubr.msk.bf16.mxu0 %vm13897_vm0, %v13896_v1 }
0x3730   :  { %13180 = vmatmul.mubr.msk.bf16.vlgmr.msra.gmra.mrb[72].mxu1 %vm116_vm1, %v16206_v20  ;;  %13185 = vmatprep.subr.bf16.mxu0 %v13896_v1 }
0x3731   :  { %13192 = vmatpush3.bf16.msra.mxu1 %v13433_v50  ;;  %13195 = vmatprep.mubr.msk.bf16.mxu1 %vm13897_vm0, %v13896_v1 }
0x3732   :  { %13193 = vmatprep.subr.bf16.mxu1 %v13896_v1 }
0x3733   :  { %13186 = vmatpush3.bf16.msra.mxu0 %v13434_v38 }
0x3735   :  { %13194 = vmatpush3.bf16.msra.mxu1 %v13435_v31 }
0x3736   :  { %13188 = vmatmul.mubr.msk.bf16.vlgmr.msra.gmra.mrb[76].mxu0 %vm116_vm1, %v16221_v26 }
0x3738   :  { %13196 = vmatmul.mubr.msk.bf16.vlgmr.msra.gmra.mrb[76].mxu1 %vm116_vm1, %v16230_v46 }
0x37f1   :  { %v10561_v20 = vpop.f32.mrb[64].mxu0 }
0x37f2   :  { %v13141_v25 = vpop.f32.mrb[65].mxu0 }
0x37f3   :  { %v10564_v47 = vpop.f32.mrb[66].mxu0  ;;  %v10616_v48 = vpop.f32.mrb[64].mxu1 }
0x37f4   :  { %v13142_v8 = vpop.f32.mrb[67].mxu0  ;;  %v13149_v18 = vpop.f32.mrb[65].mxu1 }
0x37f5   :  { %v10619_v33 = vpop.f32.mrb[66].mxu1 }
0x37f6   :  { %v13150_v16 = vpop.f32.mrb[67].mxu1 }
0x37f9   :  { %v10671_v42 = vpop.f32.mrb[68].mxu0 }
0x37fa   :  { %v13157_v40 = vpop.f32.mrb[69].mxu0 }
0x37fb   :  { %v10674_v27 = vpop.f32.mrb[70].mxu0  ;;  %v10726_v1 = vpop.f32.mrb[68].mxu1 }
0x37fc   :  { %v13158_v4 = vpop.f32.mrb[71].mxu0  ;;  %v13165_v30 = vpop.f32.mrb[69].mxu1 }
0x37fd   :  { %v10729_v63 = vpop.f32.mrb[70].mxu1 }
0x37fe   :  { %v13166_v43 = vpop.f32.mrb[71].mxu1 }
0x3801   :  { %v10778_v26 = vpop.f32.mrb[72].mxu0 }
0x3802   :  { %v10779_v44 = vadd.f32 %v10778_v26, %v10561_v20  ;;  %v13173_v39 = vpop.f32.mrb[73].mxu0 }
0x3803   :  { %v10781_v46 = vpop.f32.mrb[74].mxu0  ;;  %v10830_v0 = vpop.f32.mrb[72].mxu1 }
0x3804   :  { %v10831_v52 = vadd.f32 %v10830_v0, %v10616_v48  ;;  %v13174_v15 = vpop.f32.mrb[75].mxu0  ;;  %v13181_v11 = vpop.f32.mrb[73].mxu1  ;;  %v10940_v53 = vadd.f32 %v13847_v9, %v10779_v44 }
0x3805   :  { %v10833_v54 = vpop.f32.mrb[74].mxu1 }
0x3806   :  { %v13182_v24 = vpop.f32.mrb[75].mxu1  ;;  %v10941_v5 = vadd.f32 %v10831_v52, %v14469_v13 }
0x3808   :  { %v10948_v35 = vrot.slane %v10941_v5, 7 }
0x3809   :  { %v10882_v22 = vpop.f32.mrb[76].mxu0 }
0x380a   :  { %v10883_v51 = vadd.f32 %v10882_v22, %v10671_v42  ;;  %v13189_v6 = vpop.f32.mrb[77].mxu0  ;;  %v10949_v59 = vsel %vm1136_vm5, %v10948_v35, %v10940_v53 }
0x380b   :  { %v10885_v12 = vpop.f32.mrb[78].mxu0  ;;  %v10934_v37 = vpop.f32.mrb[76].mxu1 }
0x380c   :  { %v10942_v34 = vadd.f32 %v10883_v51, %v14474_v21  ;;  %v10935_v3 = vadd.f32 %v10934_v37, %v10726_v1  ;;  %v13190_v49 = vpop.f32.mrb[79].mxu0  ;;  %v13197_v45 = vpop.f32.mrb[77].mxu1 }
0x380d   :  { %v10937_v55 = vpop.f32.mrb[78].mxu1 }
0x380e   :  { %v10950_v56 = vrot.slane %v10942_v34, 6  ;;  %v10943_v13 = vadd.f32 %v10935_v3, %v14476_v29  ;;  %v13198_v58 = vpop.f32.mrb[79].mxu1 }
0x3810   :  { %v10952_v32 = vrot.slane %v10943_v13, 5  ;;  %v10951_v28 = vsel %vm1139_vm6, %v10950_v56, %v10949_v59 }
0x3812   :  { %v10953_v21 = vsel %vm1142_vm7, %v10952_v32, %v10951_v28 }
0x3813   :  { %v10955_v10 = vsel %vm1873_vm11, %v10953_v21, -inf }
0x3814   :  { %10956 = vmax.xlane.f32.xlu0 %v10955_v10 }
0x38a1   :  { %v10957_v7 = vpop.xlane.xlu0 %10956 }
0x38a2   :  { %v10959_v60 = vrot.slane %v10957_v7, 1  ;;  %v10960_v17 = vrot.slane %v10957_v7, 2  ;;  %v10961_v41 = vrot.slane %v10957_v7, 3  ;;  %v10966_v23 = vsub.f32 %v10940_v53, %v10957_v7 }
0x38a4   :  { %v10967_v36 = vsub.f32 %v10941_v5, %v10959_v60  ;;  %v10968_v14 = vsub.f32 %v10942_v34, %v10960_v17  ;;  %v10969_v19 = vsub.f32 %v10943_v13, %v10961_v41  ;;  %v10970_v29 = vmul.f32 1.442695, %v10966_v23 }
0x38a6   :  { %v10972_v62 = vmul.f32 1.442695, %v10967_v36  ;;  %v10974_v61 = vmul.f32 1.442695, %v10968_v14  ;;  %v10976_v57 = vmul.f32 1.442695, %v10969_v19  ;;  %13778 = vpow2.f32 %v10970_v29 }
0x38a8   :  { %13780 = vpow2.f32 %v10972_v62 }
0x38a9   :  { %13782 = vpow2.f32 %v10974_v61 }
0x38aa   :  { %13784 = vpow2.f32 %v10976_v57 }
0x38b0   :  { %v13779_v2 = vpop.eup %13778 }
0x38b2   :  { %v13781_v50 = vpop.eup %13780 }
0x38b3   :  { %v13783_v38 = vpop.eup %13782  ;;  %v10982_v31 = vrot.slane %v13781_v50, 7 }
0x38b4   :  { %v13785_v20 = vpop.eup %13784  ;;  %v10984_v25 = vrot.slane %v13783_v38, 6 }
0x38b5   :  { %v10983_v47 = vsel %vm1136_vm5, %v10982_v31, %v13779_v2  ;;  %v10986_v48 = vrot.slane %v13785_v20, 5 }
0x38b6   :  { %v10985_v8 = vsel %vm1139_vm6, %v10984_v25, %v10983_v47 }
0x38b7   :  { %v10987_v18 = vsel %vm1142_vm7, %v10986_v48, %v10985_v8 }
0x38b8   :  { %v10989_v33 = vsel %vm1873_vm11, %v10987_v18, 0.0 }
0x38b9   :  { %10990 = vadd.xlane.f32.xlu1 %v10989_v33 }
0x38ba   :  { %13859 = shalt.err (!%p13856_p4)
}
0x38bb   :  { %s13860_s11 = scalar_lea.hbm %s16410_s10, 384 }
0x38bc   :  { %p13861_p5 = scmp.ne.s32.totalorder %s16410_s10, %s13860_s11  ;;  %p13864_p6 = scmp.lt.u32.totalorder %s13860_s11, %s16410_s10 }
0x38be   :  { %p13866_p7 = pnand %p13864_p6, %p13861_p5 }
0x38c0   :  { %13869 = shalt.err (!%p13866_p7)
}
0x38c1   :  { %s13903_s16 = smov 4  }
0x38c2   :  { %11064 = dma.vmem_to_hbm [thread:$0]  %s11059_s2, 384, %s16410_s10, [#allocation5], %s13900_s23, %s13900_s23, %s13903_s16  }
0x38c3   :  { %s13904_s10 = smov [#allocation2]  }
0x38c4   :  { %s11049_s23 = sshll.u32 %s13904_s10, 4  ;;  %s11050_s23 = int_to_ptr.vmem [resolvable:$true] %s11049_s23 }
0x38c5   :  { %s13870_s7 = scalar_lea.vmem %s11050_s23, 128  ;;  %p13875_p9 = scmp.lt.s32.totalorder %s11050_s23, %s11050_s23 }
0x38c6   :  { %p13871_p8 = scmp.ne.s32.totalorder %s11050_s23, %s13870_s7  ;;  %p13876_p10 = scmp.lt.s32.totalorder %s13870_s7, %s13870_s7 }
0x38c8   :  { %p13877_p11 = por %p13876_p10, %p13875_p9 }
0x38ca   :  { %p13878_p12 = pnand %p13877_p11, %p13871_p8 }
0x3946   :  { %v10991_v16 = vpop.xlane.xlu1 %10990 }
0x3947   :  { %v10993_v42 = vrot.slane %v10991_v16, 1  ;;  %v10994_v40 = vrot.slane %v10991_v16, 2  ;;  %v10995_v27 = vrot.slane %v10991_v16, 3  ;;  %13786 = vrcp.f32 %v10991_v16 }
0x3949   :  { %13788 = vrcp.f32 %v10993_v42 }
0x394a   :  { %13790 = vrcp.f32 %v10994_v40 }
0x394b   :  { %13792 = vrcp.f32 %v10995_v27 }
0x3951   :  { %v13787_v1 = vpop.eup %13786 }
0x3952   :  { %v11001_v44 = vmul.f32 %v13787_v1, %v13779_v2 }
0x3953   :  { %v13789_v4 = vpop.eup %13788 }
0x3954   :  { %v13791_v30 = vpop.eup %13790  ;;  %v11003_v63 = vmul.f32 %v13789_v4, %v13781_v50 }
0x3955   :  { %v13793_v43 = vpop.eup %13792  ;;  %v11005_v26 = vmul.f32 %v13791_v30, %v13783_v38 }
0x3956   :  { %v11007_v39 = vmul.f32 %v13793_v43, %v13785_v20  ;;  %v11012_v46 = vrot.slane %v11003_v63, 7 }
0x3957   :  { %v11014_v0 = vrot.slane %v11005_v26, 6 }
0x3958   :  { %v11013_v52 = vsel %vm1136_vm5, %v11012_v46, %v11001_v44  ;;  %v11016_v15 = vrot.slane %v11007_v39, 5 }
0x3959   :  { %v11015_v11 = vsel %vm1139_vm6, %v11014_v0, %v11013_v52 }
0x395a   :  { %v11017_v54 = vsel %vm1142_vm7, %v11016_v15, %v11015_v11 }
0x395b   :  { %v11019_v24 = vsel %vm1873_vm11, %v11017_v54, 0.0 }
0x395c   :  { %v11020_v5 = vrot.slane %v11019_v24, 4 }
0x395e   :  { %v11021_v22 = vadd.f32 %v11020_v5, %v11019_v24 }
0x3960   :  { %v11022_v51 = vrot.slane %v11021_v22, 2 }
0x3962   :  { %v11023_v6 = vadd.f32 %v11022_v51, %v11021_v22 }
0x3964   :  { %v11024_v35 = vrot.slane %v11023_v6, 1 }
0x3966   :  { %v11025_v12 = vadd.f32 %v11024_v35, %v11023_v6 }
0x3968   :  { %v11026_v37 = vmul.f32 0.25, %v11025_v12 }
0x396a   :  { %13794 = vlog2.f32 %v11026_v37 }
0x3974   :  { %v13795_v34 = vpop.eup %13794 }
0x3975   :  { %v11028_v3 = vmul.f32 0.6931472, %v13795_v34 }
0x3977   :  { %11029 = vst.msk [vmem:[#allocation2 + $0x5] sm:$0x1] %vm1949_vm12, %v11028_v3 }
0x3978   :  { %13881 = shalt.err (!%p13878_p12)
}
0x3979   :  { %s13882_s3 = scalar_lea.hbm %s16409_s9, 128 }
0x397a   :  { %p13883_p13 = scmp.ne.s32.totalorder %s16409_s9, %s13882_s3  ;;  %p13886_p0 = scmp.lt.u32.totalorder %s13882_s3, %s16409_s9 }
0x397c   :  { %p13888_p1 = pnand %p13886_p0, %p13883_p13 }
0x397e   :  { %13891 = shalt.err (!%p13888_p1)
}
0x397f   :  { %11052 = dma.vmem_to_hbm [thread:$0]  %s11050_s23, 128, %s16409_s9, [#allocation3]  }
0x3980   :  { %13892 = dma.done.wait [#allocation3], 128  }
0x3981   :  { %13893 = vsyncadd [#allocation3], 4294967168 }
0x3982   :  { %13894 = dma.done.wait [#allocation5], 384  }
0x3983   :  { %13895 = vsyncadd [#allocation5], 4294966912 }
0x3984   :  { %11071 = vsyncpa [#allocation3], 1 }
0x3985   :  { %11072 = vsyncpa [#allocation5], 1 }

</bundles_post_ra>
